<compile_context>
chip_gen: v6e
topology: v6e:2x2x1
jax: 0.10.0
libtpu: 0.0.40
codegen_flags: <defaults>
</compile_context>

<pallas_src>
import jax
import jax.numpy as jnp
from jax import lax
from jax.experimental import pallas as pl
from jax.experimental.pallas import tpu as pltpu


def _round_up(x, m):
    return ((x + m - 1) // m) * m


def _pick_row_tile(R, cap=512):
    """Largest row tile <= cap that divides R exactly (R is a multiple of 8)."""
    if R <= cap:
        return R
    for tr in range(cap, 7, -8):
        if R % tr == 0:
            return tr
    return 8


def _pick_col_tile(N):
    """Lane-dense column tile (N is a multiple of 128)."""
    if N <= 512:
        return N
    for tn in (512, 256, 128):
        if N % tn == 0:
            return tn
    return 128


# --------------------------------------------------------------------------- #
# Kernel 1: gridded, lane-dense matmul + bias  (input projection & vocab fc)
# --------------------------------------------------------------------------- #
def mm_bias_kernel(x_ref, w_ref, b_ref, o_ref):
    o_ref[...] = (jnp.dot(x_ref[...], w_ref[...],
                          preferred_element_type=jnp.float32) + b_ref[...])


def _mm_bias(x, w, b):
    """x: (R, K), w: (K, N), b: (1, N) -> (R, N).  R % 8 == 0, K/N % 128 == 0."""
    R, K = x.shape
    N = w.shape[1]
    tr = _pick_row_tile(R)
    tn = _pick_col_tile(N)
    vmem = 4 * 2 * (tr * K + K * tn + tn + tr * tn) + (2 << 20)
    vmem = int(min(max(vmem, 16 << 20), 64 << 20))
    return pl.pallas_call(
        mm_bias_kernel,
        out_shape=jax.ShapeDtypeStruct((R, N), jnp.float32),
        grid=(R // tr, N // tn),
        in_specs=[pl.BlockSpec((tr, K), lambda i, j: (i, 0)),
                  pl.BlockSpec((K, tn), lambda i, j: (0, j)),
                  pl.BlockSpec((1, tn), lambda i, j: (0, j))],
        out_specs=pl.BlockSpec((tr, tn), lambda i, j: (i, j)),
        compiler_params=pltpu.CompilerParams(
            dimension_semantics=("parallel", "parallel"),
            vmem_limit_bytes=vmem),
    )(x, w, b)


# --------------------------------------------------------------------------- #
# Kernel 2: 2-layer LSTM recurrence (time-major), emits h1 per step
# --------------------------------------------------------------------------- #
def lstm_recurrence_kernel(gx0_ref, whh0_ref, wih1_ref, whh1_ref, b1_ref,
                           h_out_ref):
    """gx0: (T, Bp, 4Hp) = x@W_ih0 + b0; whh0/wih1/whh1: (Hp, 4Hp); b1: (1, 4Hp);
    h_out: (T, Bp, Hp)."""
    T, Bp, G = gx0_ref.shape
    Hp = G // 4

    def gates_to_hc(gates, c):
        # PyTorch gate order [i, f, g, o]; padded gate lanes stay harmless (g=0).
        i = jax.nn.sigmoid(gates[:, 0 * Hp:1 * Hp])
        f = jax.nn.sigmoid(gates[:, 1 * Hp:2 * Hp])
        g = jnp.tanh(gates[:, 2 * Hp:3 * Hp])
        o = jax.nn.sigmoid(gates[:, 3 * Hp:4 * Hp])
        c_new = f * c + i * g
        h_new = o * jnp.tanh(c_new)
        return h_new, c_new

    def step(t, carry):
        h0, c0, h1, c1 = carry
        # Both recurrent dots depend only on previous-step state: issue them
        # back-to-back so the MXU pipelines while the VPU/EUP do the gates.
        rec0 = jnp.dot(h0, whh0_ref[...], preferred_element_type=jnp.float32)
        rec1 = jnp.dot(h1, whh1_ref[...], preferred_element_type=jnp.float32)
        # layer 0: x-part already folded into gx0 (hoisted batched matmul)
        h0n, c0n = gates_to_hc(gx0_ref[t] + rec0, c0)
        # layer 1
        gates1 = (jnp.dot(h0n, wih1_ref[...], preferred_element_type=jnp.float32)
                  + rec1 + b1_ref[...])
        h1n, c1n = gates_to_hc(gates1, c1)
        h_out_ref[t] = h1n
        return (h0n, c0n, h1n, c1n)

    z = jnp.zeros((Bp, Hp), jnp.float32)        # init_hidden: zero state
    lax.fori_loop(0, T, step, (z, z, z, z), unroll=True if T <= 16 else 4)


# --------------------------------------------------------------------------- #
# One-time weight packing (pre-transpose, gate-pad, bias merge) — cached
# --------------------------------------------------------------------------- #
def pack_decoder_params(params):
    """Done once at parameter-load time; do NOT call per forward."""
    E = params["w_ih0"].shape[1]
    H = params["w_hh0"].shape[1]
    V = params["fc_w"].shape[0]
    Ep = _round_up(E, 128)
    Hp = _round_up(H, 128)
    Vp = _round_up(V, 128) if V <= 512 else _round_up(V, 512)

    def pack_gate_mat(w, in_dim, in_pad):
        # PyTorch layout (4H, in_dim) -> transposed, gate-padded (in_pad, 4Hp)
        W = jnp.zeros((in_pad, 4 * Hp), jnp.float32)
        for g in range(4):
            W = W.at[:in_dim, g * Hp:g * Hp + H].set(w[g * H:(g + 1) * H, :].T)
        return W

    def pack_gate_bias(b):
        b = jnp.reshape(b, (-1,))
        out = jnp.zeros((1, 4 * Hp), jnp.float32)
        for g in range(4):
            out = out.at[0, g * Hp:g * Hp + H].set(b[g * H:(g + 1) * H])
        return out

    fcw = jnp.zeros((Hp, Vp), jnp.float32).at[:H, :V].set(params["fc_w"].T)
    fcb = jnp.zeros((1, Vp), jnp.float32).at[0, :V].set(
        jnp.reshape(params["fc_b"], (-1,)))

    return {
        "embedding": params["embedding"].astype(jnp.float32),
        "wih0": pack_gate_mat(params["w_ih0"], E, Ep),
        "whh0": pack_gate_mat(params["w_hh0"], H, Hp),
        "b0": pack_gate_bias(params["b0"]),
        "wih1": pack_gate_mat(params["w_ih1"], H, Hp),
        "whh1": pack_gate_mat(params["w_hh1"], H, Hp),
        "b1": pack_gate_bias(params["b1"]),
        "fcw": fcw,
        "fcb": fcb,
    }


# --------------------------------------------------------------------------- #
# Forward wrapper (jitted; operates on pre-packed weights)
# --------------------------------------------------------------------------- #
@jax.jit
def decoder_forward(packed, features, captions):
    """features: (B, E) f32; captions: (B, L) int32. Returns (B, T, V), T = L."""
    emb = jnp.take(packed["embedding"], captions[:, :-1], axis=0)    # (B, L-1, E)
    x = jnp.concatenate([features[:, None, :].astype(jnp.float32),
                         emb.astype(jnp.float32)], axis=1)           # (B, T, E)
    B, T, E = x.shape
    V = packed["embedding"].shape[0]
    Ep = packed["wih0"].shape[0]
    Hp = packed["whh0"].shape[0]
    Vp = packed["fcw"].shape[1]
    Bp = _round_up(B, 8)

    # time-major, (8,128)-padded input
    x_tm = jnp.zeros((T, Bp, Ep), jnp.float32).at[:, :B, :E].set(
        jnp.transpose(x, (1, 0, 2)))

    # layer-0 input projection for all timesteps: one big lane-dense matmul
    gx0 = _mm_bias(x_tm.reshape(T * Bp, Ep), packed["wih0"], packed["b0"])
    gx0 = gx0.reshape(T, Bp, 4 * Hp)

    vmem_spec = pl.BlockSpec(memory_space=pltpu.MemorySpace.VMEM)
    rec_bytes = 4 * (T * Bp * 4 * Hp + 3 * Hp * 4 * Hp + 4 * Hp + T * Bp * Hp)
    rec_vmem = int(min(max(2 * rec_bytes + (4 << 20), 32 << 20), 64 << 20))

    h_all = pl.pallas_call(
        lstm_recurrence_kernel,
        out_shape=jax.ShapeDtypeStruct((T, Bp, Hp), jnp.float32),
        in_specs=[vmem_spec] * 5,
        out_specs=vmem_spec,
        compiler_params=pltpu.CompilerParams(vmem_limit_bytes=rec_vmem),
    )(gx0, packed["whh0"], packed["wih1"], packed["whh1"], packed["b1"])

    # vocab projection: one gridded lane-dense matmul (parallel over rows x vocab)
    logits_p = _mm_bias(h_all.reshape(T * Bp, Hp), packed["fcw"], packed["fcb"])
    logits = logits_p.reshape(T, Bp, Vp)[:, :B, :V]                  # unpad
    return jnp.transpose(logits, (1, 0, 2))                          # (B, T, V)


# --------------------------------------------------------------------------- #
# Deterministic parameter init (shapes from DecoderRNN.__init__ / init_weights)
# --------------------------------------------------------------------------- #
def xavier_normal(key, shape):
    fan_out, fan_in = shape
    std = (2.0 / (fan_in + fan_out)) ** 0.5
    return std * jax.random.normal(key, shape, dtype=jnp.float32)


def make_params(key, embed_size, hidden_size, vocab_size):
    ks = jax.random.split(key, 8)
    H, E, V = hidden_size, embed_size, vocab_size
    return {
        "embedding": jax.random.normal(ks[0], (V, E), dtype=jnp.float32),
        # layer 0
        "w_ih0": xavier_normal(ks[1], (4 * H, E)),
        "w_hh0": xavier_normal(ks[2], (4 * H, H)),
        "b0": jnp.full((1, 4 * H), 0.2, dtype=jnp.float32),   # b_ih + b_hh (0.1+0.1)
        # layer 1
        "w_ih1": xavier_normal(ks[3], (4 * H, H)),
        "w_hh1": xavier_normal(ks[4], (4 * H, H)),
        "b1": jnp.full((1, 4 * H), 0.2, dtype=jnp.float32),
        # fc
        "fc_w": xavier_normal(ks[5], (V, H)),
        "fc_b": jnp.full((1, V), 0.1, dtype=jnp.float32),
    }


# --------------------------------------------------------------------------- #
# Pure-JAX reference (for correctness check)
# --------------------------------------------------------------------------- #
def decoder_forward_ref(params, features, captions):
    emb = jnp.take(params["embedding"], captions[:, :-1], axis=0)
    x = jnp.concatenate([features[:, None, :], emb], axis=1).astype(jnp.float32)
    B, T, E = x.shape
    H = params["w_hh0"].shape[1]

    def cell(x_t, h, c, w_ih, w_hh, b):
        gates = x_t @ w_ih.T + h @ w_hh.T + b
        i = jax.nn.sigmoid(gates[:, 0 * H:1 * H])
        f = jax.nn.sigmoid(gates[:, 1 * H:2 * H])
        g = jnp.tanh(gates[:, 2 * H:3 * H])
        o = jax.nn.sigmoid(gates[:, 3 * H:4 * H])
        c_new = f * c + i * g
        return o * jnp.tanh(c_new), c_new

    def scan_step(carry, x_t):
        h0, c0, h1, c1 = carry
        h0, c0 = cell(x_t, h0, c0, params["w_ih0"], params["w_hh0"], params["b0"])
        h1, c1 = cell(h0, h1, c1, params["w_ih1"], params["w_hh1"], params["b1"])
        logits = h1 @ params["fc_w"].T + params["fc_b"]
        return (h0, c0, h1, c1), logits

    z = jnp.zeros((B, H), jnp.float32)
    _, out = lax.scan(scan_step, (z, z, z, z), jnp.transpose(x, (1, 0, 2)))
    return jnp.transpose(out, (1, 0, 2))


# --------------------------------------------------------------------------- #
if __name__ == "__main__":
    EMBED, HIDDEN, VOCAB = 32, 32, 64
    BATCH, SEQ = 2, 8  # captions length L=8  ->  T = 1 + (L-1) = 8

    key = jax.random.PRNGKey(0)
    kp, kf, kc = jax.random.split(key, 3)

    params = make_params(kp, EMBED, HIDDEN, VOCAB)
    packed = pack_decoder_params(params)   # once, at parameter-load time
    features = jax.random.normal(kf, (BATCH, EMBED), dtype=jnp.float32)
    captions = jax.random.randint(kc, (BATCH, SEQ), 0, VOCAB, dtype=jnp.int32)

    logits = decoder_forward(packed, features, captions)
    logits = jax.block_until_ready(logits)

    ref = decoder_forward_ref(params, features, captions)
    assert logits.shape == (BATCH, SEQ, VOCAB), logits.shape
    assert jnp.allclose(logits, ref, rtol=1e-4, atol=1e-4), "mismatch vs JAX reference"

    print("KERNEL_OK")
</pallas_src>

<mosaic_0001>
module attributes {stable_mosaic.version = 11 : i64} {
  func.func @mm_bias_kernel(%arg0: i32, %arg1: i32, %arg2: memref<64x128xf32, #tpu.memory_space<vmem>>, %arg3: memref<128x512xf32, #tpu.memory_space<vmem>>, %arg4: memref<1x512xf32, #tpu.memory_space<vmem>>, %arg5: memref<64x512xf32, #tpu.memory_space<vmem>>) attributes {dimension_semantics = [#tpu.dimension_semantics<parallel>, #tpu.dimension_semantics<parallel>], iteration_bounds = array<i64: 1, 1>, scalar_prefetch = 0 : i64, scratch_operands = 0 : i64, tpu.core_type = #tpu.core_type<tc>, window_params = [{transform_indices = @transform_0, window_bounds = array<i64: 64, 128>}, {transform_indices = @transform_1, window_bounds = array<i64: 128, 512>}, {transform_indices = @transform_2, window_bounds = array<i64: 1, 512>}, {transform_indices = @transform_3, window_bounds = array<i64: 64, 512>}]} {
    %c0 = arith.constant 0 : index
    %c0_0 = arith.constant 0 : index
    %0 = vector.load %arg2[%c0, %c0_0] : memref<64x128xf32, #tpu.memory_space<vmem>>, vector<64x128xf32>
    %c0_1 = arith.constant 0 : index
    %c0_2 = arith.constant 0 : index
    %1 = vector.load %arg3[%c0_1, %c0_2] : memref<128x512xf32, #tpu.memory_space<vmem>>, vector<128x512xf32>
    %cst = arith.constant dense<0.000000e+00> : vector<64x512xf32>
    %2 = tpu.matmul %0, %1, %cst {dimension_numbers = #tpu.dot_dimension_numbers<[1], [0], [0], [1], [0, 0, 1, 1], [], []>} : vector<64x128xf32>, vector<128x512xf32>, vector<64x512xf32> -> vector<64x512xf32>
    %c0_3 = arith.constant 0 : index
    %c0_4 = arith.constant 0 : index
    %3 = vector.load %arg4[%c0_3, %c0_4] : memref<1x512xf32, #tpu.memory_space<vmem>>, vector<1x512xf32>
    %4 = vector.broadcast %3 : vector<1x512xf32> to vector<64x512xf32>
    %5 = arith.addf %2, %4 : vector<64x512xf32>
    %c0_5 = arith.constant 0 : index
    %c0_6 = arith.constant 0 : index
    %6 = vector.load %arg5[%c0_5, %c0_6] : memref<64x512xf32, #tpu.memory_space<vmem>>, vector<64x512xf32>
    tpu.vector_store %arg5[%c0_5, %c0_6], %5 {strides = array<i32>} : memref<64x512xf32, #tpu.memory_space<vmem>>, vector<64x512xf32>,
    return
  }
  func.func @transform_0(%arg0: i32, %arg1: i32) -> (i32, i32) {
    %c0_i32 = arith.constant 0 : i32
    %c0_i32_0 = arith.constant 0 : i32
    return %arg0, %c0_i32 : i32, i32
  }
  func.func @transform_1(%arg0: i32, %arg1: i32) -> (i32, i32) {
    %c0_i32 = arith.constant 0 : i32
    %c0_i32_0 = arith.constant 0 : i32
    return %c0_i32, %arg1 : i32, i32
  }
  func.func @transform_2(%arg0: i32, %arg1: i32) -> (i32, i32) {
    %c0_i32 = arith.constant 0 : i32
    %c0_i32_0 = arith.constant 0 : i32
    return %c0_i32, %arg1 : i32, i32
  }
  func.func @transform_3(%arg0: i32, %arg1: i32) -> (i32, i32) {
    %c0_i32 = arith.constant 0 : i32
    return %arg0, %arg1 : i32, i32
  }
}

module attributes {stable_mosaic.version = 11 : i64} {
  func.func @mm_bias_kernel(%arg0: i32, %arg1: i32, %arg2: memref<64x128xf32, #tpu.memory_space<vmem>>, %arg3: memref<128x128xf32, #tpu.memory_space<vmem>>, %arg4: memref<1x128xf32, #tpu.memory_space<vmem>>, %arg5: memref<64x128xf32, #tpu.memory_space<vmem>>) attributes {dimension_semantics = [#tpu.dimension_semantics<parallel>, #tpu.dimension_semantics<parallel>], iteration_bounds = array<i64: 1, 1>, scalar_prefetch = 0 : i64, scratch_operands = 0 : i64, tpu.core_type = #tpu.core_type<tc>, window_params = [{transform_indices = @transform_0, window_bounds = array<i64: 64, 128>}, {transform_indices = @transform_1, window_bounds = array<i64: 128, 128>}, {transform_indices = @transform_2, window_bounds = array<i64: 1, 128>}, {transform_indices = @transform_3, window_bounds = array<i64: 64, 128>}]} {
    %c0 = arith.constant 0 : index
    %c0_0 = arith.constant 0 : index
    %0 = vector.load %arg2[%c0, %c0_0] : memref<64x128xf32, #tpu.memory_space<vmem>>, vector<64x128xf32>
    %c0_1 = arith.constant 0 : index
    %c0_2 = arith.constant 0 : index
    %1 = vector.load %arg3[%c0_1, %c0_2] : memref<128x128xf32, #tpu.memory_space<vmem>>, vector<128x128xf32>
    %cst = arith.constant dense<0.000000e+00> : vector<64x128xf32>
    %2 = tpu.matmul %0, %1, %cst {dimension_numbers = #tpu.dot_dimension_numbers<[1], [0], [0], [1], [0, 0, 1, 1], [], []>} : vector<64x128xf32>, vector<128x128xf32>, vector<64x128xf32> -> vector<64x128xf32>
    %c0_3 = arith.constant 0 : index
    %c0_4 = arith.constant 0 : index
    %3 = vector.load %arg4[%c0_3, %c0_4] : memref<1x128xf32, #tpu.memory_space<vmem>>, vector<1x128xf32>
    %4 = vector.broadcast %3 : vector<1x128xf32> to vector<64x128xf32>
    %5 = arith.addf %2, %4 : vector<64x128xf32>
    %c0_5 = arith.constant 0 : index
    %c0_6 = arith.constant 0 : index
    %6 = vector.load %arg5[%c0_5, %c0_6] : memref<64x128xf32, #tpu.memory_space<vmem>>, vector<64x128xf32>
    tpu.vector_store %arg5[%c0_5, %c0_6], %5 {strides = array<i32>} : memref<64x128xf32, #tpu.memory_space<vmem>>, vector<64x128xf32>,
    return
  }
  func.func @transform_0(%arg0: i32, %arg1: i32) -> (i32, i32) {
    %c0_i32 = arith.constant 0 : i32
    %c0_i32_0 = arith.constant 0 : i32
    return %arg0, %c0_i32 : i32, i32
  }
  func.func @transform_1(%arg0: i32, %arg1: i32) -> (i32, i32) {
    %c0_i32 = arith.constant 0 : i32
    %c0_i32_0 = arith.constant 0 : i32
    return %c0_i32, %arg1 : i32, i32
  }
  func.func @transform_2(%arg0: i32, %arg1: i32) -> (i32, i32) {
    %c0_i32 = arith.constant 0 : i32
    %c0_i32_0 = arith.constant 0 : i32
    return %c0_i32, %arg1 : i32, i32
  }
  func.func @transform_3(%arg0: i32, %arg1: i32) -> (i32, i32) {
    %c0_i32 = arith.constant 0 : i32
    return %arg0, %arg1 : i32, i32
  }
}

module attributes {stable_mosaic.version = 11 : i64} {
  func.func @lstm_recurrence_kernel(%arg0: memref<8x8x512xf32, #tpu.memory_space<vmem>>, %arg1: memref<128x512xf32, #tpu.memory_space<vmem>>, %arg2: memref<128x512xf32, #tpu.memory_space<vmem>>, %arg3: memref<128x512xf32, #tpu.memory_space<vmem>>, %arg4: memref<1x512xf32, #tpu.memory_space<vmem>>, %arg5: memref<8x8x128xf32, #tpu.memory_space<vmem>>) attributes {dimension_semantics = [], scalar_prefetch = 0 : i64, scratch_operands = 0 : i64, tpu.core_type = #tpu.core_type<tc>} {
    %cst = arith.constant 0.000000e+00 : f32
    %0 = vector.broadcast %cst : f32 to vector<8x128xf32>
    %c0_i32 = arith.constant 0 : i32
    %c0 = arith.constant 0 : index
    %c0_0 = arith.constant 0 : index
    %1 = vector.load %arg1[%c0, %c0_0] : memref<128x512xf32, #tpu.memory_space<vmem>>, vector<128x512xf32>
    %cst_1 = arith.constant dense<0.000000e+00> : vector<8x512xf32>
    %2 = tpu.matmul %0, %1, %cst_1 {dimension_numbers = #tpu.dot_dimension_numbers<[1], [0], [0], [1], [0, 0, 1, 1], [], []>} : vector<8x128xf32>, vector<128x512xf32>, vector<8x512xf32> -> vector<8x512xf32>
    %c0_2 = arith.constant 0 : index
    %c0_3 = arith.constant 0 : index
    %3 = vector.load %arg3[%c0_2, %c0_3] : memref<128x512xf32, #tpu.memory_space<vmem>>, vector<128x512xf32>
    %cst_4 = arith.constant dense<0.000000e+00> : vector<8x512xf32>
    %4 = tpu.matmul %0, %3, %cst_4 {dimension_numbers = #tpu.dot_dimension_numbers<[1], [0], [0], [1], [0, 0, 1, 1], [], []>} : vector<8x128xf32>, vector<128x512xf32>, vector<8x512xf32> -> vector<8x512xf32>
    %5 = arith.index_cast %c0_i32 : i32 to index
    %c0_5 = arith.constant 0 : index
    %c0_6 = arith.constant 0 : index
    %6 = vector.load %arg0[%5, %c0_5, %c0_6] : memref<8x8x512xf32, #tpu.memory_space<vmem>>, vector<1x8x512xf32>
    %7 = vector.shape_cast %6 : vector<1x8x512xf32> to vector<8x512xf32>
    %8 = arith.addf %7, %2 : vector<8x512xf32>
    %9 = vector.extract_strided_slice %8 {offsets = [0, 0], sizes = [8, 128], strides = [1, 1]} : vector<8x512xf32> to vector<8x128xf32>
    %10 = arith.negf %9 : vector<8x128xf32>
    %11 = math.exp %10 : vector<8x128xf32>
    %cst_7 = arith.constant 1.000000e+00 : f32
    %12 = vector.broadcast %cst_7 : f32 to vector<8x128xf32>
    %13 = arith.addf %12, %11 : vector<8x128xf32>
    %14 = arith.divf %12, %13 : vector<8x128xf32>
    %15 = vector.extract_strided_slice %8 {offsets = [0, 128], sizes = [8, 128], strides = [1, 1]} : vector<8x512xf32> to vector<8x128xf32>
    %16 = arith.negf %15 : vector<8x128xf32>
    %17 = math.exp %16 : vector<8x128xf32>
    %cst_8 = arith.constant 1.000000e+00 : f32
    %18 = vector.broadcast %cst_8 : f32 to vector<8x128xf32>
    %19 = arith.addf %18, %17 : vector<8x128xf32>
    %20 = arith.divf %18, %19 : vector<8x128xf32>
    %21 = vector.extract_strided_slice %8 {offsets = [0, 256], sizes = [8, 128], strides = [1, 1]} : vector<8x512xf32> to vector<8x128xf32>
    %22 = math.tanh %21 : vector<8x128xf32>
    %23 = vector.extract_strided_slice %8 {offsets = [0, 384], sizes = [8, 128], strides = [1, 1]} : vector<8x512xf32> to vector<8x128xf32>
    %24 = arith.negf %23 : vector<8x128xf32>
    %25 = math.exp %24 : vector<8x128xf32>
    %cst_9 = arith.constant 1.000000e+00 : f32
    %26 = vector.broadcast %cst_9 : f32 to vector<8x128xf32>
    %27 = arith.addf %26, %25 : vector<8x128xf32>
    %28 = arith.divf %26, %27 : vector<8x128xf32>
    %29 = arith.mulf %20, %0 : vector<8x128xf32>
    %30 = arith.mulf %14, %22 : vector<8x128xf32>
    %31 = arith.addf %29, %30 : vector<8x128xf32>
    %32 = math.tanh %31 : vector<8x128xf32>
    %33 = arith.mulf %28, %32 : vector<8x128xf32>
    %c0_10 = arith.constant 0 : index
    %c0_11 = arith.constant 0 : index
    %34 = vector.load %arg2[%c0_10, %c0_11] : memref<128x512xf32, #tpu.memory_space<vmem>>, vector<128x512xf32>
    %cst_12 = arith.constant dense<0.000000e+00> : vector<8x512xf32>
    %35 = tpu.matmul %33, %34, %cst_12 {dimension_numbers = #tpu.dot_dimension_numbers<[1], [0], [0], [1], [0, 0, 1, 1], [], []>} : vector<8x128xf32>, vector<128x512xf32>, vector<8x512xf32> -> vector<8x512xf32>
    %36 = arith.addf %35, %4 : vector<8x512xf32>
    %c0_13 = arith.constant 0 : index
    %c0_14 = arith.constant 0 : index
    %37 = vector.load %arg4[%c0_13, %c0_14] : memref<1x512xf32, #tpu.memory_space<vmem>>, vector<1x512xf32>
    %38 = vector.broadcast %37 : vector<1x512xf32> to vector<8x512xf32>
    %39 = arith.addf %36, %38 : vector<8x512xf32>
    %40 = vector.extract_strided_slice %39 {offsets = [0, 0], sizes = [8, 128], strides = [1, 1]} : vector<8x512xf32> to vector<8x128xf32>
    %41 = arith.negf %40 : vector<8x128xf32>
    %42 = math.exp %41 : vector<8x128xf32>
    %cst_15 = arith.constant 1.000000e+00 : f32
    %43 = vector.broadcast %cst_15 : f32 to vector<8x128xf32>
    %44 = arith.addf %43, %42 : vector<8x128xf32>
    %45 = arith.divf %43, %44 : vector<8x128xf32>
    %46 = vector.extract_strided_slice %39 {offsets = [0, 128], sizes = [8, 128], strides = [1, 1]} : vector<8x512xf32> to vector<8x128xf32>
    %47 = arith.negf %46 : vector<8x128xf32>
    %48 = math.exp %47 : vector<8x128xf32>
    %cst_16 = arith.constant 1.000000e+00 : f32
    %49 = vector.broadcast %cst_16 : f32 to vector<8x128xf32>
    %50 = arith.addf %49, %48 : vector<8x128xf32>
    %51 = arith.divf %49, %50 : vector<8x128xf32>
    %52 = vector.extract_strided_slice %39 {offsets = [0, 256], sizes = [8, 128], strides = [1, 1]} : vector<8x512xf32> to vector<8x128xf32>
    %53 = math.tanh %52 : vector<8x128xf32>
    %54 = vector.extract_strided_slice %39 {offsets = [0, 384], sizes = [8, 128], strides = [1, 1]} : vector<8x512xf32> to vector<8x128xf32>
    %55 = arith.negf %54 : vector<8x128xf32>
    %56 = math.exp %55 : vector<8x128xf32>
    %cst_17 = arith.constant 1.000000e+00 : f32
    %57 = vector.broadcast %cst_17 : f32 to vector<8x128xf32>
    %58 = arith.addf %57, %56 : vector<8x128xf32>
    %59 = arith.divf %57, %58 : vector<8x128xf32>
    %60 = arith.mulf %51, %0 : vector<8x128xf32>
    %61 = arith.mulf %45, %53 : vector<8x128xf32>
    %62 = arith.addf %60, %61 : vector<8x128xf32>
    %63 = math.tanh %62 : vector<8x128xf32>
    %64 = arith.mulf %59, %63 : vector<8x128xf32>
    %65 = arith.index_cast %c0_i32 : i32 to index
    %c0_18 = arith.constant 0 : index
    %c0_19 = arith.constant 0 : index
    %66 = vector.load %arg5[%65, %c0_18, %c0_19] : memref<8x8x128xf32, #tpu.memory_space<vmem>>, vector<1x8x128xf32>
    %67 = vector.shape_cast %66 : vector<1x8x128xf32> to vector<8x128xf32>
    %68 = vector.shape_cast %64 : vector<8x128xf32> to vector<1x8x128xf32>
    tpu.vector_store %arg5[%65, %c0_18, %c0_19], %68 {strides = array<i32>} : memref<8x8x128xf32, #tpu.memory_space<vmem>>, vector<1x8x128xf32>,
    %c1_i32 = arith.constant 1 : i32
    %c0_20 = arith.constant 0 : index
    %c0_21 = arith.constant 0 : index
    %69 = vector.load %arg1[%c0_20, %c0_21] : memref<128x512xf32, #tpu.memory_space<vmem>>, vector<128x512xf32>
    %cst_22 = arith.constant dense<0.000000e+00> : vector<8x512xf32>
    %70 = tpu.matmul %33, %69, %cst_22 {dimension_numbers = #tpu.dot_dimension_numbers<[1], [0], [0], [1], [0, 0, 1, 1], [], []>} : vector<8x128xf32>, vector<128x512xf32>, vector<8x512xf32> -> vector<8x512xf32>
    %c0_23 = arith.constant 0 : index
    %c0_24 = arith.constant 0 : index
    %71 = vector.load %arg3[%c0_23, %c0_24] : memref<128x512xf32, #tpu.memory_space<vmem>>, vector<128x512xf32>
    %cst_25 = arith.constant dense<0.000000e+00> : vector<8x512xf32>
    %72 = tpu.matmul %64, %71, %cst_25 {dimension_numbers = #tpu.dot_dimension_numbers<[1], [0], [0], [1], [0, 0, 1, 1], [], []>} : vector<8x128xf32>, vector<128x512xf32>, vector<8x512xf32> -> vector<8x512xf32>
    %73 = arith.index_cast %c1_i32 : i32 to index
    %c0_26 = arith.constant 0 : index
    %c0_27 = arith.constant 0 : index
    %74 = vector.load %arg0[%73, %c0_26, %c0_27] : memref<8x8x512xf32, #tpu.memory_space<vmem>>, vector<1x8x512xf32>
    %75 = vector.shape_cast %74 : vector<1x8x512xf32> to vector<8x512xf32>
    %76 = arith.addf %75, %70 : vector<8x512xf32>
    %77 = vector.extract_strided_slice %76 {offsets = [0, 0], sizes = [8, 128], strides = [1, 1]} : vector<8x512xf32> to vector<8x128xf32>
    %78 = arith.negf %77 : vector<8x128xf32>
    %79 = math.exp %78 : vector<8x128xf32>
    %cst_28 = arith.constant 1.000000e+00 : f32
    %80 = vector.broadcast %cst_28 : f32 to vector<8x128xf32>
    %81 = arith.addf %80, %79 : vector<8x128xf32>
    %82 = arith.divf %80, %81 : vector<8x128xf32>
    %83 = vector.extract_strided_slice %76 {offsets = [0, 128], sizes = [8, 128], strides = [1, 1]} : vector<8x512xf32> to vector<8x128xf32>
    %84 = arith.negf %83 : vector<8x128xf32>
    %85 = math.exp %84 : vector<8x128xf32>
    %cst_29 = arith.constant 1.000000e+00 : f32
    %86 = vector.broadcast %cst_29 : f32 to vector<8x128xf32>
    %87 = arith.addf %86, %85 : vector<8x128xf32>
    %88 = arith.divf %86, %87 : vector<8x128xf32>
    %89 = vector.extract_strided_slice %76 {offsets = [0, 256], sizes = [8, 128], strides = [1, 1]} : vector<8x512xf32> to vector<8x128xf32>
    %90 = math.tanh %89 : vector<8x128xf32>
    %91 = vector.extract_strided_slice %76 {offsets = [0, 384], sizes = [8, 128], strides = [1, 1]} : vector<8x512xf32> to vector<8x128xf32>
    %92 = arith.negf %91 : vector<8x128xf32>
    %93 = math.exp %92 : vector<8x128xf32>
    %cst_30 = arith.constant 1.000000e+00 : f32
    %94 = vector.broadcast %cst_30 : f32 to vector<8x128xf32>
    %95 = arith.addf %94, %93 : vector<8x128xf32>
    %96 = arith.divf %94, %95 : vector<8x128xf32>
    %97 = arith.mulf %88, %31 : vector<8x128xf32>
    %98 = arith.mulf %82, %90 : vector<8x128xf32>
    %99 = arith.addf %97, %98 : vector<8x128xf32>
    %100 = math.tanh %99 : vector<8x128xf32>
    %101 = arith.mulf %96, %100 : vector<8x128xf32>
    %c0_31 = arith.constant 0 : index
    %c0_32 = arith.constant 0 : index
    %102 = vector.load %arg2[%c0_31, %c0_32] : memref<128x512xf32, #tpu.memory_space<vmem>>, vector<128x512xf32>
    %cst_33 = arith.constant dense<0.000000e+00> : vector<8x512xf32>
    %103 = tpu.matmul %101, %102, %cst_33 {dimension_numbers = #tpu.dot_dimension_numbers<[1], [0], [0], [1], [0, 0, 1, 1], [], []>} : vector<8x128xf32>, vector<128x512xf32>, vector<8x512xf32> -> vector<8x512xf32>
    %104 = arith.addf %103, %72 : vector<8x512xf32>
    %c0_34 = arith.constant 0 : index
    %c0_35 = arith.constant 0 : index
    %105 = vector.load %arg4[%c0_34, %c0_35] : memref<1x512xf32, #tpu.memory_space<vmem>>, vector<1x512xf32>
    %106 = vector.broadcast %105 : vector<1x512xf32> to vector<8x512xf32>
    %107 = arith.addf %104, %106 : vector<8x512xf32>
    %108 = vector.extract_strided_slice %107 {offsets = [0, 0], sizes = [8, 128], strides = [1, 1]} : vector<8x512xf32> to vector<8x128xf32>
    %109 = arith.negf %108 : vector<8x128xf32>
    %110 = math.exp %109 : vector<8x128xf32>
    %cst_36 = arith.constant 1.000000e+00 : f32
    %111 = vector.broadcast %cst_36 : f32 to vector<8x128xf32>
    %112 = arith.addf %111, %110 : vector<8x128xf32>
    %113 = arith.divf %111, %112 : vector<8x128xf32>
    %114 = vector.extract_strided_slice %107 {offsets = [0, 128], sizes = [8, 128], strides = [1, 1]} : vector<8x512xf32> to vector<8x128xf32>
    %115 = arith.negf %114 : vector<8x128xf32>
    %116 = math.exp %115 : vector<8x128xf32>
    %cst_37 = arith.constant 1.000000e+00 : f32
    %117 = vector.broadcast %cst_37 : f32 to vector<8x128xf32>
    %118 = arith.addf %117, %116 : vector<8x128xf32>
    %119 = arith.divf %117, %118 : vector<8x128xf32>
    %120 = vector.extract_strided_slice %107 {offsets = [0, 256], sizes = [8, 128], strides = [1, 1]} : vector<8x512xf32> to vector<8x128xf32>
    %121 = math.tanh %120 : vector<8x128xf32>
    %122 = vector.extract_strided_slice %107 {offsets = [0, 384], sizes = [8, 128], strides = [1, 1]} : vector<8x512xf32> to vector<8x128xf32>
    %123 = arith.negf %122 : vector<8x128xf32>
    %124 = math.exp %123 : vector<8x128xf32>
    %cst_38 = arith.constant 1.000000e+00 : f32
    %125 = vector.broadcast %cst_38 : f32 to vector<8x128xf32>
    %126 = arith.addf %125, %124 : vector<8x128xf32>
    %127 = arith.divf %125, %126 : vector<8x128xf32>
    %128 = arith.mulf %119, %62 : vector<8x128xf32>
    %129 = arith.mulf %113, %121 : vector<8x128xf32>
    %130 = arith.addf %128, %129 : vector<8x128xf32>
    %131 = math.tanh %130 : vector<8x128xf32>
    %132 = arith.mulf %127, %131 : vector<8x128xf32>
    %133 = arith.index_cast %c1_i32 : i32 to index
    %c0_39 = arith.constant 0 : index
    %c0_40 = arith.constant 0 : index
    %134 = vector.load %arg5[%133, %c0_39, %c0_40] : memref<8x8x128xf32, #tpu.memory_space<vmem>>, vector<1x8x128xf32>
    %135 = vector.shape_cast %134 : vector<1x8x128xf32> to vector<8x128xf32>
    %136 = vector.shape_cast %132 : vector<8x128xf32> to vector<1x8x128xf32>
    tpu.vector_store %arg5[%133, %c0_39, %c0_40], %136 {strides = array<i32>} : memref<8x8x128xf32, #tpu.memory_space<vmem>>, vector<1x8x128xf32>,
    %c2_i32 = arith.constant 2 : i32
    %c0_41 = arith.constant 0 : index
    %c0_42 = arith.constant 0 : index
    %137 = vector.load %arg1[%c0_41, %c0_42] : memref<128x512xf32, #tpu.memory_space<vmem>>, vector<128x512xf32>
    %cst_43 = arith.constant dense<0.000000e+00> : vector<8x512xf32>
    %138 = tpu.matmul %101, %137, %cst_43 {dimension_numbers = #tpu.dot_dimension_numbers<[1], [0], [0], [1], [0, 0, 1, 1], [], []>} : vector<8x128xf32>, vector<128x512xf32>, vector<8x512xf32> -> vector<8x512xf32>
    %c0_44 = arith.constant 0 : index
    %c0_45 = arith.constant 0 : index
    %139 = vector.load %arg3[%c0_44, %c0_45] : memref<128x512xf32, #tpu.memory_space<vmem>>, vector<128x512xf32>
    %cst_46 = arith.constant dense<0.000000e+00> : vector<8x512xf32>
    %140 = tpu.matmul %132, %139, %cst_46 {dimension_numbers = #tpu.dot_dimension_numbers<[1], [0], [0], [1], [0, 0, 1, 1], [], []>} : vector<8x128xf32>, vector<128x512xf32>, vector<8x512xf32> -> vector<8x512xf32>
    %141 = arith.index_cast %c2_i32 : i32 to index
    %c0_47 = arith.constant 0 : index
    %c0_48 = arith.constant 0 : index
    %142 = vector.load %arg0[%141, %c0_47, %c0_48] : memref<8x8x512xf32, #tpu.memory_space<vmem>>, vector<1x8x512xf32>
    %143 = vector.shape_cast %142 : vector<1x8x512xf32> to vector<8x512xf32>
    %144 = arith.addf %143, %138 : vector<8x512xf32>
    %145 = vector.extract_strided_slice %144 {offsets = [0, 0], sizes = [8, 128], strides = [1, 1]} : vector<8x512xf32> to vector<8x128xf32>
    %146 = arith.negf %145 : vector<8x128xf32>
    %147 = math.exp %146 : vector<8x128xf32>
    %cst_49 = arith.constant 1.000000e+00 : f32
    %148 = vector.broadcast %cst_49 : f32 to vector<8x128xf32>
    %149 = arith.addf %148, %147 : vector<8x128xf32>
    %150 = arith.divf %148, %149 : vector<8x128xf32>
    %151 = vector.extract_strided_slice %144 {offsets = [0, 128], sizes = [8, 128], strides = [1, 1]} : vector<8x512xf32> to vector<8x128xf32>
    %152 = arith.negf %151 : vector<8x128xf32>
    %153 = math.exp %152 : vector<8x128xf32>
    %cst_50 = arith.constant 1.000000e+00 : f32
    %154 = vector.broadcast %cst_50 : f32 to vector<8x128xf32>
    %155 = arith.addf %154, %153 : vector<8x128xf32>
    %156 = arith.divf %154, %155 : vector<8x128xf32>
    %157 = vector.extract_strided_slice %144 {offsets = [0, 256], sizes = [8, 128], strides = [1, 1]} : vector<8x512xf32> to vector<8x128xf32>
    %158 = math.tanh %157 : vector<8x128xf32>
    %159 = vector.extract_strided_slice %144 {offsets = [0, 384], sizes = [8, 128], strides = [1, 1]} : vector<8x512xf32> to vector<8x128xf32>
    %160 = arith.negf %159 : vector<8x128xf32>
    %161 = math.exp %160 : vector<8x128xf32>
    %cst_51 = arith.constant 1.000000e+00 : f32
    %162 = vector.broadcast %cst_51 : f32 to vector<8x128xf32>
    %163 = arith.addf %162, %161 : vector<8x128xf32>
    %164 = arith.divf %162, %163 : vector<8x128xf32>
    %165 = arith.mulf %156, %99 : vector<8x128xf32>
    %166 = arith.mulf %150, %158 : vector<8x128xf32>
    %167 = arith.addf %165, %166 : vector<8x128xf32>
    %168 = math.tanh %167 : vector<8x128xf32>
    %169 = arith.mulf %164, %168 : vector<8x128xf32>
    %c0_52 = arith.constant 0 : index
    %c0_53 = arith.constant 0 : index
    %170 = vector.load %arg2[%c0_52, %c0_53] : memref<128x512xf32, #tpu.memory_space<vmem>>, vector<128x512xf32>
    %cst_54 = arith.constant dense<0.000000e+00> : vector<8x512xf32>
    %171 = tpu.matmul %169, %170, %cst_54 {dimension_numbers = #tpu.dot_dimension_numbers<[1], [0], [0], [1], [0, 0, 1, 1], [], []>} : vector<8x128xf32>, vector<128x512xf32>, vector<8x512xf32> -> vector<8x512xf32>
    %172 = arith.addf %171, %140 : vector<8x512xf32>
    %c0_55 = arith.constant 0 : index
    %c0_56 = arith.constant 0 : index
    %173 = vector.load %arg4[%c0_55, %c0_56] : memref<1x512xf32, #tpu.memory_space<vmem>>, vector<1x512xf32>
    %174 = vector.broadcast %173 : vector<1x512xf32> to vector<8x512xf32>
    %175 = arith.addf %172, %174 : vector<8x512xf32>
    %176 = vector.extract_strided_slice %175 {offsets = [0, 0], sizes = [8, 128], strides = [1, 1]} : vector<8x512xf32> to vector<8x128xf32>
    %177 = arith.negf %176 : vector<8x128xf32>
    %178 = math.exp %177 : vector<8x128xf32>
    %cst_57 = arith.constant 1.000000e+00 : f32
    %179 = vector.broadcast %cst_57 : f32 to vector<8x128xf32>
    %180 = arith.addf %179, %178 : vector<8x128xf32>
    %181 = arith.divf %179, %180 : vector<8x128xf32>
    %182 = vector.extract_strided_slice %175 {offsets = [0, 128], sizes = [8, 128], strides = [1, 1]} : vector<8x512xf32> to vector<8x128xf32>
    %183 = arith.negf %182 : vector<8x128xf32>
    %184 = math.exp %183 : vector<8x128xf32>
    %cst_58 = arith.constant 1.000000e+00 : f32
    %185 = vector.broadcast %cst_58 : f32 to vector<8x128xf32>
    %186 = arith.addf %185, %184 : vector<8x128xf32>
    %187 = arith.divf %185, %186 : vector<8x128xf32>
    %188 = vector.extract_strided_slice %175 {offsets = [0, 256], sizes = [8, 128], strides = [1, 1]} : vector<8x512xf32> to vector<8x128xf32>
    %189 = math.tanh %188 : vector<8x128xf32>
    %190 = vector.extract_strided_slice %175 {offsets = [0, 384], sizes = [8, 128], strides = [1, 1]} : vector<8x512xf32> to vector<8x128xf32>
    %191 = arith.negf %190 : vector<8x128xf32>
    %192 = math.exp %191 : vector<8x128xf32>
    %cst_59 = arith.constant 1.000000e+00 : f32
    %193 = vector.broadcast %cst_59 : f32 to vector<8x128xf32>
    %194 = arith.addf %193, %192 : vector<8x128xf32>
    %195 = arith.divf %193, %194 : vector<8x128xf32>
    %196 = arith.mulf %187, %130 : vector<8x128xf32>
    %197 = arith.mulf %181, %189 : vector<8x128xf32>
    %198 = arith.addf %196, %197 : vector<8x128xf32>
    %199 = math.tanh %198 : vector<8x128xf32>
    %200 = arith.mulf %195, %199 : vector<8x128xf32>
    %201 = arith.index_cast %c2_i32 : i32 to index
    %c0_60 = arith.constant 0 : index
    %c0_61 = arith.constant 0 : index
    %202 = vector.load %arg5[%201, %c0_60, %c0_61] : memref<8x8x128xf32, #tpu.memory_space<vmem>>, vector<1x8x128xf32>
    %203 = vector.shape_cast %202 : vector<1x8x128xf32> to vector<8x128xf32>
    %204 = vector.shape_cast %200 : vector<8x128xf32> to vector<1x8x128xf32>
    tpu.vector_store %arg5[%201, %c0_60, %c0_61], %204 {strides = array<i32>} : memref<8x8x128xf32, #tpu.memory_space<vmem>>, vector<1x8x128xf32>,
    %c3_i32 = arith.constant 3 : i32
    %c0_62 = arith.constant 0 : index
    %c0_63 = arith.constant 0 : index
    %205 = vector.load %arg1[%c0_62, %c0_63] : memref<128x512xf32, #tpu.memory_space<vmem>>, vector<128x512xf32>
    %cst_64 = arith.constant dense<0.000000e+00> : vector<8x512xf32>
    %206 = tpu.matmul %169, %205, %cst_64 {dimension_numbers = #tpu.dot_dimension_numbers<[1], [0], [0], [1], [0, 0, 1, 1], [], []>} : vector<8x128xf32>, vector<128x512xf32>, vector<8x512xf32> -> vector<8x512xf32>
    %c0_65 = arith.constant 0 : index
    %c0_66 = arith.constant 0 : index
    %207 = vector.load %arg3[%c0_65, %c0_66] : memref<128x512xf32, #tpu.memory_space<vmem>>, vector<128x512xf32>
    %cst_67 = arith.constant dense<0.000000e+00> : vector<8x512xf32>
    %208 = tpu.matmul %200, %207, %cst_67 {dimension_numbers = #tpu.dot_dimension_numbers<[1], [0], [0], [1], [0, 0, 1, 1], [], []>} : vector<8x128xf32>, vector<128x512xf32>, vector<8x512xf32> -> vector<8x512xf32>
    %209 = arith.index_cast %c3_i32 : i32 to index
    %c0_68 = arith.constant 0 : index
    %c0_69 = arith.constant 0 : index
    %210 = vector.load %arg0[%209, %c0_68, %c0_69] : memref<8x8x512xf32, #tpu.memory_space<vmem>>, vector<1x8x512xf32>
    %211 = vector.shape_cast %210 : vector<1x8x512xf32> to vector<8x512xf32>
    %212 = arith.addf %211, %206 : vector<8x512xf32>
    %213 = vector.extract_strided_slice %212 {offsets = [0, 0], sizes = [8, 128], strides = [1, 1]} : vector<8x512xf32> to vector<8x128xf32>
    %214 = arith.negf %213 : vector<8x128xf32>
    %215 = math.exp %214 : vector<8x128xf32>
    %cst_70 = arith.constant 1.000000e+00 : f32
    %216 = vector.broadcast %cst_70 : f32 to vector<8x128xf32>
    %217 = arith.addf %216, %215 : vector<8x128xf32>
    %218 = arith.divf %216, %217 : vector<8x128xf32>
    %219 = vector.extract_strided_slice %212 {offsets = [0, 128], sizes = [8, 128], strides = [1, 1]} : vector<8x512xf32> to vector<8x128xf32>
    %220 = arith.negf %219 : vector<8x128xf32>
    %221 = math.exp %220 : vector<8x128xf32>
    %cst_71 = arith.constant 1.000000e+00 : f32
    %222 = vector.broadcast %cst_71 : f32 to vector<8x128xf32>
    %223 = arith.addf %222, %221 : vector<8x128xf32>
    %224 = arith.divf %222, %223 : vector<8x128xf32>
    %225 = vector.extract_strided_slice %212 {offsets = [0, 256], sizes = [8, 128], strides = [1, 1]} : vector<8x512xf32> to vector<8x128xf32>
    %226 = math.tanh %225 : vector<8x128xf32>
    %227 = vector.extract_strided_slice %212 {offsets = [0, 384], sizes = [8, 128], strides = [1, 1]} : vector<8x512xf32> to vector<8x128xf32>
    %228 = arith.negf %227 : vector<8x128xf32>
    %229 = math.exp %228 : vector<8x128xf32>
    %cst_72 = arith.constant 1.000000e+00 : f32
    %230 = vector.broadcast %cst_72 : f32 to vector<8x128xf32>
    %231 = arith.addf %230, %229 : vector<8x128xf32>
    %232 = arith.divf %230, %231 : vector<8x128xf32>
    %233 = arith.mulf %224, %167 : vector<8x128xf32>
    %234 = arith.mulf %218, %226 : vector<8x128xf32>
    %235 = arith.addf %233, %234 : vector<8x128xf32>
    %236 = math.tanh %235 : vector<8x128xf32>
    %237 = arith.mulf %232, %236 : vector<8x128xf32>
    %c0_73 = arith.constant 0 : index
    %c0_74 = arith.constant 0 : index
    %238 = vector.load %arg2[%c0_73, %c0_74] : memref<128x512xf32, #tpu.memory_space<vmem>>, vector<128x512xf32>
    %cst_75 = arith.constant dense<0.000000e+00> : vector<8x512xf32>
    %239 = tpu.matmul %237, %238, %cst_75 {dimension_numbers = #tpu.dot_dimension_numbers<[1], [0], [0], [1], [0, 0, 1, 1], [], []>} : vector<8x128xf32>, vector<128x512xf32>, vector<8x512xf32> -> vector<8x512xf32>
    %240 = arith.addf %239, %208 : vector<8x512xf32>
    %c0_76 = arith.constant 0 : index
    %c0_77 = arith.constant 0 : index
    %241 = vector.load %arg4[%c0_76, %c0_77] : memref<1x512xf32, #tpu.memory_space<vmem>>, vector<1x512xf32>
    %242 = vector.broadcast %241 : vector<1x512xf32> to vector<8x512xf32>
    %243 = arith.addf %240, %242 : vector<8x512xf32>
    %244 = vector.extract_strided_slice %243 {offsets = [0, 0], sizes = [8, 128], strides = [1, 1]} : vector<8x512xf32> to vector<8x128xf32>
    %245 = arith.negf %244 : vector<8x128xf32>
    %246 = math.exp %245 : vector<8x128xf32>
    %cst_78 = arith.constant 1.000000e+00 : f32
    %247 = vector.broadcast %cst_78 : f32 to vector<8x128xf32>
    %248 = arith.addf %247, %246 : vector<8x128xf32>
    %249 = arith.divf %247, %248 : vector<8x128xf32>
    %250 = vector.extract_strided_slice %243 {offsets = [0, 128], sizes = [8, 128], strides = [1, 1]} : vector<8x512xf32> to vector<8x128xf32>
    %251 = arith.negf %250 : vector<8x128xf32>
    %252 = math.exp %251 : vector<8x128xf32>
    %cst_79 = arith.constant 1.000000e+00 : f32
    %253 = vector.broadcast %cst_79 : f32 to vector<8x128xf32>
    %254 = arith.addf %253, %252 : vector<8x128xf32>
    %255 = arith.divf %253, %254 : vector<8x128xf32>
    %256 = vector.extract_strided_slice %243 {offsets = [0, 256], sizes = [8, 128], strides = [1, 1]} : vector<8x512xf32> to vector<8x128xf32>
    %257 = math.tanh %256 : vector<8x128xf32>
    %258 = vector.extract_strided_slice %243 {offsets = [0, 384], sizes = [8, 128], strides = [1, 1]} : vector<8x512xf32> to vector<8x128xf32>
    %259 = arith.negf %258 : vector<8x128xf32>
    %260 = math.exp %259 : vector<8x128xf32>
    %cst_80 = arith.constant 1.000000e+00 : f32
    %261 = vector.broadcast %cst_80 : f32 to vector<8x128xf32>
    %262 = arith.addf %261, %260 : vector<8x128xf32>
    %263 = arith.divf %261, %262 : vector<8x128xf32>
    %264 = arith.mulf %255, %198 : vector<8x128xf32>
    %265 = arith.mulf %249, %257 : vector<8x128xf32>
    %266 = arith.addf %264, %265 : vector<8x128xf32>
    %267 = math.tanh %266 : vector<8x128xf32>
    %268 = arith.mulf %263, %267 : vector<8x128xf32>
    %269 = arith.index_cast %c3_i32 : i32 to index
    %c0_81 = arith.constant 0 : index
    %c0_82 = arith.constant 0 : index
    %270 = vector.load %arg5[%269, %c0_81, %c0_82] : memref<8x8x128xf32, #tpu.memory_space<vmem>>, vector<1x8x128xf32>
    %271 = vector.shape_cast %270 : vector<1x8x128xf32> to vector<8x128xf32>
    %272 = vector.shape_cast %268 : vector<8x128xf32> to vector<1x8x128xf32>
    tpu.vector_store %arg5[%269, %c0_81, %c0_82], %272 {strides = array<i32>} : memref<8x8x128xf32, #tpu.memory_space<vmem>>, vector<1x8x128xf32>,
    %c4_i32 = arith.constant 4 : i32
    %c0_83 = arith.constant 0 : index
    %c0_84 = arith.constant 0 : index
    %273 = vector.load %arg1[%c0_83, %c0_84] : memref<128x512xf32, #tpu.memory_space<vmem>>, vector<128x512xf32>
    %cst_85 = arith.constant dense<0.000000e+00> : vector<8x512xf32>
    %274 = tpu.matmul %237, %273, %cst_85 {dimension_numbers = #tpu.dot_dimension_numbers<[1], [0], [0], [1], [0, 0, 1, 1], [], []>} : vector<8x128xf32>, vector<128x512xf32>, vector<8x512xf32> -> vector<8x512xf32>
    %c0_86 = arith.constant 0 : index
    %c0_87 = arith.constant 0 : index
    %275 = vector.load %arg3[%c0_86, %c0_87] : memref<128x512xf32, #tpu.memory_space<vmem>>, vector<128x512xf32>
    %cst_88 = arith.constant dense<0.000000e+00> : vector<8x512xf32>
    %276 = tpu.matmul %268, %275, %cst_88 {dimension_numbers = #tpu.dot_dimension_numbers<[1], [0], [0], [1], [0, 0, 1, 1], [], []>} : vector<8x128xf32>, vector<128x512xf32>, vector<8x512xf32> -> vector<8x512xf32>
    %277 = arith.index_cast %c4_i32 : i32 to index
    %c0_89 = arith.constant 0 : index
    %c0_90 = arith.constant 0 : index
    %278 = vector.load %arg0[%277, %c0_89, %c0_90] : memref<8x8x512xf32, #tpu.memory_space<vmem>>, vector<1x8x512xf32>
    %279 = vector.shape_cast %278 : vector<1x8x512xf32> to vector<8x512xf32>
    %280 = arith.addf %279, %274 : vector<8x512xf32>
    %281 = vector.extract_strided_slice %280 {offsets = [0, 0], sizes = [8, 128], strides = [1, 1]} : vector<8x512xf32> to vector<8x128xf32>
    %282 = arith.negf %281 : vector<8x128xf32>
    %283 = math.exp %282 : vector<8x128xf32>
    %cst_91 = arith.constant 1.000000e+00 : f32
    %284 = vector.broadcast %cst_91 : f32 to vector<8x128xf32>
    %285 = arith.addf %284, %283 : vector<8x128xf32>
    %286 = arith.divf %284, %285 : vector<8x128xf32>
    %287 = vector.extract_strided_slice %280 {offsets = [0, 128], sizes = [8, 128], strides = [1, 1]} : vector<8x512xf32> to vector<8x128xf32>
    %288 = arith.negf %287 : vector<8x128xf32>
    %289 = math.exp %288 : vector<8x128xf32>
    %cst_92 = arith.constant 1.000000e+00 : f32
    %290 = vector.broadcast %cst_92 : f32 to vector<8x128xf32>
    %291 = arith.addf %290, %289 : vector<8x128xf32>
    %292 = arith.divf %290, %291 : vector<8x128xf32>
    %293 = vector.extract_strided_slice %280 {offsets = [0, 256], sizes = [8, 128], strides = [1, 1]} : vector<8x512xf32> to vector<8x128xf32>
    %294 = math.tanh %293 : vector<8x128xf32>
    %295 = vector.extract_strided_slice %280 {offsets = [0, 384], sizes = [8, 128], strides = [1, 1]} : vector<8x512xf32> to vector<8x128xf32>
    %296 = arith.negf %295 : vector<8x128xf32>
    %297 = math.exp %296 : vector<8x128xf32>
    %cst_93 = arith.constant 1.000000e+00 : f32
    %298 = vector.broadcast %cst_93 : f32 to vector<8x128xf32>
    %299 = arith.addf %298, %297 : vector<8x128xf32>
    %300 = arith.divf %298, %299 : vector<8x128xf32>
    %301 = arith.mulf %292, %235 : vector<8x128xf32>
    %302 = arith.mulf %286, %294 : vector<8x128xf32>
    %303 = arith.addf %301, %302 : vector<8x128xf32>
    %304 = math.tanh %303 : vector<8x128xf32>
    %305 = arith.mulf %300, %304 : vector<8x128xf32>
    %c0_94 = arith.constant 0 : index
    %c0_95 = arith.constant 0 : index
    %306 = vector.load %arg2[%c0_94, %c0_95] : memref<128x512xf32, #tpu.memory_space<vmem>>, vector<128x512xf32>
    %cst_96 = arith.constant dense<0.000000e+00> : vector<8x512xf32>
    %307 = tpu.matmul %305, %306, %cst_96 {dimension_numbers = #tpu.dot_dimension_numbers<[1], [0], [0], [1], [0, 0, 1, 1], [], []>} : vector<8x128xf32>, vector<128x512xf32>, vector<8x512xf32> -> vector<8x512xf32>
    %308 = arith.addf %307, %276 : vector<8x512xf32>
    %c0_97 = arith.constant 0 : index
    %c0_98 = arith.constant 0 : index
    %309 = vector.load %arg4[%c0_97, %c0_98] : memref<1x512xf32, #tpu.memory_space<vmem>>, vector<1x512xf32>
    %310 = vector.broadcast %309 : vector<1x512xf32> to vector<8x512xf32>
    %311 = arith.addf %308, %310 : vector<8x512xf32>
    %312 = vector.extract_strided_slice %311 {offsets = [0, 0], sizes = [8, 128], strides = [1, 1]} : vector<8x512xf32> to vector<8x128xf32>
    %313 = arith.negf %312 : vector<8x128xf32>
    %314 = math.exp %313 : vector<8x128xf32>
    %cst_99 = arith.constant 1.000000e+00 : f32
    %315 = vector.broadcast %cst_99 : f32 to vector<8x128xf32>
    %316 = arith.addf %315, %314 : vector<8x128xf32>
    %317 = arith.divf %315, %316 : vector<8x128xf32>
    %318 = vector.extract_strided_slice %311 {offsets = [0, 128], sizes = [8, 128], strides = [1, 1]} : vector<8x512xf32> to vector<8x128xf32>
    %319 = arith.negf %318 : vector<8x128xf32>
    %320 = math.exp %319 : vector<8x128xf32>
    %cst_100 = arith.constant 1.000000e+00 : f32
    %321 = vector.broadcast %cst_100 : f32 to vector<8x128xf32>
    %322 = arith.addf %321, %320 : vector<8x128xf32>
    %323 = arith.divf %321, %322 : vector<8x128xf32>
    %324 = vector.extract_strided_slice %311 {offsets = [0, 256], sizes = [8, 128], strides = [1, 1]} : vector<8x512xf32> to vector<8x128xf32>
    %325 = math.tanh %324 : vector<8x128xf32>
    %326 = vector.extract_strided_slice %311 {offsets = [0, 384], sizes = [8, 128], strides = [1, 1]} : vector<8x512xf32> to vector<8x128xf32>
    %327 = arith.negf %326 : vector<8x128xf32>
    %328 = math.exp %327 : vector<8x128xf32>
    %cst_101 = arith.constant 1.000000e+00 : f32
    %329 = vector.broadcast %cst_101 : f32 to vector<8x128xf32>
    %330 = arith.addf %329, %328 : vector<8x128xf32>
    %331 = arith.divf %329, %330 : vector<8x128xf32>
    %332 = arith.mulf %323, %266 : vector<8x128xf32>
    %333 = arith.mulf %317, %325 : vector<8x128xf32>
    %334 = arith.addf %332, %333 : vector<8x128xf32>
    %335 = math.tanh %334 : vector<8x128xf32>
    %336 = arith.mulf %331, %335 : vector<8x128xf32>
    %337 = arith.index_cast %c4_i32 : i32 to index
    %c0_102 = arith.constant 0 : index
    %c0_103 = arith.constant 0 : index
    %338 = vector.load %arg5[%337, %c0_102, %c0_103] : memref<8x8x128xf32, #tpu.memory_space<vmem>>, vector<1x8x128xf32>
    %339 = vector.shape_cast %338 : vector<1x8x128xf32> to vector<8x128xf32>
    %340 = vector.shape_cast %336 : vector<8x128xf32> to vector<1x8x128xf32>
    tpu.vector_store %arg5[%337, %c0_102, %c0_103], %340 {strides = array<i32>} : memref<8x8x128xf32, #tpu.memory_space<vmem>>, vector<1x8x128xf32>,
    %c5_i32 = arith.constant 5 : i32
    %c0_104 = arith.constant 0 : index
    %c0_105 = arith.constant 0 : index
    %341 = vector.load %arg1[%c0_104, %c0_105] : memref<128x512xf32, #tpu.memory_space<vmem>>, vector<128x512xf32>
    %cst_106 = arith.constant dense<0.000000e+00> : vector<8x512xf32>
    %342 = tpu.matmul %305, %341, %cst_106 {dimension_numbers = #tpu.dot_dimension_numbers<[1], [0], [0], [1], [0, 0, 1, 1], [], []>} : vector<8x128xf32>, vector<128x512xf32>, vector<8x512xf32> -> vector<8x512xf32>
    %c0_107 = arith.constant 0 : index
    %c0_108 = arith.constant 0 : index
    %343 = vector.load %arg3[%c0_107, %c0_108] : memref<128x512xf32, #tpu.memory_space<vmem>>, vector<128x512xf32>
    %cst_109 = arith.constant dense<0.000000e+00> : vector<8x512xf32>
    %344 = tpu.matmul %336, %343, %cst_109 {dimension_numbers = #tpu.dot_dimension_numbers<[1], [0], [0], [1], [0, 0, 1, 1], [], []>} : vector<8x128xf32>, vector<128x512xf32>, vector<8x512xf32> -> vector<8x512xf32>
    %345 = arith.index_cast %c5_i32 : i32 to index
    %c0_110 = arith.constant 0 : index
    %c0_111 = arith.constant 0 : index
    %346 = vector.load %arg0[%345, %c0_110, %c0_111] : memref<8x8x512xf32, #tpu.memory_space<vmem>>, vector<1x8x512xf32>
    %347 = vector.shape_cast %346 : vector<1x8x512xf32> to vector<8x512xf32>
    %348 = arith.addf %347, %342 : vector<8x512xf32>
    %349 = vector.extract_strided_slice %348 {offsets = [0, 0], sizes = [8, 128], strides = [1, 1]} : vector<8x512xf32> to vector<8x128xf32>
    %350 = arith.negf %349 : vector<8x128xf32>
    %351 = math.exp %350 : vector<8x128xf32>
    %cst_112 = arith.constant 1.000000e+00 : f32
    %352 = vector.broadcast %cst_112 : f32 to vector<8x128xf32>
    %353 = arith.addf %352, %351 : vector<8x128xf32>
    %354 = arith.divf %352, %353 : vector<8x128xf32>
    %355 = vector.extract_strided_slice %348 {offsets = [0, 128], sizes = [8, 128], strides = [1, 1]} : vector<8x512xf32> to vector<8x128xf32>
    %356 = arith.negf %355 : vector<8x128xf32>
    %357 = math.exp %356 : vector<8x128xf32>
    %cst_113 = arith.constant 1.000000e+00 : f32
    %358 = vector.broadcast %cst_113 : f32 to vector<8x128xf32>
    %359 = arith.addf %358, %357 : vector<8x128xf32>
    %360 = arith.divf %358, %359 : vector<8x128xf32>
    %361 = vector.extract_strided_slice %348 {offsets = [0, 256], sizes = [8, 128], strides = [1, 1]} : vector<8x512xf32> to vector<8x128xf32>
    %362 = math.tanh %361 : vector<8x128xf32>
    %363 = vector.extract_strided_slice %348 {offsets = [0, 384], sizes = [8, 128], strides = [1, 1]} : vector<8x512xf32> to vector<8x128xf32>
    %364 = arith.negf %363 : vector<8x128xf32>
    %365 = math.exp %364 : vector<8x128xf32>
    %cst_114 = arith.constant 1.000000e+00 : f32
    %366 = vector.broadcast %cst_114 : f32 to vector<8x128xf32>
    %367 = arith.addf %366, %365 : vector<8x128xf32>
    %368 = arith.divf %366, %367 : vector<8x128xf32>
    %369 = arith.mulf %360, %303 : vector<8x128xf32>
    %370 = arith.mulf %354, %362 : vector<8x128xf32>
    %371 = arith.addf %369, %370 : vector<8x128xf32>
    %372 = math.tanh %371 : vector<8x128xf32>
    %373 = arith.mulf %368, %372 : vector<8x128xf32>
    %c0_115 = arith.constant 0 : index
    %c0_116 = arith.constant 0 : index
    %374 = vector.load %arg2[%c0_115, %c0_116] : memref<128x512xf32, #tpu.memory_space<vmem>>, vector<128x512xf32>
    %cst_117 = arith.constant dense<0.000000e+00> : vector<8x512xf32>
    %375 = tpu.matmul %373, %374, %cst_117 {dimension_numbers = #tpu.dot_dimension_numbers<[1], [0], [0], [1], [0, 0, 1, 1], [], []>} : vector<8x128xf32>, vector<128x512xf32>, vector<8x512xf32> -> vector<8x512xf32>
    %376 = arith.addf %375, %344 : vector<8x512xf32>
    %c0_118 = arith.constant 0 : index
    %c0_119 = arith.constant 0 : index
    %377 = vector.load %arg4[%c0_118, %c0_119] : memref<1x512xf32, #tpu.memory_space<vmem>>, vector<1x512xf32>
    %378 = vector.broadcast %377 : vector<1x512xf32> to vector<8x512xf32>
    %379 = arith.addf %376, %378 : vector<8x512xf32>
    %380 = vector.extract_strided_slice %379 {offsets = [0, 0], sizes = [8, 128], strides = [1, 1]} : vector<8x512xf32> to vector<8x128xf32>
    %381 = arith.negf %380 : vector<8x128xf32>
    %382 = math.exp %381 : vector<8x128xf32>
    %cst_120 = arith.constant 1.000000e+00 : f32
    %383 = vector.broadcast %cst_120 : f32 to vector<8x128xf32>
    %384 = arith.addf %383, %382 : vector<8x128xf32>
    %385 = arith.divf %383, %384 : vector<8x128xf32>
    %386 = vector.extract_strided_slice %379 {offsets = [0, 128], sizes = [8, 128], strides = [1, 1]} : vector<8x512xf32> to vector<8x128xf32>
    %387 = arith.negf %386 : vector<8x128xf32>
    %388 = math.exp %387 : vector<8x128xf32>
    %cst_121 = arith.constant 1.000000e+00 : f32
    %389 = vector.broadcast %cst_121 : f32 to vector<8x128xf32>
    %390 = arith.addf %389, %388 : vector<8x128xf32>
    %391 = arith.divf %389, %390 : vector<8x128xf32>
    %392 = vector.extract_strided_slice %379 {offsets = [0, 256], sizes = [8, 128], strides = [1, 1]} : vector<8x512xf32> to vector<8x128xf32>
    %393 = math.tanh %392 : vector<8x128xf32>
    %394 = vector.extract_strided_slice %379 {offsets = [0, 384], sizes = [8, 128], strides = [1, 1]} : vector<8x512xf32> to vector<8x128xf32>
    %395 = arith.negf %394 : vector<8x128xf32>
    %396 = math.exp %395 : vector<8x128xf32>
    %cst_122 = arith.constant 1.000000e+00 : f32
    %397 = vector.broadcast %cst_122 : f32 to vector<8x128xf32>
    %398 = arith.addf %397, %396 : vector<8x128xf32>
    %399 = arith.divf %397, %398 : vector<8x128xf32>
    %400 = arith.mulf %391, %334 : vector<8x128xf32>
    %401 = arith.mulf %385, %393 : vector<8x128xf32>
    %402 = arith.addf %400, %401 : vector<8x128xf32>
    %403 = math.tanh %402 : vector<8x128xf32>
    %404 = arith.mulf %399, %403 : vector<8x128xf32>
    %405 = arith.index_cast %c5_i32 : i32 to index
    %c0_123 = arith.constant 0 : index
    %c0_124 = arith.constant 0 : index
    %406 = vector.load %arg5[%405, %c0_123, %c0_124] : memref<8x8x128xf32, #tpu.memory_space<vmem>>, vector<1x8x128xf32>
    %407 = vector.shape_cast %406 : vector<1x8x128xf32> to vector<8x128xf32>
    %408 = vector.shape_cast %404 : vector<8x128xf32> to vector<1x8x128xf32>
    tpu.vector_store %arg5[%405, %c0_123, %c0_124], %408 {strides = array<i32>} : memref<8x8x128xf32, #tpu.memory_space<vmem>>, vector<1x8x128xf32>,
    %c6_i32 = arith.constant 6 : i32
    %c0_125 = arith.constant 0 : index
    %c0_126 = arith.constant 0 : index
    %409 = vector.load %arg1[%c0_125, %c0_126] : memref<128x512xf32, #tpu.memory_space<vmem>>, vector<128x512xf32>
    %cst_127 = arith.constant dense<0.000000e+00> : vector<8x512xf32>
    %410 = tpu.matmul %373, %409, %cst_127 {dimension_numbers = #tpu.dot_dimension_numbers<[1], [0], [0], [1], [0, 0, 1, 1], [], []>} : vector<8x128xf32>, vector<128x512xf32>, vector<8x512xf32> -> vector<8x512xf32>
    %c0_128 = arith.constant 0 : index
    %c0_129 = arith.constant 0 : index
    %411 = vector.load %arg3[%c0_128, %c0_129] : memref<128x512xf32, #tpu.memory_space<vmem>>, vector<128x512xf32>
    %cst_130 = arith.constant dense<0.000000e+00> : vector<8x512xf32>
    %412 = tpu.matmul %404, %411, %cst_130 {dimension_numbers = #tpu.dot_dimension_numbers<[1], [0], [0], [1], [0, 0, 1, 1], [], []>} : vector<8x128xf32>, vector<128x512xf32>, vector<8x512xf32> -> vector<8x512xf32>
    %413 = arith.index_cast %c6_i32 : i32 to index
    %c0_131 = arith.constant 0 : index
    %c0_132 = arith.constant 0 : index
    %414 = vector.load %arg0[%413, %c0_131, %c0_132] : memref<8x8x512xf32, #tpu.memory_space<vmem>>, vector<1x8x512xf32>
    %415 = vector.shape_cast %414 : vector<1x8x512xf32> to vector<8x512xf32>
    %416 = arith.addf %415, %410 : vector<8x512xf32>
    %417 = vector.extract_strided_slice %416 {offsets = [0, 0], sizes = [8, 128], strides = [1, 1]} : vector<8x512xf32> to vector<8x128xf32>
    %418 = arith.negf %417 : vector<8x128xf32>
    %419 = math.exp %418 : vector<8x128xf32>
    %cst_133 = arith.constant 1.000000e+00 : f32
    %420 = vector.broadcast %cst_133 : f32 to vector<8x128xf32>
    %421 = arith.addf %420, %419 : vector<8x128xf32>
    %422 = arith.divf %420, %421 : vector<8x128xf32>
    %423 = vector.extract_strided_slice %416 {offsets = [0, 128], sizes = [8, 128], strides = [1, 1]} : vector<8x512xf32> to vector<8x128xf32>
    %424 = arith.negf %423 : vector<8x128xf32>
    %425 = math.exp %424 : vector<8x128xf32>
    %cst_134 = arith.constant 1.000000e+00 : f32
    %426 = vector.broadcast %cst_134 : f32 to vector<8x128xf32>
    %427 = arith.addf %426, %425 : vector<8x128xf32>
    %428 = arith.divf %426, %427 : vector<8x128xf32>
    %429 = vector.extract_strided_slice %416 {offsets = [0, 256], sizes = [8, 128], strides = [1, 1]} : vector<8x512xf32> to vector<8x128xf32>
    %430 = math.tanh %429 : vector<8x128xf32>
    %431 = vector.extract_strided_slice %416 {offsets = [0, 384], sizes = [8, 128], strides = [1, 1]} : vector<8x512xf32> to vector<8x128xf32>
    %432 = arith.negf %431 : vector<8x128xf32>
    %433 = math.exp %432 : vector<8x128xf32>
    %cst_135 = arith.constant 1.000000e+00 : f32
    %434 = vector.broadcast %cst_135 : f32 to vector<8x128xf32>
    %435 = arith.addf %434, %433 : vector<8x128xf32>
    %436 = arith.divf %434, %435 : vector<8x128xf32>
    %437 = arith.mulf %428, %371 : vector<8x128xf32>
    %438 = arith.mulf %422, %430 : vector<8x128xf32>
    %439 = arith.addf %437, %438 : vector<8x128xf32>
    %440 = math.tanh %439 : vector<8x128xf32>
    %441 = arith.mulf %436, %440 : vector<8x128xf32>
    %c0_136 = arith.constant 0 : index
    %c0_137 = arith.constant 0 : index
    %442 = vector.load %arg2[%c0_136, %c0_137] : memref<128x512xf32, #tpu.memory_space<vmem>>, vector<128x512xf32>
    %cst_138 = arith.constant dense<0.000000e+00> : vector<8x512xf32>
    %443 = tpu.matmul %441, %442, %cst_138 {dimension_numbers = #tpu.dot_dimension_numbers<[1], [0], [0], [1], [0, 0, 1, 1], [], []>} : vector<8x128xf32>, vector<128x512xf32>, vector<8x512xf32> -> vector<8x512xf32>
    %444 = arith.addf %443, %412 : vector<8x512xf32>
    %c0_139 = arith.constant 0 : index
    %c0_140 = arith.constant 0 : index
    %445 = vector.load %arg4[%c0_139, %c0_140] : memref<1x512xf32, #tpu.memory_space<vmem>>, vector<1x512xf32>
    %446 = vector.broadcast %445 : vector<1x512xf32> to vector<8x512xf32>
    %447 = arith.addf %444, %446 : vector<8x512xf32>
    %448 = vector.extract_strided_slice %447 {offsets = [0, 0], sizes = [8, 128], strides = [1, 1]} : vector<8x512xf32> to vector<8x128xf32>
    %449 = arith.negf %448 : vector<8x128xf32>
    %450 = math.exp %449 : vector<8x128xf32>
    %cst_141 = arith.constant 1.000000e+00 : f32
    %451 = vector.broadcast %cst_141 : f32 to vector<8x128xf32>
    %452 = arith.addf %451, %450 : vector<8x128xf32>
    %453 = arith.divf %451, %452 : vector<8x128xf32>
    %454 = vector.extract_strided_slice %447 {offsets = [0, 128], sizes = [8, 128], strides = [1, 1]} : vector<8x512xf32> to vector<8x128xf32>
    %455 = arith.negf %454 : vector<8x128xf32>
    %456 = math.exp %455 : vector<8x128xf32>
    %cst_142 = arith.constant 1.000000e+00 : f32
    %457 = vector.broadcast %cst_142 : f32 to vector<8x128xf32>
    %458 = arith.addf %457, %456 : vector<8x128xf32>
    %459 = arith.divf %457, %458 : vector<8x128xf32>
    %460 = vector.extract_strided_slice %447 {offsets = [0, 256], sizes = [8, 128], strides = [1, 1]} : vector<8x512xf32> to vector<8x128xf32>
    %461 = math.tanh %460 : vector<8x128xf32>
    %462 = vector.extract_strided_slice %447 {offsets = [0, 384], sizes = [8, 128], strides = [1, 1]} : vector<8x512xf32> to vector<8x128xf32>
    %463 = arith.negf %462 : vector<8x128xf32>
    %464 = math.exp %463 : vector<8x128xf32>
    %cst_143 = arith.constant 1.000000e+00 : f32
    %465 = vector.broadcast %cst_143 : f32 to vector<8x128xf32>
    %466 = arith.addf %465, %464 : vector<8x128xf32>
    %467 = arith.divf %465, %466 : vector<8x128xf32>
    %468 = arith.mulf %459, %402 : vector<8x128xf32>
    %469 = arith.mulf %453, %461 : vector<8x128xf32>
    %470 = arith.addf %468, %469 : vector<8x128xf32>
    %471 = math.tanh %470 : vector<8x128xf32>
    %472 = arith.mulf %467, %471 : vector<8x128xf32>
    %473 = arith.index_cast %c6_i32 : i32 to index
    %c0_144 = arith.constant 0 : index
    %c0_145 = arith.constant 0 : index
    %474 = vector.load %arg5[%473, %c0_144, %c0_145] : memref<8x8x128xf32, #tpu.memory_space<vmem>>, vector<1x8x128xf32>
    %475 = vector.shape_cast %474 : vector<1x8x128xf32> to vector<8x128xf32>
    %476 = vector.shape_cast %472 : vector<8x128xf32> to vector<1x8x128xf32>
    tpu.vector_store %arg5[%473, %c0_144, %c0_145], %476 {strides = array<i32>} : memref<8x8x128xf32, #tpu.memory_space<vmem>>, vector<1x8x128xf32>,
    %c7_i32 = arith.constant 7 : i32
    %c0_146 = arith.constant 0 : index
    %c0_147 = arith.constant 0 : index
    %477 = vector.load %arg1[%c0_146, %c0_147] : memref<128x512xf32, #tpu.memory_space<vmem>>, vector<128x512xf32>
    %cst_148 = arith.constant dense<0.000000e+00> : vector<8x512xf32>
    %478 = tpu.matmul %441, %477, %cst_148 {dimension_numbers = #tpu.dot_dimension_numbers<[1], [0], [0], [1], [0, 0, 1, 1], [], []>} : vector<8x128xf32>, vector<128x512xf32>, vector<8x512xf32> -> vector<8x512xf32>
    %c0_149 = arith.constant 0 : index
    %c0_150 = arith.constant 0 : index
    %479 = vector.load %arg3[%c0_149, %c0_150] : memref<128x512xf32, #tpu.memory_space<vmem>>, vector<128x512xf32>
    %cst_151 = arith.constant dense<0.000000e+00> : vector<8x512xf32>
    %480 = tpu.matmul %472, %479, %cst_151 {dimension_numbers = #tpu.dot_dimension_numbers<[1], [0], [0], [1], [0, 0, 1, 1], [], []>} : vector<8x128xf32>, vector<128x512xf32>, vector<8x512xf32> -> vector<8x512xf32>
    %481 = arith.index_cast %c7_i32 : i32 to index
    %c0_152 = arith.constant 0 : index
    %c0_153 = arith.constant 0 : index
    %482 = vector.load %arg0[%481, %c0_152, %c0_153] : memref<8x8x512xf32, #tpu.memory_space<vmem>>, vector<1x8x512xf32>
    %483 = vector.shape_cast %482 : vector<1x8x512xf32> to vector<8x512xf32>
    %484 = arith.addf %483, %478 : vector<8x512xf32>
    %485 = vector.extract_strided_slice %484 {offsets = [0, 0], sizes = [8, 128], strides = [1, 1]} : vector<8x512xf32> to vector<8x128xf32>
    %486 = arith.negf %485 : vector<8x128xf32>
    %487 = math.exp %486 : vector<8x128xf32>
    %cst_154 = arith.constant 1.000000e+00 : f32
    %488 = vector.broadcast %cst_154 : f32 to vector<8x128xf32>
    %489 = arith.addf %488, %487 : vector<8x128xf32>
    %490 = arith.divf %488, %489 : vector<8x128xf32>
    %491 = vector.extract_strided_slice %484 {offsets = [0, 128], sizes = [8, 128], strides = [1, 1]} : vector<8x512xf32> to vector<8x128xf32>
    %492 = arith.negf %491 : vector<8x128xf32>
    %493 = math.exp %492 : vector<8x128xf32>
    %cst_155 = arith.constant 1.000000e+00 : f32
    %494 = vector.broadcast %cst_155 : f32 to vector<8x128xf32>
    %495 = arith.addf %494, %493 : vector<8x128xf32>
    %496 = arith.divf %494, %495 : vector<8x128xf32>
    %497 = vector.extract_strided_slice %484 {offsets = [0, 256], sizes = [8, 128], strides = [1, 1]} : vector<8x512xf32> to vector<8x128xf32>
    %498 = math.tanh %497 : vector<8x128xf32>
    %499 = vector.extract_strided_slice %484 {offsets = [0, 384], sizes = [8, 128], strides = [1, 1]} : vector<8x512xf32> to vector<8x128xf32>
    %500 = arith.negf %499 : vector<8x128xf32>
    %501 = math.exp %500 : vector<8x128xf32>
    %cst_156 = arith.constant 1.000000e+00 : f32
    %502 = vector.broadcast %cst_156 : f32 to vector<8x128xf32>
    %503 = arith.addf %502, %501 : vector<8x128xf32>
    %504 = arith.divf %502, %503 : vector<8x128xf32>
    %505 = arith.mulf %496, %439 : vector<8x128xf32>
    %506 = arith.mulf %490, %498 : vector<8x128xf32>
    %507 = arith.addf %505, %506 : vector<8x128xf32>
    %508 = math.tanh %507 : vector<8x128xf32>
    %509 = arith.mulf %504, %508 : vector<8x128xf32>
    %c0_157 = arith.constant 0 : index
    %c0_158 = arith.constant 0 : index
    %510 = vector.load %arg2[%c0_157, %c0_158] : memref<128x512xf32, #tpu.memory_space<vmem>>, vector<128x512xf32>
    %cst_159 = arith.constant dense<0.000000e+00> : vector<8x512xf32>
    %511 = tpu.matmul %509, %510, %cst_159 {dimension_numbers = #tpu.dot_dimension_numbers<[1], [0], [0], [1], [0, 0, 1, 1], [], []>} : vector<8x128xf32>, vector<128x512xf32>, vector<8x512xf32> -> vector<8x512xf32>
    %512 = arith.addf %511, %480 : vector<8x512xf32>
    %c0_160 = arith.constant 0 : index
    %c0_161 = arith.constant 0 : index
    %513 = vector.load %arg4[%c0_160, %c0_161] : memref<1x512xf32, #tpu.memory_space<vmem>>, vector<1x512xf32>
    %514 = vector.broadcast %513 : vector<1x512xf32> to vector<8x512xf32>
    %515 = arith.addf %512, %514 : vector<8x512xf32>
    %516 = vector.extract_strided_slice %515 {offsets = [0, 0], sizes = [8, 128], strides = [1, 1]} : vector<8x512xf32> to vector<8x128xf32>
    %517 = arith.negf %516 : vector<8x128xf32>
    %518 = math.exp %517 : vector<8x128xf32>
    %cst_162 = arith.constant 1.000000e+00 : f32
    %519 = vector.broadcast %cst_162 : f32 to vector<8x128xf32>
    %520 = arith.addf %519, %518 : vector<8x128xf32>
    %521 = arith.divf %519, %520 : vector<8x128xf32>
    %522 = vector.extract_strided_slice %515 {offsets = [0, 128], sizes = [8, 128], strides = [1, 1]} : vector<8x512xf32> to vector<8x128xf32>
    %523 = arith.negf %522 : vector<8x128xf32>
    %524 = math.exp %523 : vector<8x128xf32>
    %cst_163 = arith.constant 1.000000e+00 : f32
    %525 = vector.broadcast %cst_163 : f32 to vector<8x128xf32>
    %526 = arith.addf %525, %524 : vector<8x128xf32>
    %527 = arith.divf %525, %526 : vector<8x128xf32>
    %528 = vector.extract_strided_slice %515 {offsets = [0, 256], sizes = [8, 128], strides = [1, 1]} : vector<8x512xf32> to vector<8x128xf32>
    %529 = math.tanh %528 : vector<8x128xf32>
    %530 = vector.extract_strided_slice %515 {offsets = [0, 384], sizes = [8, 128], strides = [1, 1]} : vector<8x512xf32> to vector<8x128xf32>
    %531 = arith.negf %530 : vector<8x128xf32>
    %532 = math.exp %531 : vector<8x128xf32>
    %cst_164 = arith.constant 1.000000e+00 : f32
    %533 = vector.broadcast %cst_164 : f32 to vector<8x128xf32>
    %534 = arith.addf %533, %532 : vector<8x128xf32>
    %535 = arith.divf %533, %534 : vector<8x128xf32>
    %536 = arith.mulf %527, %470 : vector<8x128xf32>
    %537 = arith.mulf %521, %529 : vector<8x128xf32>
    %538 = arith.addf %536, %537 : vector<8x128xf32>
    %539 = math.tanh %538 : vector<8x128xf32>
    %540 = arith.mulf %535, %539 : vector<8x128xf32>
    %541 = arith.index_cast %c7_i32 : i32 to index
    %c0_165 = arith.constant 0 : index
    %c0_166 = arith.constant 0 : index
    %542 = vector.load %arg5[%541, %c0_165, %c0_166] : memref<8x8x128xf32, #tpu.memory_space<vmem>>, vector<1x8x128xf32>
    %543 = vector.shape_cast %542 : vector<1x8x128xf32> to vector<8x128xf32>
    %544 = vector.shape_cast %540 : vector<8x128xf32> to vector<1x8x128xf32>
    tpu.vector_store %arg5[%541, %c0_165, %c0_166], %544 {strides = array<i32>} : memref<8x8x128xf32, #tpu.memory_space<vmem>>, vector<1x8x128xf32>,
    %c8_i32 = arith.constant 8 : i32
    return
  }
}

</mosaic_0001>

<bundles_post_ra>
// kernel: decoder_forward.5
= control target key start
LH: loop header
LB: loop body
LE: loop exit
PB: predicated region body
PF: predicated region fallthrough
CT: control target
= control target key end

     0   :  { %s382_s1 = inlined_call_operand.vmem [shape: f32[128,128], index: 1, kind: input, shape index: {}]   ;;  %s383_s0 = inlined_call_operand.vmem [shape: f32[64,128], index: 0, kind: input, shape index: {}]   ;;  %s384_s2 = inlined_call_operand.vmem [shape: f32[1,128], index: 2, kind: input, shape index: {}]   ;;  %s385_s3 = inlined_call_operand.vmem [shape: f32[64,128], index: 3, kind: output, shape index: {}]  }
   0x1   :  { %v37_v0 = vld [vmem:[%s382_s1 + $0x78] sm:$0xff]  ;;  %v36_v1 = vld [vmem:[%s382_s1 + $0x70] sm:$0xff]  ;;  %v35_v2 = vld [vmem:[%s382_s1 + $0x68] sm:$0xff] }
   0x2   :  { %187 = vmatprep.subr.mxu0 %v37_v0  ;;  %231 = vmatprep.subr.mxu1 %v37_v0  ;;  %v34_v3 = vld [vmem:[%s382_s1 + $0x60] sm:$0xff]  ;;  %v33_v4 = vld [vmem:[%s382_s1 + $0x58] sm:$0xff]  ;;  %v32_v5 = vld [vmem:[%s382_s1 + $0x50] sm:$0xff] }
   0x3   :  { %188 = vmatpush3.msra.mxu0 %v37_v0  ;;  %247 = vmatpush3.msra.mxu1 %v37_v0  ;;  %v31_v6 = vld [vmem:[%s382_s1 + $0x48] sm:$0xff]  ;;  %v30_v7 = vld [vmem:[%s382_s1 + $0x40] sm:$0xff]  ;;  %v29_v8 = vld [vmem:[%s382_s1 + $0x38] sm:$0xff] }
   0x4   :  { %189 = vmatprep.subr.mxu0 %v36_v1  ;;  %232 = vmatprep.subr.mxu1 %v36_v1  ;;  %v28_v9 = vld [vmem:[%s382_s1 + $0x30] sm:$0xff]  ;;  %v27_v10 = vld [vmem:[%s382_s1 + $0x28] sm:$0xff]  ;;  %v26_v11 = vld [vmem:[%s382_s1 + $0x20] sm:$0xff] }
   0x5   :  { %190 = vmatpush3.msra.mxu0 %v36_v1  ;;  %248 = vmatpush3.msra.mxu1 %v36_v1  ;;  %v25_v12 = vld [vmem:[%s382_s1 + $0x18] sm:$0xff]  ;;  %v24_v13 = vld [vmem:[%s382_s1 + $0x10] sm:$0xff]  ;;  %v23_v14 = vld [vmem:[%s382_s1 + $0x8] sm:$0xff] }
   0x6   :  { %191 = vmatprep.subr.mxu0 %v35_v2  ;;  %233 = vmatprep.subr.mxu1 %v35_v2  ;;  %v22_v15 = vld [vmem:[%s382_s1] sm:$0xff]  ;;  %v15_v18 = vld [vmem:[%s383_s0 + $0x8] sm:$0xff]  ;;  %v16_v20 = vld [vmem:[%s383_s0 + $0x10] sm:$0xff] }
   0x7   :  { %192 = vmatpush3.msra.mxu0 %v35_v2  ;;  %249 = vmatpush3.msra.mxu1 %v35_v2  ;;  %v14_v16 = vld [vmem:[%s383_s0] sm:$0xff]  ;;  %v19_v19 = vld [vmem:[%s383_s0 + $0x28] sm:$0xff]  ;;  %v20_v21 = vld [vmem:[%s383_s0 + $0x30] sm:$0xff] }
   0x8   :  { %193 = vmatprep.subr.mxu0 %v34_v3  ;;  %234 = vmatprep.subr.mxu1 %v34_v3  ;;  %v18_v17 = vld [vmem:[%s383_s0 + $0x20] sm:$0xff]  ;;  %v17_v22 = vld [vmem:[%s383_s0 + $0x18] sm:$0xff] }
   0x9   :  { %194 = vmatpush3.msra.mxu0 %v34_v3  ;;  %250 = vmatpush3.msra.mxu1 %v34_v3  ;;  %v21_v23 = vld [vmem:[%s383_s0 + $0x38] sm:$0xff]  ;;  %v162_v24 = vld [vmem:[%s384_s2] ss:$0 sm:$0xff] }
   0xa   :  { %195 = vmatprep.subr.mxu0 %v33_v4  ;;  %235 = vmatprep.subr.mxu1 %v33_v4 }
   0xb   :  { %196 = vmatpush3.msra.mxu0 %v33_v4  ;;  %251 = vmatpush3.msra.mxu1 %v33_v4 }
   0xc   :  { %197 = vmatprep.subr.mxu0 %v32_v5  ;;  %236 = vmatprep.subr.mxu1 %v32_v5 }
   0xd   :  { %198 = vmatpush3.msra.mxu0 %v32_v5  ;;  %252 = vmatpush3.msra.mxu1 %v32_v5 }
   0xe   :  { %199 = vmatprep.subr.mxu0 %v31_v6  ;;  %237 = vmatprep.subr.mxu1 %v31_v6 }
   0xf   :  { %200 = vmatpush3.msra.mxu0 %v31_v6  ;;  %253 = vmatpush3.msra.mxu1 %v31_v6 }
  0x10   :  { %201 = vmatprep.subr.mxu0 %v30_v7  ;;  %238 = vmatprep.subr.mxu1 %v30_v7 }
  0x11   :  { %202 = vmatpush3.msra.mxu0 %v30_v7  ;;  %254 = vmatpush3.msra.mxu1 %v30_v7 }
  0x12   :  { %203 = vmatprep.subr.mxu0 %v29_v8  ;;  %239 = vmatprep.subr.mxu1 %v29_v8 }
  0x13   :  { %204 = vmatpush3.msra.mxu0 %v29_v8  ;;  %255 = vmatpush3.msra.mxu1 %v29_v8 }
  0x14   :  { %205 = vmatprep.subr.mxu0 %v28_v9  ;;  %240 = vmatprep.subr.mxu1 %v28_v9 }
  0x15   :  { %206 = vmatpush3.msra.mxu0 %v28_v9  ;;  %256 = vmatpush3.msra.mxu1 %v28_v9 }
  0x16   :  { %207 = vmatprep.subr.mxu0 %v27_v10  ;;  %241 = vmatprep.subr.mxu1 %v27_v10 }
  0x17   :  { %208 = vmatpush3.msra.mxu0 %v27_v10  ;;  %257 = vmatpush3.msra.mxu1 %v27_v10 }
  0x18   :  { %209 = vmatprep.subr.mxu0 %v26_v11  ;;  %242 = vmatprep.subr.mxu1 %v26_v11 }
  0x19   :  { %210 = vmatpush3.msra.mxu0 %v26_v11  ;;  %258 = vmatpush3.msra.mxu1 %v26_v11 }
  0x1a   :  { %211 = vmatprep.subr.mxu0 %v25_v12  ;;  %243 = vmatprep.subr.mxu1 %v25_v12 }
  0x1b   :  { %212 = vmatpush3.msra.mxu0 %v25_v12  ;;  %259 = vmatpush3.msra.mxu1 %v25_v12 }
  0x1c   :  { %213 = vmatprep.subr.mxu0 %v24_v13  ;;  %244 = vmatprep.subr.mxu1 %v24_v13 }
  0x1d   :  { %214 = vmatpush3.msra.mxu0 %v24_v13  ;;  %260 = vmatpush3.msra.mxu1 %v24_v13 }
  0x1e   :  { %215 = vmatprep.subr.mxu0 %v23_v14  ;;  %245 = vmatprep.subr.mxu1 %v23_v14 }
  0x1f   :  { %216 = vmatpush3.msra.mxu0 %v23_v14  ;;  %261 = vmatpush3.msra.mxu1 %v23_v14 }
  0x20   :  { %217 = vmatprep.subr.mxu0 %v22_v15  ;;  %246 = vmatprep.subr.mxu1 %v22_v15 }
  0x21   :  { %218 = vmatpush3.msra.mxu0 %v22_v15  ;;  %262 = vmatpush3.msra.mxu1 %v22_v15 }
  0x22   :  { %219 = vmatprep.mubr.f32.mxu0 %v14_v16  ;;  %225 = vmatprep.mubr.f32.mxu1 %v18_v17 }
  0x23   :  { %220 = vmatmul.mubr.f32.vlgmr.msra.gmra.mxu0 %v15_v18  ;;  %226 = vmatmul.mubr.f32.vlgmr.msra.gmra.mxu1 %v19_v19 }
  0x24   :  { %222 = vmatprep.mubr.f32.mxu0 %v16_v20  ;;  %228 = vmatprep.mubr.f32.mxu1 %v20_v21 }
  0x27   :  { %223 = vmatmul.mubr.f32.gmra.mxu0 %v17_v22  ;;  %229 = vmatmul.mubr.f32.gmra.mxu1 %v21_v23 }
  0xe3   :  { %v221_v25 = vpop.f32.mrf.mxu0  ;;  %v227_v26 = vpop.f32.mrf.mxu1 }
  0xe4   :  { %v117_v27 = vadd.f32 %v221_v25, %v162_v24  ;;  %v137_v28 = vadd.f32 %v227_v26, %v162_v24 }
  0xe5   :  { %v111_v29 = vpop.f32.mrf.mxu0  ;;  %v131_v30 = vpop.f32.mrf.mxu1 }
  0xe6   :  { %151 = vst [vmem:[%s385_s3 + $0x8] sm:$0xff] %v117_v27  ;;  %155 = vst [vmem:[%s385_s3 + $0x28] sm:$0xff] %v137_v28  ;;  %v112_v31 = vadd.f32 %v162_v24, %v111_v29  ;;  %v132_v32 = vadd.f32 %v162_v24, %v131_v30 }
  0xe7   :  { %v224_v33 = vpop.f32.mrf.mxu0  ;;  %v230_v34 = vpop.f32.mrf.mxu1 }
  0xe8   :  { %150 = vst [vmem:[%s385_s3] sm:$0xff] %v112_v31  ;;  %154 = vst [vmem:[%s385_s3 + $0x20] sm:$0xff] %v132_v32  ;;  %v127_v35 = vadd.f32 %v224_v33, %v162_v24  ;;  %v147_v36 = vadd.f32 %v230_v34, %v162_v24 }
  0xe9   :  { %v121_v37 = vpop.f32.mrf.mxu0  ;;  %v141_v38 = vpop.f32.mrf.mxu1 }
  0xea   :  { %153 = vst [vmem:[%s385_s3 + $0x18] sm:$0xff] %v127_v35  ;;  %157 = vst [vmem:[%s385_s3 + $0x38] sm:$0xff] %v147_v36  ;;  %v122_v39 = vadd.f32 %v162_v24, %v121_v37  ;;  %v142_v40 = vadd.f32 %v162_v24, %v141_v38 }
  0xec   :  { %152 = vst [vmem:[%s385_s3 + $0x10] sm:$0xff] %v122_v39  ;;  %156 = vst [vmem:[%s385_s3 + $0x30] sm:$0xff] %v142_v40 }

// kernel: decoder_forward.3
= control target key start
LH: loop header
LB: loop body
LE: loop exit
PB: predicated region body
PF: predicated region fallthrough
CT: control target
= control target key end

     0   :  { %8 = vsyncpa [#allocation3], 0  ;;  %s411_s12 = smov [#allocation2]   ;;  %s617_s0 = inlined_call_operand.vmem [shape: f32[64,128], index: 0, kind: input, shape index: {}]   ;;  %s618_s1 = inlined_call_operand.hbm [shape: f32[128,512], index: 1, kind: input, shape index: {}]   ;;  %s619_s2 = inlined_call_operand.vmem [shape: f32[1,512], index: 2, kind: input, shape index: {}]   ;;  %s620_s3 = inlined_call_operand.vmem [shape: f32[64,512], index: 3, kind: output, shape index: {}]  }
   0x1   :  { %s16_s13 = sshll.u32 %s411_s12, 4  ;;  %s17_s13 = int_to_ptr.vmem [resolvable:$true] %s16_s13 }
   0x2   :  { %s397_s14 = scalar_lea.vmem %s17_s13, 8192  ;;  %p402_p1 = scmp.lt.s32.totalorder %s17_s13, %s17_s13 }
   0x3   :  { %p398_p0 = scmp.ne.s32.totalorder %s17_s13, %s397_s14  ;;  %p403_p2 = scmp.lt.s32.totalorder %s397_s14, %s397_s14 }
   0x5   :  { %p404_p3 = por %p403_p2, %p402_p1 }
   0x7   :  { %p405_p4 = pnand %p404_p3, %p398_p0 }
   0x9   :  { %408 = shalt.err (!%p405_p4)
}
   0xa   :  { %s412_s15 = smov 512   ;;  %s413_s16 = smov 32  }
   0xb   :  { %22 = dma.hbm_to_vmem [thread:$0]  %s618_s1, 8192, %s17_s13, [#allocation3], %s412_s15, %s412_s15, %s413_s16  }
   0xc   :  { %409 = dma.done.wait [#allocation3], 8192  }
   0xd   :  { %410 = vsyncadd [#allocation3], 4294959104  ;;  %v414_v0 = vmov 0.0   ;;  %v97_v1 = vld [vmem:[#allocation2 + $0x1e8] sm:$0xff]  ;;  %v99_v2 = vld [vmem:[#allocation2 + $0x1f8] sm:$0xff] }
   0xe   :  { %186 = vmatprep.mubr.f32.mxu0 %v414_v0  ;;  %299 = vmatprep.mubr.f32.mxu1 %v414_v0  ;;  %v96_v3 = vld [vmem:[#allocation2 + $0x1e0] sm:$0xff]  ;;  %v98_v4 = vld [vmem:[#allocation2 + $0x1f0] sm:$0xff]  ;;  %v93_v5 = vld [vmem:[#allocation2 + $0x1c8] sm:$0xff] }
   0xf   :  { %122 = vmatprep.subr.mxu0 %v97_v1  ;;  %235 = vmatprep.subr.mxu1 %v99_v2  ;;  %v95_v6 = vld [vmem:[#allocation2 + $0x1d8] sm:$0xff]  ;;  %v92_v7 = vld [vmem:[#allocation2 + $0x1c0] sm:$0xff]  ;;  %v94_v8 = vld [vmem:[#allocation2 + $0x1d0] sm:$0xff] }
  0x10   :  { %123 = vmatpush1.msra.mxu0 %v96_v3  ;;  %236 = vmatpush1.msra.mxu1 %v98_v4  ;;  %v89_v9 = vld [vmem:[#allocation2 + $0x1a8] sm:$0xff]  ;;  %v91_v10 = vld [vmem:[#allocation2 + $0x1b8] sm:$0xff]  ;;  %v88_v11 = vld [vmem:[#allocation2 + $0x1a0] sm:$0xff] }
  0x11   :  { %124 = vmatprep.subr.mxu0 %v93_v5  ;;  %237 = vmatprep.subr.mxu1 %v95_v6  ;;  %v90_v12 = vld [vmem:[#allocation2 + $0x1b0] sm:$0xff]  ;;  %v85_v13 = vld [vmem:[#allocation2 + $0x188] sm:$0xff]  ;;  %v87_v14 = vld [vmem:[#allocation2 + $0x198] sm:$0xff] }
  0x12   :  { %125 = vmatpush1.msra.mxu0 %v92_v7  ;;  %238 = vmatpush1.msra.mxu1 %v94_v8  ;;  %v84_v15 = vld [vmem:[#allocation2 + $0x180] sm:$0xff]  ;;  %v86_v16 = vld [vmem:[#allocation2 + $0x190] sm:$0xff]  ;;  %v81_v17 = vld [vmem:[#allocation2 + $0x168] sm:$0xff] }
  0x13   :  { %126 = vmatprep.subr.mxu0 %v89_v9  ;;  %239 = vmatprep.subr.mxu1 %v91_v10  ;;  %v83_v18 = vld [vmem:[#allocation2 + $0x178] sm:$0xff]  ;;  %v80_v19 = vld [vmem:[#allocation2 + $0x160] sm:$0xff]  ;;  %v82_v20 = vld [vmem:[#allocation2 + $0x170] sm:$0xff]  ;;  %v102_v10 = vlaneseq }
  0x14   :  { %127 = vmatpush1.msra.mxu0 %v88_v11  ;;  %240 = vmatpush1.msra.mxu1 %v90_v12  ;;  %v77_v21 = vld [vmem:[#allocation2 + $0x148] sm:$0xff]  ;;  %v79_v22 = vld [vmem:[#allocation2 + $0x158] sm:$0xff]  ;;  %v76_v23 = vld [vmem:[#allocation2 + $0x140] sm:$0xff] }
  0x15   :  { %128 = vmatprep.subr.mxu0 %v85_v13  ;;  %241 = vmatprep.subr.mxu1 %v87_v14  ;;  %v78_v24 = vld [vmem:[#allocation2 + $0x150] sm:$0xff]  ;;  %v73_v25 = vld [vmem:[#allocation2 + $0x128] sm:$0xff]  ;;  %v75_v26 = vld [vmem:[#allocation2 + $0x138] sm:$0xff]  ;;  %v103_v11 = vshrl.u32 %v102_v10, 7 }
  0x16   :  { %129 = vmatpush1.msra.mxu0 %v84_v15  ;;  %242 = vmatpush1.msra.mxu1 %v86_v16  ;;  %v72_v27 = vld [vmem:[#allocation2 + $0x120] sm:$0xff]  ;;  %v74_v28 = vld [vmem:[#allocation2 + $0x130] sm:$0xff]  ;;  %v69_v29 = vld [vmem:[#allocation2 + $0x108] sm:$0xff] }
  0x17   :  { %130 = vmatprep.subr.mxu0 %v81_v17  ;;  %243 = vmatprep.subr.mxu1 %v83_v18  ;;  %v71_v30 = vld [vmem:[#allocation2 + $0x118] sm:$0xff]  ;;  %v68_v31 = vld [vmem:[#allocation2 + $0x100] sm:$0xff]  ;;  %v70_v32 = vld [vmem:[#allocation2 + $0x110] sm:$0xff]  ;;  %v104_v12 = vsub.s32 0, %v103_v11  ;;  %v112_v13 = vsub.s32 2, %v103_v11  ;;  %v108_v15 = vsub.s32 1, %v103_v11 }
  0x18   :  { %131 = vmatpush1.msra.mxu0 %v80_v19  ;;  %244 = vmatpush1.msra.mxu1 %v82_v20  ;;  %v65_v33 = vld [vmem:[#allocation2 + $0xe8] sm:$0xff]  ;;  %v67_v34 = vld [vmem:[#allocation2 + $0xf8] sm:$0xff]  ;;  %v64_v35 = vld [vmem:[#allocation2 + $0xe0] sm:$0xff]  ;;  %v116_v16 = vsub.s32 3, %v103_v11 }
  0x19   :  { %132 = vmatprep.subr.mxu0 %v77_v21  ;;  %245 = vmatprep.subr.mxu1 %v79_v22  ;;  %v66_v36 = vld [vmem:[#allocation2 + $0xf0] sm:$0xff]  ;;  %v61_v37 = vld [vmem:[#allocation2 + $0xc8] sm:$0xff]  ;;  %v63_v38 = vld [vmem:[#allocation2 + $0xd8] sm:$0xff] }
  0x1a   :  { %133 = vmatpush1.msra.mxu0 %v76_v23  ;;  %246 = vmatpush1.msra.mxu1 %v78_v24  ;;  %v60_v39 = vld [vmem:[#allocation2 + $0xc0] sm:$0xff]  ;;  %v62_v40 = vld [vmem:[#allocation2 + $0xd0] sm:$0xff]  ;;  %v57_v41 = vld [vmem:[#allocation2 + $0xa8] sm:$0xff] }
  0x1b   :  { %134 = vmatprep.subr.mxu0 %v73_v25  ;;  %247 = vmatprep.subr.mxu1 %v75_v26  ;;  %v59_v42 = vld [vmem:[#allocation2 + $0xb8] sm:$0xff]  ;;  %v56_v43 = vld [vmem:[#allocation2 + $0xa0] sm:$0xff]  ;;  %v58_v44 = vld [vmem:[#allocation2 + $0xb0] sm:$0xff] }
  0x1c   :  { %135 = vmatpush1.msra.mxu0 %v72_v27  ;;  %248 = vmatpush1.msra.mxu1 %v74_v28  ;;  %v53_v45 = vld [vmem:[#allocation2 + $0x88] sm:$0xff]  ;;  %v55_v46 = vld [vmem:[#allocation2 + $0x98] sm:$0xff]  ;;  %v52_v47 = vld [vmem:[#allocation2 + $0x80] sm:$0xff] }
  0x1d   :  { %136 = vmatprep.subr.mxu0 %v69_v29  ;;  %249 = vmatprep.subr.mxu1 %v71_v30  ;;  %v54_v48 = vld [vmem:[#allocation2 + $0x90] sm:$0xff]  ;;  %v49_v49 = vld [vmem:[#allocation2 + $0x68] sm:$0xff]  ;;  %v51_v50 = vld [vmem:[#allocation2 + $0x78] sm:$0xff] }
  0x1e   :  { %137 = vmatpush1.msra.mxu0 %v68_v31  ;;  %250 = vmatpush1.msra.mxu1 %v70_v32  ;;  %v48_v51 = vld [vmem:[#allocation2 + $0x60] sm:$0xff]  ;;  %v50_v52 = vld [vmem:[#allocation2 + $0x70] sm:$0xff]  ;;  %v45_v53 = vld [vmem:[#allocation2 + $0x48] sm:$0xff] }
  0x1f   :  { %138 = vmatprep.subr.mxu0 %v65_v33  ;;  %251 = vmatprep.subr.mxu1 %v67_v34  ;;  %v47_v54 = vld [vmem:[#allocation2 + $0x58] sm:$0xff]  ;;  %v44_v55 = vld [vmem:[#allocation2 + $0x40] sm:$0xff]  ;;  %v46_v56 = vld [vmem:[#allocation2 + $0x50] sm:$0xff] }
  0x20   :  { %139 = vmatpush1.msra.mxu0 %v64_v35  ;;  %252 = vmatpush1.msra.mxu1 %v66_v36  ;;  %v41_v57 = vld [vmem:[#allocation2 + $0x28] sm:$0xff]  ;;  %v43_v58 = vld [vmem:[#allocation2 + $0x38] sm:$0xff]  ;;  %v40_v59 = vld [vmem:[#allocation2 + $0x20] sm:$0xff] }
  0x21   :  { %140 = vmatprep.subr.mxu0 %v61_v37  ;;  %253 = vmatprep.subr.mxu1 %v63_v38  ;;  %v42_v60 = vld [vmem:[#allocation2 + $0x30] sm:$0xff]  ;;  %v37_v61 = vld [vmem:[#allocation2 + $0x8] sm:$0xff]  ;;  %v39_v62 = vld [vmem:[#allocation2 + $0x18] sm:$0xff] }
  0x22   :  { %141 = vmatpush1.msra.mxu0 %v60_v39  ;;  %254 = vmatpush1.msra.mxu1 %v62_v40  ;;  %v36_v63 = vld [vmem:[#allocation2] sm:$0xff]  ;;  %v38_v1 = vld [vmem:[#allocation2 + $0x10] sm:$0xff]  ;;  %v29_v3 = vld [vmem:[%s617_s0 + $0x8] sm:$0xff] }
  0x23   :  { %142 = vmatprep.subr.mxu0 %v57_v41  ;;  %255 = vmatprep.subr.mxu1 %v59_v42  ;;  %v28_v2 = vld [vmem:[%s617_s0] sm:$0xff]  ;;  %v30_v4 = vld [vmem:[%s617_s0 + $0x10] sm:$0xff]  ;;  %v31_v5 = vld [vmem:[%s617_s0 + $0x18] sm:$0xff] }
  0x24   :  { %143 = vmatpush1.msra.mxu0 %v56_v43  ;;  %256 = vmatpush1.msra.mxu1 %v58_v44  ;;  %v32_v6 = vld [vmem:[%s617_s0 + $0x20] sm:$0xff]  ;;  %v33_v7 = vld [vmem:[%s617_s0 + $0x28] sm:$0xff]  ;;  %v34_v8 = vld [vmem:[%s617_s0 + $0x30] sm:$0xff] }
  0x25   :  { %144 = vmatprep.subr.mxu0 %v53_v45  ;;  %257 = vmatprep.subr.mxu1 %v55_v46  ;;  %v35_v9 = vld [vmem:[%s617_s0 + $0x38] sm:$0xff]  ;;  %v100_v14 = vld [vmem:[%s619_s2] sm:$0xf] }
  0x26   :  { %145 = vmatpush1.msra.mxu0 %v52_v47  ;;  %258 = vmatpush1.msra.mxu1 %v54_v48  ;;  %v481_v17 = vrot.slane %v100_v14, %v104_v12  ;;  %v483_v18 = vrot.slane %v100_v14, %v112_v13  ;;  %v487_v19 = vrot.slane %v100_v14, %v116_v16 }
  0x27   :  { %146 = vmatprep.subr.mxu0 %v49_v49  ;;  %259 = vmatprep.subr.mxu1 %v51_v50 }
  0x28   :  { %147 = vmatpush1.msra.mxu0 %v48_v51  ;;  %260 = vmatpush1.msra.mxu1 %v50_v52 }
  0x29   :  { %148 = vmatprep.subr.mxu0 %v45_v53  ;;  %261 = vmatprep.subr.mxu1 %v47_v54 }
  0x2a   :  { %149 = vmatpush1.msra.mxu0 %v44_v55  ;;  %262 = vmatpush1.msra.mxu1 %v46_v56 }
  0x2b   :  { %150 = vmatprep.subr.mxu0 %v41_v57  ;;  %263 = vmatprep.subr.mxu1 %v43_v58 }
  0x2c   :  { %151 = vmatpush1.msra.mxu0 %v40_v59  ;;  %264 = vmatpush1.msra.mxu1 %v42_v60 }
  0x2d   :  { %152 = vmatprep.subr.mxu0 %v37_v61  ;;  %265 = vmatprep.subr.mxu1 %v39_v62 }
  0x2e   :  { %153 = vmatpush1.msra.mxu0 %v36_v63  ;;  %266 = vmatpush1.msra.mxu1 %v38_v1 }
  0x2f   :  { %187 = vmatmul.mubr.f32.vlgmr.msra.gmra.mxu0 %v28_v2  ;;  %300 = vmatmul.mubr.f32.vlgmr.msra.gmra.mxu1 %v28_v2 }
  0x30   :  { %192 = vmatprep.mubr.f32.mxu0 %v414_v0  ;;  %305 = vmatprep.mubr.f32.mxu1 %v414_v0 }
  0x33   :  { %193 = vmatmul.mubr.f32.gmra.mxu0 %v29_v3  ;;  %306 = vmatmul.mubr.f32.gmra.mxu1 %v29_v3 }
  0x34   :  { %198 = vmatprep.mubr.f32.mxu0 %v414_v0  ;;  %311 = vmatprep.mubr.f32.mxu1 %v414_v0 }
  0x37   :  { %199 = vmatmul.mubr.f32.gmra.mxu0 %v30_v4  ;;  %312 = vmatmul.mubr.f32.gmra.mxu1 %v30_v4 }
  0x38   :  { %204 = vmatprep.mubr.f32.mxu0 %v414_v0  ;;  %317 = vmatprep.mubr.f32.mxu1 %v414_v0 }
  0x3b   :  { %205 = vmatmul.mubr.f32.gmra.mxu0 %v31_v5  ;;  %318 = vmatmul.mubr.f32.gmra.mxu1 %v31_v5 }
  0x3c   :  { %210 = vmatprep.mubr.f32.mxu0 %v414_v0  ;;  %323 = vmatprep.mubr.f32.mxu1 %v414_v0 }
  0x3f   :  { %211 = vmatmul.mubr.f32.gmra.mxu0 %v32_v6  ;;  %324 = vmatmul.mubr.f32.gmra.mxu1 %v32_v6 }
  0x40   :  { %216 = vmatprep.mubr.f32.mxu0 %v414_v0  ;;  %329 = vmatprep.mubr.f32.mxu1 %v414_v0 }
  0x43   :  { %217 = vmatmul.mubr.f32.gmra.mxu0 %v33_v7  ;;  %330 = vmatmul.mubr.f32.gmra.mxu1 %v33_v7 }
  0x44   :  { %222 = vmatprep.mubr.f32.mxu0 %v414_v0  ;;  %335 = vmatprep.mubr.f32.mxu1 %v414_v0 }
  0x47   :  { %223 = vmatmul.mubr.f32.gmra.mxu0 %v34_v8  ;;  %336 = vmatmul.mubr.f32.gmra.mxu1 %v34_v8 }
  0x48   :  { %228 = vmatprep.mubr.f32.mxu0 %v414_v0  ;;  %341 = vmatprep.mubr.f32.mxu1 %v414_v0  ;;  %v485_v0 = vrot.slane %v100_v14, %v108_v15 }
  0x4b   :  { %229 = vmatmul.mubr.f32.gmra.mxu0 %v35_v9  ;;  %342 = vmatmul.mubr.f32.gmra.mxu1 %v35_v9 }
  0xef   :  { %v188_v20 = vpop.f32.mrf.mxu0  ;;  %v301_v21 = vpop.f32.mrf.mxu1 }
  0xf0   :  { %v189_v22 = vadd.f32 %v188_v20, %v481_v17  ;;  %v302_v23 = vadd.f32 %v301_v21, %v483_v18 }
  0xf1   :  { %v190_v24 = vpop.f32.mrf.mxu0  ;;  %v303_v25 = vpop.f32.mrf.mxu1 }
  0xf2   :  { %348 = vst [vmem:[%s620_s3] sm:$0xff] %v189_v22  ;;  %350 = vst [vmem:[%s620_s3 + $0x10] sm:$0xff] %v302_v23  ;;  %v191_v26 = vadd.f32 %v190_v24, %v485_v0  ;;  %v304_v27 = vadd.f32 %v303_v25, %v487_v19 }
  0xf3   :  { %v194_v28 = vpop.f32.mrf.mxu0  ;;  %v307_v29 = vpop.f32.mrf.mxu1 }
  0xf4   :  { %349 = vst [vmem:[%s620_s3 + $0x8] sm:$0xff] %v191_v26  ;;  %351 = vst [vmem:[%s620_s3 + $0x18] sm:$0xff] %v304_v27  ;;  %v195_v30 = vadd.f32 %v194_v28, %v481_v17  ;;  %v308_v31 = vadd.f32 %v307_v29, %v483_v18 }
  0xf5   :  { %v196_v32 = vpop.f32.mrf.mxu0  ;;  %v309_v33 = vpop.f32.mrf.mxu1 }
  0xf6   :  { %352 = vst [vmem:[%s620_s3 + $0x20] sm:$0xff] %v195_v30  ;;  %354 = vst [vmem:[%s620_s3 + $0x30] sm:$0xff] %v308_v31  ;;  %v197_v34 = vadd.f32 %v196_v32, %v485_v0  ;;  %v310_v35 = vadd.f32 %v309_v33, %v487_v19 }
  0xf7   :  { %v200_v36 = vpop.f32.mrf.mxu0  ;;  %v313_v37 = vpop.f32.mrf.mxu1 }
  0xf8   :  { %353 = vst [vmem:[%s620_s3 + $0x28] sm:$0xff] %v197_v34  ;;  %355 = vst [vmem:[%s620_s3 + $0x38] sm:$0xff] %v310_v35  ;;  %v201_v38 = vadd.f32 %v200_v36, %v481_v17  ;;  %v314_v39 = vadd.f32 %v313_v37, %v483_v18 }
  0xf9   :  { %v202_v40 = vpop.f32.mrf.mxu0  ;;  %v315_v41 = vpop.f32.mrf.mxu1 }
  0xfa   :  { %356 = vst [vmem:[%s620_s3 + $0x40] sm:$0xff] %v201_v38  ;;  %358 = vst [vmem:[%s620_s3 + $0x50] sm:$0xff] %v314_v39  ;;  %v203_v42 = vadd.f32 %v202_v40, %v485_v0  ;;  %v316_v43 = vadd.f32 %v315_v41, %v487_v19 }
  0xfb   :  { %v206_v44 = vpop.f32.mrf.mxu0  ;;  %v319_v45 = vpop.f32.mrf.mxu1 }
  0xfc   :  { %357 = vst [vmem:[%s620_s3 + $0x48] sm:$0xff] %v203_v42  ;;  %359 = vst [vmem:[%s620_s3 + $0x58] sm:$0xff] %v316_v43  ;;  %v207_v46 = vadd.f32 %v206_v44, %v481_v17  ;;  %v320_v47 = vadd.f32 %v319_v45, %v483_v18 }
  0xfd   :  { %v208_v48 = vpop.f32.mrf.mxu0  ;;  %v321_v49 = vpop.f32.mrf.mxu1 }
  0xfe   :  { %360 = vst [vmem:[%s620_s3 + $0x60] sm:$0xff] %v207_v46  ;;  %362 = vst [vmem:[%s620_s3 + $0x70] sm:$0xff] %v320_v47  ;;  %v209_v50 = vadd.f32 %v208_v48, %v485_v0  ;;  %v322_v51 = vadd.f32 %v321_v49, %v487_v19 }
  0xff   :  { %v212_v52 = vpop.f32.mrf.mxu0  ;;  %v325_v53 = vpop.f32.mrf.mxu1 }
 0x100   :  { %361 = vst [vmem:[%s620_s3 + $0x68] sm:$0xff] %v209_v50  ;;  %363 = vst [vmem:[%s620_s3 + $0x78] sm:$0xff] %v322_v51  ;;  %v213_v54 = vadd.f32 %v212_v52, %v481_v17  ;;  %v326_v55 = vadd.f32 %v325_v53, %v483_v18 }
 0x101   :  { %v214_v56 = vpop.f32.mrf.mxu0  ;;  %v327_v57 = vpop.f32.mrf.mxu1 }
 0x102   :  { %364 = vst [vmem:[%s620_s3 + $0x80] sm:$0xff] %v213_v54  ;;  %366 = vst [vmem:[%s620_s3 + $0x90] sm:$0xff] %v326_v55  ;;  %v215_v58 = vadd.f32 %v214_v56, %v485_v0  ;;  %v328_v59 = vadd.f32 %v327_v57, %v487_v19 }
 0x103   :  { %v218_v60 = vpop.f32.mrf.mxu0  ;;  %v331_v61 = vpop.f32.mrf.mxu1 }
 0x104   :  { %365 = vst [vmem:[%s620_s3 + $0x88] sm:$0xff] %v215_v58  ;;  %367 = vst [vmem:[%s620_s3 + $0x98] sm:$0xff] %v328_v59  ;;  %v219_v62 = vadd.f32 %v218_v60, %v481_v17  ;;  %v332_v63 = vadd.f32 %v331_v61, %v483_v18 }
 0x105   :  { %v220_v1 = vpop.f32.mrf.mxu0  ;;  %v333_v2 = vpop.f32.mrf.mxu1 }
 0x106   :  { %368 = vst [vmem:[%s620_s3 + $0xa0] sm:$0xff] %v219_v62  ;;  %370 = vst [vmem:[%s620_s3 + $0xb0] sm:$0xff] %v332_v63  ;;  %v221_v3 = vadd.f32 %v220_v1, %v485_v0  ;;  %v334_v4 = vadd.f32 %v333_v2, %v487_v19 }
 0x107   :  { %v224_v5 = vpop.f32.mrf.mxu0  ;;  %v337_v6 = vpop.f32.mrf.mxu1 }
 0x108   :  { %369 = vst [vmem:[%s620_s3 + $0xa8] sm:$0xff] %v221_v3  ;;  %371 = vst [vmem:[%s620_s3 + $0xb8] sm:$0xff] %v334_v4  ;;  %v225_v7 = vadd.f32 %v224_v5, %v481_v17  ;;  %v338_v8 = vadd.f32 %v337_v6, %v483_v18 }
 0x109   :  { %v226_v9 = vpop.f32.mrf.mxu0  ;;  %v339_v10 = vpop.f32.mrf.mxu1 }
 0x10a   :  { %372 = vst [vmem:[%s620_s3 + $0xc0] sm:$0xff] %v225_v7  ;;  %374 = vst [vmem:[%s620_s3 + $0xd0] sm:$0xff] %v338_v8  ;;  %v227_v11 = vadd.f32 %v226_v9, %v485_v0  ;;  %v340_v12 = vadd.f32 %v339_v10, %v487_v19 }
 0x10b   :  { %v230_v13 = vpop.f32.mrf.mxu0  ;;  %v343_v14 = vpop.f32.mrf.mxu1 }
 0x10c   :  { %373 = vst [vmem:[%s620_s3 + $0xc8] sm:$0xff] %v227_v11  ;;  %375 = vst [vmem:[%s620_s3 + $0xd8] sm:$0xff] %v340_v12  ;;  %v231_v15 = vadd.f32 %v230_v13, %v481_v17  ;;  %v344_v16 = vadd.f32 %v343_v14, %v483_v18 }
 0x10d   :  { %v232_v20 = vpop.f32.mrf.mxu0  ;;  %v345_v21 = vpop.f32.mrf.mxu1 }
 0x10e   :  { %376 = vst [vmem:[%s620_s3 + $0xe0] sm:$0xff] %v231_v15  ;;  %378 = vst [vmem:[%s620_s3 + $0xf0] sm:$0xff] %v344_v16  ;;  %v233_v22 = vadd.f32 %v232_v20, %v485_v0  ;;  %v346_v23 = vadd.f32 %v345_v21, %v487_v19 }
 0x110   :  { %377 = vst [vmem:[%s620_s3 + $0xe8] sm:$0xff] %v233_v22  ;;  %379 = vst [vmem:[%s620_s3 + $0xf8] sm:$0xff] %v346_v23 }
 0x111   :  { %384 = vsyncpa [#allocation3], 1 }

// kernel: decoder_forward.4
= control target key start
LH: loop header
LB: loop body
LE: loop exit
PB: predicated region body
PF: predicated region fallthrough
CT: control target
= control target key end

     0   :  { %10 = vsyncpa [#allocation3], 0  ;;  %s6026_s18 = smov [#allocation2]   ;;  %s11005_s0 = inlined_call_operand.vmem [shape: f32[8,8,512], index: 0, kind: input, shape index: {}]   ;;  %s11006_s1 = inlined_call_operand.vmem [shape: f32[128,512], index: 1, kind: input, shape index: {}]   ;;  %s11007_s2 = inlined_call_operand.vmem [shape: f32[128,512], index: 2, kind: input, shape index: {}]   ;;  %s11008_s3 = inlined_call_operand.hbm [shape: f32[128,512], index: 3, kind: input, shape index: {}]   ;;  %s11009_s4 = inlined_call_operand.vmem [shape: f32[1,512], index: 4, kind: input, shape index: {}]   ;;  %s11010_s5 = inlined_call_operand.vmem [shape: f32[8,8,128], index: 5, kind: output, shape index: {}]  }
   0x1   :  { %s22_s19 = sshll.u32 %s6026_s18, 4  ;;  %s23_s19 = int_to_ptr.vmem [resolvable:$true] %s22_s19 }
   0x2   :  { %s6012_s20 = scalar_lea.vmem %s23_s19, 8192  ;;  %p6017_p1 = scmp.lt.s32.totalorder %s23_s19, %s23_s19 }
   0x3   :  { %p6013_p0 = scmp.ne.s32.totalorder %s23_s19, %s6012_s20  ;;  %p6018_p2 = scmp.lt.s32.totalorder %s6012_s20, %s6012_s20 }
   0x5   :  { %p6019_p3 = por %p6018_p2, %p6017_p1 }
   0x7   :  { %p6020_p4 = pnand %p6019_p3, %p6013_p0 }
   0x9   :  { %6023 = shalt.err (!%p6020_p4)
}
   0xa   :  { %s6027_s21 = smov 512   ;;  %s6028_s22 = smov 32  }
   0xb   :  { %28 = dma.hbm_to_vmem [thread:$0]  %s11008_s3, 8192, %s23_s19, [#allocation3], %s6027_s21, %s6027_s21, %s6028_s22  }
   0xc   :  { %6024 = dma.done.wait [#allocation3], 8192  }
   0xd   :  { %6025 = vsyncadd [#allocation3], 4294959104  ;;  %v11011_v0 = vmov 0.0   ;;  %v6068_v1 = vld [vmem:[%s11006_s1 + $0x1e8] sm:$0xff]  ;;  %v6073_v2 = vld [vmem:[%s11006_s1 + $0x1e0] sm:$0xff] }
   0xe   :  { %162 = vmatprep.mubr.f32.mxu0 %v11011_v0  ;;  %233 = vmatprep.mubr.f32.mxu1 %v11011_v0  ;;  %v6078_v3 = vld [vmem:[%s11006_s1 + $0x1c8] sm:$0xff]  ;;  %v6084_v4 = vld [vmem:[%s11006_s1 + $0x1c0] sm:$0xff]  ;;  %v6113_v9 = vld [vmem:[%s11006_s1 + $0x1f8] sm:$0xff] }
   0xf   :  { %98 = vmatprep.subr.mxu0 %v6068_v1  ;;  %v6090_v5 = vld [vmem:[%s11006_s1 + $0x1a8] sm:$0xff]  ;;  %v6096_v6 = vld [vmem:[%s11006_s1 + $0x1a0] sm:$0xff]  ;;  %169 = vmatprep.subr.mxu1 %v6113_v9  ;;  %v6125_v11 = vld [vmem:[%s11006_s1 + $0x1f0] sm:$0xff] }
  0x10   :  { %99 = vmatpush1.msra.mxu0 %v6073_v2  ;;  %v6102_v7 = vld [vmem:[%s11006_s1 + $0x188] sm:$0xff]  ;;  %v6108_v8 = vld [vmem:[%s11006_s1 + $0x180] sm:$0xff]  ;;  %170 = vmatpush1.msra.mxu1 %v6125_v11  ;;  %v6137_v13 = vld [vmem:[%s11006_s1 + $0x1d8] sm:$0xff] }
  0x11   :  { %100 = vmatprep.subr.mxu0 %v6078_v3  ;;  %v6119_v10 = vld [vmem:[%s11006_s1 + $0x168] sm:$0xff]  ;;  %v6131_v12 = vld [vmem:[%s11006_s1 + $0x160] sm:$0xff]  ;;  %v6142_v14 = vld [vmem:[%s11006_s1 + $0x1d0] sm:$0xff]  ;;  %171 = vmatprep.subr.mxu1 %v6137_v13 }
  0x12   :  { %101 = vmatpush1.msra.mxu0 %v6084_v4  ;;  %v6148_v15 = vld [vmem:[%s11006_s1 + $0x148] sm:$0xff]  ;;  %v6154_v16 = vld [vmem:[%s11006_s1 + $0x1b8] sm:$0xff]  ;;  %v6160_v17 = vld [vmem:[%s11006_s1 + $0x140] sm:$0xff]  ;;  %172 = vmatpush1.msra.mxu1 %v6142_v14 }
  0x13   :  { %102 = vmatprep.subr.mxu0 %v6090_v5  ;;  %v6166_v18 = vld [vmem:[%s11006_s1 + $0x1b0] sm:$0xff]  ;;  %v6171_v19 = vld [vmem:[%s11006_s1 + $0x198] sm:$0xff]  ;;  %v6177_v20 = vld [vmem:[%s11006_s1 + $0x128] sm:$0xff]  ;;  %173 = vmatprep.subr.mxu1 %v6154_v16 }
  0x14   :  { %103 = vmatpush1.msra.mxu0 %v6096_v6  ;;  %v6183_v21 = vld [vmem:[%s11006_s1 + $0x190] sm:$0xff]  ;;  %v6189_v22 = vld [vmem:[%s11006_s1 + $0x120] sm:$0xff]  ;;  %174 = vmatpush1.msra.mxu1 %v6166_v18  ;;  %v6195_v23 = vld [vmem:[%s11006_s1 + $0x178] sm:$0xff] }
  0x15   :  { %104 = vmatprep.subr.mxu0 %v6102_v7  ;;  %v6201_v24 = vld [vmem:[%s11006_s1 + $0x108] sm:$0xff]  ;;  %175 = vmatprep.subr.mxu1 %v6171_v19  ;;  %v6207_v25 = vld [vmem:[%s11006_s1 + $0x170] sm:$0xff]  ;;  %v6213_v26 = vld [vmem:[%s11006_s1 + $0x100] sm:$0xff] }
  0x16   :  { %105 = vmatpush1.msra.mxu0 %v6108_v8  ;;  %176 = vmatpush1.msra.mxu1 %v6183_v21  ;;  %v6219_v27 = vld [vmem:[%s11006_s1 + $0x158] sm:$0xff]  ;;  %v6225_v28 = vld [vmem:[%s11006_s1 + $0xe8] sm:$0xff]  ;;  %v6231_v29 = vld [vmem:[%s11006_s1 + $0x150] sm:$0xff] }
  0x17   :  { %106 = vmatprep.subr.mxu0 %v6119_v10  ;;  %177 = vmatprep.subr.mxu1 %v6195_v23  ;;  %v6237_v30 = vld [vmem:[%s11006_s1 + $0xe0] sm:$0xff]  ;;  %v6243_v31 = vld [vmem:[%s11006_s1 + $0x138] sm:$0xff]  ;;  %v6249_v32 = vld [vmem:[%s11006_s1 + $0xc8] sm:$0xff] }
  0x18   :  { %107 = vmatpush1.msra.mxu0 %v6131_v12  ;;  %178 = vmatpush1.msra.mxu1 %v6207_v25  ;;  %v6255_v33 = vld [vmem:[%s11006_s1 + $0x130] sm:$0xff]  ;;  %v6261_v34 = vld [vmem:[%s11006_s1 + $0xc0] sm:$0xff]  ;;  %v6267_v35 = vld [vmem:[%s11006_s1 + $0x118] sm:$0xff] }
  0x19   :  { %108 = vmatprep.subr.mxu0 %v6148_v15  ;;  %179 = vmatprep.subr.mxu1 %v6219_v27  ;;  %v6273_v36 = vld [vmem:[%s11006_s1 + $0xa8] sm:$0xff]  ;;  %v6279_v37 = vld [vmem:[%s11006_s1 + $0x110] sm:$0xff]  ;;  %v6285_v38 = vld [vmem:[%s11006_s1 + $0xa0] sm:$0xff] }
  0x1a   :  { %109 = vmatpush1.msra.mxu0 %v6160_v17  ;;  %180 = vmatpush1.msra.mxu1 %v6231_v29  ;;  %v6291_v39 = vld [vmem:[%s11006_s1 + $0xf8] sm:$0xff]  ;;  %v6297_v40 = vld [vmem:[%s11006_s1 + $0x88] sm:$0xff]  ;;  %v6303_v41 = vld [vmem:[%s11006_s1 + $0xf0] sm:$0xff] }
  0x1b   :  { %110 = vmatprep.subr.mxu0 %v6177_v20  ;;  %181 = vmatprep.subr.mxu1 %v6243_v31  ;;  %v6309_v42 = vld [vmem:[%s11006_s1 + $0x80] sm:$0xff]  ;;  %v6315_v43 = vld [vmem:[%s11006_s1 + $0xd8] sm:$0xff]  ;;  %v6321_v44 = vld [vmem:[%s11006_s1 + $0x68] sm:$0xff] }
  0x1c   :  { %111 = vmatpush1.msra.mxu0 %v6189_v22  ;;  %182 = vmatpush1.msra.mxu1 %v6255_v33  ;;  %11575 = vst [vmem:[#allocation5_spill] sm:$0xff] %v6321_v44  ;;  %v6327_v45 = vld [vmem:[%s11006_s1 + $0xd0] sm:$0xff]  ;;  %v6333_v46 = vld [vmem:[%s11006_s1 + $0x60] sm:$0xff]  ;;  %v6339_v47 = vld [vmem:[%s11006_s1 + $0xb8] sm:$0xff] }
  0x1d   :  { %112 = vmatprep.subr.mxu0 %v6201_v24  ;;  %183 = vmatprep.subr.mxu1 %v6267_v35  ;;  %11576 = vst [vmem:[#allocation6_spill] sm:$0xff] %v6333_v46  ;;  %v6345_v48 = vld [vmem:[%s11006_s1 + $0x48] sm:$0xff]  ;;  %v6351_v49 = vld [vmem:[%s11006_s1 + $0xb0] sm:$0xff]  ;;  %v6357_v50 = vld [vmem:[%s11006_s1 + $0x40] sm:$0xff] }
  0x1e   :  { %113 = vmatpush1.msra.mxu0 %v6213_v26  ;;  %184 = vmatpush1.msra.mxu1 %v6279_v37  ;;  %11577 = vst [vmem:[#allocation7_spill] sm:$0xff] %v6345_v48  ;;  %11578 = vst [vmem:[#allocation8_spill] sm:$0xff] %v6357_v50  ;;  %v6363_v51 = vld [vmem:[%s11006_s1 + $0x98] sm:$0xff]  ;;  %v6369_v52 = vld [vmem:[%s11006_s1 + $0x28] sm:$0xff] }
  0x1f   :  { %114 = vmatprep.subr.mxu0 %v6225_v28  ;;  %185 = vmatprep.subr.mxu1 %v6291_v39  ;;  %11579 = vst [vmem:[#allocation9_spill] sm:$0xff] %v6369_v52  ;;  %v6375_v53 = vld [vmem:[%s11006_s1 + $0x90] sm:$0xff]  ;;  %v6381_v54 = vld [vmem:[%s11006_s1 + $0x20] sm:$0xff]  ;;  %v6387_v55 = vld [vmem:[%s11006_s1 + $0x78] sm:$0xff] }
  0x20   :  { %115 = vmatpush1.msra.mxu0 %v6237_v30  ;;  %186 = vmatpush1.msra.mxu1 %v6303_v41  ;;  %11580 = vst [vmem:[#allocation10_spill] sm:$0xff] %v6375_v53  ;;  %11581 = vst [vmem:[#allocation11_spill] sm:$0xff] %v6381_v54  ;;  %v6393_v56 = vld [vmem:[%s11006_s1 + $0x8] sm:$0xff]  ;;  %v6399_v57 = vld [vmem:[%s11006_s1 + $0x70] sm:$0xff] }
  0x21   :  { %116 = vmatprep.subr.mxu0 %v6249_v32  ;;  %187 = vmatprep.subr.mxu1 %v6315_v43  ;;  %11582 = vst [vmem:[#allocation12_spill] sm:$0xff] %v6387_v55  ;;  %11583 = vst [vmem:[#allocation13_spill] sm:$0xff] %v6393_v56  ;;  %v6405_v58 = vld [vmem:[%s11006_s1] sm:$0xff]  ;;  %v6411_v59 = vld [vmem:[%s11006_s1 + $0x58] sm:$0xff] }
  0x22   :  { %117 = vmatpush1.msra.mxu0 %v6261_v34  ;;  %188 = vmatpush1.msra.mxu1 %v6327_v45  ;;  %11584 = vst [vmem:[#allocation14_spill] sm:$0xff] %v6399_v57  ;;  %11585 = vst [vmem:[#allocation15_spill] sm:$0xff] %v6405_v58  ;;  %v6418_v60 = vld [vmem:[%s11006_s1 + $0x50] sm:$0xff]  ;;  %v6425_v61 = vld [vmem:[%s11006_s1 + $0x38] sm:$0xff] }
  0x23   :  { %118 = vmatprep.subr.mxu0 %v6273_v36  ;;  %189 = vmatprep.subr.mxu1 %v6339_v47  ;;  %11586 = vst [vmem:[#allocation16_spill] sm:$0xff] %v6411_v59  ;;  %11587 = vst [vmem:[#allocation17_spill] sm:$0xff] %v6418_v60  ;;  %v6427_v62 = vld [vmem:[#allocation2 + $0x1e8] sm:$0xff]  ;;  %v6434_v63 = vld [vmem:[%s11006_s1 + $0x30] sm:$0xff] }
  0x24   :  { %119 = vmatpush1.msra.mxu0 %v6285_v38  ;;  %190 = vmatpush1.msra.mxu1 %v6351_v49  ;;  %11588 = vst [vmem:[#allocation18_spill] sm:$0xff] %v6425_v61  ;;  %11589 = vst [vmem:[#allocation19_spill] sm:$0xff] %v6427_v62  ;;  %v6436_v0 = vld [vmem:[#allocation2 + $0x1e0] sm:$0xff] }
  0x25   :  { %120 = vmatprep.subr.mxu0 %v6297_v40  ;;  %191 = vmatprep.subr.mxu1 %v6363_v51  ;;  %11590 = vst [vmem:[#allocation20_spill] sm:$0xff] %v6434_v63  ;;  %11591 = vst [vmem:[#allocation21_spill] sm:$0xff] %v6436_v0 }
  0x26   :  { %121 = vmatpush1.msra.mxu0 %v6309_v42  ;;  %192 = vmatpush1.msra.mxu1 %v6375_v53 }
  0x27   :  { %122 = vmatprep.subr.mxu0 %v6321_v44  ;;  %193 = vmatprep.subr.mxu1 %v6387_v55 }
  0x28   :  { %123 = vmatpush1.msra.mxu0 %v6333_v46  ;;  %194 = vmatpush1.msra.mxu1 %v6399_v57 }
  0x29   :  { %124 = vmatprep.subr.mxu0 %v6345_v48  ;;  %195 = vmatprep.subr.mxu1 %v6411_v59  ;;  %v6461_v59 = vld [vmem:[#allocation2 + $0x1f0] sm:$0xff]  ;;  %v6467_v48 = vld [vmem:[#allocation2 + $0x1d8] sm:$0xff] }
  0x2a   :  { %125 = vmatpush1.msra.mxu0 %v6357_v50  ;;  %196 = vmatpush1.msra.mxu1 %v6418_v60  ;;  %v6454_v50 = vld [vmem:[#allocation2 + $0x1c0] sm:$0xff]  ;;  %v6457_v60 = vld [vmem:[#allocation2 + $0x1f8] sm:$0xff]  ;;  %11598 = vst [vmem:[#allocation27_spill] sm:$0xff] %v6461_v59  ;;  %11600 = vst [vmem:[#allocation29_spill] sm:$0xff] %v6467_v48 }
  0x2b   :  { %126 = vmatprep.subr.mxu0 %v6369_v52  ;;  %v6445_v52 = vld [vmem:[#allocation2 + $0x1c8] sm:$0xff]  ;;  %197 = vmatprep.subr.mxu1 %v6425_v61  ;;  %11596 = vst [vmem:[#allocation25_spill] sm:$0xff] %v6454_v50  ;;  %11597 = vst [vmem:[#allocation26_spill] sm:$0xff] %v6457_v60 }
  0x2c   :  { %127 = vmatpush1.msra.mxu0 %v6381_v54  ;;  %v6443_v54 = vld [vmem:[%s11006_s1 + $0x18] sm:$0xff]  ;;  %11594 = vst [vmem:[#allocation23_spill] sm:$0xff] %v6445_v52  ;;  %198 = vmatpush1.msra.mxu1 %v6434_v63  ;;  %v6464_v61 = vld [vmem:[#allocation2 + $0x1a8] sm:$0xff] }
  0x2d   :  { %128 = vmatprep.subr.mxu0 %v6393_v56  ;;  %v11592_v56 = vmov 0.0   ;;  %11593 = vst [vmem:[#allocation22_spill] sm:$0xff] %v6443_v54  ;;  %199 = vmatprep.subr.mxu1 %v6443_v54  ;;  %11599 = vst [vmem:[#allocation28_spill] sm:$0xff] %v6464_v61  ;;  %v6476_v54 = vld [vmem:[#allocation2 + $0x188] sm:$0xff] }
  0x2e   :  { %129 = vmatpush1.msra.mxu0 %v6405_v58  ;;  %v6451_v58 = vld [vmem:[%s11006_s1 + $0x10] sm:$0xff]  ;;  %11603 = vst [vmem:[#allocation32_spill] sm:$0xff] %v6476_v54 }
  0x2f   :  { %163 = vmatmul.mubr.f32.vlgmr.msra.gmra.mxu0 %v11592_v56  ;;  %11595 = vst [vmem:[#allocation24_spill] sm:$0xff] %v6451_v58  ;;  %304 = vmatprep.subr.mxu0 %v6427_v62  ;;  %v6470_v62 = vld [vmem:[#allocation2 + $0x1a0] sm:$0xff] }
  0x30   :  { %305 = vmatpush1.msra.mxu0 %v6436_v0  ;;  %200 = vmatpush1.msra.mxu1 %v6451_v58  ;;  %11601 = vst [vmem:[#allocation30_spill] sm:$0xff] %v6470_v62  ;;  %v6474_v0 = vld [vmem:[#allocation2 + $0x1d0] sm:$0xff]  ;;  %v6482_v58 = vld [vmem:[#allocation2 + $0x180] sm:$0xff] }
  0x31   :  { %306 = vmatprep.subr.mxu0 %v6445_v52  ;;  %234 = vmatmul.mubr.f32.vlgmr.msra.gmra.mxu1 %v11592_v56  ;;  %11602 = vst [vmem:[#allocation31_spill] sm:$0xff] %v6474_v0  ;;  %v6480_v52 = vld [vmem:[#allocation2 + $0x1b8] sm:$0xff]  ;;  %11605 = vst [vmem:[#allocation34_spill] sm:$0xff] %v6482_v58 }
  0x32   :  { %307 = vmatpush1.msra.mxu0 %v6454_v50  ;;  %375 = vmatprep.subr.mxu1 %v6457_v60  ;;  %11604 = vst [vmem:[#allocation33_spill] sm:$0xff] %v6480_v52  ;;  %v6486_v50 = vld [vmem:[#allocation2 + $0x1b0] sm:$0xff]  ;;  %v6490_v60 = vld [vmem:[#allocation2 + $0x198] sm:$0xff] }
  0x33   :  { %376 = vmatpush1.msra.mxu1 %v6461_v59  ;;  %308 = vmatprep.subr.mxu0 %v6464_v61  ;;  %11606 = vst [vmem:[#allocation35_spill] sm:$0xff] %v6486_v50  ;;  %11607 = vst [vmem:[#allocation36_spill] sm:$0xff] %v6490_v60  ;;  %v6494_v61 = vld [vmem:[#allocation2 + $0x190] sm:$0xff] }
  0x34   :  { %377 = vmatprep.subr.mxu1 %v6467_v48  ;;  %309 = vmatpush1.msra.mxu0 %v6470_v62  ;;  %11608 = vst [vmem:[#allocation37_spill] sm:$0xff] %v6494_v61  ;;  %v6501_v62 = vld [vmem:[#allocation2 + $0x168] sm:$0xff]  ;;  %v448_v59 = vld [vmem:[%s11005_s0 + $0x10] sm:$0xff] }
  0x35   :  { %378 = vmatpush1.msra.mxu1 %v6474_v0  ;;  %310 = vmatprep.subr.mxu0 %v6476_v54  ;;  %11609 = vst [vmem:[#allocation38_spill] sm:$0xff] %v6501_v62  ;;  %v6503_v54 = vld [vmem:[#allocation2 + $0x178] sm:$0xff] }
  0x36   :  { %379 = vmatprep.subr.mxu1 %v6480_v52  ;;  %311 = vmatpush1.msra.mxu0 %v6482_v58  ;;  %11610 = vst [vmem:[#allocation39_spill] sm:$0xff] %v6503_v54  ;;  %v6507_v58 = vld [vmem:[#allocation2 + $0x160] sm:$0xff]  ;;  %v6509_v52 = vld [vmem:[#allocation2 + $0x170] sm:$0xff]  ;;  %v6622_v0 = vld [vmem:[#allocation2 + $0x38] sm:$0xff] }
  0x37   :  { %380 = vmatpush1.msra.mxu1 %v6486_v50  ;;  %368 = vmatprep.mubr.f32.mxu0 %v11592_v56  ;;  %11611 = vst [vmem:[#allocation40_spill] sm:$0xff] %v6507_v58  ;;  %11612 = vst [vmem:[#allocation41_spill] sm:$0xff] %v6509_v52  ;;  %v6515_v50 = vld [vmem:[#allocation2 + $0x158] sm:$0xff] }
  0x38   :  { %381 = vmatprep.subr.mxu1 %v6490_v60  ;;  %439 = vmatprep.mubr.f32.mxu1 %v11592_v56  ;;  %v6513_v60 = vld [vmem:[#allocation2 + $0x148] sm:$0xff]  ;;  %11614 = vst [vmem:[#allocation43_spill] sm:$0xff] %v6515_v50  ;;  %11650 = vst [vmem:[#allocation79_spill] sm:$0xff] %v6622_v0 }
  0x39   :  { %382 = vmatpush1.msra.mxu1 %v6494_v61  ;;  %312 = vmatprep.subr.mxu0 %v6501_v62  ;;  %11613 = vst [vmem:[#allocation42_spill] sm:$0xff] %v6513_v60  ;;  %v6519_v61 = vld [vmem:[#allocation2 + $0x140] sm:$0xff]  ;;  %v6521_v62 = vld [vmem:[#allocation2 + $0x150] sm:$0xff] }
  0x3a   :  { %383 = vmatprep.subr.mxu1 %v6503_v54  ;;  %313 = vmatpush1.msra.mxu0 %v6507_v58  ;;  %11615 = vst [vmem:[#allocation44_spill] sm:$0xff] %v6519_v61  ;;  %11616 = vst [vmem:[#allocation45_spill] sm:$0xff] %v6521_v62  ;;  %v6525_v54 = vld [vmem:[#allocation2 + $0x128] sm:$0xff]  ;;  %v6527_v58 = vld [vmem:[#allocation2 + $0x138] sm:$0xff] }
  0x3b   :  { %384 = vmatpush1.msra.mxu1 %v6509_v52  ;;  %314 = vmatprep.subr.mxu0 %v6513_v60  ;;  %11617 = vst [vmem:[#allocation46_spill] sm:$0xff] %v6525_v54  ;;  %11618 = vst [vmem:[#allocation47_spill] sm:$0xff] %v6527_v58  ;;  %v6531_v52 = vld [vmem:[#allocation2 + $0x120] sm:$0xff]  ;;  %v6533_v60 = vld [vmem:[#allocation2 + $0x130] sm:$0xff] }
  0x3c   :  { %385 = vmatprep.subr.mxu1 %v6515_v50  ;;  %315 = vmatpush1.msra.mxu0 %v6519_v61  ;;  %11619 = vst [vmem:[#allocation48_spill] sm:$0xff] %v6531_v52  ;;  %11620 = vst [vmem:[#allocation49_spill] sm:$0xff] %v6533_v60  ;;  %v6537_v50 = vld [vmem:[#allocation2 + $0x108] sm:$0xff]  ;;  %v6539_v61 = vld [vmem:[#allocation2 + $0x118] sm:$0xff] }
  0x3d   :  { %386 = vmatpush1.msra.mxu1 %v6521_v62  ;;  %316 = vmatprep.subr.mxu0 %v6525_v54  ;;  %11621 = vst [vmem:[#allocation50_spill] sm:$0xff] %v6537_v50  ;;  %11622 = vst [vmem:[#allocation51_spill] sm:$0xff] %v6539_v61  ;;  %v6543_v62 = vld [vmem:[#allocation2 + $0x100] sm:$0xff]  ;;  %v6545_v54 = vld [vmem:[#allocation2 + $0x110] sm:$0xff] }
  0x3e   :  { %387 = vmatprep.subr.mxu1 %v6527_v58  ;;  %317 = vmatpush1.msra.mxu0 %v6531_v52  ;;  %11623 = vst [vmem:[#allocation52_spill] sm:$0xff] %v6543_v62  ;;  %11624 = vst [vmem:[#allocation53_spill] sm:$0xff] %v6545_v54  ;;  %v6549_v58 = vld [vmem:[#allocation2 + $0xe8] sm:$0xff]  ;;  %v6551_v52 = vld [vmem:[#allocation2 + $0xf8] sm:$0xff] }
  0x3f   :  { %388 = vmatpush1.msra.mxu1 %v6533_v60  ;;  %318 = vmatprep.subr.mxu0 %v6537_v50  ;;  %11625 = vst [vmem:[#allocation54_spill] sm:$0xff] %v6549_v58  ;;  %11626 = vst [vmem:[#allocation55_spill] sm:$0xff] %v6551_v52  ;;  %v6555_v60 = vld [vmem:[#allocation2 + $0xe0] sm:$0xff]  ;;  %v6557_v50 = vld [vmem:[#allocation2 + $0xf0] sm:$0xff] }
  0x40   :  { %389 = vmatprep.subr.mxu1 %v6539_v61  ;;  %319 = vmatpush1.msra.mxu0 %v6543_v62  ;;  %11627 = vst [vmem:[#allocation56_spill] sm:$0xff] %v6555_v60  ;;  %11628 = vst [vmem:[#allocation57_spill] sm:$0xff] %v6557_v50  ;;  %v6561_v61 = vld [vmem:[#allocation2 + $0xc8] sm:$0xff]  ;;  %v6563_v62 = vld [vmem:[#allocation2 + $0xd8] sm:$0xff] }
  0x41   :  { %390 = vmatpush1.msra.mxu1 %v6545_v54  ;;  %320 = vmatprep.subr.mxu0 %v6549_v58  ;;  %11629 = vst [vmem:[#allocation58_spill] sm:$0xff] %v6561_v61  ;;  %11630 = vst [vmem:[#allocation59_spill] sm:$0xff] %v6563_v62  ;;  %v6567_v54 = vld [vmem:[#allocation2 + $0xc0] sm:$0xff]  ;;  %v6569_v58 = vld [vmem:[#allocation2 + $0xd0] sm:$0xff] }
  0x42   :  { %391 = vmatprep.subr.mxu1 %v6551_v52  ;;  %321 = vmatpush1.msra.mxu0 %v6555_v60  ;;  %11631 = vst [vmem:[#allocation60_spill] sm:$0xff] %v6567_v54  ;;  %11632 = vst [vmem:[#allocation61_spill] sm:$0xff] %v6569_v58  ;;  %v6573_v52 = vld [vmem:[#allocation2 + $0xa8] sm:$0xff]  ;;  %v6575_v60 = vld [vmem:[#allocation2 + $0xb8] sm:$0xff] }
  0x43   :  { %392 = vmatpush1.msra.mxu1 %v6557_v50  ;;  %322 = vmatprep.subr.mxu0 %v6561_v61  ;;  %11633 = vst [vmem:[#allocation62_spill] sm:$0xff] %v6573_v52  ;;  %11634 = vst [vmem:[#allocation63_spill] sm:$0xff] %v6575_v60  ;;  %v6579_v50 = vld [vmem:[#allocation2 + $0xa0] sm:$0xff]  ;;  %v6581_v61 = vld [vmem:[#allocation2 + $0xb0] sm:$0xff] }
  0x44   :  { %393 = vmatprep.subr.mxu1 %v6563_v62  ;;  %323 = vmatpush1.msra.mxu0 %v6567_v54  ;;  %11635 = vst [vmem:[#allocation64_spill] sm:$0xff] %v6579_v50  ;;  %11636 = vst [vmem:[#allocation65_spill] sm:$0xff] %v6581_v61  ;;  %v6585_v62 = vld [vmem:[#allocation2 + $0x88] sm:$0xff]  ;;  %v6587_v54 = vld [vmem:[#allocation2 + $0x98] sm:$0xff] }
  0x45   :  { %394 = vmatpush1.msra.mxu1 %v6569_v58  ;;  %324 = vmatprep.subr.mxu0 %v6573_v52  ;;  %11637 = vst [vmem:[#allocation66_spill] sm:$0xff] %v6585_v62  ;;  %11638 = vst [vmem:[#allocation67_spill] sm:$0xff] %v6587_v54  ;;  %v6591_v58 = vld [vmem:[#allocation2 + $0x80] sm:$0xff]  ;;  %v6593_v52 = vld [vmem:[#allocation2 + $0x90] sm:$0xff] }
  0x46   :  { %395 = vmatprep.subr.mxu1 %v6575_v60  ;;  %325 = vmatpush1.msra.mxu0 %v6579_v50  ;;  %11639 = vst [vmem:[#allocation68_spill] sm:$0xff] %v6591_v58  ;;  %11640 = vst [vmem:[#allocation69_spill] sm:$0xff] %v6593_v52  ;;  %v6597_v60 = vld [vmem:[#allocation2 + $0x68] sm:$0xff]  ;;  %v6599_v50 = vld [vmem:[#allocation2 + $0x78] sm:$0xff] }
  0x47   :  { %396 = vmatpush1.msra.mxu1 %v6581_v61  ;;  %326 = vmatprep.subr.mxu0 %v6585_v62  ;;  %11641 = vst [vmem:[#allocation70_spill] sm:$0xff] %v6597_v60  ;;  %11642 = vst [vmem:[#allocation71_spill] sm:$0xff] %v6599_v50  ;;  %v6603_v61 = vld [vmem:[#allocation2 + $0x60] sm:$0xff]  ;;  %v6605_v62 = vld [vmem:[#allocation2 + $0x70] sm:$0xff] }
  0x48   :  { %397 = vmatprep.subr.mxu1 %v6587_v54  ;;  %327 = vmatpush1.msra.mxu0 %v6591_v58  ;;  %11643 = vst [vmem:[#allocation72_spill] sm:$0xff] %v6603_v61  ;;  %11644 = vst [vmem:[#allocation73_spill] sm:$0xff] %v6605_v62  ;;  %v6609_v54 = vld [vmem:[#allocation2 + $0x48] sm:$0xff]  ;;  %v6611_v58 = vld [vmem:[#allocation2 + $0x58] sm:$0xff] }
  0x49   :  { %398 = vmatpush1.msra.mxu1 %v6593_v52  ;;  %328 = vmatprep.subr.mxu0 %v6597_v60  ;;  %11645 = vst [vmem:[#allocation74_spill] sm:$0xff] %v6609_v54  ;;  %11646 = vst [vmem:[#allocation75_spill] sm:$0xff] %v6611_v58  ;;  %v6615_v52 = vld [vmem:[#allocation2 + $0x40] sm:$0xff]  ;;  %v6620_v60 = vld [vmem:[#allocation2 + $0x28] sm:$0xff] }
  0x4a   :  { %399 = vmatprep.subr.mxu1 %v6599_v50  ;;  %329 = vmatpush1.msra.mxu0 %v6603_v61  ;;  %11647 = vst [vmem:[#allocation76_spill] sm:$0xff] %v6615_v52  ;;  %v6618_v50 = vld [vmem:[#allocation2 + $0x50] sm:$0xff]  ;;  %11649 = vst [vmem:[#allocation78_spill] sm:$0xff] %v6620_v60 }
  0x4b   :  { %400 = vmatpush1.msra.mxu1 %v6605_v62  ;;  %330 = vmatprep.subr.mxu0 %v6609_v54  ;;  %11648 = vst [vmem:[#allocation77_spill] sm:$0xff] %v6618_v50  ;;  %v6626_v62 = vld [vmem:[#allocation2 + $0x20] sm:$0xff]  ;;  %v6628_v61 = vld [vmem:[#allocation2 + $0x30] sm:$0xff] }
  0x4c   :  { %401 = vmatprep.subr.mxu1 %v6611_v58  ;;  %331 = vmatpush1.msra.mxu0 %v6615_v52  ;;  %11651 = vst [vmem:[#allocation80_spill] sm:$0xff] %v6626_v62  ;;  %11652 = vst [vmem:[#allocation81_spill] sm:$0xff] %v6628_v61  ;;  %v6632_v58 = vld [vmem:[#allocation2 + $0x8] sm:$0xff]  ;;  %v6634_v52 = vld [vmem:[#allocation2 + $0x18] sm:$0xff] }
  0x4d   :  { %402 = vmatpush1.msra.mxu1 %v6618_v50  ;;  %332 = vmatprep.subr.mxu0 %v6620_v60  ;;  %11653 = vst [vmem:[#allocation82_spill] sm:$0xff] %v6632_v58  ;;  %11654 = vst [vmem:[#allocation83_spill] sm:$0xff] %v6634_v52  ;;  %v6638_v54 = vld [vmem:[#allocation2] sm:$0xff]  ;;  %v6640_v50 = vld [vmem:[#allocation2 + $0x10] sm:$0xff] }
  0x4e   :  { %403 = vmatprep.subr.mxu1 %v6622_v0  ;;  %333 = vmatpush1.msra.mxu0 %v6626_v62  ;;  %11655 = vst [vmem:[#allocation84_spill] sm:$0xff] %v6638_v54  ;;  %11656 = vst [vmem:[#allocation85_spill] sm:$0xff] %v6640_v50  ;;  %v6647_v62 = vld [vmem:[%s11007_s2 + $0x1e8] sm:$0xff]  ;;  %v6652_v0 = vld [vmem:[%s11007_s2 + $0x1f8] sm:$0xff] }
  0x4f   :  { %404 = vmatpush1.msra.mxu1 %v6628_v61  ;;  %334 = vmatprep.subr.mxu0 %v6632_v58  ;;  %11657 = vst [vmem:[#allocation86_spill] sm:$0xff] %v6647_v62  ;;  %11658 = vst [vmem:[#allocation87_spill] sm:$0xff] %v6652_v0  ;;  %v6676_v58 = vld [vmem:[%s11007_s2 + $0x1d8] sm:$0xff]  ;;  %v6695_v61 = vld [vmem:[%s11007_s2 + $0x1a8] sm:$0xff] }
  0x50   :  { %405 = vmatprep.subr.mxu1 %v6634_v52  ;;  %335 = vmatpush1.msra.mxu0 %v6638_v54  ;;  %v6659_v52 = vld [vmem:[%s11007_s2 + $0x1e0] sm:$0xff]  ;;  %v6664_v54 = vld [vmem:[%s11007_s2 + $0x1f0] sm:$0xff]  ;;  %11662 = vst [vmem:[#allocation91_spill] sm:$0xff] %v6676_v58  ;;  %11665 = vst [vmem:[#allocation94_spill] sm:$0xff] %v6695_v61 }
  0x51   :  { %406 = vmatpush1.msra.mxu1 %v6640_v50  ;;  %369 = vmatmul.mubr.f32.vlgmr.msra.gmra.mxu0 %v11592_v56  ;;  %11659 = vst [vmem:[#allocation88_spill] sm:$0xff] %v6659_v52  ;;  %11660 = vst [vmem:[#allocation89_spill] sm:$0xff] %v6664_v54  ;;  %v6671_v50 = vld [vmem:[%s11007_s2 + $0x1c8] sm:$0xff]  ;;  %v6873_v60 = vld [vmem:[%s11007_s2 + $0xc0] sm:$0xff] }
  0x52   :  { %542 = vmatprep.subr.mxu0 %v6647_v62  ;;  %613 = vmatprep.subr.mxu1 %v6652_v0  ;;  %11661 = vst [vmem:[#allocation90_spill] sm:$0xff] %v6671_v50  ;;  %v6683_v62 = vld [vmem:[%s11007_s2 + $0x1c0] sm:$0xff]  ;;  %v6688_v0 = vld [vmem:[%s11007_s2 + $0x1d0] sm:$0xff]  ;;  %11695 = vst [vmem:[#allocation124_spill] sm:$0xff] %v6873_v60 }
  0x53   :  { %440 = vmatmul.mubr.f32.vlgmr.msra.gmra.mxu1 %v11592_v56  ;;  %543 = vmatpush1.msra.mxu0 %v6659_v52  ;;  %11663 = vst [vmem:[#allocation92_spill] sm:$0xff] %v6683_v62  ;;  %11664 = vst [vmem:[#allocation93_spill] sm:$0xff] %v6688_v0  ;;  %v6700_v52 = vld [vmem:[%s11007_s2 + $0x1b8] sm:$0xff] }
  0x54   :  { %614 = vmatpush1.msra.mxu1 %v6664_v54  ;;  %544 = vmatprep.subr.mxu0 %v6671_v50  ;;  %11666 = vst [vmem:[#allocation95_spill] sm:$0xff] %v6700_v52  ;;  %v6707_v54 = vld [vmem:[%s11007_s2 + $0x1a0] sm:$0xff]  ;;  %v6712_v50 = vld [vmem:[%s11007_s2 + $0x1b0] sm:$0xff] }
  0x55   :  { %615 = vmatprep.subr.mxu1 %v6676_v58  ;;  %545 = vmatpush1.msra.mxu0 %v6683_v62  ;;  %11667 = vst [vmem:[#allocation96_spill] sm:$0xff] %v6707_v54  ;;  %11668 = vst [vmem:[#allocation97_spill] sm:$0xff] %v6712_v50  ;;  %v6719_v58 = vld [vmem:[%s11007_s2 + $0x188] sm:$0xff]  ;;  %v6724_v62 = vld [vmem:[%s11007_s2 + $0x198] sm:$0xff] }
  0x56   :  { %616 = vmatpush1.msra.mxu1 %v6688_v0  ;;  %546 = vmatprep.subr.mxu0 %v6695_v61  ;;  %11669 = vst [vmem:[#allocation98_spill] sm:$0xff] %v6719_v58  ;;  %11670 = vst [vmem:[#allocation99_spill] sm:$0xff] %v6724_v62  ;;  %v6731_v0 = vld [vmem:[%s11007_s2 + $0x180] sm:$0xff]  ;;  %v6736_v61 = vld [vmem:[%s11007_s2 + $0x190] sm:$0xff] }
  0x57   :  { %617 = vmatprep.subr.mxu1 %v6700_v52  ;;  %547 = vmatpush1.msra.mxu0 %v6707_v54  ;;  %11671 = vst [vmem:[#allocation100_spill] sm:$0xff] %v6731_v0  ;;  %11672 = vst [vmem:[#allocation101_spill] sm:$0xff] %v6736_v61  ;;  %v6743_v52 = vld [vmem:[%s11007_s2 + $0x168] sm:$0xff]  ;;  %v6748_v54 = vld [vmem:[%s11007_s2 + $0x178] sm:$0xff] }
  0x58   :  { %618 = vmatpush1.msra.mxu1 %v6712_v50  ;;  %548 = vmatprep.subr.mxu0 %v6719_v58  ;;  %11673 = vst [vmem:[#allocation102_spill] sm:$0xff] %v6743_v52  ;;  %11674 = vst [vmem:[#allocation103_spill] sm:$0xff] %v6748_v54  ;;  %v6755_v50 = vld [vmem:[%s11007_s2 + $0x160] sm:$0xff]  ;;  %v6760_v58 = vld [vmem:[%s11007_s2 + $0x170] sm:$0xff] }
  0x59   :  { %619 = vmatprep.subr.mxu1 %v6724_v62  ;;  %549 = vmatpush1.msra.mxu0 %v6731_v0  ;;  %11675 = vst [vmem:[#allocation104_spill] sm:$0xff] %v6755_v50  ;;  %11676 = vst [vmem:[#allocation105_spill] sm:$0xff] %v6760_v58  ;;  %v6767_v62 = vld [vmem:[%s11007_s2 + $0x148] sm:$0xff]  ;;  %v6772_v0 = vld [vmem:[%s11007_s2 + $0x158] sm:$0xff] }
  0x5a   :  { %620 = vmatpush1.msra.mxu1 %v6736_v61  ;;  %550 = vmatprep.subr.mxu0 %v6743_v52  ;;  %11677 = vst [vmem:[#allocation106_spill] sm:$0xff] %v6767_v62  ;;  %11678 = vst [vmem:[#allocation107_spill] sm:$0xff] %v6772_v0  ;;  %v6779_v61 = vld [vmem:[%s11007_s2 + $0x140] sm:$0xff]  ;;  %v6784_v52 = vld [vmem:[%s11007_s2 + $0x150] sm:$0xff] }
  0x5b   :  { %621 = vmatprep.subr.mxu1 %v6748_v54  ;;  %551 = vmatpush1.msra.mxu0 %v6755_v50  ;;  %11679 = vst [vmem:[#allocation108_spill] sm:$0xff] %v6779_v61  ;;  %11680 = vst [vmem:[#allocation109_spill] sm:$0xff] %v6784_v52  ;;  %v6791_v54 = vld [vmem:[%s11007_s2 + $0x128] sm:$0xff]  ;;  %v6796_v50 = vld [vmem:[%s11007_s2 + $0x138] sm:$0xff] }
  0x5c   :  { %622 = vmatpush1.msra.mxu1 %v6760_v58  ;;  %552 = vmatprep.subr.mxu0 %v6767_v62  ;;  %11681 = vst [vmem:[#allocation110_spill] sm:$0xff] %v6791_v54  ;;  %11682 = vst [vmem:[#allocation111_spill] sm:$0xff] %v6796_v50  ;;  %v6803_v58 = vld [vmem:[%s11007_s2 + $0x120] sm:$0xff]  ;;  %v6808_v62 = vld [vmem:[%s11007_s2 + $0x130] sm:$0xff] }
  0x5d   :  { %623 = vmatprep.subr.mxu1 %v6772_v0  ;;  %553 = vmatpush1.msra.mxu0 %v6779_v61  ;;  %11683 = vst [vmem:[#allocation112_spill] sm:$0xff] %v6803_v58  ;;  %11684 = vst [vmem:[#allocation113_spill] sm:$0xff] %v6808_v62  ;;  %v6815_v0 = vld [vmem:[%s11007_s2 + $0x108] sm:$0xff]  ;;  %v6820_v61 = vld [vmem:[%s11007_s2 + $0x118] sm:$0xff] }
  0x5e   :  { %624 = vmatpush1.msra.mxu1 %v6784_v52  ;;  %554 = vmatprep.subr.mxu0 %v6791_v54  ;;  %11685 = vst [vmem:[#allocation114_spill] sm:$0xff] %v6815_v0  ;;  %11686 = vst [vmem:[#allocation115_spill] sm:$0xff] %v6820_v61  ;;  %v6827_v52 = vld [vmem:[%s11007_s2 + $0x100] sm:$0xff]  ;;  %v6832_v54 = vld [vmem:[%s11007_s2 + $0x110] sm:$0xff] }
  0x5f   :  { %625 = vmatprep.subr.mxu1 %v6796_v50  ;;  %555 = vmatpush1.msra.mxu0 %v6803_v58  ;;  %11687 = vst [vmem:[#allocation116_spill] sm:$0xff] %v6827_v52  ;;  %11688 = vst [vmem:[#allocation117_spill] sm:$0xff] %v6832_v54  ;;  %v6839_v50 = vld [vmem:[%s11007_s2 + $0xe8] sm:$0xff]  ;;  %v6844_v58 = vld [vmem:[%s11007_s2 + $0xf8] sm:$0xff] }
  0x60   :  { %626 = vmatpush1.msra.mxu1 %v6808_v62  ;;  %556 = vmatprep.subr.mxu0 %v6815_v0  ;;  %11689 = vst [vmem:[#allocation118_spill] sm:$0xff] %v6839_v50  ;;  %11690 = vst [vmem:[#allocation119_spill] sm:$0xff] %v6844_v58  ;;  %v6851_v62 = vld [vmem:[%s11007_s2 + $0xe0] sm:$0xff]  ;;  %v6856_v0 = vld [vmem:[%s11007_s2 + $0xf0] sm:$0xff] }
  0x61   :  { %627 = vmatprep.subr.mxu1 %v6820_v61  ;;  %557 = vmatpush1.msra.mxu0 %v6827_v52  ;;  %11691 = vst [vmem:[#allocation120_spill] sm:$0xff] %v6851_v62  ;;  %11692 = vst [vmem:[#allocation121_spill] sm:$0xff] %v6856_v0  ;;  %v6863_v61 = vld [vmem:[%s11007_s2 + $0xc8] sm:$0xff]  ;;  %v6868_v52 = vld [vmem:[%s11007_s2 + $0xd8] sm:$0xff] }
  0x62   :  { %628 = vmatpush1.msra.mxu1 %v6832_v54  ;;  %558 = vmatprep.subr.mxu0 %v6839_v50  ;;  %11693 = vst [vmem:[#allocation122_spill] sm:$0xff] %v6863_v61  ;;  %11694 = vst [vmem:[#allocation123_spill] sm:$0xff] %v6868_v52  ;;  %v6880_v50 = vld [vmem:[%s11007_s2 + $0xd0] sm:$0xff]  ;;  %v6885_v54 = vld [vmem:[%s11007_s2 + $0xa8] sm:$0xff] }
  0x63   :  { %629 = vmatprep.subr.mxu1 %v6844_v58  ;;  %559 = vmatpush1.msra.mxu0 %v6851_v62  ;;  %11696 = vst [vmem:[#allocation125_spill] sm:$0xff] %v6880_v50  ;;  %11697 = vst [vmem:[#allocation126_spill] sm:$0xff] %v6885_v54  ;;  %v6892_v58 = vld [vmem:[%s11007_s2 + $0xb8] sm:$0xff]  ;;  %v6897_v62 = vld [vmem:[%s11007_s2 + $0xa0] sm:$0xff] }
  0x64   :  { %630 = vmatpush1.msra.mxu1 %v6856_v0  ;;  %560 = vmatprep.subr.mxu0 %v6863_v61  ;;  %11698 = vst [vmem:[#allocation127_spill] sm:$0xff] %v6892_v58  ;;  %11699 = vst [vmem:[#allocation128_spill] sm:$0xff] %v6897_v62  ;;  %v6904_v0 = vld [vmem:[%s11007_s2 + $0xb0] sm:$0xff]  ;;  %v6909_v61 = vld [vmem:[%s11007_s2 + $0x88] sm:$0xff] }
  0x65   :  { %631 = vmatprep.subr.mxu1 %v6868_v52  ;;  %561 = vmatpush1.msra.mxu0 %v6873_v60  ;;  %11700 = vst [vmem:[#allocation129_spill] sm:$0xff] %v6904_v0  ;;  %11701 = vst [vmem:[#allocation130_spill] sm:$0xff] %v6909_v61  ;;  %v6916_v52 = vld [vmem:[%s11007_s2 + $0x98] sm:$0xff]  ;;  %v6921_v60 = vld [vmem:[%s11007_s2 + $0x80] sm:$0xff] }
  0x66   :  { %632 = vmatpush1.msra.mxu1 %v6880_v50  ;;  %562 = vmatprep.subr.mxu0 %v6885_v54  ;;  %11702 = vst [vmem:[#allocation131_spill] sm:$0xff] %v6916_v52  ;;  %11703 = vst [vmem:[#allocation132_spill] sm:$0xff] %v6921_v60  ;;  %v6928_v50 = vld [vmem:[%s11007_s2 + $0x90] sm:$0xff]  ;;  %v6933_v54 = vld [vmem:[%s11007_s2 + $0x68] sm:$0xff] }
  0x67   :  { %633 = vmatprep.subr.mxu1 %v6892_v58  ;;  %563 = vmatpush1.msra.mxu0 %v6897_v62  ;;  %11704 = vst [vmem:[#allocation133_spill] sm:$0xff] %v6928_v50  ;;  %11705 = vst [vmem:[#allocation134_spill] sm:$0xff] %v6933_v54  ;;  %v6940_v58 = vld [vmem:[%s11007_s2 + $0x78] sm:$0xff]  ;;  %v6945_v62 = vld [vmem:[%s11007_s2 + $0x60] sm:$0xff] }
  0x68   :  { %634 = vmatpush1.msra.mxu1 %v6904_v0  ;;  %564 = vmatprep.subr.mxu0 %v6909_v61  ;;  %11706 = vst [vmem:[#allocation135_spill] sm:$0xff] %v6940_v58  ;;  %11707 = vst [vmem:[#allocation136_spill] sm:$0xff] %v6945_v62  ;;  %v6952_v0 = vld [vmem:[%s11007_s2 + $0x70] sm:$0xff]  ;;  %v6957_v61 = vld [vmem:[%s11007_s2 + $0x48] sm:$0xff] }
  0x69   :  { %635 = vmatprep.subr.mxu1 %v6916_v52  ;;  %565 = vmatpush1.msra.mxu0 %v6921_v60  ;;  %11708 = vst [vmem:[#allocation137_spill] sm:$0xff] %v6952_v0  ;;  %11709 = vst [vmem:[#allocation138_spill] sm:$0xff] %v6957_v61  ;;  %v6964_v52 = vld [vmem:[%s11007_s2 + $0x58] sm:$0xff]  ;;  %v6969_v60 = vld [vmem:[%s11007_s2 + $0x40] sm:$0xff] }
  0x6a   :  { %636 = vmatpush1.msra.mxu1 %v6928_v50  ;;  %566 = vmatprep.subr.mxu0 %v6933_v54  ;;  %11710 = vst [vmem:[#allocation139_spill] sm:$0xff] %v6964_v52  ;;  %11711 = vst [vmem:[#allocation140_spill] sm:$0xff] %v6969_v60  ;;  %v6976_v50 = vld [vmem:[%s11007_s2 + $0x50] sm:$0xff]  ;;  %v6981_v54 = vld [vmem:[%s11007_s2 + $0x28] sm:$0xff] }
  0x6b   :  { %637 = vmatprep.subr.mxu1 %v6940_v58  ;;  %567 = vmatpush1.msra.mxu0 %v6945_v62  ;;  %11712 = vst [vmem:[#allocation141_spill] sm:$0xff] %v6976_v50  ;;  %11713 = vst [vmem:[#allocation142_spill] sm:$0xff] %v6981_v54  ;;  %v6988_v58 = vld [vmem:[%s11007_s2 + $0x38] sm:$0xff]  ;;  %v6993_v62 = vld [vmem:[%s11007_s2 + $0x20] sm:$0xff] }
  0x6c   :  { %638 = vmatpush1.msra.mxu1 %v6952_v0  ;;  %568 = vmatprep.subr.mxu0 %v6957_v61  ;;  %11714 = vst [vmem:[#allocation143_spill] sm:$0xff] %v6988_v58  ;;  %11715 = vst [vmem:[#allocation144_spill] sm:$0xff] %v6993_v62  ;;  %v7000_v0 = vld [vmem:[%s11007_s2 + $0x30] sm:$0xff]  ;;  %v7005_v61 = vld [vmem:[%s11007_s2 + $0x8] sm:$0xff] }
  0x6d   :  { %639 = vmatprep.subr.mxu1 %v6964_v52  ;;  %569 = vmatpush1.msra.mxu0 %v6969_v60  ;;  %11716 = vst [vmem:[#allocation145_spill] sm:$0xff] %v7000_v0  ;;  %11717 = vst [vmem:[#allocation146_spill] sm:$0xff] %v7005_v61  ;;  %v7012_v52 = vld [vmem:[%s11007_s2 + $0x18] sm:$0xff]  ;;  %v7017_v60 = vld [vmem:[%s11007_s2] sm:$0xff] }
  0x6e   :  { %640 = vmatpush1.msra.mxu1 %v6976_v50  ;;  %570 = vmatprep.subr.mxu0 %v6981_v54  ;;  %11718 = vst [vmem:[#allocation147_spill] sm:$0xff] %v7012_v52  ;;  %11719 = vst [vmem:[#allocation148_spill] sm:$0xff] %v7017_v60  ;;  %v7024_v50 = vld [vmem:[%s11007_s2 + $0x10] sm:$0xff] }
  0x6f   :  { %641 = vmatprep.subr.mxu1 %v6988_v58  ;;  %571 = vmatpush1.msra.mxu0 %v6993_v62  ;;  %11720 = vst [vmem:[#allocation149_spill] sm:$0xff] %v7024_v50 }
  0x70   :  { %642 = vmatpush1.msra.mxu1 %v7000_v0  ;;  %572 = vmatprep.subr.mxu0 %v7005_v61  ;;  %v446_v0 = vld [vmem:[%s11005_s0] sm:$0xff] }
  0x71   :  { %643 = vmatprep.subr.mxu1 %v7012_v52  ;;  %573 = vmatpush1.msra.mxu0 %v7017_v60  ;;  %v447_v52 = vld [vmem:[%s11005_s0 + $0x8] sm:$0xff] }
  0x72   :  { %644 = vmatpush1.msra.mxu1 %v7024_v50  ;;  %606 = vmatprep.mubr.f32.mxu0 %v11592_v56 }
  0x73   :  { %677 = vmatprep.mubr.f32.mxu1 %v11592_v56  ;;  %799 = vmatprep.subr.mxu0 %v6068_v1 }
  0x74   :  { %870 = vmatprep.subr.mxu1 %v6113_v9  ;;  %v449_v9 = vld [vmem:[%s11005_s0 + $0x18] sm:$0xff] }
  0xef   :  { %v164_v62 = vpop.f32.mrf.mxu0 }
  0xf0   :  { %v450_v60 = vadd.f32 %v446_v0, %v164_v62 }
  0xf1   :  { %v166_v61 = vpop.f32.mrf.mxu0  ;;  %v235_v48 = vpop.f32.mrf.mxu1 }
  0xf2   :  { %v5661_v50 = vmul.f32 -1.442695, %v450_v60  ;;  %v451_v58 = vadd.f32 %v447_v52, %v166_v61  ;;  %v452_v63 = vadd.f32 %v448_v59, %v235_v48 }
  0xf3   :  { %v237_v1 = vpop.f32.mrf.mxu1 }
  0xf4   :  { %5748 = vpow2.f32 %v5661_v50  ;;  %v5662_v54 = vmul.f32 -1.442695, %v451_v58  ;;  %v453_v56 = vadd.f32 %v449_v9, %v237_v1  ;;  %v11771_v1 = vld [vmem:[#allocation54_spill] sm:$0xff]  ;;  %v11772_v9 = vld [vmem:[#allocation55_spill] sm:$0xff] }
  0xf6   :  { %5750 = vpow2.f32 %v5662_v54  ;;  %v5663_v57 = vmul.f32 -1.442695, %v453_v56 }
  0xf7   :  { %5752 = vtanh.f32 %v452_v63  ;;  %v11770_v63 = vld [vmem:[#allocation53_spill] sm:$0xff] }
  0xf8   :  { %5754 = vpow2.f32 %v5663_v57  ;;  %v11769_v57 = vld [vmem:[#allocation52_spill] sm:$0xff] }
 0x101   :  { %v5749_v0 = vpop.eup %5748 }
 0x102   :  { %v457_v62 = vadd.f32 1.0, %v5749_v0  ;;  %v11773_v0 = vld [vmem:[#allocation56_spill] sm:$0xff] }
 0x103   :  { %v5751_v52 = vpop.eup %5750 }
 0x104   :  { %5756 = vrcp.f32 %v457_v62  ;;  %v463_v50 = vadd.f32 1.0, %v5751_v52  ;;  %v5753_v54 = vpop.eup %5752  ;;  %v11774_v62 = vld [vmem:[#allocation57_spill] sm:$0xff]  ;;  %v11775_v52 = vld [vmem:[#allocation58_spill] sm:$0xff] }
 0x105   :  { %v5755_v58 = vpop.eup %5754 }
 0x106   :  { %5758 = vrcp.f32 %v463_v50  ;;  %v470_v46 = vadd.f32 1.0, %v5755_v58  ;;  %v11776_v50 = vld [vmem:[#allocation59_spill] sm:$0xff]  ;;  %v11778_v58 = vld [vmem:[#allocation61_spill] sm:$0xff] }
 0x108   :  { %5760 = vrcp.f32 %v470_v46  ;;  %v11764_v46 = vld [vmem:[#allocation47_spill] sm:$0xff] }
 0x111   :  { %v5757_v60 = vpop.eup %5756 }
 0x112   :  { %v474_v44 = vmul.f32 %v5757_v60, %v5753_v54  ;;  %v11777_v54 = vld [vmem:[#allocation60_spill] sm:$0xff]  ;;  %v11779_v60 = vld [vmem:[#allocation62_spill] sm:$0xff] }
 0x113   :  { %v5759_v61 = vpop.eup %5758 }
 0x114   :  { %v473_v55 = vmul.f32 0.0, %v5759_v61  ;;  %v11780_v61 = vld [vmem:[#allocation63_spill] sm:$0xff] }
 0x115   :  { %v5761_v48 = vpop.eup %5760 }
 0x116   :  { %v7047_v53 = vadd.f32 %v474_v44, %v473_v55  ;;  %v11762_v44 = vld [vmem:[#allocation45_spill] sm:$0xff]  ;;  %v11768_v55 = vld [vmem:[#allocation51_spill] sm:$0xff] }
 0x118   :  { %5762 = vtanh.f32 %v7047_v53 }
 0x125   :  { %v5763_v56 = vpop.eup %5762 }
 0x126   :  { %v7050_v59 = vmul.f32 %v5763_v56, %v5761_v48  ;;  %v11781_v48 = vld [vmem:[#allocation64_spill] sm:$0xff]  ;;  %v11782_v56 = vld [vmem:[#allocation65_spill] sm:$0xff] }
 0x128   :  { %607 = vmatmul.mubr.f32.vlgmr.msra.gmra.mxu0 %v7050_v59  ;;  %678 = vmatmul.mubr.f32.vlgmr.msra.gmra.mxu1 %v7050_v59 }
 0x129   :  { %800 = vmatpush1.msra.mxu0 %v6073_v2  ;;  %871 = vmatpush1.msra.mxu1 %v6125_v11  ;;  %v11721_v2 = vld [vmem:[#allocation10_spill] sm:$0xff]  ;;  %v11729_v11 = vld [vmem:[#allocation17_spill] sm:$0xff] }
 0x12a   :  { %801 = vmatprep.subr.mxu0 %v6078_v3  ;;  %872 = vmatprep.subr.mxu1 %v6137_v13  ;;  %v11722_v3 = vld [vmem:[#allocation5_spill] sm:$0xff]  ;;  %v11731_v13 = vld [vmem:[#allocation18_spill] sm:$0xff] }
 0x12b   :  { %802 = vmatpush1.msra.mxu0 %v6084_v4  ;;  %873 = vmatpush1.msra.mxu1 %v6142_v14  ;;  %v11723_v4 = vld [vmem:[#allocation12_spill] sm:$0xff]  ;;  %v11732_v14 = vld [vmem:[#allocation11_spill] sm:$0xff] }
 0x12c   :  { %803 = vmatprep.subr.mxu0 %v6090_v5  ;;  %874 = vmatprep.subr.mxu1 %v6154_v16  ;;  %v11724_v5 = vld [vmem:[#allocation6_spill] sm:$0xff]  ;;  %v11734_v16 = vld [vmem:[#allocation13_spill] sm:$0xff] }
 0x12d   :  { %804 = vmatpush1.msra.mxu0 %v6096_v6  ;;  %875 = vmatpush1.msra.mxu1 %v6166_v18  ;;  %v11725_v6 = vld [vmem:[#allocation14_spill] sm:$0xff]  ;;  %v11736_v18 = vld [vmem:[#allocation15_spill] sm:$0xff] }
 0x12e   :  { %805 = vmatprep.subr.mxu0 %v6102_v7  ;;  %876 = vmatprep.subr.mxu1 %v6171_v19  ;;  %v11726_v7 = vld [vmem:[#allocation7_spill] sm:$0xff]  ;;  %v11737_v19 = vmov 0.0  }
 0x12f   :  { %806 = vmatpush1.msra.mxu0 %v6108_v8  ;;  %877 = vmatpush1.msra.mxu1 %v6183_v21  ;;  %v11727_v8 = vld [vmem:[#allocation16_spill] sm:$0xff]  ;;  %v11739_v21 = vld [vmem:[#allocation19_spill] sm:$0xff] }
 0x130   :  { %807 = vmatprep.subr.mxu0 %v6119_v10  ;;  %878 = vmatprep.subr.mxu1 %v6195_v23  ;;  %v11728_v10 = vld [vmem:[#allocation8_spill] sm:$0xff]  ;;  %v11741_v23 = vld [vmem:[#allocation21_spill] sm:$0xff] }
 0x131   :  { %808 = vmatpush1.msra.mxu0 %v6131_v12  ;;  %879 = vmatpush1.msra.mxu1 %v6207_v25  ;;  %v11730_v12 = vld [vmem:[#allocation9_spill] sm:$0xff]  ;;  %v11743_v25 = vld [vmem:[#allocation23_spill] sm:$0xff] }
 0x132   :  { %809 = vmatprep.subr.mxu0 %v6148_v15  ;;  %880 = vmatprep.subr.mxu1 %v6219_v27  ;;  %v11733_v15 = vld [vmem:[#allocation20_spill] sm:$0xff]  ;;  %v11745_v27 = vld [vmem:[#allocation25_spill] sm:$0xff] }
 0x133   :  { %810 = vmatpush1.msra.mxu0 %v6160_v17  ;;  %881 = vmatpush1.msra.mxu1 %v6231_v29  ;;  %v11735_v17 = vld [vmem:[#allocation22_spill] sm:$0xff]  ;;  %v11747_v29 = vld [vmem:[#allocation28_spill] sm:$0xff] }
 0x134   :  { %811 = vmatprep.subr.mxu0 %v6177_v20  ;;  %882 = vmatprep.subr.mxu1 %v6243_v31  ;;  %v11738_v20 = vld [vmem:[#allocation24_spill] sm:$0xff]  ;;  %v11749_v31 = vld [vmem:[#allocation30_spill] sm:$0xff] }
 0x135   :  { %812 = vmatpush1.msra.mxu0 %v6189_v22  ;;  %883 = vmatpush1.msra.mxu1 %v6255_v33  ;;  %v11740_v22 = vld [vmem:[#allocation26_spill] sm:$0xff]  ;;  %v11751_v33 = vld [vmem:[#allocation32_spill] sm:$0xff] }
 0x136   :  { %813 = vmatprep.subr.mxu0 %v6201_v24  ;;  %884 = vmatprep.subr.mxu1 %v6267_v35  ;;  %v11742_v24 = vld [vmem:[#allocation27_spill] sm:$0xff]  ;;  %v11753_v35 = vld [vmem:[#allocation34_spill] sm:$0xff] }
 0x137   :  { %814 = vmatpush1.msra.mxu0 %v6213_v26  ;;  %885 = vmatpush1.msra.mxu1 %v6279_v37  ;;  %v11744_v26 = vld [vmem:[#allocation29_spill] sm:$0xff]  ;;  %v11755_v37 = vld [vmem:[#allocation38_spill] sm:$0xff] }
 0x138   :  { %815 = vmatprep.subr.mxu0 %v6225_v28  ;;  %886 = vmatprep.subr.mxu1 %v6291_v39  ;;  %v11746_v28 = vld [vmem:[#allocation31_spill] sm:$0xff]  ;;  %v11757_v39 = vld [vmem:[#allocation40_spill] sm:$0xff] }
 0x139   :  { %816 = vmatpush1.msra.mxu0 %v6237_v30  ;;  %887 = vmatpush1.msra.mxu1 %v6303_v41  ;;  %v11748_v30 = vld [vmem:[#allocation33_spill] sm:$0xff]  ;;  %v11759_v41 = vld [vmem:[#allocation42_spill] sm:$0xff] }
 0x13a   :  { %817 = vmatprep.subr.mxu0 %v6249_v32  ;;  %888 = vmatprep.subr.mxu1 %v6315_v43  ;;  %v11750_v32 = vld [vmem:[#allocation35_spill] sm:$0xff]  ;;  %v11761_v43 = vld [vmem:[#allocation44_spill] sm:$0xff] }
 0x13b   :  { %818 = vmatpush1.msra.mxu0 %v6261_v34  ;;  %889 = vmatpush1.msra.mxu1 %v6327_v45  ;;  %v11752_v34 = vld [vmem:[#allocation36_spill] sm:$0xff]  ;;  %v11763_v45 = vld [vmem:[#allocation46_spill] sm:$0xff] }
 0x13c   :  { %819 = vmatprep.subr.mxu0 %v6273_v36  ;;  %890 = vmatprep.subr.mxu1 %v6339_v47  ;;  %v11754_v36 = vld [vmem:[#allocation37_spill] sm:$0xff]  ;;  %v11765_v47 = vld [vmem:[#allocation48_spill] sm:$0xff] }
 0x13d   :  { %820 = vmatpush1.msra.mxu0 %v6285_v38  ;;  %891 = vmatpush1.msra.mxu1 %v6351_v49  ;;  %v11756_v38 = vld [vmem:[#allocation39_spill] sm:$0xff]  ;;  %v11766_v49 = vld [vmem:[#allocation49_spill] sm:$0xff] }
 0x13e   :  { %821 = vmatprep.subr.mxu0 %v6297_v40  ;;  %892 = vmatprep.subr.mxu1 %v6363_v51  ;;  %v11758_v40 = vld [vmem:[#allocation41_spill] sm:$0xff]  ;;  %v11767_v51 = vld [vmem:[#allocation50_spill] sm:$0xff] }
 0x13f   :  { %822 = vmatpush1.msra.mxu0 %v6309_v42  ;;  %893 = vmatpush1.msra.mxu1 %v11721_v2  ;;  %v11760_v42 = vld [vmem:[#allocation43_spill] sm:$0xff] }
 0x140   :  { %823 = vmatprep.subr.mxu0 %v11722_v3  ;;  %894 = vmatprep.subr.mxu1 %v11723_v4  ;;  %v11784_v2 = vld [vmem:[#allocation67_spill] sm:$0xff]  ;;  %v11785_v3 = vld [vmem:[#allocation68_spill] sm:$0xff]  ;;  %v11786_v4 = vld [vmem:[#allocation69_spill] sm:$0xff] }
 0x141   :  { %824 = vmatpush1.msra.mxu0 %v11724_v5  ;;  %895 = vmatpush1.msra.mxu1 %v11725_v6  ;;  %v11787_v5 = vld [vmem:[#allocation70_spill] sm:$0xff]  ;;  %v11788_v6 = vld [vmem:[#allocation71_spill] sm:$0xff] }
 0x142   :  { %825 = vmatprep.subr.mxu0 %v11726_v7  ;;  %896 = vmatprep.subr.mxu1 %v11727_v8  ;;  %v11789_v7 = vld [vmem:[#allocation72_spill] sm:$0xff]  ;;  %v11790_v8 = vld [vmem:[#allocation73_spill] sm:$0xff] }
 0x143   :  { %826 = vmatpush1.msra.mxu0 %v11728_v10  ;;  %897 = vmatpush1.msra.mxu1 %v11729_v11  ;;  %v11791_v10 = vld [vmem:[#allocation74_spill] sm:$0xff]  ;;  %v11792_v11 = vld [vmem:[#allocation75_spill] sm:$0xff] }
 0x144   :  { %827 = vmatprep.subr.mxu0 %v11730_v12  ;;  %898 = vmatprep.subr.mxu1 %v11731_v13  ;;  %v11793_v12 = vld [vmem:[#allocation76_spill] sm:$0xff]  ;;  %v11794_v13 = vld [vmem:[#allocation77_spill] sm:$0xff] }
 0x145   :  { %828 = vmatpush1.msra.mxu0 %v11732_v14  ;;  %899 = vmatpush1.msra.mxu1 %v11733_v15  ;;  %v11795_v14 = vld [vmem:[#allocation78_spill] sm:$0xff]  ;;  %v11796_v15 = vld [vmem:[#allocation79_spill] sm:$0xff] }
 0x146   :  { %829 = vmatprep.subr.mxu0 %v11734_v16  ;;  %900 = vmatprep.subr.mxu1 %v11735_v17  ;;  %v11797_v16 = vld [vmem:[#allocation80_spill] sm:$0xff]  ;;  %v11798_v17 = vld [vmem:[#allocation81_spill] sm:$0xff] }
 0x147   :  { %830 = vmatpush1.msra.mxu0 %v11736_v18  ;;  %863 = vmatprep.mubr.f32.mxu0 %v11737_v19  ;;  %v11799_v18 = vld [vmem:[#allocation82_spill] sm:$0xff] }
 0x148   :  { %901 = vmatpush1.msra.mxu1 %v11738_v20  ;;  %934 = vmatprep.mubr.f32.mxu1 %v11737_v19  ;;  %v11800_v20 = vld [vmem:[#allocation83_spill] sm:$0xff] }
 0x149   :  { %864 = vmatmul.mubr.f32.vlgmr.msra.gmra.mxu0 %v7050_v59  ;;  %935 = vmatmul.mubr.f32.vlgmr.msra.gmra.mxu1 %v7050_v59  ;;  %v11783_v59 = vld [vmem:[#allocation66_spill] sm:$0xff] }
 0x14a   :  { %1005 = vmatprep.subr.mxu0 %v11739_v21  ;;  %1076 = vmatprep.subr.mxu1 %v11740_v22  ;;  %v11801_v21 = vld [vmem:[#allocation84_spill] sm:$0xff]  ;;  %v11802_v22 = vld [vmem:[#allocation85_spill] sm:$0xff] }
 0x14b   :  { %1006 = vmatpush1.msra.mxu0 %v11741_v23  ;;  %1077 = vmatpush1.msra.mxu1 %v11742_v24  ;;  %v11803_v23 = vld [vmem:[#allocation86_spill] sm:$0xff]  ;;  %v11804_v24 = vld [vmem:[#allocation87_spill] sm:$0xff] }
 0x14c   :  { %1007 = vmatprep.subr.mxu0 %v11743_v25  ;;  %1078 = vmatprep.subr.mxu1 %v11744_v26  ;;  %v686_v25 = vlaneseq }
 0x14d   :  { %1008 = vmatpush1.msra.mxu0 %v11745_v27  ;;  %1079 = vmatpush1.msra.mxu1 %v11746_v28  ;;  %v370_v27 = vpop.f32.mrf.mxu0 }
 0x14e   :  { %1009 = vmatprep.subr.mxu0 %v11747_v29  ;;  %1080 = vmatprep.subr.mxu1 %v11748_v30  ;;  %v687_v26 = vshrl.u32 %v686_v25, 7  ;;  %v684_v29 = vld [vmem:[%s11009_s4] sm:$0xf]  ;;  %v441_v30 = vpop.f32.mrf.mxu1 }
 0x14f   :  { %1010 = vmatpush1.msra.mxu0 %v11749_v31  ;;  %1081 = vmatpush1.msra.mxu1 %v11750_v32  ;;  %v372_v32 = vpop.f32.mrf.mxu0 }
 0x150   :  { %1011 = vmatprep.subr.mxu0 %v11751_v33  ;;  %1082 = vmatprep.subr.mxu1 %v11752_v34  ;;  %v7188_v28 = vsub.s32 0, %v687_v26  ;;  %v7193_v31 = vsub.s32 1, %v687_v26 }
 0x151   :  { %1012 = vmatpush1.msra.mxu0 %v11753_v35  ;;  %1083 = vmatpush1.msra.mxu1 %v11754_v36  ;;  %v443_v35 = vpop.f32.mrf.mxu1 }
 0x152   :  { %1013 = vmatprep.subr.mxu0 %v11755_v37  ;;  %1084 = vmatprep.subr.mxu1 %v11756_v38  ;;  %11805 = vst [vmem:[#allocation10_spill] sm:$0xff] %v7188_v28  ;;  %11806 = vst [vmem:[#allocation5_spill] sm:$0xff] %v7193_v31  ;;  %v689_v33 = vrot.slane %v684_v29, %v7188_v28  ;;  %v693_v37 = vrot.slane %v684_v29, %v7193_v31 }
 0x153   :  { %1014 = vmatpush1.msra.mxu0 %v11757_v39  ;;  %1085 = vmatpush1.msra.mxu1 %v11758_v40 }
 0x154   :  { %1015 = vmatprep.subr.mxu0 %v11759_v41  ;;  %1086 = vmatprep.subr.mxu1 %v11760_v42 }
 0x155   :  { %1016 = vmatpush1.msra.mxu0 %v11761_v43  ;;  %1087 = vmatpush1.msra.mxu1 %v11762_v44  ;;  %v7197_v44 = vsub.s32 3, %v687_v26 }
 0x156   :  { %1017 = vmatprep.subr.mxu0 %v11763_v45  ;;  %1088 = vmatprep.subr.mxu1 %v11764_v46 }
 0x157   :  { %1018 = vmatpush1.msra.mxu0 %v11765_v47  ;;  %1089 = vmatpush1.msra.mxu1 %v11766_v49  ;;  %v701_v49 = vrot.slane %v684_v29, %v7197_v44 }
 0x158   :  { %1019 = vmatprep.subr.mxu0 %v11767_v51  ;;  %1090 = vmatprep.subr.mxu1 %v11768_v55  ;;  %v7200_v51 = vsub.s32 2, %v687_v26 }
 0x159   :  { %1020 = vmatpush1.msra.mxu0 %v11769_v57  ;;  %1091 = vmatpush1.msra.mxu1 %v11770_v63 }
 0x15a   :  { %1021 = vmatprep.subr.mxu0 %v11771_v1  ;;  %1092 = vmatprep.subr.mxu1 %v11772_v9  ;;  %v697_v63 = vrot.slane %v684_v29, %v7200_v51  ;;  %v11808_v29 = vld [vmem:[#allocation89_spill] sm:$0xff] }
 0x15b   :  { %1022 = vmatpush1.msra.mxu0 %v11773_v0  ;;  %1093 = vmatpush1.msra.mxu1 %v11774_v62 }
 0x15c   :  { %1023 = vmatprep.subr.mxu0 %v11775_v52  ;;  %1094 = vmatprep.subr.mxu1 %v11776_v50 }
 0x15d   :  { %1024 = vmatpush1.msra.mxu0 %v11777_v54  ;;  %1095 = vmatpush1.msra.mxu1 %v11778_v58  ;;  %v5667_v54 = vld [vmem:[%s11005_s0 + $0x20] sm:$0xff] }
 0x15e   :  { %1025 = vmatprep.subr.mxu0 %v11779_v60  ;;  %1096 = vmatprep.subr.mxu1 %v11780_v61  ;;  %v5668_v60 = vld [vmem:[%s11005_s0 + $0x28] sm:$0xff] }
 0x15f   :  { %1026 = vmatpush1.msra.mxu0 %v11781_v48  ;;  %1097 = vmatpush1.msra.mxu1 %v11782_v56 }
 0x160   :  { %1027 = vmatprep.subr.mxu0 %v11783_v59  ;;  %1098 = vmatprep.subr.mxu1 %v11784_v2 }
 0x161   :  { %1028 = vmatpush1.msra.mxu0 %v11785_v3  ;;  %1099 = vmatpush1.msra.mxu1 %v11786_v4 }
 0x162   :  { %1029 = vmatprep.subr.mxu0 %v11787_v5  ;;  %1100 = vmatprep.subr.mxu1 %v11788_v6 }
 0x163   :  { %1030 = vmatpush1.msra.mxu0 %v11789_v7  ;;  %1101 = vmatpush1.msra.mxu1 %v11790_v8 }
 0x164   :  { %1031 = vmatprep.subr.mxu0 %v11791_v10  ;;  %1102 = vmatprep.subr.mxu1 %v11792_v11 }
 0x165   :  { %1032 = vmatpush1.msra.mxu0 %v11793_v12  ;;  %1103 = vmatpush1.msra.mxu1 %v11794_v13 }
 0x166   :  { %1033 = vmatprep.subr.mxu0 %v11795_v14  ;;  %1104 = vmatprep.subr.mxu1 %v11796_v15  ;;  %v5670_v14 = vld [vmem:[%s11005_s0 + $0x38] sm:$0xff]  ;;  %v5669_v15 = vld [vmem:[%s11005_s0 + $0x30] sm:$0xff] }
 0x167   :  { %1034 = vmatpush1.msra.mxu0 %v11797_v16  ;;  %1105 = vmatpush1.msra.mxu1 %v11798_v17 }
 0x168   :  { %1035 = vmatprep.subr.mxu0 %v11799_v18  ;;  %1106 = vmatprep.subr.mxu1 %v11800_v20 }
 0x169   :  { %1036 = vmatpush1.msra.mxu0 %v11801_v21  ;;  %1107 = vmatpush1.msra.mxu1 %v11802_v22 }
 0x16a   :  { %1069 = vmatprep.mubr.f32.mxu0 %v11737_v19  ;;  %1140 = vmatprep.mubr.f32.mxu1 %v11737_v19 }
 0x16b   :  { %1244 = vmatprep.subr.mxu0 %v11803_v23  ;;  %1315 = vmatprep.subr.mxu1 %v11804_v24 }
 0x1e8   :  { %v608_v34 = vpop.f32.mrf.mxu0  ;;  %v679_v40 = vpop.f32.mrf.mxu1 }
 0x1e9   :  { %v609_v36 = vadd.f32 %v608_v34, %v370_v27  ;;  %v680_v57 = vadd.f32 %v679_v40, %v441_v30  ;;  %v11807_v27 = vld [vmem:[#allocation88_spill] sm:$0xff]  ;;  %v11809_v30 = vld [vmem:[#allocation90_spill] sm:$0xff]  ;;  %v11812_v34 = vld [vmem:[#allocation93_spill] sm:$0xff] }
 0x1ea   :  { %v610_v38 = vpop.f32.mrf.mxu0  ;;  %v681_v46 = vpop.f32.mrf.mxu1  ;;  %v11818_v40 = vld [vmem:[#allocation99_spill] sm:$0xff] }
 0x1eb   :  { %v706_v39 = vadd.f32 %v689_v33, %v609_v36  ;;  %v611_v41 = vadd.f32 %v610_v38, %v372_v32  ;;  %v682_v47 = vadd.f32 %v681_v46, %v443_v35  ;;  %v708_v0 = vadd.f32 %v697_v63, %v680_v57  ;;  %v11810_v32 = vld [vmem:[#allocation91_spill] sm:$0xff]  ;;  %v11811_v33 = vld [vmem:[#allocation92_spill] sm:$0xff]  ;;  %v11813_v35 = vld [vmem:[#allocation94_spill] sm:$0xff] }
 0x1ec   :  { %v11814_v36 = vld [vmem:[#allocation95_spill] sm:$0xff]  ;;  %v11816_v38 = vld [vmem:[#allocation97_spill] sm:$0xff]  ;;  %v11821_v46 = vld [vmem:[#allocation102_spill] sm:$0xff] }
 0x1ed   :  { %v5664_v42 = vmul.f32 -1.442695, %v706_v39  ;;  %v707_v43 = vadd.f32 %v693_v37, %v611_v41  ;;  %v709_v55 = vadd.f32 %v701_v49, %v682_v47  ;;  %v11815_v37 = vld [vmem:[#allocation96_spill] sm:$0xff]  ;;  %v11817_v39 = vld [vmem:[#allocation98_spill] sm:$0xff]  ;;  %v11822_v47 = vld [vmem:[#allocation103_spill] sm:$0xff] }
 0x1ee   :  { %v11824_v57 = vld [vmem:[#allocation105_spill] sm:$0xff] }
 0x1ef   :  { %5764 = vpow2.f32 %v5664_v42  ;;  %v5665_v45 = vmul.f32 -1.442695, %v707_v43  ;;  %v5666_v1 = vmul.f32 -1.442695, %v709_v55  ;;  %v11819_v42 = vld [vmem:[#allocation100_spill] sm:$0xff]  ;;  %v11820_v43 = vld [vmem:[#allocation101_spill] sm:$0xff] }
 0x1f0   :  { %v11823_v55 = vld [vmem:[#allocation104_spill] sm:$0xff] }
 0x1f1   :  { %5766 = vpow2.f32 %v5665_v45 }
 0x1f2   :  { %5768 = vpow2.f32 %v5666_v1  ;;  %v11825_v1 = vld [vmem:[#allocation106_spill] sm:$0xff] }
 0x1fc   :  { %v5765_v9 = vpop.eup %5764 }
 0x1fd   :  { %v713_v62 = vadd.f32 1.0, %v5765_v9  ;;  %v11826_v9 = vld [vmem:[#allocation107_spill] sm:$0xff] }
 0x1fe   :  { %v5767_v52 = vpop.eup %5766 }
 0x1ff   :  { %5770 = vrcp.f32 %v713_v62  ;;  %v719_v50 = vadd.f32 1.0, %v5767_v52  ;;  %v5769_v48 = vpop.eup %5768  ;;  %v11827_v52 = vld [vmem:[#allocation108_spill] sm:$0xff] }
 0x200   :  { %5772 = vtanh.f32 %v708_v0  ;;  %v726_v6 = vadd.f32 1.0, %v5769_v48  ;;  %v11831_v48 = vld [vmem:[#allocation112_spill] sm:$0xff] }
 0x201   :  { %5774 = vrcp.f32 %v719_v50  ;;  %v11828_v50 = vld [vmem:[#allocation109_spill] sm:$0xff] }
 0x209   :  { %v865_v58 = vpop.f32.mrf.mxu0  ;;  %v936_v11 = vpop.f32.mrf.mxu1 }
 0x20a   :  { %v1152_v61 = vadd.f32 %v5667_v54, %v865_v58  ;;  %v1154_v17 = vadd.f32 %v5669_v15, %v936_v11  ;;  %v11829_v54 = vld [vmem:[#allocation110_spill] sm:$0xff]  ;;  %v11830_v58 = vld [vmem:[#allocation111_spill] sm:$0xff]  ;;  %v11843_v11 = vld [vmem:[#allocation124_spill] sm:$0xff] }
 0x20b   :  { %v867_v56 = vpop.f32.mrf.mxu0  ;;  %v938_v13 = vpop.f32.mrf.mxu1  ;;  %v11846_v15 = vld [vmem:[#allocation127_spill] sm:$0xff] }
 0x20c   :  { %v5771_v59 = vpop.eup %5770  ;;  %v5671_v2 = vmul.f32 -1.442695, %v1152_v61  ;;  %v1153_v3 = vadd.f32 %v5668_v60, %v867_v56  ;;  %v1155_v16 = vadd.f32 %v5670_v14, %v938_v13  ;;  %v11832_v56 = vld [vmem:[#allocation113_spill] sm:$0xff]  ;;  %v11845_v14 = vld [vmem:[#allocation126_spill] sm:$0xff] }
 0x20d   :  { %v5773_v4 = vpop.eup %5772  ;;  %v11844_v13 = vld [vmem:[#allocation125_spill] sm:$0xff] }
 0x20e   :  { %v5775_v5 = vpop.eup %5774  ;;  %5776 = vpow2.f32 %v5671_v2  ;;  %v5672_v7 = vmul.f32 -1.442695, %v1153_v3  ;;  %v730_v10 = vmul.f32 %v5773_v4, %v5771_v59  ;;  %v5673_v20 = vmul.f32 -1.442695, %v1155_v16  ;;  %v11833_v59 = vld [vmem:[#allocation114_spill] sm:$0xff]  ;;  %v11834_v2 = vld [vmem:[#allocation115_spill] sm:$0xff] }
 0x20f   :  { %v729_v8 = vmul.f32 0.0, %v5775_v5  ;;  %v11836_v3 = vld [vmem:[#allocation117_spill] sm:$0xff]  ;;  %v11837_v4 = vld [vmem:[#allocation118_spill] sm:$0xff]  ;;  %v11838_v5 = vld [vmem:[#allocation119_spill] sm:$0xff] }
 0x210   :  { %5778 = vpow2.f32 %v5672_v7  ;;  %v11840_v7 = vld [vmem:[#allocation121_spill] sm:$0xff]  ;;  %v11847_v16 = vld [vmem:[#allocation128_spill] sm:$0xff] }
 0x211   :  { %v7209_v12 = vadd.f32 %v730_v10, %v729_v8  ;;  %5780 = vrcp.f32 %v726_v6  ;;  %v11839_v6 = vld [vmem:[#allocation120_spill] sm:$0xff]  ;;  %v11841_v8 = vld [vmem:[#allocation122_spill] sm:$0xff]  ;;  %v11842_v10 = vld [vmem:[#allocation123_spill] sm:$0xff] }
 0x213   :  { %5782 = vtanh.f32 %v7209_v12 }
 0x214   :  { %5784 = vtanh.f32 %v1154_v17  ;;  %v11848_v17 = vld [vmem:[#allocation129_spill] sm:$0xff] }
 0x21b   :  { %v5777_v18 = vpop.eup %5776 }
 0x21c   :  { %v1159_v21 = vadd.f32 1.0, %v5777_v18  ;;  %v11849_v18 = vld [vmem:[#allocation130_spill] sm:$0xff] }
 0x21d   :  { %v5779_v22 = vpop.eup %5778 }
 0x21e   :  { %5786 = vrcp.f32 %v1159_v21  ;;  %v1165_v23 = vadd.f32 1.0, %v5779_v22  ;;  %v5781_v24 = vpop.eup %5780  ;;  %v11851_v21 = vld [vmem:[#allocation132_spill] sm:$0xff]  ;;  %v11852_v22 = vld [vmem:[#allocation133_spill] sm:$0xff] }
 0x21f   :  { %5788 = vpow2.f32 %v5673_v20  ;;  %v11850_v20 = vld [vmem:[#allocation131_spill] sm:$0xff] }
 0x220   :  { %v5783_v25 = vpop.eup %5782  ;;  %5790 = vrcp.f32 %v1165_v23  ;;  %v11853_v23 = vld [vmem:[#allocation134_spill] sm:$0xff] }
 0x221   :  { %v733_v26 = vmul.f32 %v5783_v25, %v5781_v24  ;;  %v5785_v41 = vpop.eup %5784  ;;  %v11854_v24 = vld [vmem:[#allocation135_spill] sm:$0xff]  ;;  %v11855_v25 = vld [vmem:[#allocation136_spill] sm:$0xff] }
 0x223   :  { %734 = vst [vmem:[%s11010_s5] sm:$0xff] %v733_v26  ;;  %1070 = vmatmul.mubr.f32.vlgmr.msra.gmra.mxu0 %v733_v26  ;;  %1141 = vmatmul.mubr.f32.vlgmr.msra.gmra.mxu1 %v733_v26  ;;  %v11856_v26 = vld [vmem:[#allocation137_spill] sm:$0xff] }
 0x224   :  { %1245 = vmatpush1.msra.mxu0 %v11807_v27  ;;  %1316 = vmatpush1.msra.mxu1 %v11808_v29  ;;  %v11857_v27 = vld [vmem:[#allocation138_spill] sm:$0xff]  ;;  %v11858_v29 = vld [vmem:[#allocation139_spill] sm:$0xff] }
 0x225   :  { %1246 = vmatprep.subr.mxu0 %v11809_v30  ;;  %1317 = vmatprep.subr.mxu1 %v11810_v32  ;;  %v11859_v30 = vld [vmem:[#allocation140_spill] sm:$0xff]  ;;  %v11860_v32 = vld [vmem:[#allocation141_spill] sm:$0xff] }
 0x226   :  { %1247 = vmatpush1.msra.mxu0 %v11811_v33  ;;  %1318 = vmatpush1.msra.mxu1 %v11812_v34  ;;  %v11861_v34 = vld [vmem:[#allocation142_spill] sm:$0xff] }
 0x227   :  { %1248 = vmatprep.subr.mxu0 %v11813_v35  ;;  %1319 = vmatprep.subr.mxu1 %v11814_v36  ;;  %v11862_v35 = vld [vmem:[#allocation143_spill] sm:$0xff]  ;;  %v11863_v36 = vld [vmem:[#allocation144_spill] sm:$0xff] }
 0x228   :  { %1249 = vmatpush1.msra.mxu0 %v11815_v37  ;;  %1320 = vmatpush1.msra.mxu1 %v11816_v38  ;;  %v11864_v37 = vld [vmem:[#allocation145_spill] sm:$0xff] }
 0x229   :  { %1250 = vmatprep.subr.mxu0 %v11817_v39  ;;  %1321 = vmatprep.subr.mxu1 %v11818_v40  ;;  %v11865_v39 = vld [vmem:[#allocation146_spill] sm:$0xff]  ;;  %v11866_v40 = vld [vmem:[#allocation147_spill] sm:$0xff] }
 0x22a   :  { %1251 = vmatpush1.msra.mxu0 %v11819_v42  ;;  %1322 = vmatpush1.msra.mxu1 %v11820_v43  ;;  %v7292_v43 = vld [vmem:[%s11006_s1 + $0x1e8] sm:$0xff] }
 0x22b   :  { %v5787_v45 = vpop.eup %5786  ;;  %1252 = vmatprep.subr.mxu0 %v11821_v46  ;;  %1323 = vmatprep.subr.mxu1 %v11822_v47  ;;  %v11868_v46 = vld [vmem:[#allocation149_spill] sm:$0xff] }
 0x22c   :  { %v5789_v49 = vpop.eup %5788  ;;  %1253 = vmatpush1.msra.mxu0 %v11823_v55  ;;  %1324 = vmatpush1.msra.mxu1 %v11824_v57  ;;  %v1176_v0 = vmul.f32 %v5787_v45, %v5785_v41  ;;  %v11867_v41 = vld [vmem:[#allocation148_spill] sm:$0xff]  ;;  %v7304_v47 = vld [vmem:[%s11006_s1 + $0x1e0] sm:$0xff]  ;;  %v7316_v55 = vld [vmem:[%s11006_s1 + $0x1c8] sm:$0xff] }
 0x22d   :  { %v5791_v63 = vpop.eup %5790  ;;  %1254 = vmatprep.subr.mxu0 %v11825_v1  ;;  %1325 = vmatprep.subr.mxu1 %v11826_v9  ;;  %v1172_v61 = vadd.f32 1.0, %v5789_v49  ;;  %v7297_v45 = vld [vmem:[%s11006_s1 + $0x1f8] sm:$0xff]  ;;  %v7309_v49 = vld [vmem:[%s11006_s1 + $0x1f0] sm:$0xff]  ;;  %v7340_v9 = vld [vmem:[%s11006_s1 + $0x1a8] sm:$0xff] }
 0x22e   :  { %v1175_v62 = vmul.f32 %v5791_v63, %v7047_v53  ;;  %1255 = vmatpush1.msra.mxu0 %v11827_v52  ;;  %1326 = vmatpush1.msra.mxu1 %v11828_v50  ;;  %v11835_v53 = vld [vmem:[#allocation116_spill] sm:$0xff]  ;;  %v7328_v63 = vld [vmem:[%s11006_s1 + $0x1c0] sm:$0xff]  ;;  %v7333_v1 = vld [vmem:[%s11006_s1 + $0x1d0] sm:$0xff] }
 0x22f   :  { %1256 = vmatprep.subr.mxu0 %v11829_v54  ;;  %1327 = vmatprep.subr.mxu1 %v11830_v58  ;;  %v7321_v57 = vld [vmem:[%s11006_s1 + $0x1d8] sm:$0xff]  ;;  %v7357_v52 = vld [vmem:[%s11006_s1 + $0x1b0] sm:$0xff]  ;;  %v7364_v50 = vld [vmem:[%s11006_s1 + $0x188] sm:$0xff] }
 0x230   :  { %v7246_v60 = vadd.f32 %v1176_v0, %v1175_v62  ;;  %1257 = vmatpush1.msra.mxu0 %v11831_v48  ;;  %1328 = vmatpush1.msra.mxu1 %v11832_v56  ;;  %v7345_v0 = vld [vmem:[%s11006_s1 + $0x1b8] sm:$0xff]  ;;  %v7352_v62 = vld [vmem:[%s11006_s1 + $0x1a0] sm:$0xff]  ;;  %v7388_v48 = vld [vmem:[%s11006_s1 + $0x168] sm:$0xff] }
 0x231   :  { %1258 = vmatprep.subr.mxu0 %v11833_v59  ;;  %1329 = vmatprep.subr.mxu1 %v11834_v2  ;;  %v7369_v54 = vld [vmem:[%s11006_s1 + $0x198] sm:$0xff]  ;;  %v7376_v58 = vld [vmem:[%s11006_s1 + $0x180] sm:$0xff]  ;;  %v7405_v2 = vld [vmem:[%s11006_s1 + $0x170] sm:$0xff] }
 0x232   :  { %1259 = vmatpush1.msra.mxu0 %v11835_v53  ;;  %1330 = vmatpush1.msra.mxu1 %v11836_v3  ;;  %5792 = vtanh.f32 %v7246_v60  ;;  %v7393_v56 = vld [vmem:[%s11006_s1 + $0x178] sm:$0xff]  ;;  %v7400_v59 = vld [vmem:[%s11006_s1 + $0x160] sm:$0xff]  ;;  %v7412_v53 = vld [vmem:[%s11006_s1 + $0x148] sm:$0xff] }
 0x233   :  { %1260 = vmatprep.subr.mxu0 %v11837_v4  ;;  %1331 = vmatprep.subr.mxu1 %v11838_v5  ;;  %5794 = vrcp.f32 %v1172_v61  ;;  %v7381_v61 = vld [vmem:[%s11006_s1 + $0x190] sm:$0xff]  ;;  %v7417_v3 = vld [vmem:[%s11006_s1 + $0x158] sm:$0xff]  ;;  %v7424_v4 = vld [vmem:[%s11006_s1 + $0x140] sm:$0xff] }
 0x234   :  { %1261 = vmatpush1.msra.mxu0 %v11839_v6  ;;  %1332 = vmatpush1.msra.mxu1 %v11840_v7  ;;  %v7429_v5 = vld [vmem:[%s11006_s1 + $0x150] sm:$0xff]  ;;  %v7436_v6 = vld [vmem:[%s11006_s1 + $0x128] sm:$0xff]  ;;  %v7441_v7 = vld [vmem:[%s11006_s1 + $0x138] sm:$0xff] }
 0x235   :  { %1262 = vmatprep.subr.mxu0 %v11841_v8  ;;  %1333 = vmatprep.subr.mxu1 %v11842_v10  ;;  %v7448_v8 = vld [vmem:[%s11006_s1 + $0x120] sm:$0xff]  ;;  %v7453_v10 = vld [vmem:[%s11006_s1 + $0x130] sm:$0xff] }
 0x236   :  { %1263 = vmatpush1.msra.mxu0 %v11843_v11  ;;  %1334 = vmatpush1.msra.mxu1 %v11844_v13  ;;  %v7460_v11 = vld [vmem:[%s11006_s1 + $0x108] sm:$0xff]  ;;  %v7465_v13 = vld [vmem:[%s11006_s1 + $0x118] sm:$0xff] }
 0x237   :  { %1264 = vmatprep.subr.mxu0 %v11845_v14  ;;  %1335 = vmatprep.subr.mxu1 %v11846_v15  ;;  %v7472_v14 = vld [vmem:[%s11006_s1 + $0x100] sm:$0xff]  ;;  %v7477_v15 = vld [vmem:[%s11006_s1 + $0x110] sm:$0xff] }
 0x238   :  { %1265 = vmatpush1.msra.mxu0 %v11847_v16  ;;  %1336 = vmatpush1.msra.mxu1 %v11848_v17  ;;  %v7484_v16 = vld [vmem:[%s11006_s1 + $0xe8] sm:$0xff]  ;;  %v7489_v17 = vld [vmem:[%s11006_s1 + $0xf8] sm:$0xff] }
 0x239   :  { %1266 = vmatprep.subr.mxu0 %v11849_v18  ;;  %1337 = vmatprep.subr.mxu1 %v11850_v20  ;;  %v7496_v18 = vld [vmem:[%s11006_s1 + $0xe0] sm:$0xff]  ;;  %v7501_v20 = vld [vmem:[%s11006_s1 + $0xf0] sm:$0xff] }
 0x23a   :  { %1267 = vmatpush1.msra.mxu0 %v11851_v21  ;;  %1338 = vmatpush1.msra.mxu1 %v11852_v22  ;;  %11869 = vst [vmem:[#allocation12_spill] sm:$0xff] %v7501_v20  ;;  %v7508_v21 = vld [vmem:[%s11006_s1 + $0xc8] sm:$0xff]  ;;  %v7513_v22 = vld [vmem:[%s11006_s1 + $0xd8] sm:$0xff] }
 0x23b   :  { %1268 = vmatprep.subr.mxu0 %v11853_v23  ;;  %1339 = vmatprep.subr.mxu1 %v11854_v24  ;;  %11870 = vst [vmem:[#allocation6_spill] sm:$0xff] %v7508_v21  ;;  %11871 = vst [vmem:[#allocation14_spill] sm:$0xff] %v7513_v22  ;;  %v7520_v23 = vld [vmem:[%s11006_s1 + $0xc0] sm:$0xff]  ;;  %v7525_v24 = vld [vmem:[%s11006_s1 + $0xd0] sm:$0xff] }
 0x23c   :  { %1269 = vmatpush1.msra.mxu0 %v11855_v25  ;;  %1340 = vmatpush1.msra.mxu1 %v11856_v26  ;;  %11872 = vst [vmem:[#allocation7_spill] sm:$0xff] %v7520_v23  ;;  %11873 = vst [vmem:[#allocation16_spill] sm:$0xff] %v7525_v24  ;;  %v7532_v25 = vld [vmem:[%s11006_s1 + $0xa8] sm:$0xff]  ;;  %v7537_v26 = vld [vmem:[%s11006_s1 + $0xb8] sm:$0xff] }
 0x23d   :  { %1270 = vmatprep.subr.mxu0 %v11857_v27  ;;  %1341 = vmatprep.subr.mxu1 %v11858_v29  ;;  %11874 = vst [vmem:[#allocation8_spill] sm:$0xff] %v7532_v25  ;;  %11875 = vst [vmem:[#allocation17_spill] sm:$0xff] %v7537_v26  ;;  %v7544_v27 = vld [vmem:[%s11006_s1 + $0xa0] sm:$0xff]  ;;  %v7549_v29 = vld [vmem:[%s11006_s1 + $0xb0] sm:$0xff] }
 0x23e   :  { %1271 = vmatpush1.msra.mxu0 %v11859_v30  ;;  %1342 = vmatpush1.msra.mxu1 %v11860_v32  ;;  %11876 = vst [vmem:[#allocation9_spill] sm:$0xff] %v7544_v27  ;;  %11877 = vst [vmem:[#allocation18_spill] sm:$0xff] %v7549_v29  ;;  %v7556_v30 = vld [vmem:[%s11006_s1 + $0x88] sm:$0xff]  ;;  %v7561_v32 = vld [vmem:[%s11006_s1 + $0x98] sm:$0xff] }
 0x23f   :  { %v5793_v33 = vpop.eup %5792  ;;  %1272 = vmatprep.subr.mxu0 %v11861_v34  ;;  %1343 = vmatprep.subr.mxu1 %v11862_v35  ;;  %11878 = vst [vmem:[#allocation11_spill] sm:$0xff] %v7556_v30  ;;  %11879 = vst [vmem:[#allocation20_spill] sm:$0xff] %v7561_v32  ;;  %v7573_v34 = vld [vmem:[%s11006_s1 + $0x90] sm:$0xff]  ;;  %v7580_v35 = vld [vmem:[%s11006_s1 + $0x68] sm:$0xff] }
 0x240   :  { %1273 = vmatpush1.msra.mxu0 %v11863_v36  ;;  %1344 = vmatpush1.msra.mxu1 %v11864_v37  ;;  %v5795_v38 = vpop.eup %5794  ;;  %11881 = vst [vmem:[#allocation22_spill] sm:$0xff] %v7573_v34  ;;  %11882 = vst [vmem:[#allocation15_spill] sm:$0xff] %v7580_v35  ;;  %v7585_v36 = vld [vmem:[%s11006_s1 + $0x78] sm:$0xff]  ;;  %v7592_v37 = vld [vmem:[%s11006_s1 + $0x60] sm:$0xff] }
 0x241   :  { %1274 = vmatprep.subr.mxu0 %v11865_v39  ;;  %1345 = vmatprep.subr.mxu1 %v11866_v40  ;;  %v7287_v42 = vmul.f32 %v5795_v38, %v5793_v33  ;;  %v7568_v33 = vld [vmem:[%s11006_s1 + $0x80] sm:$0xff]  ;;  %11883 = vst [vmem:[#allocation24_spill] sm:$0xff] %v7585_v36  ;;  %11884 = vst [vmem:[#allocation19_spill] sm:$0xff] %v7592_v37  ;;  %v7597_v38 = vld [vmem:[%s11006_s1 + $0x70] sm:$0xff] }
 0x242   :  { %1275 = vmatpush1.msra.mxu0 %v11867_v41  ;;  %1308 = vmatprep.mubr.f32.mxu0 %v11737_v19  ;;  %11880 = vst [vmem:[#allocation13_spill] sm:$0xff] %v7568_v33  ;;  %11885 = vst [vmem:[#allocation26_spill] sm:$0xff] %v7597_v38  ;;  %v7604_v39 = vld [vmem:[%s11006_s1 + $0x48] sm:$0xff]  ;;  %v7609_v40 = vld [vmem:[%s11006_s1 + $0x58] sm:$0xff] }
 0x243   :  { %1346 = vmatpush1.msra.mxu1 %v11868_v46  ;;  %1379 = vmatprep.mubr.f32.mxu1 %v11737_v19  ;;  %11886 = vst [vmem:[#allocation21_spill] sm:$0xff] %v7604_v39  ;;  %11887 = vst [vmem:[#allocation27_spill] sm:$0xff] %v7609_v40  ;;  %v7616_v41 = vld [vmem:[%s11006_s1 + $0x40] sm:$0xff]  ;;  %v7621_v46 = vld [vmem:[%s11006_s1 + $0x50] sm:$0xff] }
 0x244   :  { %1309 = vmatmul.mubr.f32.vlgmr.msra.gmra.mxu0 %v7287_v42  ;;  %1380 = vmatmul.mubr.f32.vlgmr.msra.gmra.mxu1 %v7287_v42  ;;  %11888 = vst [vmem:[#allocation23_spill] sm:$0xff] %v7616_v41  ;;  %11889 = vst [vmem:[#allocation29_spill] sm:$0xff] %v7621_v46 }
 0x245   :  { %1502 = vmatprep.subr.mxu0 %v7292_v43  ;;  %1573 = vmatprep.subr.mxu1 %v7297_v45 }
 0x246   :  { %1503 = vmatpush1.msra.mxu0 %v7304_v47  ;;  %1574 = vmatpush1.msra.mxu1 %v7309_v49 }
 0x247   :  { %1504 = vmatprep.subr.mxu0 %v7316_v55  ;;  %1575 = vmatprep.subr.mxu1 %v7321_v57 }
 0x248   :  { %1505 = vmatpush1.msra.mxu0 %v7328_v63  ;;  %1576 = vmatpush1.msra.mxu1 %v7333_v1 }
 0x249   :  { %1506 = vmatprep.subr.mxu0 %v7340_v9  ;;  %1577 = vmatprep.subr.mxu1 %v7345_v0 }
 0x24a   :  { %1507 = vmatpush1.msra.mxu0 %v7352_v62  ;;  %1578 = vmatpush1.msra.mxu1 %v7357_v52 }
 0x24b   :  { %1508 = vmatprep.subr.mxu0 %v7364_v50  ;;  %1579 = vmatprep.subr.mxu1 %v7369_v54 }
 0x24c   :  { %1509 = vmatpush1.msra.mxu0 %v7376_v58  ;;  %1580 = vmatpush1.msra.mxu1 %v7381_v61 }
 0x24d   :  { %1510 = vmatprep.subr.mxu0 %v7388_v48  ;;  %1581 = vmatprep.subr.mxu1 %v7393_v56 }
 0x24e   :  { %1511 = vmatpush1.msra.mxu0 %v7400_v59  ;;  %1582 = vmatpush1.msra.mxu1 %v7405_v2 }
 0x24f   :  { %1512 = vmatprep.subr.mxu0 %v7412_v53  ;;  %1583 = vmatprep.subr.mxu1 %v7417_v3 }
 0x250   :  { %1513 = vmatpush1.msra.mxu0 %v7424_v4  ;;  %1584 = vmatpush1.msra.mxu1 %v7429_v5 }
 0x251   :  { %1514 = vmatprep.subr.mxu0 %v7436_v6  ;;  %1585 = vmatprep.subr.mxu1 %v7441_v7 }
 0x252   :  { %1515 = vmatpush1.msra.mxu0 %v7448_v8  ;;  %1586 = vmatpush1.msra.mxu1 %v7453_v10 }
 0x253   :  { %1516 = vmatprep.subr.mxu0 %v7460_v11  ;;  %1587 = vmatprep.subr.mxu1 %v7465_v13 }
 0x254   :  { %1517 = vmatpush1.msra.mxu0 %v7472_v14  ;;  %1588 = vmatpush1.msra.mxu1 %v7477_v15 }
 0x255   :  { %1518 = vmatprep.subr.mxu0 %v7484_v16  ;;  %1589 = vmatprep.subr.mxu1 %v7489_v17 }
 0x256   :  { %1519 = vmatpush1.msra.mxu0 %v7496_v18  ;;  %1590 = vmatpush1.msra.mxu1 %v7501_v20 }
 0x257   :  { %1520 = vmatprep.subr.mxu0 %v7508_v21  ;;  %1591 = vmatprep.subr.mxu1 %v7513_v22 }
 0x258   :  { %1521 = vmatpush1.msra.mxu0 %v7520_v23  ;;  %1592 = vmatpush1.msra.mxu1 %v7525_v24 }
 0x259   :  { %1522 = vmatprep.subr.mxu0 %v7532_v25  ;;  %1593 = vmatprep.subr.mxu1 %v7537_v26 }
 0x25a   :  { %1523 = vmatpush1.msra.mxu0 %v7544_v27  ;;  %1594 = vmatpush1.msra.mxu1 %v7549_v29 }
 0x25b   :  { %1524 = vmatprep.subr.mxu0 %v7556_v30  ;;  %1595 = vmatprep.subr.mxu1 %v7561_v32 }
 0x25c   :  { %1525 = vmatpush1.msra.mxu0 %v7568_v33  ;;  %1596 = vmatpush1.msra.mxu1 %v7573_v34 }
 0x25d   :  { %1526 = vmatprep.subr.mxu0 %v7580_v35  ;;  %1597 = vmatprep.subr.mxu1 %v7585_v36  ;;  %v7628_v35 = vld [vmem:[%s11006_s1 + $0x28] sm:$0xff]  ;;  %v7633_v36 = vld [vmem:[%s11006_s1 + $0x38] sm:$0xff] }
 0x25e   :  { %1527 = vmatpush1.msra.mxu0 %v7592_v37  ;;  %1598 = vmatpush1.msra.mxu1 %v7597_v38  ;;  %11890 = vst [vmem:[#allocation25_spill] sm:$0xff] %v7628_v35  ;;  %11891 = vst [vmem:[#allocation31_spill] sm:$0xff] %v7633_v36  ;;  %v7640_v37 = vld [vmem:[%s11006_s1 + $0x20] sm:$0xff]  ;;  %v7645_v38 = vld [vmem:[%s11006_s1 + $0x30] sm:$0xff] }
 0x25f   :  { %1528 = vmatprep.subr.mxu0 %v7604_v39  ;;  %1599 = vmatprep.subr.mxu1 %v7609_v40  ;;  %11892 = vst [vmem:[#allocation28_spill] sm:$0xff] %v7640_v37  ;;  %11893 = vst [vmem:[#allocation33_spill] sm:$0xff] %v7645_v38  ;;  %v7652_v39 = vld [vmem:[%s11006_s1 + $0x8] sm:$0xff]  ;;  %v7657_v40 = vld [vmem:[%s11006_s1 + $0x18] sm:$0xff] }
 0x260   :  { %1529 = vmatpush1.msra.mxu0 %v7616_v41  ;;  %1600 = vmatpush1.msra.mxu1 %v7621_v46  ;;  %11894 = vst [vmem:[#allocation30_spill] sm:$0xff] %v7652_v39  ;;  %11895 = vst [vmem:[#allocation35_spill] sm:$0xff] %v7657_v40  ;;  %v7664_v41 = vld [vmem:[%s11006_s1] sm:$0xff]  ;;  %v7671_v46 = vld [vmem:[%s11006_s1 + $0x10] sm:$0xff] }
 0x261   :  { %1530 = vmatprep.subr.mxu0 %v7628_v35  ;;  %1601 = vmatprep.subr.mxu1 %v7633_v36  ;;  %11896 = vst [vmem:[#allocation32_spill] sm:$0xff] %v7664_v41  ;;  %11897 = vst [vmem:[#allocation36_spill] sm:$0xff] %v7671_v46  ;;  %v7738_v36 = vld [vmem:[#allocation2 + $0x170] sm:$0xff] }
 0x262   :  { %1531 = vmatpush1.msra.mxu0 %v7640_v37  ;;  %1602 = vmatpush1.msra.mxu1 %v7645_v38  ;;  %v7683_v38 = vld [vmem:[#allocation2 + $0x1e8] sm:$0xff]  ;;  %v7701_v37 = vld [vmem:[#allocation2 + $0x1c0] sm:$0xff]  ;;  %11917 = vst [vmem:[#allocation55_spill] sm:$0xff] %v7738_v36 }
 0x263   :  { %1532 = vmatprep.subr.mxu0 %v7652_v39  ;;  %1603 = vmatprep.subr.mxu1 %v7657_v40  ;;  %11898 = vst [vmem:[#allocation34_spill] sm:$0xff] %v7683_v38  ;;  %v7685_v39 = vld [vmem:[#allocation2 + $0x1f8] sm:$0xff]  ;;  %11904 = vst [vmem:[#allocation42_spill] sm:$0xff] %v7701_v37 }
 0x264   :  { %1533 = vmatpush1.msra.mxu0 %v7664_v41  ;;  %1566 = vmatprep.mubr.f32.mxu0 %v11737_v19  ;;  %11899 = vst [vmem:[#allocation37_spill] sm:$0xff] %v7685_v39  ;;  %v7689_v41 = vld [vmem:[#allocation2 + $0x1e0] sm:$0xff]  ;;  %v7697_v40 = vld [vmem:[#allocation2 + $0x1d8] sm:$0xff] }
 0x265   :  { %1604 = vmatpush1.msra.mxu1 %v7671_v46  ;;  %1637 = vmatprep.mubr.f32.mxu1 %v11737_v19  ;;  %11900 = vst [vmem:[#allocation38_spill] sm:$0xff] %v7689_v41  ;;  %v7691_v46 = vld [vmem:[#allocation2 + $0x1f0] sm:$0xff]  ;;  %11903 = vst [vmem:[#allocation41_spill] sm:$0xff] %v7697_v40 }
 0x266   :  { %1567 = vmatmul.mubr.f32.vlgmr.msra.gmra.mxu0 %v7287_v42  ;;  %1638 = vmatmul.mubr.f32.vlgmr.msra.gmra.mxu1 %v7287_v42  ;;  %11901 = vst [vmem:[#allocation39_spill] sm:$0xff] %v7691_v46  ;;  %v7695_v42 = vld [vmem:[#allocation2 + $0x1c8] sm:$0xff] }
 0x267   :  { %1772 = vmatprep.mubr.f32.mxu0 %v11737_v19  ;;  %1843 = vmatprep.mubr.f32.mxu1 %v11737_v19  ;;  %11902 = vst [vmem:[#allocation40_spill] sm:$0xff] %v7695_v42 }
 0x268   :  { %1708 = vmatprep.subr.mxu0 %v7683_v38  ;;  %1779 = vmatprep.subr.mxu1 %v7685_v39  ;;  %v7703_v38 = vld [vmem:[#allocation2 + $0x1d0] sm:$0xff]  ;;  %v7707_v39 = vld [vmem:[#allocation2 + $0x1a8] sm:$0xff] }
 0x269   :  { %1709 = vmatpush1.msra.mxu0 %v7689_v41  ;;  %1780 = vmatpush1.msra.mxu1 %v7691_v46  ;;  %11905 = vst [vmem:[#allocation43_spill] sm:$0xff] %v7703_v38  ;;  %11906 = vst [vmem:[#allocation44_spill] sm:$0xff] %v7707_v39  ;;  %v7709_v41 = vld [vmem:[#allocation2 + $0x1b8] sm:$0xff]  ;;  %v7713_v46 = vld [vmem:[#allocation2 + $0x1a0] sm:$0xff] }
 0x26a   :  { %1710 = vmatprep.subr.mxu0 %v7695_v42  ;;  %1781 = vmatprep.subr.mxu1 %v7697_v40  ;;  %11907 = vst [vmem:[#allocation45_spill] sm:$0xff] %v7709_v41  ;;  %11908 = vst [vmem:[#allocation46_spill] sm:$0xff] %v7713_v46  ;;  %v7715_v42 = vld [vmem:[#allocation2 + $0x1b0] sm:$0xff]  ;;  %v7719_v40 = vld [vmem:[#allocation2 + $0x188] sm:$0xff] }
 0x26b   :  { %1711 = vmatpush1.msra.mxu0 %v7701_v37  ;;  %1782 = vmatpush1.msra.mxu1 %v7703_v38  ;;  %11909 = vst [vmem:[#allocation47_spill] sm:$0xff] %v7715_v42  ;;  %11910 = vst [vmem:[#allocation48_spill] sm:$0xff] %v7719_v40  ;;  %v7721_v37 = vld [vmem:[#allocation2 + $0x198] sm:$0xff]  ;;  %v7725_v38 = vld [vmem:[#allocation2 + $0x180] sm:$0xff] }
 0x26c   :  { %1712 = vmatprep.subr.mxu0 %v7707_v39  ;;  %1783 = vmatprep.subr.mxu1 %v7709_v41  ;;  %11911 = vst [vmem:[#allocation49_spill] sm:$0xff] %v7721_v37  ;;  %11912 = vst [vmem:[#allocation50_spill] sm:$0xff] %v7725_v38  ;;  %v7728_v41 = vld [vmem:[#allocation2 + $0x190] sm:$0xff]  ;;  %v7731_v39 = vld [vmem:[#allocation2 + $0x168] sm:$0xff] }
 0x26d   :  { %1713 = vmatpush1.msra.mxu0 %v7713_v46  ;;  %1784 = vmatpush1.msra.mxu1 %v7715_v42  ;;  %11913 = vst [vmem:[#allocation51_spill] sm:$0xff] %v7728_v41  ;;  %11914 = vst [vmem:[#allocation52_spill] sm:$0xff] %v7731_v39  ;;  %v7734_v42 = vld [vmem:[#allocation2 + $0x178] sm:$0xff]  ;;  %v7736_v46 = vld [vmem:[#allocation2 + $0x160] sm:$0xff] }
 0x26e   :  { %1714 = vmatprep.subr.mxu0 %v7719_v40  ;;  %1785 = vmatprep.subr.mxu1 %v7721_v37  ;;  %11915 = vst [vmem:[#allocation53_spill] sm:$0xff] %v7734_v42  ;;  %11916 = vst [vmem:[#allocation54_spill] sm:$0xff] %v7736_v46  ;;  %v7742_v37 = vld [vmem:[#allocation2 + $0x148] sm:$0xff] }
 0x26f   :  { %1715 = vmatpush1.msra.mxu0 %v7725_v38  ;;  %1786 = vmatpush1.msra.mxu1 %v7728_v41  ;;  %11918 = vst [vmem:[#allocation56_spill] sm:$0xff] %v7742_v37  ;;  %v7744_v38 = vld [vmem:[#allocation2 + $0x158] sm:$0xff]  ;;  %v7748_v41 = vld [vmem:[#allocation2 + $0x140] sm:$0xff]  ;;  %v7754_v40 = vld [vmem:[#allocation2 + $0x128] sm:$0xff] }
 0x270   :  { %1716 = vmatprep.subr.mxu0 %v7731_v39  ;;  %1787 = vmatprep.subr.mxu1 %v7734_v42  ;;  %11919 = vst [vmem:[#allocation57_spill] sm:$0xff] %v7744_v38  ;;  %11920 = vst [vmem:[#allocation58_spill] sm:$0xff] %v7748_v41  ;;  %v7750_v39 = vld [vmem:[#allocation2 + $0x150] sm:$0xff]  ;;  %v7756_v42 = vld [vmem:[#allocation2 + $0x138] sm:$0xff] }
 0x271   :  { %1717 = vmatpush1.msra.mxu0 %v7736_v46  ;;  %1788 = vmatpush1.msra.mxu1 %v7738_v36  ;;  %11921 = vst [vmem:[#allocation59_spill] sm:$0xff] %v7750_v39  ;;  %11922 = vst [vmem:[#allocation60_spill] sm:$0xff] %v7754_v40  ;;  %v7760_v46 = vld [vmem:[#allocation2 + $0x120] sm:$0xff]  ;;  %v7762_v36 = vld [vmem:[#allocation2 + $0x130] sm:$0xff] }
 0x272   :  { %1718 = vmatprep.subr.mxu0 %v7742_v37  ;;  %1789 = vmatprep.subr.mxu1 %v7744_v38  ;;  %11923 = vst [vmem:[#allocation61_spill] sm:$0xff] %v7756_v42  ;;  %11924 = vst [vmem:[#allocation62_spill] sm:$0xff] %v7760_v46  ;;  %v7766_v37 = vld [vmem:[#allocation2 + $0x108] sm:$0xff]  ;;  %v7768_v38 = vld [vmem:[#allocation2 + $0x118] sm:$0xff] }
 0x273   :  { %1719 = vmatpush1.msra.mxu0 %v7748_v41  ;;  %1790 = vmatpush1.msra.mxu1 %v7750_v39  ;;  %11925 = vst [vmem:[#allocation63_spill] sm:$0xff] %v7762_v36  ;;  %11926 = vst [vmem:[#allocation64_spill] sm:$0xff] %v7766_v37  ;;  %v7772_v41 = vld [vmem:[#allocation2 + $0x100] sm:$0xff]  ;;  %v7774_v39 = vld [vmem:[#allocation2 + $0x110] sm:$0xff] }
 0x274   :  { %1720 = vmatprep.subr.mxu0 %v7754_v40  ;;  %1791 = vmatprep.subr.mxu1 %v7756_v42  ;;  %11927 = vst [vmem:[#allocation65_spill] sm:$0xff] %v7768_v38  ;;  %11928 = vst [vmem:[#allocation66_spill] sm:$0xff] %v7772_v41  ;;  %v7778_v40 = vld [vmem:[#allocation2 + $0xe8] sm:$0xff]  ;;  %v7780_v42 = vld [vmem:[#allocation2 + $0xf8] sm:$0xff] }
 0x275   :  { %1721 = vmatpush1.msra.mxu0 %v7760_v46  ;;  %1792 = vmatpush1.msra.mxu1 %v7762_v36  ;;  %11929 = vst [vmem:[#allocation67_spill] sm:$0xff] %v7774_v39  ;;  %11930 = vst [vmem:[#allocation68_spill] sm:$0xff] %v7778_v40  ;;  %v7784_v46 = vld [vmem:[#allocation2 + $0xe0] sm:$0xff]  ;;  %v7786_v36 = vld [vmem:[#allocation2 + $0xf0] sm:$0xff] }
 0x276   :  { %1722 = vmatprep.subr.mxu0 %v7766_v37  ;;  %1793 = vmatprep.subr.mxu1 %v7768_v38  ;;  %11931 = vst [vmem:[#allocation69_spill] sm:$0xff] %v7780_v42  ;;  %11932 = vst [vmem:[#allocation70_spill] sm:$0xff] %v7784_v46  ;;  %v7790_v37 = vld [vmem:[#allocation2 + $0xc8] sm:$0xff]  ;;  %v7792_v38 = vld [vmem:[#allocation2 + $0xd8] sm:$0xff] }
 0x277   :  { %1723 = vmatpush1.msra.mxu0 %v7772_v41  ;;  %1794 = vmatpush1.msra.mxu1 %v7774_v39  ;;  %11933 = vst [vmem:[#allocation71_spill] sm:$0xff] %v7786_v36  ;;  %11934 = vst [vmem:[#allocation72_spill] sm:$0xff] %v7790_v37  ;;  %v7796_v41 = vld [vmem:[#allocation2 + $0xc0] sm:$0xff]  ;;  %v7798_v39 = vld [vmem:[#allocation2 + $0xd0] sm:$0xff] }
 0x278   :  { %1724 = vmatprep.subr.mxu0 %v7778_v40  ;;  %1795 = vmatprep.subr.mxu1 %v7780_v42  ;;  %11935 = vst [vmem:[#allocation73_spill] sm:$0xff] %v7792_v38  ;;  %11936 = vst [vmem:[#allocation74_spill] sm:$0xff] %v7796_v41  ;;  %v7802_v40 = vld [vmem:[#allocation2 + $0xa8] sm:$0xff]  ;;  %v7804_v42 = vld [vmem:[#allocation2 + $0xb8] sm:$0xff] }
 0x279   :  { %1725 = vmatpush1.msra.mxu0 %v7784_v46  ;;  %1796 = vmatpush1.msra.mxu1 %v7786_v36  ;;  %11937 = vst [vmem:[#allocation75_spill] sm:$0xff] %v7798_v39  ;;  %11938 = vst [vmem:[#allocation76_spill] sm:$0xff] %v7802_v40  ;;  %v7808_v46 = vld [vmem:[#allocation2 + $0xa0] sm:$0xff]  ;;  %v7810_v36 = vld [vmem:[#allocation2 + $0xb0] sm:$0xff] }
 0x27a   :  { %1726 = vmatprep.subr.mxu0 %v7790_v37  ;;  %1797 = vmatprep.subr.mxu1 %v7792_v38  ;;  %11939 = vst [vmem:[#allocation77_spill] sm:$0xff] %v7804_v42  ;;  %11940 = vst [vmem:[#allocation78_spill] sm:$0xff] %v7808_v46  ;;  %v7814_v37 = vld [vmem:[#allocation2 + $0x88] sm:$0xff]  ;;  %v7816_v38 = vld [vmem:[#allocation2 + $0x98] sm:$0xff] }
 0x27b   :  { %1727 = vmatpush1.msra.mxu0 %v7796_v41  ;;  %1798 = vmatpush1.msra.mxu1 %v7798_v39  ;;  %11941 = vst [vmem:[#allocation79_spill] sm:$0xff] %v7810_v36  ;;  %11942 = vst [vmem:[#allocation80_spill] sm:$0xff] %v7814_v37  ;;  %v7820_v41 = vld [vmem:[#allocation2 + $0x80] sm:$0xff]  ;;  %v7822_v39 = vld [vmem:[#allocation2 + $0x90] sm:$0xff] }
 0x27c   :  { %1728 = vmatprep.subr.mxu0 %v7802_v40  ;;  %1799 = vmatprep.subr.mxu1 %v7804_v42  ;;  %11943 = vst [vmem:[#allocation81_spill] sm:$0xff] %v7816_v38  ;;  %11944 = vst [vmem:[#allocation82_spill] sm:$0xff] %v7820_v41  ;;  %v7826_v40 = vld [vmem:[#allocation2 + $0x68] sm:$0xff]  ;;  %v7828_v42 = vld [vmem:[#allocation2 + $0x78] sm:$0xff] }
 0x27d   :  { %1729 = vmatpush1.msra.mxu0 %v7808_v46  ;;  %1800 = vmatpush1.msra.mxu1 %v7810_v36  ;;  %11945 = vst [vmem:[#allocation83_spill] sm:$0xff] %v7822_v39  ;;  %11946 = vst [vmem:[#allocation84_spill] sm:$0xff] %v7826_v40  ;;  %v7832_v46 = vld [vmem:[#allocation2 + $0x60] sm:$0xff]  ;;  %v7834_v36 = vld [vmem:[#allocation2 + $0x70] sm:$0xff] }
 0x27e   :  { %1730 = vmatprep.subr.mxu0 %v7814_v37  ;;  %1801 = vmatprep.subr.mxu1 %v7816_v38  ;;  %11947 = vst [vmem:[#allocation85_spill] sm:$0xff] %v7828_v42  ;;  %11948 = vst [vmem:[#allocation86_spill] sm:$0xff] %v7832_v46  ;;  %v7838_v37 = vld [vmem:[#allocation2 + $0x48] sm:$0xff]  ;;  %v7840_v38 = vld [vmem:[#allocation2 + $0x58] sm:$0xff] }
 0x27f   :  { %1731 = vmatpush1.msra.mxu0 %v7820_v41  ;;  %1802 = vmatpush1.msra.mxu1 %v7822_v39  ;;  %11949 = vst [vmem:[#allocation87_spill] sm:$0xff] %v7834_v36  ;;  %11950 = vst [vmem:[#allocation88_spill] sm:$0xff] %v7838_v37  ;;  %v7844_v41 = vld [vmem:[#allocation2 + $0x40] sm:$0xff]  ;;  %v7846_v39 = vld [vmem:[#allocation2 + $0x50] sm:$0xff] }
 0x280   :  { %1732 = vmatprep.subr.mxu0 %v7826_v40  ;;  %1803 = vmatprep.subr.mxu1 %v7828_v42  ;;  %11951 = vst [vmem:[#allocation89_spill] sm:$0xff] %v7840_v38  ;;  %11952 = vst [vmem:[#allocation90_spill] sm:$0xff] %v7844_v41  ;;  %v7850_v40 = vld [vmem:[#allocation2 + $0x28] sm:$0xff]  ;;  %v7852_v42 = vld [vmem:[#allocation2 + $0x38] sm:$0xff] }
 0x281   :  { %1733 = vmatpush1.msra.mxu0 %v7832_v46  ;;  %1804 = vmatpush1.msra.mxu1 %v7834_v36  ;;  %11953 = vst [vmem:[#allocation91_spill] sm:$0xff] %v7846_v39  ;;  %11954 = vst [vmem:[#allocation92_spill] sm:$0xff] %v7850_v40  ;;  %v7856_v46 = vld [vmem:[#allocation2 + $0x20] sm:$0xff]  ;;  %v7858_v36 = vld [vmem:[#allocation2 + $0x30] sm:$0xff] }
 0x282   :  { %1734 = vmatprep.subr.mxu0 %v7838_v37  ;;  %1805 = vmatprep.subr.mxu1 %v7840_v38  ;;  %11955 = vst [vmem:[#allocation93_spill] sm:$0xff] %v7852_v42  ;;  %11956 = vst [vmem:[#allocation94_spill] sm:$0xff] %v7856_v46  ;;  %v7862_v37 = vld [vmem:[#allocation2 + $0x8] sm:$0xff]  ;;  %v7864_v38 = vld [vmem:[#allocation2 + $0x18] sm:$0xff] }
 0x283   :  { %1735 = vmatpush1.msra.mxu0 %v7844_v41  ;;  %1806 = vmatpush1.msra.mxu1 %v7846_v39  ;;  %11957 = vst [vmem:[#allocation95_spill] sm:$0xff] %v7858_v36  ;;  %11958 = vst [vmem:[#allocation96_spill] sm:$0xff] %v7862_v37  ;;  %v7868_v41 = vld [vmem:[#allocation2] sm:$0xff]  ;;  %v7870_v39 = vld [vmem:[#allocation2 + $0x10] sm:$0xff] }
 0x284   :  { %1736 = vmatprep.subr.mxu0 %v7850_v40  ;;  %1807 = vmatprep.subr.mxu1 %v7852_v42  ;;  %11959 = vst [vmem:[#allocation97_spill] sm:$0xff] %v7864_v38  ;;  %11960 = vst [vmem:[#allocation98_spill] sm:$0xff] %v7868_v41  ;;  %v7882_v42 = vld [vmem:[%s11007_s2 + $0x1f8] sm:$0xff] }
 0x285   :  { %1737 = vmatpush1.msra.mxu0 %v7856_v46  ;;  %1808 = vmatpush1.msra.mxu1 %v7858_v36  ;;  %11961 = vst [vmem:[#allocation99_spill] sm:$0xff] %v7870_v39  ;;  %v7877_v46 = vld [vmem:[%s11007_s2 + $0x1e8] sm:$0xff]  ;;  %11963 = vst [vmem:[#allocation101_spill] sm:$0xff] %v7882_v42 }
 0x286   :  { %1738 = vmatprep.subr.mxu0 %v7862_v37  ;;  %1809 = vmatprep.subr.mxu1 %v7864_v38  ;;  %11962 = vst [vmem:[#allocation100_spill] sm:$0xff] %v7877_v46 }
 0x287   :  { %1739 = vmatpush1.msra.mxu0 %v7868_v41  ;;  %1810 = vmatpush1.msra.mxu1 %v7870_v39  ;;  %v1386_v41 = vld [vmem:[%s11009_s4] sm:$0xf] }
 0x288   :  { %1947 = vmatprep.subr.mxu0 %v7877_v46  ;;  %2018 = vmatprep.subr.mxu1 %v7882_v42  ;;  %v1391_v40 = vrot.slane %v1386_v41, %v7188_v28  ;;  %v1395_v32 = vrot.slane %v1386_v41, %v7193_v31  ;;  %v1403_v23 = vrot.slane %v1386_v41, %v7197_v44 }
 0x289   :  { %v1399_v21 = vrot.slane %v1386_v41, %v7200_v51 }
 0x2e3   :  { %v1071_v37 = vpop.f32.mrf.mxu0  ;;  %v1142_v38 = vpop.f32.mrf.mxu1 }
 0x2e5   :  { %v1073_v36 = vpop.f32.mrf.mxu0  ;;  %v1144_v34 = vpop.f32.mrf.mxu1 }
 0x304   :  { %v1310_v35 = vpop.f32.mrf.mxu0  ;;  %v1381_v29 = vpop.f32.mrf.mxu1 }
 0x305   :  { %v1311_v33 = vadd.f32 %v1310_v35, %v1071_v37  ;;  %v1382_v28 = vadd.f32 %v1381_v29, %v1142_v38 }
 0x306   :  { %v1312_v30 = vpop.f32.mrf.mxu0  ;;  %v1383_v25 = vpop.f32.mrf.mxu1 }
 0x307   :  { %v1408_v39 = vadd.f32 %v1391_v40, %v1311_v33  ;;  %v1313_v46 = vadd.f32 %v1312_v30, %v1073_v36  ;;  %v1384_v24 = vadd.f32 %v1383_v25, %v1144_v34  ;;  %v1410_v31 = vadd.f32 %v1399_v21, %v1382_v28  ;;  %v5678_v25 = vld [vmem:[%s11005_s0 + $0x40] sm:$0xff] }
 0x309   :  { %v5674_v27 = vmul.f32 -1.442695, %v1408_v39  ;;  %v1409_v42 = vadd.f32 %v1395_v32, %v1313_v46  ;;  %v1411_v22 = vadd.f32 %v1403_v23, %v1384_v24  ;;  %v5679_v23 = vld [vmem:[%s11005_s0 + $0x48] sm:$0xff]  ;;  %v5681_v46 = vld [vmem:[%s11005_s0 + $0x58] sm:$0xff] }
 0x30b   :  { %5796 = vpow2.f32 %v5674_v27  ;;  %v5675_v26 = vmul.f32 -1.442695, %v1409_v42  ;;  %v5676_v35 = vmul.f32 -1.442695, %v1411_v22 }
 0x30d   :  { %5798 = vpow2.f32 %v5675_v26 }
 0x30e   :  { %5800 = vpow2.f32 %v5676_v35  ;;  %v5680_v35 = vld [vmem:[%s11005_s0 + $0x50] sm:$0xff] }
 0x318   :  { %v5797_v37 = vpop.eup %5796 }
 0x319   :  { %v1415_v20 = vadd.f32 1.0, %v5797_v37 }
 0x31a   :  { %v5799_v33 = vpop.eup %5798 }
 0x31b   :  { %5802 = vrcp.f32 %v1415_v20  ;;  %v1421_v30 = vadd.f32 1.0, %v5799_v33  ;;  %v5801_v24 = vpop.eup %5800 }
 0x31c   :  { %5804 = vtanh.f32 %v1410_v31  ;;  %v1428_v34 = vadd.f32 1.0, %v5801_v24 }
 0x31d   :  { %5806 = vrcp.f32 %v1421_v30 }
 0x326   :  { %v1568_v26 = vpop.f32.mrf.mxu0  ;;  %v1639_v38 = vpop.f32.mrf.mxu1 }
 0x327   :  { %v1855_v22 = vadd.f32 %v5678_v25, %v1568_v26  ;;  %v1857_v33 = vadd.f32 %v5680_v35, %v1639_v38  ;;  %v7965_v38 = vld [vmem:[%s11007_s2 + $0x1b0] sm:$0xff]  ;;  %v7996_v35 = vld [vmem:[%s11007_s2 + $0x168] sm:$0xff] }
 0x328   :  { %v5803_v27 = vpop.eup %5802  ;;  %v1570_v28 = vpop.f32.mrf.mxu0  ;;  %11964 = vst [vmem:[#allocation102_spill] sm:$0xff] %v7965_v38  ;;  %11969 = vst [vmem:[#allocation107_spill] sm:$0xff] %v7996_v35 }
 0x329   :  { %v5805_v21 = vpop.eup %5804  ;;  %v5682_v29 = vmul.f32 -1.442695, %v1855_v22  ;;  %v1856_v32 = vadd.f32 %v5679_v23, %v1570_v28  ;;  %v1641_v41 = vpop.f32.mrf.mxu1  ;;  %v7918_v28 = vld [vmem:[%s11007_s2 + $0x1f0] sm:$0xff] }
 0x32a   :  { %v5807_v20 = vpop.eup %5806  ;;  %v1432_v31 = vmul.f32 %v5805_v21, %v5803_v27  ;;  %v1858_v42 = vadd.f32 %v5681_v46, %v1641_v41  ;;  %v7913_v27 = vld [vmem:[%s11007_s2 + $0x1e0] sm:$0xff]  ;;  %v7923_v21 = vld [vmem:[%s11007_s2 + $0x1c8] sm:$0xff]  ;;  %v7977_v41 = vld [vmem:[%s11007_s2 + $0x198] sm:$0xff] }
 0x32b   :  { %v1431_v36 = vmul.f32 %v5807_v20, %v7209_v12  ;;  %5808 = vpow2.f32 %v5682_v29  ;;  %v5683_v39 = vmul.f32 -1.442695, %v1856_v32  ;;  %v7928_v29 = vld [vmem:[%s11007_s2 + $0x1d8] sm:$0xff]  ;;  %v7936_v32 = vld [vmem:[%s11007_s2 + $0x1c0] sm:$0xff]  ;;  %v7941_v20 = vld [vmem:[%s11007_s2 + $0x1d0] sm:$0xff]  ;;  %11966 = vst [vmem:[#allocation104_spill] sm:$0xff] %v7977_v41 }
 0x32c   :  { %v5684_v12 = vmul.f32 -1.442695, %v1858_v42  ;;  %v7984_v46 = vld [vmem:[%s11007_s2 + $0x180] sm:$0xff]  ;;  %v7989_v42 = vld [vmem:[%s11007_s2 + $0x190] sm:$0xff] }
 0x32d   :  { %5810 = vpow2.f32 %v5683_v39  ;;  %v7901_v40 = vadd.f32 %v1432_v31, %v1431_v36  ;;  %v7953_v31 = vld [vmem:[%s11007_s2 + $0x1b8] sm:$0xff]  ;;  %v7960_v36 = vld [vmem:[%s11007_s2 + $0x1a0] sm:$0xff]  ;;  %v7972_v39 = vld [vmem:[%s11007_s2 + $0x188] sm:$0xff]  ;;  %11967 = vst [vmem:[#allocation105_spill] sm:$0xff] %v7984_v46 }
 0x32e   :  { %5812 = vrcp.f32 %v1428_v34  ;;  %v7948_v34 = vld [vmem:[%s11007_s2 + $0x1a8] sm:$0xff]  ;;  %11965 = vst [vmem:[#allocation103_spill] sm:$0xff] %v7972_v39  ;;  %11968 = vst [vmem:[#allocation106_spill] sm:$0xff] %v7989_v42 }
 0x32f   :  { %5814 = vtanh.f32 %v7901_v40 }
 0x330   :  { %5816 = vpow2.f32 %v5684_v12  ;;  %v8001_v12 = vld [vmem:[%s11007_s2 + $0x178] sm:$0xff] }
 0x331   :  { %11970 = vst [vmem:[#allocation108_spill] sm:$0xff] %v8001_v12 }
 0x338   :  { %v5809_v37 = vpop.eup %5808 }
 0x339   :  { %v1862_v30 = vadd.f32 1.0, %v5809_v37  ;;  %v8008_v37 = vld [vmem:[%s11007_s2 + $0x160] sm:$0xff] }
 0x33a   :  { %v5811_v25 = vpop.eup %5810  ;;  %11971 = vst [vmem:[#allocation109_spill] sm:$0xff] %v8008_v37 }
 0x33b   :  { %v5813_v26 = vpop.eup %5812  ;;  %5818 = vrcp.f32 %v1862_v30  ;;  %v1868_v23 = vadd.f32 1.0, %v5811_v25  ;;  %v8020_v30 = vld [vmem:[%s11007_s2 + $0x148] sm:$0xff]  ;;  %v8025_v25 = vld [vmem:[%s11007_s2 + $0x158] sm:$0xff] }
 0x33c   :  { %v5815_v24 = vpop.eup %5814  ;;  %5820 = vtanh.f32 %v1857_v33  ;;  %v8013_v33 = vld [vmem:[%s11007_s2 + $0x170] sm:$0xff]  ;;  %11973 = vst [vmem:[#allocation111_spill] sm:$0xff] %v8020_v30  ;;  %11974 = vst [vmem:[#allocation112_spill] sm:$0xff] %v8025_v25 }
 0x33d   :  { %5822 = vrcp.f32 %v1868_v23  ;;  %v1435_v22 = vmul.f32 %v5815_v24, %v5813_v26  ;;  %11972 = vst [vmem:[#allocation110_spill] sm:$0xff] %v8013_v33  ;;  %v5817_v26 = vpop.eup %5816  ;;  %v8032_v23 = vld [vmem:[%s11007_s2 + $0x140] sm:$0xff]  ;;  %v8037_v24 = vld [vmem:[%s11007_s2 + $0x150] sm:$0xff] }
 0x33e   :  { %11975 = vst [vmem:[#allocation113_spill] sm:$0xff] %v8037_v24 }
 0x33f   :  { %5677 = vst [vmem:[%s11010_s5 + $0x8] sm:$0xff] %v1435_v22  ;;  %1773 = vmatmul.mubr.f32.vlgmr.msra.gmra.mxu0 %v1435_v22  ;;  %1844 = vmatmul.mubr.f32.vlgmr.msra.gmra.mxu1 %v1435_v22 }
 0x340   :  { %1948 = vmatpush1.msra.mxu0 %v7913_v27  ;;  %2019 = vmatpush1.msra.mxu1 %v7918_v28 }
 0x341   :  { %1949 = vmatprep.subr.mxu0 %v7923_v21  ;;  %2020 = vmatprep.subr.mxu1 %v7928_v29 }
 0x342   :  { %1950 = vmatpush1.msra.mxu0 %v7936_v32  ;;  %2021 = vmatpush1.msra.mxu1 %v7941_v20 }
 0x343   :  { %1951 = vmatprep.subr.mxu0 %v7948_v34  ;;  %2022 = vmatprep.subr.mxu1 %v7953_v31 }
 0x344   :  { %1952 = vmatpush1.msra.mxu0 %v7960_v36  ;;  %2023 = vmatpush1.msra.mxu1 %v7965_v38 }
 0x345   :  { %1953 = vmatprep.subr.mxu0 %v7972_v39  ;;  %2024 = vmatprep.subr.mxu1 %v7977_v41  ;;  %v1875_v41 = vadd.f32 1.0, %v5817_v26  ;;  %v8081_v26 = vld [vmem:[%s11007_s2 + $0x100] sm:$0xff] }
 0x346   :  { %1954 = vmatpush1.msra.mxu0 %v7984_v46  ;;  %2025 = vmatpush1.msra.mxu1 %v7989_v42  ;;  %11978 = vst [vmem:[#allocation116_spill] sm:$0xff] %v8081_v26 }
 0x347   :  { %1955 = vmatprep.subr.mxu0 %v7996_v35  ;;  %2026 = vmatprep.subr.mxu1 %v8001_v12  ;;  %v8044_v35 = vld [vmem:[%s11007_s2 + $0x128] sm:$0xff]  ;;  %v8049_v12 = vld [vmem:[%s11007_s2 + $0x138] sm:$0xff]  ;;  %5824 = vrcp.f32 %v1875_v41  ;;  %v8131_v41 = vld [vmem:[%s11007_s2 + $0xc0] sm:$0xff] }
 0x348   :  { %v5819_v22 = vpop.eup %5818  ;;  %1956 = vmatpush1.msra.mxu0 %v8008_v37  ;;  %2027 = vmatpush1.msra.mxu1 %v8013_v33  ;;  %v8056_v37 = vld [vmem:[%s11007_s2 + $0x120] sm:$0xff]  ;;  %v8061_v33 = vld [vmem:[%s11007_s2 + $0x130] sm:$0xff]  ;;  %11986 = vst [vmem:[#allocation124_spill] sm:$0xff] %v8131_v41 }
 0x349   :  { %v5821_v42 = vpop.eup %5820  ;;  %1957 = vmatprep.subr.mxu0 %v8020_v30  ;;  %2028 = vmatprep.subr.mxu1 %v8025_v25  ;;  %11976 = vst [vmem:[#allocation114_spill] sm:$0xff] %v8061_v33  ;;  %v8068_v25 = vld [vmem:[%s11007_s2 + $0x108] sm:$0xff]  ;;  %v8073_v30 = vld [vmem:[%s11007_s2 + $0x118] sm:$0xff] }
 0x34a   :  { %v5823_v46 = vpop.eup %5822  ;;  %1958 = vmatpush1.msra.mxu0 %v8032_v23  ;;  %2029 = vmatpush1.msra.mxu1 %v8037_v24  ;;  %11977 = vst [vmem:[#allocation115_spill] sm:$0xff] %v8073_v30  ;;  %v1879_v39 = vmul.f32 %v5821_v42, %v5819_v22  ;;  %v8086_v24 = vld [vmem:[%s11007_s2 + $0x110] sm:$0xff]  ;;  %v8107_v22 = vld [vmem:[%s11007_s2 + $0xe0] sm:$0xff] }
 0x34b   :  { %v1878_v38 = vmul.f32 %v5823_v46, %v7246_v60  ;;  %1959 = vmatprep.subr.mxu0 %v8044_v35  ;;  %2030 = vmatprep.subr.mxu1 %v8049_v12  ;;  %11979 = vst [vmem:[#allocation117_spill] sm:$0xff] %v8086_v24  ;;  %v8093_v60 = vld [vmem:[%s11007_s2 + $0xe8] sm:$0xff]  ;;  %v8098_v46 = vld [vmem:[%s11007_s2 + $0xf8] sm:$0xff]  ;;  %11982 = vst [vmem:[#allocation120_spill] sm:$0xff] %v8107_v22 }
 0x34c   :  { %1960 = vmatpush1.msra.mxu0 %v8056_v37  ;;  %2031 = vmatpush1.msra.mxu1 %v8061_v33  ;;  %11980 = vst [vmem:[#allocation118_spill] sm:$0xff] %v8093_v60  ;;  %11981 = vst [vmem:[#allocation119_spill] sm:$0xff] %v8098_v46  ;;  %v8112_v33 = vld [vmem:[%s11007_s2 + $0xf0] sm:$0xff] }
 0x34d   :  { %v8100_v42 = vadd.f32 %v1879_v39, %v1878_v38  ;;  %1961 = vmatprep.subr.mxu0 %v8068_v25  ;;  %2032 = vmatprep.subr.mxu1 %v8073_v30  ;;  %11983 = vst [vmem:[#allocation121_spill] sm:$0xff] %v8112_v33  ;;  %v8119_v38 = vld [vmem:[%s11007_s2 + $0xc8] sm:$0xff]  ;;  %v8124_v39 = vld [vmem:[%s11007_s2 + $0xd8] sm:$0xff]  ;;  %v8283_v30 = vld [vmem:[%s11007_s2 + $0x10] sm:$0xff] }
 0x34e   :  { %1962 = vmatpush1.msra.mxu0 %v8081_v26  ;;  %2033 = vmatpush1.msra.mxu1 %v8086_v24  ;;  %11984 = vst [vmem:[#allocation122_spill] sm:$0xff] %v8119_v38  ;;  %11985 = vst [vmem:[#allocation123_spill] sm:$0xff] %v8124_v39  ;;  %v8136_v24 = vld [vmem:[%s11007_s2 + $0xd0] sm:$0xff] }
 0x34f   :  { %1963 = vmatprep.subr.mxu0 %v8093_v60  ;;  %2034 = vmatprep.subr.mxu1 %v8098_v46  ;;  %11987 = vst [vmem:[#allocation125_spill] sm:$0xff] %v8136_v24  ;;  %5826 = vtanh.f32 %v8100_v42  ;;  %v8144_v46 = vld [vmem:[%s11007_s2 + $0xa8] sm:$0xff]  ;;  %v8149_v60 = vld [vmem:[%s11007_s2 + $0xb8] sm:$0xff] }
 0x350   :  { %1964 = vmatpush1.msra.mxu0 %v8107_v22  ;;  %2035 = vmatpush1.msra.mxu1 %v8112_v33  ;;  %11988 = vst [vmem:[#allocation126_spill] sm:$0xff] %v8144_v46  ;;  %11989 = vst [vmem:[#allocation127_spill] sm:$0xff] %v8149_v60  ;;  %v8156_v22 = vld [vmem:[%s11007_s2 + $0xa0] sm:$0xff]  ;;  %v8161_v33 = vld [vmem:[%s11007_s2 + $0xb0] sm:$0xff] }
 0x351   :  { %1965 = vmatprep.subr.mxu0 %v8119_v38  ;;  %2036 = vmatprep.subr.mxu1 %v8124_v39  ;;  %11990 = vst [vmem:[#allocation128_spill] sm:$0xff] %v8156_v22  ;;  %11991 = vst [vmem:[#allocation129_spill] sm:$0xff] %v8161_v33  ;;  %v8168_v38 = vld [vmem:[%s11007_s2 + $0x88] sm:$0xff]  ;;  %v8173_v39 = vld [vmem:[%s11007_s2 + $0x98] sm:$0xff] }
 0x352   :  { %1966 = vmatpush1.msra.mxu0 %v8131_v41  ;;  %2037 = vmatpush1.msra.mxu1 %v8136_v24  ;;  %11992 = vst [vmem:[#allocation130_spill] sm:$0xff] %v8168_v38  ;;  %11993 = vst [vmem:[#allocation131_spill] sm:$0xff] %v8173_v39  ;;  %v8180_v41 = vld [vmem:[%s11007_s2 + $0x80] sm:$0xff]  ;;  %v8185_v24 = vld [vmem:[%s11007_s2 + $0x90] sm:$0xff] }
 0x353   :  { %1967 = vmatprep.subr.mxu0 %v8144_v46  ;;  %2038 = vmatprep.subr.mxu1 %v8149_v60  ;;  %11994 = vst [vmem:[#allocation132_spill] sm:$0xff] %v8180_v41  ;;  %11995 = vst [vmem:[#allocation133_spill] sm:$0xff] %v8185_v24  ;;  %v8192_v46 = vld [vmem:[%s11007_s2 + $0x68] sm:$0xff]  ;;  %v8197_v60 = vld [vmem:[%s11007_s2 + $0x78] sm:$0xff] }
 0x354   :  { %1968 = vmatpush1.msra.mxu0 %v8156_v22  ;;  %2039 = vmatpush1.msra.mxu1 %v8161_v33  ;;  %11996 = vst [vmem:[#allocation134_spill] sm:$0xff] %v8192_v46  ;;  %11997 = vst [vmem:[#allocation135_spill] sm:$0xff] %v8197_v60  ;;  %v8204_v22 = vld [vmem:[%s11007_s2 + $0x60] sm:$0xff]  ;;  %v8209_v33 = vld [vmem:[%s11007_s2 + $0x70] sm:$0xff]  ;;  %v5825_v26 = vpop.eup %5824 }
 0x355   :  { %1969 = vmatprep.subr.mxu0 %v8168_v38  ;;  %2040 = vmatprep.subr.mxu1 %v8173_v39  ;;  %11998 = vst [vmem:[#allocation136_spill] sm:$0xff] %v8204_v22  ;;  %11999 = vst [vmem:[#allocation137_spill] sm:$0xff] %v8209_v33  ;;  %v8216_v38 = vld [vmem:[%s11007_s2 + $0x48] sm:$0xff]  ;;  %v8221_v39 = vld [vmem:[%s11007_s2 + $0x58] sm:$0xff] }
 0x356   :  { %1970 = vmatpush1.msra.mxu0 %v8180_v41  ;;  %2041 = vmatpush1.msra.mxu1 %v8185_v24  ;;  %12000 = vst [vmem:[#allocation138_spill] sm:$0xff] %v8216_v38  ;;  %12001 = vst [vmem:[#allocation139_spill] sm:$0xff] %v8221_v39  ;;  %v8228_v41 = vld [vmem:[%s11007_s2 + $0x40] sm:$0xff]  ;;  %v8233_v24 = vld [vmem:[%s11007_s2 + $0x50] sm:$0xff] }
 0x357   :  { %1971 = vmatprep.subr.mxu0 %v8192_v46  ;;  %2042 = vmatprep.subr.mxu1 %v8197_v60  ;;  %12002 = vst [vmem:[#allocation140_spill] sm:$0xff] %v8228_v41  ;;  %12003 = vst [vmem:[#allocation141_spill] sm:$0xff] %v8233_v24  ;;  %v8240_v46 = vld [vmem:[%s11007_s2 + $0x28] sm:$0xff]  ;;  %v8245_v60 = vld [vmem:[%s11007_s2 + $0x38] sm:$0xff] }
 0x358   :  { %1972 = vmatpush1.msra.mxu0 %v8204_v22  ;;  %2043 = vmatpush1.msra.mxu1 %v8209_v33  ;;  %12004 = vst [vmem:[#allocation142_spill] sm:$0xff] %v8245_v60  ;;  %v8252_v22 = vld [vmem:[%s11007_s2 + $0x20] sm:$0xff]  ;;  %v8257_v33 = vld [vmem:[%s11007_s2 + $0x30] sm:$0xff] }
 0x359   :  { %1973 = vmatprep.subr.mxu0 %v8216_v38  ;;  %2044 = vmatprep.subr.mxu1 %v8221_v39  ;;  %v8264_v38 = vld [vmem:[%s11007_s2 + $0x8] sm:$0xff]  ;;  %v8269_v39 = vld [vmem:[%s11007_s2 + $0x18] sm:$0xff] }
 0x35a   :  { %1974 = vmatpush1.msra.mxu0 %v8228_v41  ;;  %2045 = vmatpush1.msra.mxu1 %v8233_v24  ;;  %v8276_v41 = vld [vmem:[%s11007_s2] sm:$0xff] }
 0x35b   :  { %1975 = vmatprep.subr.mxu0 %v8240_v46  ;;  %2046 = vmatprep.subr.mxu1 %v8245_v60 }
 0x35c   :  { %v5827_v24 = vpop.eup %5826  ;;  %1976 = vmatpush1.msra.mxu0 %v8252_v22  ;;  %2047 = vmatpush1.msra.mxu1 %v8257_v33 }
 0x35d   :  { %1977 = vmatprep.subr.mxu0 %v8264_v38  ;;  %2048 = vmatprep.subr.mxu1 %v8269_v39  ;;  %v8287_v60 = vmul.f32 %v5827_v24, %v5825_v26  ;;  %v12040_v24 = vld [vmem:[#allocation42_spill] sm:$0xff]  ;;  %v12041_v26 = vld [vmem:[#allocation43_spill] sm:$0xff] }
 0x35e   :  { %1978 = vmatpush1.msra.mxu0 %v8276_v41  ;;  %2011 = vmatprep.mubr.f32.mxu0 %v11737_v19 }
 0x35f   :  { %2049 = vmatpush1.msra.mxu1 %v8283_v30  ;;  %2082 = vmatprep.mubr.f32.mxu1 %v11737_v19 }
 0x360   :  { %2012 = vmatmul.mubr.f32.vlgmr.msra.gmra.mxu0 %v8287_v60  ;;  %2083 = vmatmul.mubr.f32.vlgmr.msra.gmra.mxu1 %v8287_v60 }
 0x361   :  { %2205 = vmatprep.subr.mxu0 %v7292_v43  ;;  %2276 = vmatprep.subr.mxu1 %v7297_v45  ;;  %v12005_v43 = vld [vmem:[#allocation12_spill] sm:$0xff]  ;;  %v12006_v45 = vld [vmem:[#allocation6_spill] sm:$0xff] }
 0x362   :  { %2206 = vmatpush1.msra.mxu0 %v7304_v47  ;;  %2277 = vmatpush1.msra.mxu1 %v7309_v49  ;;  %v12007_v47 = vld [vmem:[#allocation14_spill] sm:$0xff]  ;;  %v12008_v49 = vld [vmem:[#allocation7_spill] sm:$0xff] }
 0x363   :  { %2207 = vmatprep.subr.mxu0 %v7316_v55  ;;  %2278 = vmatprep.subr.mxu1 %v7321_v57  ;;  %v12009_v55 = vld [vmem:[#allocation16_spill] sm:$0xff] }
 0x364   :  { %2208 = vmatpush1.msra.mxu0 %v7328_v63  ;;  %2279 = vmatpush1.msra.mxu1 %v7333_v1  ;;  %v12010_v57 = vld [vmem:[#allocation8_spill] sm:$0xff]  ;;  %v12011_v63 = vld [vmem:[#allocation17_spill] sm:$0xff] }
 0x365   :  { %2209 = vmatprep.subr.mxu0 %v7340_v9  ;;  %2280 = vmatprep.subr.mxu1 %v7345_v0  ;;  %v12012_v1 = vld [vmem:[#allocation9_spill] sm:$0xff]  ;;  %v12013_v9 = vld [vmem:[#allocation18_spill] sm:$0xff]  ;;  %v12014_v0 = vld [vmem:[#allocation11_spill] sm:$0xff] }
 0x366   :  { %2210 = vmatpush1.msra.mxu0 %v7352_v62  ;;  %2281 = vmatpush1.msra.mxu1 %v7357_v52  ;;  %v12015_v62 = vld [vmem:[#allocation20_spill] sm:$0xff]  ;;  %v12016_v52 = vld [vmem:[#allocation13_spill] sm:$0xff] }
 0x367   :  { %2211 = vmatprep.subr.mxu0 %v7364_v50  ;;  %2282 = vmatprep.subr.mxu1 %v7369_v54  ;;  %v12017_v50 = vld [vmem:[#allocation22_spill] sm:$0xff]  ;;  %v12018_v54 = vld [vmem:[#allocation15_spill] sm:$0xff] }
 0x368   :  { %2212 = vmatpush1.msra.mxu0 %v7376_v58  ;;  %2283 = vmatpush1.msra.mxu1 %v7381_v61  ;;  %v12019_v58 = vld [vmem:[#allocation24_spill] sm:$0xff]  ;;  %v12020_v61 = vld [vmem:[#allocation19_spill] sm:$0xff] }
 0x369   :  { %2213 = vmatprep.subr.mxu0 %v7388_v48  ;;  %2284 = vmatprep.subr.mxu1 %v7393_v56  ;;  %v12021_v48 = vld [vmem:[#allocation26_spill] sm:$0xff]  ;;  %v12022_v56 = vld [vmem:[#allocation21_spill] sm:$0xff] }
 0x36a   :  { %2214 = vmatpush1.msra.mxu0 %v7400_v59  ;;  %2285 = vmatpush1.msra.mxu1 %v7405_v2  ;;  %v12023_v59 = vld [vmem:[#allocation27_spill] sm:$0xff] }
 0x36b   :  { %2215 = vmatprep.subr.mxu0 %v7412_v53  ;;  %2286 = vmatprep.subr.mxu1 %v7417_v3  ;;  %v12024_v2 = vld [vmem:[#allocation23_spill] sm:$0xff]  ;;  %v12025_v53 = vld [vmem:[#allocation29_spill] sm:$0xff] }
 0x36c   :  { %2216 = vmatpush1.msra.mxu0 %v7424_v4  ;;  %2287 = vmatpush1.msra.mxu1 %v7429_v5  ;;  %v12026_v3 = vld [vmem:[#allocation25_spill] sm:$0xff]  ;;  %v12027_v4 = vld [vmem:[#allocation31_spill] sm:$0xff]  ;;  %v12028_v5 = vld [vmem:[#allocation28_spill] sm:$0xff] }
 0x36d   :  { %2217 = vmatprep.subr.mxu0 %v7436_v6  ;;  %2288 = vmatprep.subr.mxu1 %v7441_v7  ;;  %v12029_v6 = vld [vmem:[#allocation33_spill] sm:$0xff]  ;;  %v12030_v7 = vld [vmem:[#allocation30_spill] sm:$0xff] }
 0x36e   :  { %2218 = vmatpush1.msra.mxu0 %v7448_v8  ;;  %2289 = vmatpush1.msra.mxu1 %v7453_v10  ;;  %v12031_v8 = vld [vmem:[#allocation35_spill] sm:$0xff]  ;;  %v12032_v10 = vld [vmem:[#allocation32_spill] sm:$0xff] }
 0x36f   :  { %2219 = vmatprep.subr.mxu0 %v7460_v11  ;;  %2290 = vmatprep.subr.mxu1 %v7465_v13  ;;  %v12033_v11 = vld [vmem:[#allocation36_spill] sm:$0xff]  ;;  %v12034_v13 = vld [vmem:[#allocation34_spill] sm:$0xff] }
 0x370   :  { %2220 = vmatpush1.msra.mxu0 %v7472_v14  ;;  %2291 = vmatpush1.msra.mxu1 %v7477_v15  ;;  %v12035_v14 = vld [vmem:[#allocation37_spill] sm:$0xff]  ;;  %v12036_v15 = vld [vmem:[#allocation38_spill] sm:$0xff] }
 0x371   :  { %2221 = vmatprep.subr.mxu0 %v7484_v16  ;;  %2292 = vmatprep.subr.mxu1 %v7489_v17  ;;  %v12037_v16 = vld [vmem:[#allocation39_spill] sm:$0xff]  ;;  %v12038_v17 = vld [vmem:[#allocation40_spill] sm:$0xff] }
 0x372   :  { %2222 = vmatpush1.msra.mxu0 %v7496_v18  ;;  %2293 = vmatpush1.msra.mxu1 %v12005_v43  ;;  %v12039_v18 = vld [vmem:[#allocation41_spill] sm:$0xff]  ;;  %v12042_v43 = vld [vmem:[#allocation44_spill] sm:$0xff] }
 0x373   :  { %2223 = vmatprep.subr.mxu0 %v12006_v45  ;;  %2294 = vmatprep.subr.mxu1 %v12007_v47  ;;  %v12043_v45 = vld [vmem:[#allocation45_spill] sm:$0xff]  ;;  %v12045_v47 = vld [vmem:[#allocation47_spill] sm:$0xff] }
 0x374   :  { %2224 = vmatpush1.msra.mxu0 %v12008_v49  ;;  %2295 = vmatpush1.msra.mxu1 %v12009_v55  ;;  %v12046_v49 = vld [vmem:[#allocation48_spill] sm:$0xff]  ;;  %v12047_v55 = vld [vmem:[#allocation49_spill] sm:$0xff] }
 0x375   :  { %2225 = vmatprep.subr.mxu0 %v12010_v57  ;;  %2296 = vmatprep.subr.mxu1 %v12011_v63  ;;  %v12048_v57 = vld [vmem:[#allocation50_spill] sm:$0xff]  ;;  %v12049_v63 = vld [vmem:[#allocation51_spill] sm:$0xff] }
 0x376   :  { %2226 = vmatpush1.msra.mxu0 %v12012_v1  ;;  %2297 = vmatpush1.msra.mxu1 %v12013_v9  ;;  %v12050_v1 = vld [vmem:[#allocation52_spill] sm:$0xff]  ;;  %v12051_v9 = vld [vmem:[#allocation53_spill] sm:$0xff] }
 0x377   :  { %2227 = vmatprep.subr.mxu0 %v12014_v0  ;;  %2298 = vmatprep.subr.mxu1 %v12015_v62  ;;  %v12052_v0 = vld [vmem:[#allocation54_spill] sm:$0xff]  ;;  %v12053_v62 = vld [vmem:[#allocation55_spill] sm:$0xff] }
 0x378   :  { %2228 = vmatpush1.msra.mxu0 %v12016_v52  ;;  %2299 = vmatpush1.msra.mxu1 %v12017_v50  ;;  %v12054_v52 = vld [vmem:[#allocation56_spill] sm:$0xff]  ;;  %v12055_v50 = vld [vmem:[#allocation57_spill] sm:$0xff] }
 0x379   :  { %2229 = vmatprep.subr.mxu0 %v12018_v54  ;;  %2300 = vmatprep.subr.mxu1 %v12019_v58  ;;  %v12056_v54 = vld [vmem:[#allocation58_spill] sm:$0xff]  ;;  %v12057_v58 = vld [vmem:[#allocation59_spill] sm:$0xff] }
 0x37a   :  { %2230 = vmatpush1.msra.mxu0 %v12020_v61  ;;  %2301 = vmatpush1.msra.mxu1 %v12021_v48  ;;  %v12058_v61 = vld [vmem:[#allocation60_spill] sm:$0xff]  ;;  %v12059_v48 = vld [vmem:[#allocation61_spill] sm:$0xff] }
 0x37b   :  { %2231 = vmatprep.subr.mxu0 %v12022_v56  ;;  %2302 = vmatprep.subr.mxu1 %v12023_v59  ;;  %v12060_v56 = vld [vmem:[#allocation62_spill] sm:$0xff]  ;;  %v12061_v59 = vld [vmem:[#allocation63_spill] sm:$0xff] }
 0x37c   :  { %2232 = vmatpush1.msra.mxu0 %v12024_v2  ;;  %2303 = vmatpush1.msra.mxu1 %v12025_v53  ;;  %v12062_v2 = vld [vmem:[#allocation64_spill] sm:$0xff]  ;;  %v12063_v53 = vld [vmem:[#allocation65_spill] sm:$0xff] }
 0x37d   :  { %2233 = vmatprep.subr.mxu0 %v12026_v3  ;;  %2304 = vmatprep.subr.mxu1 %v12027_v4  ;;  %v12064_v3 = vld [vmem:[#allocation66_spill] sm:$0xff]  ;;  %v12065_v4 = vld [vmem:[#allocation67_spill] sm:$0xff] }
 0x37e   :  { %2234 = vmatpush1.msra.mxu0 %v12028_v5  ;;  %2305 = vmatpush1.msra.mxu1 %v12029_v6  ;;  %v12066_v5 = vld [vmem:[#allocation68_spill] sm:$0xff]  ;;  %v12067_v6 = vld [vmem:[#allocation69_spill] sm:$0xff] }
 0x37f   :  { %2235 = vmatprep.subr.mxu0 %v12030_v7  ;;  %2306 = vmatprep.subr.mxu1 %v12031_v8  ;;  %v12068_v7 = vld [vmem:[#allocation70_spill] sm:$0xff]  ;;  %v12069_v8 = vld [vmem:[#allocation71_spill] sm:$0xff] }
 0x380   :  { %2236 = vmatpush1.msra.mxu0 %v12032_v10  ;;  %2269 = vmatprep.mubr.f32.mxu0 %v11737_v19  ;;  %v12070_v10 = vld [vmem:[#allocation72_spill] sm:$0xff] }
 0x381   :  { %2307 = vmatpush1.msra.mxu1 %v12033_v11  ;;  %2340 = vmatprep.mubr.f32.mxu1 %v11737_v19  ;;  %v12071_v11 = vld [vmem:[#allocation73_spill] sm:$0xff] }
 0x382   :  { %2270 = vmatmul.mubr.f32.vlgmr.msra.gmra.mxu0 %v8287_v60  ;;  %2341 = vmatmul.mubr.f32.vlgmr.msra.gmra.mxu1 %v8287_v60  ;;  %v12044_v60 = vld [vmem:[#allocation46_spill] sm:$0xff] }
 0x383   :  { %2411 = vmatprep.subr.mxu0 %v12034_v13  ;;  %2482 = vmatprep.subr.mxu1 %v12035_v14  ;;  %v12072_v13 = vld [vmem:[#allocation74_spill] sm:$0xff]  ;;  %v12073_v14 = vld [vmem:[#allocation75_spill] sm:$0xff] }
 0x384   :  { %2412 = vmatpush1.msra.mxu0 %v12036_v15  ;;  %2483 = vmatpush1.msra.mxu1 %v12037_v16  ;;  %v12074_v15 = vld [vmem:[#allocation76_spill] sm:$0xff]  ;;  %v12075_v16 = vld [vmem:[#allocation77_spill] sm:$0xff] }
 0x385   :  { %2413 = vmatprep.subr.mxu0 %v12038_v17  ;;  %2484 = vmatprep.subr.mxu1 %v12039_v18  ;;  %v12076_v17 = vld [vmem:[#allocation78_spill] sm:$0xff]  ;;  %v12077_v18 = vld [vmem:[#allocation79_spill] sm:$0xff] }
 0x386   :  { %2414 = vmatpush1.msra.mxu0 %v12040_v24  ;;  %2485 = vmatpush1.msra.mxu1 %v12041_v26  ;;  %v12078_v24 = vld [vmem:[#allocation80_spill] sm:$0xff]  ;;  %v12079_v26 = vld [vmem:[#allocation81_spill] sm:$0xff] }
 0x387   :  { %2415 = vmatprep.subr.mxu0 %v12042_v43  ;;  %2486 = vmatprep.subr.mxu1 %v12043_v45  ;;  %v12080_v43 = vld [vmem:[#allocation82_spill] sm:$0xff]  ;;  %v12081_v45 = vld [vmem:[#allocation83_spill] sm:$0xff] }
 0x388   :  { %2416 = vmatpush1.msra.mxu0 %v12044_v60  ;;  %2487 = vmatpush1.msra.mxu1 %v12045_v47  ;;  %v12082_v60 = vld [vmem:[#allocation84_spill] sm:$0xff]  ;;  %v12083_v47 = vld [vmem:[#allocation85_spill] sm:$0xff] }
 0x389   :  { %2417 = vmatprep.subr.mxu0 %v12046_v49  ;;  %2488 = vmatprep.subr.mxu1 %v12047_v55  ;;  %v12084_v49 = vld [vmem:[#allocation86_spill] sm:$0xff]  ;;  %v12085_v55 = vld [vmem:[#allocation87_spill] sm:$0xff] }
 0x38a   :  { %2418 = vmatpush1.msra.mxu0 %v12048_v57  ;;  %2489 = vmatpush1.msra.mxu1 %v12049_v63  ;;  %v12086_v57 = vld [vmem:[#allocation88_spill] sm:$0xff]  ;;  %v12087_v63 = vld [vmem:[#allocation89_spill] sm:$0xff] }
 0x38b   :  { %2419 = vmatprep.subr.mxu0 %v12050_v1  ;;  %2490 = vmatprep.subr.mxu1 %v12051_v9  ;;  %v12088_v1 = vld [vmem:[#allocation90_spill] sm:$0xff]  ;;  %v12089_v9 = vld [vmem:[#allocation91_spill] sm:$0xff] }
 0x38c   :  { %2420 = vmatpush1.msra.mxu0 %v12052_v0  ;;  %2491 = vmatpush1.msra.mxu1 %v12053_v62  ;;  %v12090_v0 = vld [vmem:[#allocation92_spill] sm:$0xff]  ;;  %v12091_v62 = vld [vmem:[#allocation93_spill] sm:$0xff] }
 0x38d   :  { %2421 = vmatprep.subr.mxu0 %v12054_v52  ;;  %2492 = vmatprep.subr.mxu1 %v12055_v50  ;;  %v12092_v52 = vld [vmem:[#allocation94_spill] sm:$0xff]  ;;  %v12093_v50 = vld [vmem:[#allocation95_spill] sm:$0xff] }
 0x38e   :  { %2422 = vmatpush1.msra.mxu0 %v12056_v54  ;;  %2493 = vmatpush1.msra.mxu1 %v12057_v58  ;;  %v12094_v54 = vld [vmem:[#allocation96_spill] sm:$0xff]  ;;  %v12095_v58 = vld [vmem:[#allocation97_spill] sm:$0xff] }
 0x38f   :  { %2423 = vmatprep.subr.mxu0 %v12058_v61  ;;  %2494 = vmatprep.subr.mxu1 %v12059_v48  ;;  %v12096_v61 = vld [vmem:[#allocation98_spill] sm:$0xff]  ;;  %v12097_v48 = vld [vmem:[#allocation99_spill] sm:$0xff] }
 0x390   :  { %2424 = vmatpush1.msra.mxu0 %v12060_v56  ;;  %2495 = vmatpush1.msra.mxu1 %v12061_v59  ;;  %v12098_v56 = vld [vmem:[#allocation100_spill] sm:$0xff]  ;;  %v12099_v59 = vld [vmem:[#allocation101_spill] sm:$0xff] }
 0x391   :  { %2425 = vmatprep.subr.mxu0 %v12062_v2  ;;  %2496 = vmatprep.subr.mxu1 %v12063_v53  ;;  %v2089_v53 = vld [vmem:[%s11009_s4] sm:$0xf] }
 0x392   :  { %2426 = vmatpush1.msra.mxu0 %v12064_v3  ;;  %2497 = vmatpush1.msra.mxu1 %v12065_v4 }
 0x393   :  { %2427 = vmatprep.subr.mxu0 %v12066_v5  ;;  %2498 = vmatprep.subr.mxu1 %v12067_v6  ;;  %v12100_v5 = vld [vmem:[#allocation10_spill] sm:$0xff] }
 0x394   :  { %2428 = vmatpush1.msra.mxu0 %v12068_v7  ;;  %2499 = vmatpush1.msra.mxu1 %v12069_v8  ;;  %v2094_v6 = vrot.slane %v2089_v53, %v12100_v5 }
 0x395   :  { %2429 = vmatprep.subr.mxu0 %v12070_v10  ;;  %2500 = vmatprep.subr.mxu1 %v12071_v11  ;;  %v12101_v11 = vld [vmem:[#allocation5_spill] sm:$0xff] }
 0x396   :  { %2430 = vmatpush1.msra.mxu0 %v12072_v13  ;;  %2501 = vmatpush1.msra.mxu1 %v12073_v14  ;;  %v2098_v13 = vrot.slane %v2089_v53, %v12101_v11 }
 0x397   :  { %2431 = vmatprep.subr.mxu0 %v12074_v15  ;;  %2502 = vmatprep.subr.mxu1 %v12075_v16 }
 0x398   :  { %2432 = vmatpush1.msra.mxu0 %v12076_v17  ;;  %2503 = vmatpush1.msra.mxu1 %v12077_v18 }
 0x399   :  { %2433 = vmatprep.subr.mxu0 %v12078_v24  ;;  %2504 = vmatprep.subr.mxu1 %v12079_v26 }
 0x39a   :  { %2434 = vmatpush1.msra.mxu0 %v12080_v43  ;;  %2505 = vmatpush1.msra.mxu1 %v12081_v45 }
 0x39b   :  { %2435 = vmatprep.subr.mxu0 %v12082_v60  ;;  %2506 = vmatprep.subr.mxu1 %v12083_v47  ;;  %v2106_v60 = vrot.slane %v2089_v53, %v7197_v44 }
 0x39c   :  { %2436 = vmatpush1.msra.mxu0 %v12084_v49  ;;  %2507 = vmatpush1.msra.mxu1 %v12085_v55  ;;  %v2102_v55 = vrot.slane %v2089_v53, %v7200_v51 }
 0x39d   :  { %2437 = vmatprep.subr.mxu0 %v12086_v57  ;;  %2508 = vmatprep.subr.mxu1 %v12087_v63 }
 0x39e   :  { %2438 = vmatpush1.msra.mxu0 %v12088_v1  ;;  %2509 = vmatpush1.msra.mxu1 %v12089_v9 }
 0x39f   :  { %2439 = vmatprep.subr.mxu0 %v12090_v0  ;;  %2510 = vmatprep.subr.mxu1 %v12091_v62 }
 0x3a0   :  { %2440 = vmatpush1.msra.mxu0 %v12092_v52  ;;  %2511 = vmatpush1.msra.mxu1 %v12093_v50  ;;  %v5689_v52 = vld [vmem:[%s11005_s0 + $0x60] sm:$0xff] }
 0x3a1   :  { %2441 = vmatprep.subr.mxu0 %v12094_v54  ;;  %2512 = vmatprep.subr.mxu1 %v12095_v58  ;;  %v5690_v54 = vld [vmem:[%s11005_s0 + $0x68] sm:$0xff] }
 0x3a2   :  { %2442 = vmatpush1.msra.mxu0 %v12096_v61  ;;  %2513 = vmatpush1.msra.mxu1 %v12097_v48 }
 0x3a3   :  { %2475 = vmatprep.mubr.f32.mxu0 %v11737_v19  ;;  %2546 = vmatprep.mubr.f32.mxu1 %v11737_v19 }
 0x3a4   :  { %2650 = vmatprep.subr.mxu0 %v12098_v56  ;;  %2721 = vmatprep.subr.mxu1 %v12099_v59 }
 0x3ff   :  { %v1774_v2 = vpop.f32.mrf.mxu0  ;;  %v1845_v3 = vpop.f32.mrf.mxu1 }
 0x401   :  { %v1776_v4 = vpop.f32.mrf.mxu0  ;;  %v1847_v8 = vpop.f32.mrf.mxu1 }
 0x420   :  { %v2013_v7 = vpop.f32.mrf.mxu0  ;;  %v2084_v16 = vpop.f32.mrf.mxu1 }
 0x421   :  { %v2014_v10 = vadd.f32 %v2013_v7, %v1774_v2  ;;  %v2085_v49 = vadd.f32 %v2084_v16, %v1845_v3 }
 0x422   :  { %v2015_v14 = vpop.f32.mrf.mxu0  ;;  %v2086_v43 = vpop.f32.mrf.mxu1 }
 0x423   :  { %v2111_v15 = vadd.f32 %v2094_v6, %v2014_v10  ;;  %v2016_v17 = vadd.f32 %v2015_v14, %v1776_v4  ;;  %v2087_v45 = vadd.f32 %v2086_v43, %v1847_v8  ;;  %v2113_v1 = vadd.f32 %v2102_v55, %v2085_v49  ;;  %v12102_v55 = vld [vmem:[#allocation102_spill] sm:$0xff] }
 0x425   :  { %v5685_v18 = vmul.f32 -1.442695, %v2111_v15  ;;  %v2112_v24 = vadd.f32 %v2098_v13, %v2016_v17  ;;  %v2114_v47 = vadd.f32 %v2106_v60, %v2087_v45  ;;  %v5692_v15 = vld [vmem:[%s11005_s0 + $0x78] sm:$0xff]  ;;  %v5691_v17 = vld [vmem:[%s11005_s0 + $0x70] sm:$0xff] }
 0x427   :  { %5828 = vpow2.f32 %v5685_v18  ;;  %v5686_v26 = vmul.f32 -1.442695, %v2112_v24  ;;  %v5687_v57 = vmul.f32 -1.442695, %v2114_v47 }
 0x429   :  { %5830 = vpow2.f32 %v5686_v26 }
 0x42a   :  { %5832 = vpow2.f32 %v5687_v57  ;;  %v12103_v57 = vld [vmem:[#allocation103_spill] sm:$0xff] }
 0x434   :  { %v5829_v63 = vpop.eup %5828 }
 0x435   :  { %v2118_v9 = vadd.f32 1.0, %v5829_v63  ;;  %v12109_v63 = vld [vmem:[#allocation109_spill] sm:$0xff] }
 0x436   :  { %v5831_v0 = vpop.eup %5830 }
 0x437   :  { %5834 = vrcp.f32 %v2118_v9  ;;  %v2124_v62 = vadd.f32 1.0, %v5831_v0  ;;  %v5833_v58 = vpop.eup %5832  ;;  %v12112_v9 = vld [vmem:[#allocation112_spill] sm:$0xff] }
 0x438   :  { %5836 = vtanh.f32 %v2113_v1  ;;  %v2131_v4 = vadd.f32 1.0, %v5833_v58  ;;  %v12111_v1 = vld [vmem:[#allocation111_spill] sm:$0xff]  ;;  %v12114_v58 = vld [vmem:[#allocation114_spill] sm:$0xff] }
 0x439   :  { %5838 = vrcp.f32 %v2124_v62 }
 0x442   :  { %v2271_v50 = vpop.f32.mrf.mxu0  ;;  %v2342_v8 = vpop.f32.mrf.mxu1 }
 0x443   :  { %v2558_v61 = vadd.f32 %v5689_v52, %v2271_v50  ;;  %v2560_v24 = vadd.f32 %v5691_v17, %v2342_v8  ;;  %v12113_v52 = vld [vmem:[#allocation113_spill] sm:$0xff]  ;;  %v12130_v8 = vld [vmem:[#allocation130_spill] sm:$0xff]  ;;  %v12135_v17 = vld [vmem:[#allocation135_spill] sm:$0xff] }
 0x444   :  { %v5835_v48 = vpop.eup %5834  ;;  %v2273_v56 = vpop.f32.mrf.mxu0 }
 0x445   :  { %v5837_v59 = vpop.eup %5836  ;;  %v5693_v2 = vmul.f32 -1.442695, %v2558_v61  ;;  %v2559_v53 = vadd.f32 %v5690_v54, %v2273_v56  ;;  %v2344_v14 = vpop.f32.mrf.mxu1  ;;  %v12117_v56 = vld [vmem:[#allocation117_spill] sm:$0xff] }
 0x446   :  { %v5839_v3 = vpop.eup %5838  ;;  %v2135_v6 = vmul.f32 %v5837_v59, %v5835_v48  ;;  %v2561_v16 = vadd.f32 %v5692_v15, %v2344_v14  ;;  %v12115_v48 = vld [vmem:[#allocation115_spill] sm:$0xff]  ;;  %v12122_v59 = vld [vmem:[#allocation122_spill] sm:$0xff]  ;;  %v12132_v14 = vld [vmem:[#allocation132_spill] sm:$0xff] }
 0x447   :  { %v2134_v7 = vmul.f32 %v5839_v3, %v7901_v40  ;;  %5840 = vpow2.f32 %v5693_v2  ;;  %v5694_v10 = vmul.f32 -1.442695, %v2559_v53  ;;  %v12124_v2 = vld [vmem:[#allocation124_spill] sm:$0xff]  ;;  %v12125_v53 = vld [vmem:[#allocation125_spill] sm:$0xff]  ;;  %v12126_v3 = vld [vmem:[#allocation126_spill] sm:$0xff] }
 0x448   :  { %v5695_v40 = vmul.f32 -1.442695, %v2561_v16  ;;  %v12133_v15 = vld [vmem:[#allocation133_spill] sm:$0xff]  ;;  %v12134_v16 = vld [vmem:[#allocation134_spill] sm:$0xff] }
 0x449   :  { %5842 = vpow2.f32 %v5694_v10  ;;  %v8445_v13 = vadd.f32 %v2135_v6, %v2134_v7  ;;  %v12128_v6 = vld [vmem:[#allocation128_spill] sm:$0xff]  ;;  %v12129_v7 = vld [vmem:[#allocation129_spill] sm:$0xff]  ;;  %v12131_v10 = vld [vmem:[#allocation131_spill] sm:$0xff] }
 0x44a   :  { %5844 = vrcp.f32 %v2131_v4  ;;  %v12127_v4 = vld [vmem:[#allocation127_spill] sm:$0xff] }
 0x44b   :  { %5846 = vtanh.f32 %v8445_v13 }
 0x44c   :  { %5848 = vpow2.f32 %v5695_v40  ;;  %v12136_v40 = vld [vmem:[#allocation136_spill] sm:$0xff] }
 0x454   :  { %v5841_v18 = vpop.eup %5840 }
 0x455   :  { %v2565_v26 = vadd.f32 1.0, %v5841_v18  ;;  %v12137_v18 = vld [vmem:[#allocation137_spill] sm:$0xff] }
 0x456   :  { %v5843_v43 = vpop.eup %5842 }
 0x457   :  { %v5845_v45 = vpop.eup %5844  ;;  %5850 = vrcp.f32 %v2565_v26  ;;  %v2571_v60 = vadd.f32 1.0, %v5843_v43  ;;  %v12139_v26 = vld [vmem:[#allocation139_spill] sm:$0xff]  ;;  %v12140_v43 = vld [vmem:[#allocation140_spill] sm:$0xff] }
 0x458   :  { %v5847_v47 = vpop.eup %5846  ;;  %5852 = vtanh.f32 %v2560_v24  ;;  %v12138_v24 = vld [vmem:[#allocation138_spill] sm:$0xff] }
 0x459   :  { %5854 = vrcp.f32 %v2571_v60  ;;  %v2138_v49 = vmul.f32 %v5847_v47, %v5845_v45  ;;  %v12141_v45 = vld [vmem:[#allocation141_spill] sm:$0xff]  ;;  %v12142_v47 = vld [vmem:[#allocation142_spill] sm:$0xff] }
 0x45b   :  { %5688 = vst [vmem:[%s11010_s5 + $0x10] sm:$0xff] %v2138_v49  ;;  %2476 = vmatmul.mubr.f32.vlgmr.msra.gmra.mxu0 %v2138_v49  ;;  %2547 = vmatmul.mubr.f32.vlgmr.msra.gmra.mxu1 %v2138_v49 }
 0x45c   :  { %2651 = vmatpush1.msra.mxu0 %v7913_v27  ;;  %2722 = vmatpush1.msra.mxu1 %v7918_v28  ;;  %v12104_v27 = vld [vmem:[#allocation104_spill] sm:$0xff]  ;;  %v12105_v28 = vld [vmem:[#allocation105_spill] sm:$0xff] }
 0x45d   :  { %2652 = vmatprep.subr.mxu0 %v7923_v21  ;;  %2723 = vmatprep.subr.mxu1 %v7928_v29  ;;  %v12106_v21 = vld [vmem:[#allocation106_spill] sm:$0xff]  ;;  %v5849_v29 = vpop.eup %5848 }
 0x45e   :  { %2653 = vmatpush1.msra.mxu0 %v7936_v32  ;;  %2724 = vmatpush1.msra.mxu1 %v7941_v20  ;;  %v12107_v32 = vld [vmem:[#allocation107_spill] sm:$0xff]  ;;  %v12108_v20 = vld [vmem:[#allocation108_spill] sm:$0xff]  ;;  %v2578_v62 = vadd.f32 1.0, %v5849_v29 }
 0x45f   :  { %2654 = vmatprep.subr.mxu0 %v7948_v34  ;;  %2725 = vmatprep.subr.mxu1 %v7953_v31  ;;  %v12110_v31 = vld [vmem:[#allocation110_spill] sm:$0xff]  ;;  %v8593_v29 = vld [vmem:[%s11006_s1 + $0x1b0] sm:$0xff] }
 0x460   :  { %2655 = vmatpush1.msra.mxu0 %v7960_v36  ;;  %2726 = vmatpush1.msra.mxu1 %v12102_v55  ;;  %5856 = vrcp.f32 %v2578_v62  ;;  %v8653_v62 = vld [vmem:[%s11006_s1 + $0x158] sm:$0xff] }
 0x461   :  { %2656 = vmatprep.subr.mxu0 %v12103_v57  ;;  %2727 = vmatprep.subr.mxu1 %v12104_v27  ;;  %v8569_v57 = vld [vmem:[%s11006_s1 + $0x1d0] sm:$0xff]  ;;  %v8576_v27 = vld [vmem:[%s11006_s1 + $0x1a8] sm:$0xff] }
 0x462   :  { %2657 = vmatpush1.msra.mxu0 %v12105_v28  ;;  %2728 = vmatpush1.msra.mxu1 %v12106_v21  ;;  %v8581_v28 = vld [vmem:[%s11006_s1 + $0x1b8] sm:$0xff]  ;;  %v8588_v21 = vld [vmem:[%s11006_s1 + $0x1a0] sm:$0xff] }
 0x463   :  { %2658 = vmatprep.subr.mxu0 %v12107_v32  ;;  %2729 = vmatprep.subr.mxu1 %v12108_v20  ;;  %v8600_v32 = vld [vmem:[%s11006_s1 + $0x188] sm:$0xff]  ;;  %v8605_v20 = vld [vmem:[%s11006_s1 + $0x198] sm:$0xff] }
 0x464   :  { %v5851_v34 = vpop.eup %5850  ;;  %2659 = vmatpush1.msra.mxu0 %v12109_v63  ;;  %2730 = vmatpush1.msra.mxu1 %v12110_v31  ;;  %v8617_v63 = vld [vmem:[%s11006_s1 + $0x190] sm:$0xff]  ;;  %v8624_v31 = vld [vmem:[%s11006_s1 + $0x168] sm:$0xff] }
 0x465   :  { %v5853_v36 = vpop.eup %5852  ;;  %2660 = vmatprep.subr.mxu0 %v12111_v1  ;;  %2731 = vmatprep.subr.mxu1 %v12112_v9  ;;  %v8636_v1 = vld [vmem:[%s11006_s1 + $0x160] sm:$0xff]  ;;  %v8641_v9 = vld [vmem:[%s11006_s1 + $0x170] sm:$0xff] }
 0x466   :  { %v5855_v0 = vpop.eup %5854  ;;  %2661 = vmatpush1.msra.mxu0 %v8032_v23  ;;  %2732 = vmatpush1.msra.mxu1 %v12113_v52  ;;  %v2582_v50 = vmul.f32 %v5853_v36, %v5851_v34  ;;  %v12116_v23 = vld [vmem:[#allocation116_spill] sm:$0xff]  ;;  %v8612_v34 = vld [vmem:[%s11006_s1 + $0x180] sm:$0xff] }
 0x467   :  { %v2581_v54 = vmul.f32 %v5855_v0, %v8100_v42  ;;  %2662 = vmatprep.subr.mxu0 %v8044_v35  ;;  %2733 = vmatprep.subr.mxu1 %v8049_v12  ;;  %v12118_v42 = vld [vmem:[#allocation118_spill] sm:$0xff]  ;;  %v12119_v35 = vld [vmem:[#allocation119_spill] sm:$0xff]  ;;  %v12120_v12 = vld [vmem:[#allocation120_spill] sm:$0xff] }
 0x468   :  { %2663 = vmatpush1.msra.mxu0 %v8056_v37  ;;  %2734 = vmatpush1.msra.mxu1 %v12114_v58  ;;  %v12121_v37 = vld [vmem:[#allocation121_spill] sm:$0xff]  ;;  %v8629_v36 = vld [vmem:[%s11006_s1 + $0x178] sm:$0xff]  ;;  %v8648_v0 = vld [vmem:[%s11006_s1 + $0x148] sm:$0xff] }
 0x469   :  { %v8484_v61 = vadd.f32 %v2582_v50, %v2581_v54  ;;  %2664 = vmatprep.subr.mxu0 %v8068_v25  ;;  %2735 = vmatprep.subr.mxu1 %v12115_v48  ;;  %v12123_v25 = vld [vmem:[#allocation123_spill] sm:$0xff]  ;;  %v8660_v52 = vld [vmem:[%s11006_s1 + $0x140] sm:$0xff]  ;;  %v8672_v54 = vld [vmem:[%s11006_s1 + $0x128] sm:$0xff] }
 0x46a   :  { %2665 = vmatpush1.msra.mxu0 %v12116_v23  ;;  %2736 = vmatpush1.msra.mxu1 %v12117_v56  ;;  %v8665_v50 = vld [vmem:[%s11006_s1 + $0x150] sm:$0xff]  ;;  %v8677_v58 = vld [vmem:[%s11006_s1 + $0x138] sm:$0xff]  ;;  %v8684_v48 = vld [vmem:[%s11006_s1 + $0x120] sm:$0xff] }
 0x46b   :  { %2666 = vmatprep.subr.mxu0 %v12118_v42  ;;  %2737 = vmatprep.subr.mxu1 %v12119_v35  ;;  %5858 = vtanh.f32 %v8484_v61  ;;  %v8689_v23 = vld [vmem:[%s11006_s1 + $0x130] sm:$0xff]  ;;  %v8696_v56 = vld [vmem:[%s11006_s1 + $0x108] sm:$0xff]  ;;  %v8701_v42 = vld [vmem:[%s11006_s1 + $0x118] sm:$0xff] }
 0x46c   :  { %2667 = vmatpush1.msra.mxu0 %v12120_v12  ;;  %2738 = vmatpush1.msra.mxu1 %v12121_v37  ;;  %v8708_v35 = vld [vmem:[%s11006_s1 + $0x100] sm:$0xff]  ;;  %v8713_v12 = vld [vmem:[%s11006_s1 + $0x110] sm:$0xff]  ;;  %v8720_v37 = vld [vmem:[%s11006_s1 + $0xe8] sm:$0xff] }
 0x46d   :  { %2668 = vmatprep.subr.mxu0 %v12122_v59  ;;  %2739 = vmatprep.subr.mxu1 %v12123_v25  ;;  %v5857_v60 = vpop.eup %5856  ;;  %v8725_v59 = vld [vmem:[%s11006_s1 + $0xf8] sm:$0xff]  ;;  %v8732_v25 = vld [vmem:[%s11006_s1 + $0xe0] sm:$0xff] }
 0x46e   :  { %2669 = vmatpush1.msra.mxu0 %v12124_v2  ;;  %2740 = vmatpush1.msra.mxu1 %v12125_v53  ;;  %v8737_v2 = vld [vmem:[%s11006_s1 + $0xf0] sm:$0xff]  ;;  %v8744_v53 = vld [vmem:[%s11006_s1 + $0xc8] sm:$0xff] }
 0x46f   :  { %2670 = vmatprep.subr.mxu0 %v12126_v3  ;;  %2741 = vmatprep.subr.mxu1 %v12127_v4  ;;  %12143 = vst [vmem:[#allocation143_spill] sm:$0xff] %v8737_v2  ;;  %12144 = vst [vmem:[#allocation144_spill] sm:$0xff] %v8744_v53  ;;  %v8749_v3 = vld [vmem:[%s11006_s1 + $0xd8] sm:$0xff]  ;;  %v8756_v4 = vld [vmem:[%s11006_s1 + $0xc0] sm:$0xff] }
 0x470   :  { %2671 = vmatpush1.msra.mxu0 %v12128_v6  ;;  %2742 = vmatpush1.msra.mxu1 %v12129_v7  ;;  %12145 = vst [vmem:[#allocation145_spill] sm:$0xff] %v8749_v3  ;;  %12146 = vst [vmem:[#allocation146_spill] sm:$0xff] %v8756_v4  ;;  %v8761_v6 = vld [vmem:[%s11006_s1 + $0xd0] sm:$0xff]  ;;  %v8768_v7 = vld [vmem:[%s11006_s1 + $0xa8] sm:$0xff] }
 0x471   :  { %2672 = vmatprep.subr.mxu0 %v12130_v8  ;;  %2743 = vmatprep.subr.mxu1 %v12131_v10  ;;  %12147 = vst [vmem:[#allocation147_spill] sm:$0xff] %v8761_v6  ;;  %12148 = vst [vmem:[#allocation148_spill] sm:$0xff] %v8768_v7  ;;  %v8773_v8 = vld [vmem:[%s11006_s1 + $0xb8] sm:$0xff]  ;;  %v8780_v10 = vld [vmem:[%s11006_s1 + $0xa0] sm:$0xff] }
 0x472   :  { %2673 = vmatpush1.msra.mxu0 %v12132_v14  ;;  %2744 = vmatpush1.msra.mxu1 %v12133_v15  ;;  %12149 = vst [vmem:[#allocation149_spill] sm:$0xff] %v8773_v8  ;;  %12150 = vst [vmem:[#allocation12_spill] sm:$0xff] %v8780_v10  ;;  %v8785_v14 = vld [vmem:[%s11006_s1 + $0xb0] sm:$0xff]  ;;  %v8792_v15 = vld [vmem:[%s11006_s1 + $0x88] sm:$0xff] }
 0x473   :  { %2674 = vmatprep.subr.mxu0 %v12134_v16  ;;  %2745 = vmatprep.subr.mxu1 %v12135_v17  ;;  %12151 = vst [vmem:[#allocation6_spill] sm:$0xff] %v8785_v14  ;;  %12152 = vst [vmem:[#allocation14_spill] sm:$0xff] %v8792_v15  ;;  %v8797_v16 = vld [vmem:[%s11006_s1 + $0x98] sm:$0xff]  ;;  %v8804_v17 = vld [vmem:[%s11006_s1 + $0x80] sm:$0xff] }
 0x474   :  { %2675 = vmatpush1.msra.mxu0 %v12136_v40  ;;  %2746 = vmatpush1.msra.mxu1 %v12137_v18  ;;  %12153 = vst [vmem:[#allocation7_spill] sm:$0xff] %v8797_v16  ;;  %12154 = vst [vmem:[#allocation16_spill] sm:$0xff] %v8804_v17  ;;  %v8809_v40 = vld [vmem:[%s11006_s1 + $0x90] sm:$0xff]  ;;  %v8816_v18 = vld [vmem:[%s11006_s1 + $0x68] sm:$0xff] }
 0x475   :  { %2676 = vmatprep.subr.mxu0 %v12138_v24  ;;  %2747 = vmatprep.subr.mxu1 %v12139_v26  ;;  %12155 = vst [vmem:[#allocation8_spill] sm:$0xff] %v8809_v40  ;;  %12156 = vst [vmem:[#allocation17_spill] sm:$0xff] %v8816_v18  ;;  %v8821_v24 = vld [vmem:[%s11006_s1 + $0x78] sm:$0xff]  ;;  %v8828_v26 = vld [vmem:[%s11006_s1 + $0x60] sm:$0xff] }
 0x476   :  { %2677 = vmatpush1.msra.mxu0 %v12140_v43  ;;  %2748 = vmatpush1.msra.mxu1 %v12141_v45  ;;  %12157 = vst [vmem:[#allocation9_spill] sm:$0xff] %v8821_v24  ;;  %12158 = vst [vmem:[#allocation18_spill] sm:$0xff] %v8828_v26  ;;  %v8833_v43 = vld [vmem:[%s11006_s1 + $0x70] sm:$0xff]  ;;  %v8840_v45 = vld [vmem:[%s11006_s1 + $0x48] sm:$0xff] }
 0x477   :  { %2678 = vmatprep.subr.mxu0 %v8240_v46  ;;  %2749 = vmatprep.subr.mxu1 %v12142_v47  ;;  %v8528_v46 = vld [vmem:[%s11006_s1 + $0x1e8] sm:$0xff]  ;;  %12159 = vst [vmem:[#allocation11_spill] sm:$0xff] %v8833_v43  ;;  %12160 = vst [vmem:[#allocation20_spill] sm:$0xff] %v8840_v45  ;;  %v8852_v47 = vld [vmem:[%s11006_s1 + $0x40] sm:$0xff] }
 0x478   :  { %v5859_v49 = vpop.eup %5858  ;;  %2679 = vmatpush1.msra.mxu0 %v8252_v22  ;;  %2750 = vmatpush1.msra.mxu1 %v8257_v33  ;;  %v8533_v22 = vld [vmem:[%s11006_s1 + $0x1f8] sm:$0xff]  ;;  %v8540_v33 = vld [vmem:[%s11006_s1 + $0x1e0] sm:$0xff]  ;;  %12162 = vst [vmem:[#allocation22_spill] sm:$0xff] %v8852_v47 }
 0x479   :  { %2680 = vmatprep.subr.mxu0 %v8264_v38  ;;  %2751 = vmatprep.subr.mxu1 %v8269_v39  ;;  %v8521_v55 = vmul.f32 %v5859_v49, %v5857_v60  ;;  %v8545_v38 = vld [vmem:[%s11006_s1 + $0x1f0] sm:$0xff]  ;;  %v8557_v39 = vld [vmem:[%s11006_s1 + $0x1d8] sm:$0xff] }
 0x47a   :  { %2681 = vmatpush1.msra.mxu0 %v8276_v41  ;;  %2714 = vmatprep.mubr.f32.mxu0 %v11737_v19  ;;  %v8564_v41 = vld [vmem:[%s11006_s1 + $0x1c0] sm:$0xff]  ;;  %v8845_v60 = vld [vmem:[%s11006_s1 + $0x58] sm:$0xff]  ;;  %v8857_v49 = vld [vmem:[%s11006_s1 + $0x50] sm:$0xff] }
 0x47b   :  { %2752 = vmatpush1.msra.mxu1 %v8283_v30  ;;  %2785 = vmatprep.mubr.f32.mxu1 %v11737_v19  ;;  %v8552_v30 = vld [vmem:[%s11006_s1 + $0x1c8] sm:$0xff]  ;;  %12161 = vst [vmem:[#allocation13_spill] sm:$0xff] %v8845_v60  ;;  %12163 = vst [vmem:[#allocation15_spill] sm:$0xff] %v8857_v49 }
 0x47c   :  { %2715 = vmatmul.mubr.f32.vlgmr.msra.gmra.mxu0 %v8521_v55  ;;  %2786 = vmatmul.mubr.f32.vlgmr.msra.gmra.mxu1 %v8521_v55 }
 0x47d   :  { %2908 = vmatprep.subr.mxu0 %v8528_v46  ;;  %2979 = vmatprep.subr.mxu1 %v8533_v22 }
 0x47e   :  { %2909 = vmatpush1.msra.mxu0 %v8540_v33  ;;  %2980 = vmatpush1.msra.mxu1 %v8545_v38 }
 0x47f   :  { %2910 = vmatprep.subr.mxu0 %v8552_v30  ;;  %2981 = vmatprep.subr.mxu1 %v8557_v39 }
 0x480   :  { %2911 = vmatpush1.msra.mxu0 %v8564_v41  ;;  %2982 = vmatpush1.msra.mxu1 %v8569_v57 }
 0x481   :  { %2912 = vmatprep.subr.mxu0 %v8576_v27  ;;  %2983 = vmatprep.subr.mxu1 %v8581_v28 }
 0x482   :  { %2913 = vmatpush1.msra.mxu0 %v8588_v21  ;;  %2984 = vmatpush1.msra.mxu1 %v8593_v29 }
 0x483   :  { %2914 = vmatprep.subr.mxu0 %v8600_v32  ;;  %2985 = vmatprep.subr.mxu1 %v8605_v20 }
 0x484   :  { %2915 = vmatpush1.msra.mxu0 %v8612_v34  ;;  %2986 = vmatpush1.msra.mxu1 %v8617_v63 }
 0x485   :  { %2916 = vmatprep.subr.mxu0 %v8624_v31  ;;  %2987 = vmatprep.subr.mxu1 %v8629_v36 }
 0x486   :  { %2917 = vmatpush1.msra.mxu0 %v8636_v1  ;;  %2988 = vmatpush1.msra.mxu1 %v8641_v9 }
 0x487   :  { %2918 = vmatprep.subr.mxu0 %v8648_v0  ;;  %2989 = vmatprep.subr.mxu1 %v8653_v62 }
 0x488   :  { %2919 = vmatpush1.msra.mxu0 %v8660_v52  ;;  %2990 = vmatpush1.msra.mxu1 %v8665_v50 }
 0x489   :  { %2920 = vmatprep.subr.mxu0 %v8672_v54  ;;  %2991 = vmatprep.subr.mxu1 %v8677_v58 }
 0x48a   :  { %2921 = vmatpush1.msra.mxu0 %v8684_v48  ;;  %2992 = vmatpush1.msra.mxu1 %v8689_v23 }
 0x48b   :  { %2922 = vmatprep.subr.mxu0 %v8696_v56  ;;  %2993 = vmatprep.subr.mxu1 %v8701_v42 }
 0x48c   :  { %2923 = vmatpush1.msra.mxu0 %v8708_v35  ;;  %2994 = vmatpush1.msra.mxu1 %v8713_v12 }
 0x48d   :  { %2924 = vmatprep.subr.mxu0 %v8720_v37  ;;  %2995 = vmatprep.subr.mxu1 %v8725_v59 }
 0x48e   :  { %2925 = vmatpush1.msra.mxu0 %v8732_v25  ;;  %2996 = vmatpush1.msra.mxu1 %v8737_v2 }
 0x48f   :  { %2926 = vmatprep.subr.mxu0 %v8744_v53  ;;  %2997 = vmatprep.subr.mxu1 %v8749_v3 }
 0x490   :  { %2927 = vmatpush1.msra.mxu0 %v8756_v4  ;;  %2998 = vmatpush1.msra.mxu1 %v8761_v6 }
 0x491   :  { %2928 = vmatprep.subr.mxu0 %v8768_v7  ;;  %2999 = vmatprep.subr.mxu1 %v8773_v8 }
 0x492   :  { %2929 = vmatpush1.msra.mxu0 %v8780_v10  ;;  %3000 = vmatpush1.msra.mxu1 %v8785_v14 }
 0x493   :  { %2930 = vmatprep.subr.mxu0 %v8792_v15  ;;  %3001 = vmatprep.subr.mxu1 %v8797_v16 }
 0x494   :  { %2931 = vmatpush1.msra.mxu0 %v8804_v17  ;;  %3002 = vmatpush1.msra.mxu1 %v8809_v40 }
 0x495   :  { %2932 = vmatprep.subr.mxu0 %v8816_v18  ;;  %3003 = vmatprep.subr.mxu1 %v8821_v24  ;;  %v8864_v18 = vld [vmem:[%s11006_s1 + $0x28] sm:$0xff]  ;;  %v8869_v24 = vld [vmem:[%s11006_s1 + $0x38] sm:$0xff] }
 0x496   :  { %2933 = vmatpush1.msra.mxu0 %v8828_v26  ;;  %3004 = vmatpush1.msra.mxu1 %v8833_v43  ;;  %12164 = vst [vmem:[#allocation24_spill] sm:$0xff] %v8864_v18  ;;  %12165 = vst [vmem:[#allocation19_spill] sm:$0xff] %v8869_v24  ;;  %v8876_v26 = vld [vmem:[%s11006_s1 + $0x20] sm:$0xff]  ;;  %v8881_v43 = vld [vmem:[%s11006_s1 + $0x30] sm:$0xff] }
 0x497   :  { %2934 = vmatprep.subr.mxu0 %v8840_v45  ;;  %3005 = vmatprep.subr.mxu1 %v8845_v60  ;;  %12166 = vst [vmem:[#allocation26_spill] sm:$0xff] %v8876_v26  ;;  %12167 = vst [vmem:[#allocation21_spill] sm:$0xff] %v8881_v43  ;;  %v8888_v45 = vld [vmem:[%s11006_s1 + $0x8] sm:$0xff]  ;;  %v8893_v60 = vld [vmem:[%s11006_s1 + $0x18] sm:$0xff] }
 0x498   :  { %2935 = vmatpush1.msra.mxu0 %v8852_v47  ;;  %3006 = vmatpush1.msra.mxu1 %v8857_v49  ;;  %12168 = vst [vmem:[#allocation27_spill] sm:$0xff] %v8888_v45  ;;  %12169 = vst [vmem:[#allocation23_spill] sm:$0xff] %v8893_v60  ;;  %v8900_v47 = vld [vmem:[%s11006_s1] sm:$0xff]  ;;  %v8907_v49 = vld [vmem:[%s11006_s1 + $0x10] sm:$0xff] }
 0x499   :  { %2936 = vmatprep.subr.mxu0 %v8864_v18  ;;  %3007 = vmatprep.subr.mxu1 %v8869_v24  ;;  %12170 = vst [vmem:[#allocation29_spill] sm:$0xff] %v8900_v47  ;;  %12171 = vst [vmem:[#allocation25_spill] sm:$0xff] %v8907_v49  ;;  %v8974_v24 = vld [vmem:[#allocation2 + $0x170] sm:$0xff] }
 0x49a   :  { %2937 = vmatpush1.msra.mxu0 %v8876_v26  ;;  %3008 = vmatpush1.msra.mxu1 %v8881_v43  ;;  %v8919_v43 = vld [vmem:[#allocation2 + $0x1e8] sm:$0xff]  ;;  %v8937_v26 = vld [vmem:[#allocation2 + $0x1c0] sm:$0xff]  ;;  %12191 = vst [vmem:[#allocation48_spill] sm:$0xff] %v8974_v24 }
 0x49b   :  { %2938 = vmatprep.subr.mxu0 %v8888_v45  ;;  %3009 = vmatprep.subr.mxu1 %v8893_v60  ;;  %12172 = vst [vmem:[#allocation31_spill] sm:$0xff] %v8919_v43  ;;  %v8921_v45 = vld [vmem:[#allocation2 + $0x1f8] sm:$0xff]  ;;  %12178 = vst [vmem:[#allocation36_spill] sm:$0xff] %v8937_v26 }
 0x49c   :  { %2939 = vmatpush1.msra.mxu0 %v8900_v47  ;;  %2972 = vmatprep.mubr.f32.mxu0 %v11737_v19  ;;  %12173 = vst [vmem:[#allocation28_spill] sm:$0xff] %v8921_v45  ;;  %v8925_v47 = vld [vmem:[#allocation2 + $0x1e0] sm:$0xff]  ;;  %v8933_v60 = vld [vmem:[#allocation2 + $0x1d8] sm:$0xff] }
 0x49d   :  { %3010 = vmatpush1.msra.mxu1 %v8907_v49  ;;  %3043 = vmatprep.mubr.f32.mxu1 %v11737_v19  ;;  %12174 = vst [vmem:[#allocation33_spill] sm:$0xff] %v8925_v47  ;;  %v8927_v49 = vld [vmem:[#allocation2 + $0x1f0] sm:$0xff]  ;;  %12177 = vst [vmem:[#allocation32_spill] sm:$0xff] %v8933_v60 }
 0x49e   :  { %2973 = vmatmul.mubr.f32.vlgmr.msra.gmra.mxu0 %v8521_v55  ;;  %3044 = vmatmul.mubr.f32.vlgmr.msra.gmra.mxu1 %v8521_v55  ;;  %12175 = vst [vmem:[#allocation30_spill] sm:$0xff] %v8927_v49  ;;  %v8931_v55 = vld [vmem:[#allocation2 + $0x1c8] sm:$0xff] }
 0x49f   :  { %3178 = vmatprep.mubr.f32.mxu0 %v11737_v19  ;;  %3249 = vmatprep.mubr.f32.mxu1 %v11737_v19  ;;  %12176 = vst [vmem:[#allocation35_spill] sm:$0xff] %v8931_v55 }
 0x4a0   :  { %3114 = vmatprep.subr.mxu0 %v8919_v43  ;;  %3185 = vmatprep.subr.mxu1 %v8921_v45  ;;  %v8939_v43 = vld [vmem:[#allocation2 + $0x1d0] sm:$0xff]  ;;  %v8943_v45 = vld [vmem:[#allocation2 + $0x1a8] sm:$0xff] }
 0x4a1   :  { %3115 = vmatpush1.msra.mxu0 %v8925_v47  ;;  %3186 = vmatpush1.msra.mxu1 %v8927_v49  ;;  %12179 = vst [vmem:[#allocation34_spill] sm:$0xff] %v8939_v43  ;;  %12180 = vst [vmem:[#allocation37_spill] sm:$0xff] %v8943_v45  ;;  %v8945_v47 = vld [vmem:[#allocation2 + $0x1b8] sm:$0xff]  ;;  %v8949_v49 = vld [vmem:[#allocation2 + $0x1a0] sm:$0xff] }
 0x4a2   :  { %3116 = vmatprep.subr.mxu0 %v8931_v55  ;;  %3187 = vmatprep.subr.mxu1 %v8933_v60  ;;  %12181 = vst [vmem:[#allocation38_spill] sm:$0xff] %v8945_v47  ;;  %12182 = vst [vmem:[#allocation39_spill] sm:$0xff] %v8949_v49  ;;  %v8951_v55 = vld [vmem:[#allocation2 + $0x1b0] sm:$0xff]  ;;  %v8955_v60 = vld [vmem:[#allocation2 + $0x188] sm:$0xff] }
 0x4a3   :  { %3117 = vmatpush1.msra.mxu0 %v8937_v26  ;;  %3188 = vmatpush1.msra.mxu1 %v8939_v43  ;;  %12183 = vst [vmem:[#allocation40_spill] sm:$0xff] %v8951_v55  ;;  %12184 = vst [vmem:[#allocation41_spill] sm:$0xff] %v8955_v60  ;;  %v8957_v26 = vld [vmem:[#allocation2 + $0x198] sm:$0xff]  ;;  %v8961_v43 = vld [vmem:[#allocation2 + $0x180] sm:$0xff] }
 0x4a4   :  { %3118 = vmatprep.subr.mxu0 %v8943_v45  ;;  %3189 = vmatprep.subr.mxu1 %v8945_v47  ;;  %12185 = vst [vmem:[#allocation42_spill] sm:$0xff] %v8957_v26  ;;  %12186 = vst [vmem:[#allocation43_spill] sm:$0xff] %v8961_v43  ;;  %v8964_v47 = vld [vmem:[#allocation2 + $0x190] sm:$0xff]  ;;  %v8967_v45 = vld [vmem:[#allocation2 + $0x168] sm:$0xff] }
 0x4a5   :  { %3119 = vmatpush1.msra.mxu0 %v8949_v49  ;;  %3190 = vmatpush1.msra.mxu1 %v8951_v55  ;;  %12187 = vst [vmem:[#allocation44_spill] sm:$0xff] %v8964_v47  ;;  %12188 = vst [vmem:[#allocation45_spill] sm:$0xff] %v8967_v45  ;;  %v8970_v55 = vld [vmem:[#allocation2 + $0x178] sm:$0xff]  ;;  %v8972_v49 = vld [vmem:[#allocation2 + $0x160] sm:$0xff] }
 0x4a6   :  { %3120 = vmatprep.subr.mxu0 %v8955_v60  ;;  %3191 = vmatprep.subr.mxu1 %v8957_v26  ;;  %12189 = vst [vmem:[#allocation46_spill] sm:$0xff] %v8970_v55  ;;  %12190 = vst [vmem:[#allocation47_spill] sm:$0xff] %v8972_v49  ;;  %v8978_v26 = vld [vmem:[#allocation2 + $0x148] sm:$0xff] }
 0x4a7   :  { %3121 = vmatpush1.msra.mxu0 %v8961_v43  ;;  %3192 = vmatpush1.msra.mxu1 %v8964_v47  ;;  %12192 = vst [vmem:[#allocation49_spill] sm:$0xff] %v8978_v26  ;;  %v8980_v43 = vld [vmem:[#allocation2 + $0x158] sm:$0xff]  ;;  %v8984_v47 = vld [vmem:[#allocation2 + $0x140] sm:$0xff]  ;;  %v8990_v60 = vld [vmem:[#allocation2 + $0x128] sm:$0xff] }
 0x4a8   :  { %3122 = vmatprep.subr.mxu0 %v8967_v45  ;;  %3193 = vmatprep.subr.mxu1 %v8970_v55  ;;  %12193 = vst [vmem:[#allocation50_spill] sm:$0xff] %v8980_v43  ;;  %12194 = vst [vmem:[#allocation51_spill] sm:$0xff] %v8984_v47  ;;  %v8986_v45 = vld [vmem:[#allocation2 + $0x150] sm:$0xff]  ;;  %v8992_v55 = vld [vmem:[#allocation2 + $0x138] sm:$0xff] }
 0x4a9   :  { %3123 = vmatpush1.msra.mxu0 %v8972_v49  ;;  %3194 = vmatpush1.msra.mxu1 %v8974_v24  ;;  %12195 = vst [vmem:[#allocation52_spill] sm:$0xff] %v8986_v45  ;;  %12196 = vst [vmem:[#allocation53_spill] sm:$0xff] %v8990_v60  ;;  %v8996_v49 = vld [vmem:[#allocation2 + $0x120] sm:$0xff]  ;;  %v8998_v24 = vld [vmem:[#allocation2 + $0x130] sm:$0xff] }
 0x4aa   :  { %3124 = vmatprep.subr.mxu0 %v8978_v26  ;;  %3195 = vmatprep.subr.mxu1 %v8980_v43  ;;  %12197 = vst [vmem:[#allocation54_spill] sm:$0xff] %v8992_v55  ;;  %12198 = vst [vmem:[#allocation55_spill] sm:$0xff] %v8996_v49  ;;  %v9002_v26 = vld [vmem:[#allocation2 + $0x108] sm:$0xff]  ;;  %v9004_v43 = vld [vmem:[#allocation2 + $0x118] sm:$0xff] }
 0x4ab   :  { %3125 = vmatpush1.msra.mxu0 %v8984_v47  ;;  %3196 = vmatpush1.msra.mxu1 %v8986_v45  ;;  %12199 = vst [vmem:[#allocation56_spill] sm:$0xff] %v8998_v24  ;;  %12200 = vst [vmem:[#allocation57_spill] sm:$0xff] %v9002_v26  ;;  %v9008_v47 = vld [vmem:[#allocation2 + $0x100] sm:$0xff]  ;;  %v9010_v45 = vld [vmem:[#allocation2 + $0x110] sm:$0xff] }
 0x4ac   :  { %3126 = vmatprep.subr.mxu0 %v8990_v60  ;;  %3197 = vmatprep.subr.mxu1 %v8992_v55  ;;  %12201 = vst [vmem:[#allocation58_spill] sm:$0xff] %v9004_v43  ;;  %12202 = vst [vmem:[#allocation59_spill] sm:$0xff] %v9008_v47  ;;  %v9014_v60 = vld [vmem:[#allocation2 + $0xe8] sm:$0xff]  ;;  %v9016_v55 = vld [vmem:[#allocation2 + $0xf8] sm:$0xff] }
 0x4ad   :  { %3127 = vmatpush1.msra.mxu0 %v8996_v49  ;;  %3198 = vmatpush1.msra.mxu1 %v8998_v24  ;;  %12203 = vst [vmem:[#allocation60_spill] sm:$0xff] %v9010_v45  ;;  %12204 = vst [vmem:[#allocation61_spill] sm:$0xff] %v9014_v60  ;;  %v9020_v49 = vld [vmem:[#allocation2 + $0xe0] sm:$0xff]  ;;  %v9022_v24 = vld [vmem:[#allocation2 + $0xf0] sm:$0xff] }
 0x4ae   :  { %3128 = vmatprep.subr.mxu0 %v9002_v26  ;;  %3199 = vmatprep.subr.mxu1 %v9004_v43  ;;  %12205 = vst [vmem:[#allocation62_spill] sm:$0xff] %v9016_v55  ;;  %12206 = vst [vmem:[#allocation63_spill] sm:$0xff] %v9020_v49  ;;  %v9026_v26 = vld [vmem:[#allocation2 + $0xc8] sm:$0xff]  ;;  %v9028_v43 = vld [vmem:[#allocation2 + $0xd8] sm:$0xff] }
 0x4af   :  { %3129 = vmatpush1.msra.mxu0 %v9008_v47  ;;  %3200 = vmatpush1.msra.mxu1 %v9010_v45  ;;  %12207 = vst [vmem:[#allocation64_spill] sm:$0xff] %v9022_v24  ;;  %12208 = vst [vmem:[#allocation65_spill] sm:$0xff] %v9026_v26  ;;  %v9032_v47 = vld [vmem:[#allocation2 + $0xc0] sm:$0xff]  ;;  %v9034_v45 = vld [vmem:[#allocation2 + $0xd0] sm:$0xff] }
 0x4b0   :  { %3130 = vmatprep.subr.mxu0 %v9014_v60  ;;  %3201 = vmatprep.subr.mxu1 %v9016_v55  ;;  %12209 = vst [vmem:[#allocation66_spill] sm:$0xff] %v9028_v43  ;;  %12210 = vst [vmem:[#allocation67_spill] sm:$0xff] %v9032_v47  ;;  %v9038_v60 = vld [vmem:[#allocation2 + $0xa8] sm:$0xff]  ;;  %v9040_v55 = vld [vmem:[#allocation2 + $0xb8] sm:$0xff] }
 0x4b1   :  { %3131 = vmatpush1.msra.mxu0 %v9020_v49  ;;  %3202 = vmatpush1.msra.mxu1 %v9022_v24  ;;  %12211 = vst [vmem:[#allocation68_spill] sm:$0xff] %v9034_v45  ;;  %12212 = vst [vmem:[#allocation69_spill] sm:$0xff] %v9038_v60  ;;  %v9044_v49 = vld [vmem:[#allocation2 + $0xa0] sm:$0xff]  ;;  %v9046_v24 = vld [vmem:[#allocation2 + $0xb0] sm:$0xff] }
 0x4b2   :  { %3132 = vmatprep.subr.mxu0 %v9026_v26  ;;  %3203 = vmatprep.subr.mxu1 %v9028_v43  ;;  %12213 = vst [vmem:[#allocation70_spill] sm:$0xff] %v9040_v55  ;;  %12214 = vst [vmem:[#allocation71_spill] sm:$0xff] %v9044_v49  ;;  %v9050_v26 = vld [vmem:[#allocation2 + $0x88] sm:$0xff]  ;;  %v9052_v43 = vld [vmem:[#allocation2 + $0x98] sm:$0xff] }
 0x4b3   :  { %3133 = vmatpush1.msra.mxu0 %v9032_v47  ;;  %3204 = vmatpush1.msra.mxu1 %v9034_v45  ;;  %12215 = vst [vmem:[#allocation72_spill] sm:$0xff] %v9046_v24  ;;  %12216 = vst [vmem:[#allocation73_spill] sm:$0xff] %v9050_v26  ;;  %v9056_v47 = vld [vmem:[#allocation2 + $0x80] sm:$0xff]  ;;  %v9058_v45 = vld [vmem:[#allocation2 + $0x90] sm:$0xff] }
 0x4b4   :  { %3134 = vmatprep.subr.mxu0 %v9038_v60  ;;  %3205 = vmatprep.subr.mxu1 %v9040_v55  ;;  %12217 = vst [vmem:[#allocation74_spill] sm:$0xff] %v9052_v43  ;;  %12218 = vst [vmem:[#allocation75_spill] sm:$0xff] %v9056_v47  ;;  %v9062_v60 = vld [vmem:[#allocation2 + $0x68] sm:$0xff]  ;;  %v9064_v55 = vld [vmem:[#allocation2 + $0x78] sm:$0xff] }
 0x4b5   :  { %3135 = vmatpush1.msra.mxu0 %v9044_v49  ;;  %3206 = vmatpush1.msra.mxu1 %v9046_v24  ;;  %12219 = vst [vmem:[#allocation76_spill] sm:$0xff] %v9058_v45  ;;  %12220 = vst [vmem:[#allocation77_spill] sm:$0xff] %v9062_v60  ;;  %v9068_v49 = vld [vmem:[#allocation2 + $0x60] sm:$0xff]  ;;  %v9070_v24 = vld [vmem:[#allocation2 + $0x70] sm:$0xff] }
 0x4b6   :  { %3136 = vmatprep.subr.mxu0 %v9050_v26  ;;  %3207 = vmatprep.subr.mxu1 %v9052_v43  ;;  %12221 = vst [vmem:[#allocation78_spill] sm:$0xff] %v9064_v55  ;;  %12222 = vst [vmem:[#allocation79_spill] sm:$0xff] %v9068_v49  ;;  %v9074_v26 = vld [vmem:[#allocation2 + $0x48] sm:$0xff]  ;;  %v9076_v43 = vld [vmem:[#allocation2 + $0x58] sm:$0xff] }
 0x4b7   :  { %3137 = vmatpush1.msra.mxu0 %v9056_v47  ;;  %3208 = vmatpush1.msra.mxu1 %v9058_v45  ;;  %12223 = vst [vmem:[#allocation80_spill] sm:$0xff] %v9070_v24  ;;  %12224 = vst [vmem:[#allocation81_spill] sm:$0xff] %v9074_v26  ;;  %v9080_v47 = vld [vmem:[#allocation2 + $0x40] sm:$0xff]  ;;  %v9082_v45 = vld [vmem:[#allocation2 + $0x50] sm:$0xff] }
 0x4b8   :  { %3138 = vmatprep.subr.mxu0 %v9062_v60  ;;  %3209 = vmatprep.subr.mxu1 %v9064_v55  ;;  %12225 = vst [vmem:[#allocation82_spill] sm:$0xff] %v9076_v43  ;;  %12226 = vst [vmem:[#allocation83_spill] sm:$0xff] %v9080_v47  ;;  %v9086_v60 = vld [vmem:[#allocation2 + $0x28] sm:$0xff]  ;;  %v9088_v55 = vld [vmem:[#allocation2 + $0x38] sm:$0xff] }
 0x4b9   :  { %3139 = vmatpush1.msra.mxu0 %v9068_v49  ;;  %3210 = vmatpush1.msra.mxu1 %v9070_v24  ;;  %12227 = vst [vmem:[#allocation84_spill] sm:$0xff] %v9082_v45  ;;  %12228 = vst [vmem:[#allocation85_spill] sm:$0xff] %v9086_v60  ;;  %v9092_v49 = vld [vmem:[#allocation2 + $0x20] sm:$0xff]  ;;  %v9094_v24 = vld [vmem:[#allocation2 + $0x30] sm:$0xff] }
 0x4ba   :  { %3140 = vmatprep.subr.mxu0 %v9074_v26  ;;  %3211 = vmatprep.subr.mxu1 %v9076_v43  ;;  %12229 = vst [vmem:[#allocation86_spill] sm:$0xff] %v9088_v55  ;;  %12230 = vst [vmem:[#allocation87_spill] sm:$0xff] %v9092_v49  ;;  %v9098_v26 = vld [vmem:[#allocation2 + $0x8] sm:$0xff]  ;;  %v9100_v43 = vld [vmem:[#allocation2 + $0x18] sm:$0xff] }
 0x4bb   :  { %3141 = vmatpush1.msra.mxu0 %v9080_v47  ;;  %3212 = vmatpush1.msra.mxu1 %v9082_v45  ;;  %12231 = vst [vmem:[#allocation88_spill] sm:$0xff] %v9094_v24  ;;  %12232 = vst [vmem:[#allocation89_spill] sm:$0xff] %v9098_v26  ;;  %v9104_v47 = vld [vmem:[#allocation2] sm:$0xff]  ;;  %v9106_v45 = vld [vmem:[#allocation2 + $0x10] sm:$0xff] }
 0x4bc   :  { %3142 = vmatprep.subr.mxu0 %v9086_v60  ;;  %3213 = vmatprep.subr.mxu1 %v9088_v55  ;;  %12233 = vst [vmem:[#allocation90_spill] sm:$0xff] %v9100_v43  ;;  %12234 = vst [vmem:[#allocation91_spill] sm:$0xff] %v9104_v47  ;;  %v9118_v55 = vld [vmem:[%s11007_s2 + $0x1f8] sm:$0xff] }
 0x4bd   :  { %3143 = vmatpush1.msra.mxu0 %v9092_v49  ;;  %3214 = vmatpush1.msra.mxu1 %v9094_v24  ;;  %12235 = vst [vmem:[#allocation92_spill] sm:$0xff] %v9106_v45  ;;  %v9113_v49 = vld [vmem:[%s11007_s2 + $0x1e8] sm:$0xff]  ;;  %12237 = vst [vmem:[#allocation94_spill] sm:$0xff] %v9118_v55 }
 0x4be   :  { %3144 = vmatprep.subr.mxu0 %v9098_v26  ;;  %3215 = vmatprep.subr.mxu1 %v9100_v43  ;;  %12236 = vst [vmem:[#allocation93_spill] sm:$0xff] %v9113_v49 }
 0x4bf   :  { %3145 = vmatpush1.msra.mxu0 %v9104_v47  ;;  %3216 = vmatpush1.msra.mxu1 %v9106_v45  ;;  %v2792_v47 = vld [vmem:[%s11009_s4] sm:$0xf] }
 0x4c0   :  { %3353 = vmatprep.subr.mxu0 %v9113_v49  ;;  %3424 = vmatprep.subr.mxu1 %v9118_v55  ;;  %v2797_v60 = vrot.slane %v2792_v47, %v12100_v5  ;;  %v2801_v16 = vrot.slane %v2792_v47, %v12101_v11  ;;  %v2809_v4 = vrot.slane %v2792_v47, %v7197_v44 }
 0x4c1   :  { %v2805_v53 = vrot.slane %v2792_v47, %v7200_v51 }
 0x51b   :  { %v2477_v26 = vpop.f32.mrf.mxu0  ;;  %v2548_v43 = vpop.f32.mrf.mxu1 }
 0x51d   :  { %v2479_v24 = vpop.f32.mrf.mxu0  ;;  %v2550_v40 = vpop.f32.mrf.mxu1 }
 0x53c   :  { %v2716_v18 = vpop.f32.mrf.mxu0  ;;  %v2787_v14 = vpop.f32.mrf.mxu1 }
 0x53d   :  { %v2717_v17 = vadd.f32 %v2716_v18, %v2477_v26  ;;  %v2788_v5 = vadd.f32 %v2787_v14, %v2548_v43 }
 0x53e   :  { %v2718_v15 = vpop.f32.mrf.mxu0  ;;  %v2789_v7 = vpop.f32.mrf.mxu1 }
 0x53f   :  { %v2814_v45 = vadd.f32 %v2797_v60, %v2717_v17  ;;  %v2719_v49 = vadd.f32 %v2718_v15, %v2479_v24  ;;  %v2790_v6 = vadd.f32 %v2789_v7, %v2550_v40  ;;  %v2816_v11 = vadd.f32 %v2805_v53, %v2788_v5  ;;  %v5700_v7 = vld [vmem:[%s11005_s0 + $0x80] sm:$0xff] }
 0x541   :  { %v5696_v10 = vmul.f32 -1.442695, %v2814_v45  ;;  %v2815_v55 = vadd.f32 %v2801_v16, %v2719_v49  ;;  %v2817_v3 = vadd.f32 %v2809_v4, %v2790_v6  ;;  %v5701_v4 = vld [vmem:[%s11005_s0 + $0x88] sm:$0xff]  ;;  %v5703_v49 = vld [vmem:[%s11005_s0 + $0x98] sm:$0xff] }
 0x543   :  { %5860 = vpow2.f32 %v5696_v10  ;;  %v5697_v8 = vmul.f32 -1.442695, %v2815_v55  ;;  %v5698_v18 = vmul.f32 -1.442695, %v2817_v3 }
 0x545   :  { %5862 = vpow2.f32 %v5697_v8 }
 0x546   :  { %5864 = vpow2.f32 %v5698_v18  ;;  %v5702_v18 = vld [vmem:[%s11005_s0 + $0x90] sm:$0xff] }
 0x550   :  { %v5861_v26 = vpop.eup %5860 }
 0x551   :  { %v2821_v2 = vadd.f32 1.0, %v5861_v26 }
 0x552   :  { %v5863_v17 = vpop.eup %5862 }
 0x553   :  { %5866 = vrcp.f32 %v2821_v2  ;;  %v2827_v15 = vadd.f32 1.0, %v5863_v17  ;;  %v5865_v6 = vpop.eup %5864 }
 0x554   :  { %5868 = vtanh.f32 %v2816_v11  ;;  %v2834_v40 = vadd.f32 1.0, %v5865_v6 }
 0x555   :  { %5870 = vrcp.f32 %v2827_v15 }
 0x55e   :  { %v2974_v8 = vpop.f32.mrf.mxu0  ;;  %v3045_v43 = vpop.f32.mrf.mxu1 }
 0x55f   :  { %v3261_v3 = vadd.f32 %v5700_v7, %v2974_v8  ;;  %v3263_v17 = vadd.f32 %v5702_v18, %v3045_v43  ;;  %v9201_v43 = vld [vmem:[%s11007_s2 + $0x1b0] sm:$0xff]  ;;  %v9232_v18 = vld [vmem:[%s11007_s2 + $0x168] sm:$0xff] }
 0x560   :  { %v5867_v10 = vpop.eup %5866  ;;  %v2976_v5 = vpop.f32.mrf.mxu0  ;;  %12238 = vst [vmem:[#allocation95_spill] sm:$0xff] %v9201_v43  ;;  %12243 = vst [vmem:[#allocation100_spill] sm:$0xff] %v9232_v18 }
 0x561   :  { %v5869_v53 = vpop.eup %5868  ;;  %v5704_v14 = vmul.f32 -1.442695, %v3261_v3  ;;  %v3262_v16 = vadd.f32 %v5701_v4, %v2976_v5  ;;  %v3047_v47 = vpop.f32.mrf.mxu1  ;;  %v9154_v5 = vld [vmem:[%s11007_s2 + $0x1f0] sm:$0xff] }
 0x562   :  { %v5871_v2 = vpop.eup %5870  ;;  %v2838_v11 = vmul.f32 %v5869_v53, %v5867_v10  ;;  %v3264_v55 = vadd.f32 %v5703_v49, %v3047_v47  ;;  %v9149_v10 = vld [vmem:[%s11007_s2 + $0x1e0] sm:$0xff]  ;;  %v9159_v53 = vld [vmem:[%s11007_s2 + $0x1c8] sm:$0xff]  ;;  %v9213_v47 = vld [vmem:[%s11007_s2 + $0x198] sm:$0xff] }
 0x563   :  { %v2837_v24 = vmul.f32 %v5871_v2, %v8445_v13  ;;  %5872 = vpow2.f32 %v5704_v14  ;;  %v5705_v45 = vmul.f32 -1.442695, %v3262_v16  ;;  %v9164_v14 = vld [vmem:[%s11007_s2 + $0x1d8] sm:$0xff]  ;;  %v9172_v16 = vld [vmem:[%s11007_s2 + $0x1c0] sm:$0xff]  ;;  %v9177_v2 = vld [vmem:[%s11007_s2 + $0x1d0] sm:$0xff]  ;;  %12240 = vst [vmem:[#allocation97_spill] sm:$0xff] %v9213_v47 }
 0x564   :  { %v5706_v13 = vmul.f32 -1.442695, %v3264_v55  ;;  %v9220_v49 = vld [vmem:[%s11007_s2 + $0x180] sm:$0xff]  ;;  %v9225_v55 = vld [vmem:[%s11007_s2 + $0x190] sm:$0xff] }
 0x565   :  { %5874 = vpow2.f32 %v5705_v45  ;;  %v9137_v60 = vadd.f32 %v2838_v11, %v2837_v24  ;;  %v9189_v11 = vld [vmem:[%s11007_s2 + $0x1b8] sm:$0xff]  ;;  %v9196_v24 = vld [vmem:[%s11007_s2 + $0x1a0] sm:$0xff]  ;;  %v9208_v45 = vld [vmem:[%s11007_s2 + $0x188] sm:$0xff]  ;;  %12241 = vst [vmem:[#allocation98_spill] sm:$0xff] %v9220_v49 }
 0x566   :  { %5876 = vrcp.f32 %v2834_v40  ;;  %v9184_v40 = vld [vmem:[%s11007_s2 + $0x1a8] sm:$0xff]  ;;  %12239 = vst [vmem:[#allocation96_spill] sm:$0xff] %v9208_v45  ;;  %12242 = vst [vmem:[#allocation99_spill] sm:$0xff] %v9225_v55 }
 0x567   :  { %5878 = vtanh.f32 %v9137_v60 }
 0x568   :  { %5880 = vpow2.f32 %v5706_v13  ;;  %v9237_v13 = vld [vmem:[%s11007_s2 + $0x178] sm:$0xff] }
 0x569   :  { %12244 = vst [vmem:[#allocation101_spill] sm:$0xff] %v9237_v13 }
 0x570   :  { %v5873_v26 = vpop.eup %5872 }
 0x571   :  { %v3268_v15 = vadd.f32 1.0, %v5873_v26  ;;  %v9244_v26 = vld [vmem:[%s11007_s2 + $0x160] sm:$0xff] }
 0x572   :  { %v5875_v7 = vpop.eup %5874  ;;  %12245 = vst [vmem:[#allocation102_spill] sm:$0xff] %v9244_v26 }
 0x573   :  { %v5877_v8 = vpop.eup %5876  ;;  %5882 = vrcp.f32 %v3268_v15  ;;  %v3274_v4 = vadd.f32 1.0, %v5875_v7  ;;  %v9256_v15 = vld [vmem:[%s11007_s2 + $0x148] sm:$0xff]  ;;  %v9261_v7 = vld [vmem:[%s11007_s2 + $0x158] sm:$0xff] }
 0x574   :  { %v5879_v6 = vpop.eup %5878  ;;  %5884 = vtanh.f32 %v3263_v17  ;;  %v9249_v17 = vld [vmem:[%s11007_s2 + $0x170] sm:$0xff]  ;;  %12247 = vst [vmem:[#allocation104_spill] sm:$0xff] %v9256_v15  ;;  %12248 = vst [vmem:[#allocation105_spill] sm:$0xff] %v9261_v7 }
 0x575   :  { %5886 = vrcp.f32 %v3274_v4  ;;  %v2841_v3 = vmul.f32 %v5879_v6, %v5877_v8  ;;  %12246 = vst [vmem:[#allocation103_spill] sm:$0xff] %v9249_v17  ;;  %v5881_v8 = vpop.eup %5880  ;;  %v9268_v4 = vld [vmem:[%s11007_s2 + $0x140] sm:$0xff]  ;;  %v9273_v6 = vld [vmem:[%s11007_s2 + $0x150] sm:$0xff] }
 0x576   :  { %12249 = vst [vmem:[#allocation106_spill] sm:$0xff] %v9273_v6 }
 0x577   :  { %5699 = vst [vmem:[%s11010_s5 + $0x18] sm:$0xff] %v2841_v3  ;;  %3179 = vmatmul.mubr.f32.vlgmr.msra.gmra.mxu0 %v2841_v3  ;;  %3250 = vmatmul.mubr.f32.vlgmr.msra.gmra.mxu1 %v2841_v3 }
 0x578   :  { %3354 = vmatpush1.msra.mxu0 %v9149_v10  ;;  %3425 = vmatpush1.msra.mxu1 %v9154_v5 }
 0x579   :  { %3355 = vmatprep.subr.mxu0 %v9159_v53  ;;  %3426 = vmatprep.subr.mxu1 %v9164_v14 }
 0x57a   :  { %3356 = vmatpush1.msra.mxu0 %v9172_v16  ;;  %3427 = vmatpush1.msra.mxu1 %v9177_v2 }
 0x57b   :  { %3357 = vmatprep.subr.mxu0 %v9184_v40  ;;  %3428 = vmatprep.subr.mxu1 %v9189_v11 }
 0x57c   :  { %3358 = vmatpush1.msra.mxu0 %v9196_v24  ;;  %3429 = vmatpush1.msra.mxu1 %v9201_v43 }
 0x57d   :  { %3359 = vmatprep.subr.mxu0 %v9208_v45  ;;  %3430 = vmatprep.subr.mxu1 %v9213_v47  ;;  %v3281_v47 = vadd.f32 1.0, %v5881_v8  ;;  %v9317_v8 = vld [vmem:[%s11007_s2 + $0x100] sm:$0xff] }
 0x57e   :  { %3360 = vmatpush1.msra.mxu0 %v9220_v49  ;;  %3431 = vmatpush1.msra.mxu1 %v9225_v55  ;;  %12252 = vst [vmem:[#allocation109_spill] sm:$0xff] %v9317_v8 }
 0x57f   :  { %3361 = vmatprep.subr.mxu0 %v9232_v18  ;;  %3432 = vmatprep.subr.mxu1 %v9237_v13  ;;  %v9280_v18 = vld [vmem:[%s11007_s2 + $0x128] sm:$0xff]  ;;  %v9285_v13 = vld [vmem:[%s11007_s2 + $0x138] sm:$0xff]  ;;  %5888 = vrcp.f32 %v3281_v47  ;;  %v9367_v47 = vld [vmem:[%s11007_s2 + $0xc0] sm:$0xff] }
 0x580   :  { %v5883_v3 = vpop.eup %5882  ;;  %3362 = vmatpush1.msra.mxu0 %v9244_v26  ;;  %3433 = vmatpush1.msra.mxu1 %v9249_v17  ;;  %v9292_v26 = vld [vmem:[%s11007_s2 + $0x120] sm:$0xff]  ;;  %v9297_v17 = vld [vmem:[%s11007_s2 + $0x130] sm:$0xff]  ;;  %12260 = vst [vmem:[#allocation117_spill] sm:$0xff] %v9367_v47 }
 0x581   :  { %v5885_v55 = vpop.eup %5884  ;;  %3363 = vmatprep.subr.mxu0 %v9256_v15  ;;  %3434 = vmatprep.subr.mxu1 %v9261_v7  ;;  %12250 = vst [vmem:[#allocation107_spill] sm:$0xff] %v9297_v17  ;;  %v9304_v7 = vld [vmem:[%s11007_s2 + $0x108] sm:$0xff]  ;;  %v9309_v15 = vld [vmem:[%s11007_s2 + $0x118] sm:$0xff] }
 0x582   :  { %v5887_v49 = vpop.eup %5886  ;;  %3364 = vmatpush1.msra.mxu0 %v9268_v4  ;;  %3435 = vmatpush1.msra.mxu1 %v9273_v6  ;;  %12251 = vst [vmem:[#allocation108_spill] sm:$0xff] %v9309_v15  ;;  %v3285_v45 = vmul.f32 %v5885_v55, %v5883_v3  ;;  %v9322_v6 = vld [vmem:[%s11007_s2 + $0x110] sm:$0xff]  ;;  %v9343_v3 = vld [vmem:[%s11007_s2 + $0xe0] sm:$0xff] }
 0x583   :  { %v3284_v43 = vmul.f32 %v5887_v49, %v8484_v61  ;;  %3365 = vmatprep.subr.mxu0 %v9280_v18  ;;  %3436 = vmatprep.subr.mxu1 %v9285_v13  ;;  %12253 = vst [vmem:[#allocation110_spill] sm:$0xff] %v9322_v6  ;;  %v9329_v61 = vld [vmem:[%s11007_s2 + $0xe8] sm:$0xff]  ;;  %v9334_v49 = vld [vmem:[%s11007_s2 + $0xf8] sm:$0xff]  ;;  %12256 = vst [vmem:[#allocation113_spill] sm:$0xff] %v9343_v3 }
 0x584   :  { %3366 = vmatpush1.msra.mxu0 %v9292_v26  ;;  %3437 = vmatpush1.msra.mxu1 %v9297_v17  ;;  %12254 = vst [vmem:[#allocation111_spill] sm:$0xff] %v9329_v61  ;;  %12255 = vst [vmem:[#allocation112_spill] sm:$0xff] %v9334_v49  ;;  %v9348_v17 = vld [vmem:[%s11007_s2 + $0xf0] sm:$0xff] }
 0x585   :  { %v9336_v55 = vadd.f32 %v3285_v45, %v3284_v43  ;;  %3367 = vmatprep.subr.mxu0 %v9304_v7  ;;  %3438 = vmatprep.subr.mxu1 %v9309_v15  ;;  %12257 = vst [vmem:[#allocation114_spill] sm:$0xff] %v9348_v17  ;;  %v9355_v43 = vld [vmem:[%s11007_s2 + $0xc8] sm:$0xff]  ;;  %v9360_v45 = vld [vmem:[%s11007_s2 + $0xd8] sm:$0xff]  ;;  %v9519_v15 = vld [vmem:[%s11007_s2 + $0x10] sm:$0xff] }
 0x586   :  { %3368 = vmatpush1.msra.mxu0 %v9317_v8  ;;  %3439 = vmatpush1.msra.mxu1 %v9322_v6  ;;  %12258 = vst [vmem:[#allocation115_spill] sm:$0xff] %v9355_v43  ;;  %12259 = vst [vmem:[#allocation116_spill] sm:$0xff] %v9360_v45  ;;  %v9372_v6 = vld [vmem:[%s11007_s2 + $0xd0] sm:$0xff] }
 0x587   :  { %3369 = vmatprep.subr.mxu0 %v9329_v61  ;;  %3440 = vmatprep.subr.mxu1 %v9334_v49  ;;  %12261 = vst [vmem:[#allocation118_spill] sm:$0xff] %v9372_v6  ;;  %5890 = vtanh.f32 %v9336_v55  ;;  %v9380_v49 = vld [vmem:[%s11007_s2 + $0xa8] sm:$0xff]  ;;  %v9385_v61 = vld [vmem:[%s11007_s2 + $0xb8] sm:$0xff] }
 0x588   :  { %3370 = vmatpush1.msra.mxu0 %v9343_v3  ;;  %3441 = vmatpush1.msra.mxu1 %v9348_v17  ;;  %12262 = vst [vmem:[#allocation119_spill] sm:$0xff] %v9380_v49  ;;  %12263 = vst [vmem:[#allocation120_spill] sm:$0xff] %v9385_v61  ;;  %v9392_v3 = vld [vmem:[%s11007_s2 + $0xa0] sm:$0xff]  ;;  %v9397_v17 = vld [vmem:[%s11007_s2 + $0xb0] sm:$0xff] }
 0x589   :  { %3371 = vmatprep.subr.mxu0 %v9355_v43  ;;  %3442 = vmatprep.subr.mxu1 %v9360_v45  ;;  %12264 = vst [vmem:[#allocation121_spill] sm:$0xff] %v9392_v3  ;;  %12265 = vst [vmem:[#allocation122_spill] sm:$0xff] %v9397_v17  ;;  %v9404_v43 = vld [vmem:[%s11007_s2 + $0x88] sm:$0xff]  ;;  %v9409_v45 = vld [vmem:[%s11007_s2 + $0x98] sm:$0xff] }
 0x58a   :  { %3372 = vmatpush1.msra.mxu0 %v9367_v47  ;;  %3443 = vmatpush1.msra.mxu1 %v9372_v6  ;;  %12266 = vst [vmem:[#allocation123_spill] sm:$0xff] %v9404_v43  ;;  %12267 = vst [vmem:[#allocation124_spill] sm:$0xff] %v9409_v45  ;;  %v9416_v47 = vld [vmem:[%s11007_s2 + $0x80] sm:$0xff]  ;;  %v9421_v6 = vld [vmem:[%s11007_s2 + $0x90] sm:$0xff] }
 0x58b   :  { %3373 = vmatprep.subr.mxu0 %v9380_v49  ;;  %3444 = vmatprep.subr.mxu1 %v9385_v61  ;;  %12268 = vst [vmem:[#allocation125_spill] sm:$0xff] %v9416_v47  ;;  %12269 = vst [vmem:[#allocation126_spill] sm:$0xff] %v9421_v6  ;;  %v9428_v49 = vld [vmem:[%s11007_s2 + $0x68] sm:$0xff]  ;;  %v9433_v61 = vld [vmem:[%s11007_s2 + $0x78] sm:$0xff] }
 0x58c   :  { %3374 = vmatpush1.msra.mxu0 %v9392_v3  ;;  %3445 = vmatpush1.msra.mxu1 %v9397_v17  ;;  %12270 = vst [vmem:[#allocation127_spill] sm:$0xff] %v9428_v49  ;;  %12271 = vst [vmem:[#allocation128_spill] sm:$0xff] %v9433_v61  ;;  %v9440_v3 = vld [vmem:[%s11007_s2 + $0x60] sm:$0xff]  ;;  %v9445_v17 = vld [vmem:[%s11007_s2 + $0x70] sm:$0xff]  ;;  %v5889_v8 = vpop.eup %5888 }
 0x58d   :  { %3375 = vmatprep.subr.mxu0 %v9404_v43  ;;  %3446 = vmatprep.subr.mxu1 %v9409_v45  ;;  %12272 = vst [vmem:[#allocation129_spill] sm:$0xff] %v9440_v3  ;;  %12273 = vst [vmem:[#allocation130_spill] sm:$0xff] %v9445_v17  ;;  %v9452_v43 = vld [vmem:[%s11007_s2 + $0x48] sm:$0xff]  ;;  %v9457_v45 = vld [vmem:[%s11007_s2 + $0x58] sm:$0xff] }
 0x58e   :  { %3376 = vmatpush1.msra.mxu0 %v9416_v47  ;;  %3447 = vmatpush1.msra.mxu1 %v9421_v6  ;;  %12274 = vst [vmem:[#allocation131_spill] sm:$0xff] %v9452_v43  ;;  %12275 = vst [vmem:[#allocation132_spill] sm:$0xff] %v9457_v45  ;;  %v9464_v47 = vld [vmem:[%s11007_s2 + $0x40] sm:$0xff]  ;;  %v9469_v6 = vld [vmem:[%s11007_s2 + $0x50] sm:$0xff] }
 0x58f   :  { %3377 = vmatprep.subr.mxu0 %v9428_v49  ;;  %3448 = vmatprep.subr.mxu1 %v9433_v61  ;;  %12276 = vst [vmem:[#allocation133_spill] sm:$0xff] %v9464_v47  ;;  %12277 = vst [vmem:[#allocation134_spill] sm:$0xff] %v9469_v6  ;;  %v9476_v49 = vld [vmem:[%s11007_s2 + $0x28] sm:$0xff]  ;;  %v9481_v61 = vld [vmem:[%s11007_s2 + $0x38] sm:$0xff] }
 0x590   :  { %3378 = vmatpush1.msra.mxu0 %v9440_v3  ;;  %3449 = vmatpush1.msra.mxu1 %v9445_v17  ;;  %12278 = vst [vmem:[#allocation135_spill] sm:$0xff] %v9481_v61  ;;  %v9488_v3 = vld [vmem:[%s11007_s2 + $0x20] sm:$0xff]  ;;  %v9493_v17 = vld [vmem:[%s11007_s2 + $0x30] sm:$0xff] }
 0x591   :  { %3379 = vmatprep.subr.mxu0 %v9452_v43  ;;  %3450 = vmatprep.subr.mxu1 %v9457_v45  ;;  %v9500_v43 = vld [vmem:[%s11007_s2 + $0x8] sm:$0xff]  ;;  %v9505_v45 = vld [vmem:[%s11007_s2 + $0x18] sm:$0xff] }
 0x592   :  { %3380 = vmatpush1.msra.mxu0 %v9464_v47  ;;  %3451 = vmatpush1.msra.mxu1 %v9469_v6  ;;  %v9512_v47 = vld [vmem:[%s11007_s2] sm:$0xff] }
 0x593   :  { %3381 = vmatprep.subr.mxu0 %v9476_v49  ;;  %3452 = vmatprep.subr.mxu1 %v9481_v61 }
 0x594   :  { %v5891_v6 = vpop.eup %5890  ;;  %3382 = vmatpush1.msra.mxu0 %v9488_v3  ;;  %3453 = vmatpush1.msra.mxu1 %v9493_v17 }
 0x595   :  { %3383 = vmatprep.subr.mxu0 %v9500_v43  ;;  %3454 = vmatprep.subr.mxu1 %v9505_v45  ;;  %v9523_v61 = vmul.f32 %v5891_v6, %v5889_v8  ;;  %v12314_v6 = vld [vmem:[#allocation36_spill] sm:$0xff]  ;;  %v12315_v8 = vld [vmem:[#allocation34_spill] sm:$0xff] }
 0x596   :  { %3384 = vmatpush1.msra.mxu0 %v9512_v47  ;;  %3417 = vmatprep.mubr.f32.mxu0 %v11737_v19 }
 0x597   :  { %3455 = vmatpush1.msra.mxu1 %v9519_v15  ;;  %3488 = vmatprep.mubr.f32.mxu1 %v11737_v19 }
 0x598   :  { %3418 = vmatmul.mubr.f32.vlgmr.msra.gmra.mxu0 %v9523_v61  ;;  %3489 = vmatmul.mubr.f32.vlgmr.msra.gmra.mxu1 %v9523_v61 }
 0x599   :  { %3611 = vmatprep.subr.mxu0 %v8528_v46  ;;  %3682 = vmatprep.subr.mxu1 %v8533_v22  ;;  %v12279_v46 = vld [vmem:[#allocation143_spill] sm:$0xff]  ;;  %v12280_v22 = vld [vmem:[#allocation144_spill] sm:$0xff] }
 0x59a   :  { %3612 = vmatpush1.msra.mxu0 %v8540_v33  ;;  %3683 = vmatpush1.msra.mxu1 %v8545_v38  ;;  %v12281_v33 = vld [vmem:[#allocation145_spill] sm:$0xff]  ;;  %v12282_v38 = vld [vmem:[#allocation146_spill] sm:$0xff] }
 0x59b   :  { %3613 = vmatprep.subr.mxu0 %v8552_v30  ;;  %3684 = vmatprep.subr.mxu1 %v8557_v39  ;;  %v12283_v30 = vld [vmem:[#allocation147_spill] sm:$0xff]  ;;  %v12284_v39 = vld [vmem:[#allocation148_spill] sm:$0xff] }
 0x59c   :  { %3614 = vmatpush1.msra.mxu0 %v8564_v41  ;;  %3685 = vmatpush1.msra.mxu1 %v8569_v57  ;;  %v12285_v41 = vld [vmem:[#allocation149_spill] sm:$0xff]  ;;  %v12286_v57 = vld [vmem:[#allocation12_spill] sm:$0xff] }
 0x59d   :  { %3615 = vmatprep.subr.mxu0 %v8576_v27  ;;  %3686 = vmatprep.subr.mxu1 %v8581_v28  ;;  %v12287_v27 = vld [vmem:[#allocation6_spill] sm:$0xff] }
 0x59e   :  { %3616 = vmatpush1.msra.mxu0 %v8588_v21  ;;  %3687 = vmatpush1.msra.mxu1 %v8593_v29  ;;  %v12288_v28 = vld [vmem:[#allocation14_spill] sm:$0xff]  ;;  %v12289_v21 = vld [vmem:[#allocation7_spill] sm:$0xff]  ;;  %v12290_v29 = vld [vmem:[#allocation16_spill] sm:$0xff] }
 0x59f   :  { %3617 = vmatprep.subr.mxu0 %v8600_v32  ;;  %3688 = vmatprep.subr.mxu1 %v8605_v20  ;;  %v12291_v32 = vld [vmem:[#allocation8_spill] sm:$0xff]  ;;  %v12292_v20 = vld [vmem:[#allocation17_spill] sm:$0xff] }
 0x5a0   :  { %3618 = vmatpush1.msra.mxu0 %v8612_v34  ;;  %3689 = vmatpush1.msra.mxu1 %v8617_v63  ;;  %v12293_v34 = vld [vmem:[#allocation9_spill] sm:$0xff]  ;;  %v12294_v63 = vld [vmem:[#allocation18_spill] sm:$0xff] }
 0x5a1   :  { %3619 = vmatprep.subr.mxu0 %v8624_v31  ;;  %3690 = vmatprep.subr.mxu1 %v8629_v36  ;;  %v12295_v31 = vld [vmem:[#allocation11_spill] sm:$0xff]  ;;  %v12296_v36 = vld [vmem:[#allocation20_spill] sm:$0xff] }
 0x5a2   :  { %3620 = vmatpush1.msra.mxu0 %v8636_v1  ;;  %3691 = vmatpush1.msra.mxu1 %v8641_v9  ;;  %v12297_v1 = vld [vmem:[#allocation13_spill] sm:$0xff]  ;;  %v12298_v9 = vld [vmem:[#allocation22_spill] sm:$0xff] }
 0x5a3   :  { %3621 = vmatprep.subr.mxu0 %v8648_v0  ;;  %3692 = vmatprep.subr.mxu1 %v8653_v62  ;;  %v12299_v0 = vld [vmem:[#allocation15_spill] sm:$0xff]  ;;  %v12300_v62 = vld [vmem:[#allocation24_spill] sm:$0xff] }
 0x5a4   :  { %3622 = vmatpush1.msra.mxu0 %v8660_v52  ;;  %3693 = vmatpush1.msra.mxu1 %v8665_v50  ;;  %v12301_v52 = vld [vmem:[#allocation19_spill] sm:$0xff]  ;;  %v12302_v50 = vld [vmem:[#allocation26_spill] sm:$0xff] }
 0x5a5   :  { %3623 = vmatprep.subr.mxu0 %v8672_v54  ;;  %3694 = vmatprep.subr.mxu1 %v8677_v58  ;;  %v12303_v54 = vld [vmem:[#allocation21_spill] sm:$0xff]  ;;  %v12304_v58 = vld [vmem:[#allocation27_spill] sm:$0xff] }
 0x5a6   :  { %3624 = vmatpush1.msra.mxu0 %v8684_v48  ;;  %3695 = vmatpush1.msra.mxu1 %v8689_v23  ;;  %v12305_v48 = vld [vmem:[#allocation23_spill] sm:$0xff]  ;;  %v12306_v23 = vld [vmem:[#allocation29_spill] sm:$0xff] }
 0x5a7   :  { %3625 = vmatprep.subr.mxu0 %v8696_v56  ;;  %3696 = vmatprep.subr.mxu1 %v8701_v42  ;;  %v12307_v56 = vld [vmem:[#allocation25_spill] sm:$0xff]  ;;  %v12308_v42 = vld [vmem:[#allocation31_spill] sm:$0xff] }
 0x5a8   :  { %3626 = vmatpush1.msra.mxu0 %v8708_v35  ;;  %3697 = vmatpush1.msra.mxu1 %v8713_v12  ;;  %v12309_v35 = vld [vmem:[#allocation28_spill] sm:$0xff]  ;;  %v12310_v12 = vld [vmem:[#allocation33_spill] sm:$0xff] }
 0x5a9   :  { %3627 = vmatprep.subr.mxu0 %v8720_v37  ;;  %3698 = vmatprep.subr.mxu1 %v8725_v59  ;;  %v12311_v37 = vld [vmem:[#allocation30_spill] sm:$0xff]  ;;  %v12312_v59 = vld [vmem:[#allocation35_spill] sm:$0xff] }
 0x5aa   :  { %3628 = vmatpush1.msra.mxu0 %v8732_v25  ;;  %3699 = vmatpush1.msra.mxu1 %v12279_v46  ;;  %v12313_v25 = vld [vmem:[#allocation32_spill] sm:$0xff]  ;;  %v12316_v46 = vld [vmem:[#allocation37_spill] sm:$0xff] }
 0x5ab   :  { %3629 = vmatprep.subr.mxu0 %v12280_v22  ;;  %3700 = vmatprep.subr.mxu1 %v12281_v33  ;;  %v12317_v22 = vld [vmem:[#allocation38_spill] sm:$0xff]  ;;  %v12319_v33 = vld [vmem:[#allocation40_spill] sm:$0xff] }
 0x5ac   :  { %3630 = vmatpush1.msra.mxu0 %v12282_v38  ;;  %3701 = vmatpush1.msra.mxu1 %v12283_v30  ;;  %v12320_v38 = vld [vmem:[#allocation41_spill] sm:$0xff]  ;;  %v12321_v30 = vld [vmem:[#allocation42_spill] sm:$0xff] }
 0x5ad   :  { %3631 = vmatprep.subr.mxu0 %v12284_v39  ;;  %3702 = vmatprep.subr.mxu1 %v12285_v41  ;;  %v12322_v39 = vld [vmem:[#allocation43_spill] sm:$0xff]  ;;  %v12323_v41 = vld [vmem:[#allocation44_spill] sm:$0xff] }
 0x5ae   :  { %3632 = vmatpush1.msra.mxu0 %v12286_v57  ;;  %3703 = vmatpush1.msra.mxu1 %v12287_v27  ;;  %v12324_v57 = vld [vmem:[#allocation45_spill] sm:$0xff]  ;;  %v12325_v27 = vld [vmem:[#allocation46_spill] sm:$0xff] }
 0x5af   :  { %3633 = vmatprep.subr.mxu0 %v12288_v28  ;;  %3704 = vmatprep.subr.mxu1 %v12289_v21  ;;  %v12326_v28 = vld [vmem:[#allocation47_spill] sm:$0xff]  ;;  %v12327_v21 = vld [vmem:[#allocation48_spill] sm:$0xff] }
 0x5b0   :  { %3634 = vmatpush1.msra.mxu0 %v12290_v29  ;;  %3705 = vmatpush1.msra.mxu1 %v12291_v32  ;;  %v12328_v29 = vld [vmem:[#allocation49_spill] sm:$0xff]  ;;  %v12329_v32 = vld [vmem:[#allocation50_spill] sm:$0xff] }
 0x5b1   :  { %3635 = vmatprep.subr.mxu0 %v12292_v20  ;;  %3706 = vmatprep.subr.mxu1 %v12293_v34  ;;  %v12330_v20 = vld [vmem:[#allocation51_spill] sm:$0xff]  ;;  %v12331_v34 = vld [vmem:[#allocation52_spill] sm:$0xff] }
 0x5b2   :  { %3636 = vmatpush1.msra.mxu0 %v12294_v63  ;;  %3707 = vmatpush1.msra.mxu1 %v12295_v31  ;;  %v12332_v63 = vld [vmem:[#allocation53_spill] sm:$0xff]  ;;  %v12333_v31 = vld [vmem:[#allocation54_spill] sm:$0xff] }
 0x5b3   :  { %3637 = vmatprep.subr.mxu0 %v12296_v36  ;;  %3708 = vmatprep.subr.mxu1 %v12297_v1  ;;  %v12334_v36 = vld [vmem:[#allocation55_spill] sm:$0xff]  ;;  %v12335_v1 = vld [vmem:[#allocation56_spill] sm:$0xff] }
 0x5b4   :  { %3638 = vmatpush1.msra.mxu0 %v12298_v9  ;;  %3709 = vmatpush1.msra.mxu1 %v12299_v0  ;;  %v12336_v9 = vld [vmem:[#allocation57_spill] sm:$0xff]  ;;  %v12337_v0 = vld [vmem:[#allocation58_spill] sm:$0xff] }
 0x5b5   :  { %3639 = vmatprep.subr.mxu0 %v12300_v62  ;;  %3710 = vmatprep.subr.mxu1 %v12301_v52  ;;  %v12338_v62 = vld [vmem:[#allocation59_spill] sm:$0xff]  ;;  %v12339_v52 = vld [vmem:[#allocation60_spill] sm:$0xff] }
 0x5b6   :  { %3640 = vmatpush1.msra.mxu0 %v12302_v50  ;;  %3711 = vmatpush1.msra.mxu1 %v12303_v54  ;;  %v12340_v50 = vld [vmem:[#allocation61_spill] sm:$0xff]  ;;  %v12341_v54 = vld [vmem:[#allocation62_spill] sm:$0xff] }
 0x5b7   :  { %3641 = vmatprep.subr.mxu0 %v12304_v58  ;;  %3712 = vmatprep.subr.mxu1 %v12305_v48  ;;  %v12342_v58 = vld [vmem:[#allocation63_spill] sm:$0xff]  ;;  %v12343_v48 = vld [vmem:[#allocation64_spill] sm:$0xff] }
 0x5b8   :  { %3642 = vmatpush1.msra.mxu0 %v12306_v23  ;;  %3675 = vmatprep.mubr.f32.mxu0 %v11737_v19  ;;  %v12344_v23 = vld [vmem:[#allocation65_spill] sm:$0xff] }
 0x5b9   :  { %3713 = vmatpush1.msra.mxu1 %v12307_v56  ;;  %3746 = vmatprep.mubr.f32.mxu1 %v11737_v19  ;;  %v12345_v56 = vld [vmem:[#allocation66_spill] sm:$0xff] }
 0x5ba   :  { %3676 = vmatmul.mubr.f32.vlgmr.msra.gmra.mxu0 %v9523_v61  ;;  %3747 = vmatmul.mubr.f32.vlgmr.msra.gmra.mxu1 %v9523_v61  ;;  %v12318_v61 = vld [vmem:[#allocation39_spill] sm:$0xff] }
 0x5bb   :  { %3817 = vmatprep.subr.mxu0 %v12308_v42  ;;  %3888 = vmatprep.subr.mxu1 %v12309_v35  ;;  %v12346_v42 = vld [vmem:[#allocation67_spill] sm:$0xff]  ;;  %v12347_v35 = vld [vmem:[#allocation68_spill] sm:$0xff] }
 0x5bc   :  { %3818 = vmatpush1.msra.mxu0 %v12310_v12  ;;  %3889 = vmatpush1.msra.mxu1 %v12311_v37  ;;  %v12348_v12 = vld [vmem:[#allocation69_spill] sm:$0xff]  ;;  %v12349_v37 = vld [vmem:[#allocation70_spill] sm:$0xff] }
 0x5bd   :  { %3819 = vmatprep.subr.mxu0 %v12312_v59  ;;  %3890 = vmatprep.subr.mxu1 %v12313_v25  ;;  %v12350_v59 = vld [vmem:[#allocation71_spill] sm:$0xff]  ;;  %v12351_v25 = vld [vmem:[#allocation72_spill] sm:$0xff] }
 0x5be   :  { %3820 = vmatpush1.msra.mxu0 %v12314_v6  ;;  %3891 = vmatpush1.msra.mxu1 %v12315_v8  ;;  %v12352_v6 = vld [vmem:[#allocation73_spill] sm:$0xff]  ;;  %v12353_v8 = vld [vmem:[#allocation74_spill] sm:$0xff] }
 0x5bf   :  { %3821 = vmatprep.subr.mxu0 %v12316_v46  ;;  %3892 = vmatprep.subr.mxu1 %v12317_v22  ;;  %v12354_v46 = vld [vmem:[#allocation75_spill] sm:$0xff]  ;;  %v12355_v22 = vld [vmem:[#allocation76_spill] sm:$0xff] }
 0x5c0   :  { %3822 = vmatpush1.msra.mxu0 %v12318_v61  ;;  %3893 = vmatpush1.msra.mxu1 %v12319_v33  ;;  %v12356_v61 = vld [vmem:[#allocation77_spill] sm:$0xff]  ;;  %v12357_v33 = vld [vmem:[#allocation78_spill] sm:$0xff] }
 0x5c1   :  { %3823 = vmatprep.subr.mxu0 %v12320_v38  ;;  %3894 = vmatprep.subr.mxu1 %v12321_v30  ;;  %v12358_v38 = vld [vmem:[#allocation79_spill] sm:$0xff]  ;;  %v12359_v30 = vld [vmem:[#allocation80_spill] sm:$0xff] }
 0x5c2   :  { %3824 = vmatpush1.msra.mxu0 %v12322_v39  ;;  %3895 = vmatpush1.msra.mxu1 %v12323_v41  ;;  %v12360_v39 = vld [vmem:[#allocation81_spill] sm:$0xff]  ;;  %v12361_v41 = vld [vmem:[#allocation82_spill] sm:$0xff] }
 0x5c3   :  { %3825 = vmatprep.subr.mxu0 %v12324_v57  ;;  %3896 = vmatprep.subr.mxu1 %v12325_v27  ;;  %v12362_v57 = vld [vmem:[#allocation83_spill] sm:$0xff]  ;;  %v12363_v27 = vld [vmem:[#allocation84_spill] sm:$0xff] }
 0x5c4   :  { %3826 = vmatpush1.msra.mxu0 %v12326_v28  ;;  %3897 = vmatpush1.msra.mxu1 %v12327_v21  ;;  %v12364_v28 = vld [vmem:[#allocation85_spill] sm:$0xff]  ;;  %v12365_v21 = vld [vmem:[#allocation86_spill] sm:$0xff] }
 0x5c5   :  { %3827 = vmatprep.subr.mxu0 %v12328_v29  ;;  %3898 = vmatprep.subr.mxu1 %v12329_v32  ;;  %v12366_v29 = vld [vmem:[#allocation87_spill] sm:$0xff]  ;;  %v12367_v32 = vld [vmem:[#allocation88_spill] sm:$0xff] }
 0x5c6   :  { %3828 = vmatpush1.msra.mxu0 %v12330_v20  ;;  %3899 = vmatpush1.msra.mxu1 %v12331_v34  ;;  %v12368_v20 = vld [vmem:[#allocation89_spill] sm:$0xff]  ;;  %v12369_v34 = vld [vmem:[#allocation90_spill] sm:$0xff] }
 0x5c7   :  { %3829 = vmatprep.subr.mxu0 %v12332_v63  ;;  %3900 = vmatprep.subr.mxu1 %v12333_v31  ;;  %v12370_v63 = vld [vmem:[#allocation91_spill] sm:$0xff]  ;;  %v12371_v31 = vld [vmem:[#allocation92_spill] sm:$0xff] }
 0x5c8   :  { %3830 = vmatpush1.msra.mxu0 %v12334_v36  ;;  %3901 = vmatpush1.msra.mxu1 %v12335_v1  ;;  %v12372_v36 = vld [vmem:[#allocation93_spill] sm:$0xff]  ;;  %v12373_v1 = vld [vmem:[#allocation94_spill] sm:$0xff] }
 0x5c9   :  { %3831 = vmatprep.subr.mxu0 %v12336_v9  ;;  %3902 = vmatprep.subr.mxu1 %v12337_v0  ;;  %v3495_v0 = vld [vmem:[%s11009_s4] sm:$0xf] }
 0x5ca   :  { %3832 = vmatpush1.msra.mxu0 %v12338_v62  ;;  %3903 = vmatpush1.msra.mxu1 %v12339_v52 }
 0x5cb   :  { %3833 = vmatprep.subr.mxu0 %v12340_v50  ;;  %3904 = vmatprep.subr.mxu1 %v12341_v54  ;;  %v12374_v50 = vld [vmem:[#allocation10_spill] sm:$0xff] }
 0x5cc   :  { %3834 = vmatpush1.msra.mxu0 %v12342_v58  ;;  %3905 = vmatpush1.msra.mxu1 %v12343_v48  ;;  %v3500_v54 = vrot.slane %v3495_v0, %v12374_v50 }
 0x5cd   :  { %3835 = vmatprep.subr.mxu0 %v12344_v23  ;;  %3906 = vmatprep.subr.mxu1 %v12345_v56  ;;  %v12375_v56 = vld [vmem:[#allocation5_spill] sm:$0xff] }
 0x5ce   :  { %3836 = vmatpush1.msra.mxu0 %v12346_v42  ;;  %3907 = vmatpush1.msra.mxu1 %v12347_v35  ;;  %v3504_v42 = vrot.slane %v3495_v0, %v12375_v56 }
 0x5cf   :  { %3837 = vmatprep.subr.mxu0 %v12348_v12  ;;  %3908 = vmatprep.subr.mxu1 %v12349_v37 }
 0x5d0   :  { %3838 = vmatpush1.msra.mxu0 %v12350_v59  ;;  %3909 = vmatpush1.msra.mxu1 %v12351_v25 }
 0x5d1   :  { %3839 = vmatprep.subr.mxu0 %v12352_v6  ;;  %3910 = vmatprep.subr.mxu1 %v12353_v8 }
 0x5d2   :  { %3840 = vmatpush1.msra.mxu0 %v12354_v46  ;;  %3911 = vmatpush1.msra.mxu1 %v12355_v22 }
 0x5d3   :  { %3841 = vmatprep.subr.mxu0 %v12356_v61  ;;  %3912 = vmatprep.subr.mxu1 %v12357_v33  ;;  %v3512_v61 = vrot.slane %v3495_v0, %v7197_v44 }
 0x5d4   :  { %3842 = vmatpush1.msra.mxu0 %v12358_v38  ;;  %3913 = vmatpush1.msra.mxu1 %v12359_v30  ;;  %v3508_v30 = vrot.slane %v3495_v0, %v7200_v51 }
 0x5d5   :  { %3843 = vmatprep.subr.mxu0 %v12360_v39  ;;  %3914 = vmatprep.subr.mxu1 %v12361_v41 }
 0x5d6   :  { %3844 = vmatpush1.msra.mxu0 %v12362_v57  ;;  %3915 = vmatpush1.msra.mxu1 %v12363_v27 }
 0x5d7   :  { %3845 = vmatprep.subr.mxu0 %v12364_v28  ;;  %3916 = vmatprep.subr.mxu1 %v12365_v21 }
 0x5d8   :  { %3846 = vmatpush1.msra.mxu0 %v12366_v29  ;;  %3917 = vmatpush1.msra.mxu1 %v12367_v32  ;;  %v5711_v29 = vld [vmem:[%s11005_s0 + $0xa0] sm:$0xff] }
 0x5d9   :  { %3847 = vmatprep.subr.mxu0 %v12368_v20  ;;  %3918 = vmatprep.subr.mxu1 %v12369_v34  ;;  %v5712_v20 = vld [vmem:[%s11005_s0 + $0xa8] sm:$0xff] }
 0x5da   :  { %3848 = vmatpush1.msra.mxu0 %v12370_v63  ;;  %3919 = vmatpush1.msra.mxu1 %v12371_v31 }
 0x5db   :  { %3881 = vmatprep.mubr.f32.mxu0 %v11737_v19  ;;  %3952 = vmatprep.mubr.f32.mxu1 %v11737_v19 }
 0x5dc   :  { %4056 = vmatprep.subr.mxu0 %v12372_v36  ;;  %4127 = vmatprep.subr.mxu1 %v12373_v1 }
 0x637   :  { %v3180_v9 = vpop.f32.mrf.mxu0  ;;  %v3251_v62 = vpop.f32.mrf.mxu1 }
 0x639   :  { %v3182_v52 = vpop.f32.mrf.mxu0  ;;  %v3253_v48 = vpop.f32.mrf.mxu1 }
 0x658   :  { %v3419_v58 = vpop.f32.mrf.mxu0  ;;  %v3490_v37 = vpop.f32.mrf.mxu1 }
 0x659   :  { %v3420_v23 = vadd.f32 %v3419_v58, %v3180_v9  ;;  %v3491_v38 = vadd.f32 %v3490_v37, %v3251_v62 }
 0x65a   :  { %v3421_v35 = vpop.f32.mrf.mxu0  ;;  %v3492_v46 = vpop.f32.mrf.mxu1 }
 0x65b   :  { %v3517_v12 = vadd.f32 %v3500_v54, %v3420_v23  ;;  %v3422_v59 = vadd.f32 %v3421_v35, %v3182_v52  ;;  %v3493_v22 = vadd.f32 %v3492_v46, %v3253_v48  ;;  %v3519_v57 = vadd.f32 %v3508_v30, %v3491_v38  ;;  %v12376_v30 = vld [vmem:[#allocation95_spill] sm:$0xff] }
 0x65d   :  { %v5707_v25 = vmul.f32 -1.442695, %v3517_v12  ;;  %v3518_v6 = vadd.f32 %v3504_v42, %v3422_v59  ;;  %v3520_v33 = vadd.f32 %v3512_v61, %v3493_v22  ;;  %v5714_v12 = vld [vmem:[%s11005_s0 + $0xb8] sm:$0xff]  ;;  %v5713_v59 = vld [vmem:[%s11005_s0 + $0xb0] sm:$0xff] }
 0x65f   :  { %5892 = vpow2.f32 %v5707_v25  ;;  %v5708_v8 = vmul.f32 -1.442695, %v3518_v6  ;;  %v5709_v39 = vmul.f32 -1.442695, %v3520_v33 }
 0x661   :  { %5894 = vpow2.f32 %v5708_v8 }
 0x662   :  { %5896 = vpow2.f32 %v5709_v39  ;;  %v12377_v39 = vld [vmem:[#allocation96_spill] sm:$0xff] }
 0x66c   :  { %v5893_v41 = vpop.eup %5892 }
 0x66d   :  { %v3524_v27 = vadd.f32 1.0, %v5893_v41  ;;  %v12383_v41 = vld [vmem:[#allocation102_spill] sm:$0xff] }
 0x66e   :  { %v5895_v28 = vpop.eup %5894 }
 0x66f   :  { %5898 = vrcp.f32 %v3524_v27  ;;  %v3530_v21 = vadd.f32 1.0, %v5895_v28  ;;  %v5897_v34 = vpop.eup %5896  ;;  %v12386_v27 = vld [vmem:[#allocation105_spill] sm:$0xff] }
 0x670   :  { %5900 = vtanh.f32 %v3519_v57  ;;  %v3537_v52 = vadd.f32 1.0, %v5897_v34  ;;  %v12385_v57 = vld [vmem:[#allocation104_spill] sm:$0xff]  ;;  %v12388_v34 = vld [vmem:[#allocation107_spill] sm:$0xff] }
 0x671   :  { %5902 = vrcp.f32 %v3530_v21 }
 0x67a   :  { %v3677_v32 = vpop.f32.mrf.mxu0  ;;  %v3748_v48 = vpop.f32.mrf.mxu1 }
 0x67b   :  { %v3964_v63 = vadd.f32 %v5711_v29, %v3677_v32  ;;  %v3966_v6 = vadd.f32 %v5713_v59, %v3748_v48  ;;  %v12387_v29 = vld [vmem:[#allocation106_spill] sm:$0xff]  ;;  %v12404_v48 = vld [vmem:[#allocation123_spill] sm:$0xff]  ;;  %v12409_v59 = vld [vmem:[#allocation128_spill] sm:$0xff] }
 0x67c   :  { %v5899_v31 = vpop.eup %5898  ;;  %v3679_v36 = vpop.f32.mrf.mxu0 }
 0x67d   :  { %v5901_v1 = vpop.eup %5900  ;;  %v5715_v9 = vmul.f32 -1.442695, %v3964_v63  ;;  %v3965_v0 = vadd.f32 %v5712_v20, %v3679_v36  ;;  %v3750_v35 = vpop.f32.mrf.mxu1  ;;  %v12391_v36 = vld [vmem:[#allocation110_spill] sm:$0xff] }
 0x67e   :  { %v5903_v62 = vpop.eup %5902  ;;  %v3541_v54 = vmul.f32 %v5901_v1, %v5899_v31  ;;  %v3967_v37 = vadd.f32 %v5714_v12, %v3750_v35  ;;  %v12389_v31 = vld [vmem:[#allocation108_spill] sm:$0xff]  ;;  %v12396_v1 = vld [vmem:[#allocation115_spill] sm:$0xff]  ;;  %v12406_v35 = vld [vmem:[#allocation125_spill] sm:$0xff] }
 0x67f   :  { %v3540_v58 = vmul.f32 %v5903_v62, %v9137_v60  ;;  %5904 = vpow2.f32 %v5715_v9  ;;  %v5716_v23 = vmul.f32 -1.442695, %v3965_v0  ;;  %v12398_v9 = vld [vmem:[#allocation117_spill] sm:$0xff]  ;;  %v12399_v0 = vld [vmem:[#allocation118_spill] sm:$0xff]  ;;  %v12400_v62 = vld [vmem:[#allocation119_spill] sm:$0xff] }
 0x680   :  { %v5717_v60 = vmul.f32 -1.442695, %v3967_v37  ;;  %v12407_v12 = vld [vmem:[#allocation126_spill] sm:$0xff]  ;;  %v12408_v37 = vld [vmem:[#allocation127_spill] sm:$0xff] }
 0x681   :  { %5906 = vpow2.f32 %v5716_v23  ;;  %v9681_v42 = vadd.f32 %v3541_v54, %v3540_v58  ;;  %v12402_v54 = vld [vmem:[#allocation121_spill] sm:$0xff]  ;;  %v12403_v58 = vld [vmem:[#allocation122_spill] sm:$0xff]  ;;  %v12405_v23 = vld [vmem:[#allocation124_spill] sm:$0xff] }
 0x682   :  { %5908 = vrcp.f32 %v3537_v52  ;;  %v12401_v52 = vld [vmem:[#allocation120_spill] sm:$0xff] }
 0x683   :  { %5910 = vtanh.f32 %v9681_v42 }
 0x684   :  { %5912 = vpow2.f32 %v5717_v60  ;;  %v12410_v60 = vld [vmem:[#allocation129_spill] sm:$0xff] }
 0x68c   :  { %v5905_v25 = vpop.eup %5904 }
 0x68d   :  { %v3971_v8 = vadd.f32 1.0, %v5905_v25  ;;  %v12411_v25 = vld [vmem:[#allocation130_spill] sm:$0xff] }
 0x68e   :  { %v5907_v46 = vpop.eup %5906 }
 0x68f   :  { %v5909_v22 = vpop.eup %5908  ;;  %5914 = vrcp.f32 %v3971_v8  ;;  %v3977_v61 = vadd.f32 1.0, %v5907_v46  ;;  %v12413_v8 = vld [vmem:[#allocation132_spill] sm:$0xff]  ;;  %v12414_v46 = vld [vmem:[#allocation133_spill] sm:$0xff] }
 0x690   :  { %v5911_v33 = vpop.eup %5910  ;;  %5916 = vtanh.f32 %v3966_v6  ;;  %v12412_v6 = vld [vmem:[#allocation131_spill] sm:$0xff] }
 0x691   :  { %5918 = vrcp.f32 %v3977_v61  ;;  %v3544_v38 = vmul.f32 %v5911_v33, %v5909_v22  ;;  %v12415_v22 = vld [vmem:[#allocation134_spill] sm:$0xff]  ;;  %v12416_v33 = vld [vmem:[#allocation135_spill] sm:$0xff] }
 0x693   :  { %5710 = vst [vmem:[%s11010_s5 + $0x20] sm:$0xff] %v3544_v38  ;;  %3882 = vmatmul.mubr.f32.vlgmr.msra.gmra.mxu0 %v3544_v38  ;;  %3953 = vmatmul.mubr.f32.vlgmr.msra.gmra.mxu1 %v3544_v38 }
 0x694   :  { %4057 = vmatpush1.msra.mxu0 %v9149_v10  ;;  %4128 = vmatpush1.msra.mxu1 %v9154_v5  ;;  %v12378_v10 = vld [vmem:[#allocation97_spill] sm:$0xff]  ;;  %v12379_v5 = vld [vmem:[#allocation98_spill] sm:$0xff] }
 0x695   :  { %4058 = vmatprep.subr.mxu0 %v9159_v53  ;;  %4129 = vmatprep.subr.mxu1 %v9164_v14  ;;  %v12380_v53 = vld [vmem:[#allocation99_spill] sm:$0xff]  ;;  %v5913_v14 = vpop.eup %5912 }
 0x696   :  { %4059 = vmatpush1.msra.mxu0 %v9172_v16  ;;  %4130 = vmatpush1.msra.mxu1 %v9177_v2  ;;  %v12381_v16 = vld [vmem:[#allocation100_spill] sm:$0xff]  ;;  %v12382_v2 = vld [vmem:[#allocation101_spill] sm:$0xff]  ;;  %v3984_v21 = vadd.f32 1.0, %v5913_v14  ;;  %v9829_v14 = vld [vmem:[%s11006_s1 + $0x1b0] sm:$0xff] }
 0x697   :  { %4060 = vmatprep.subr.mxu0 %v9184_v40  ;;  %4131 = vmatprep.subr.mxu1 %v9189_v11  ;;  %v12384_v11 = vld [vmem:[#allocation103_spill] sm:$0xff] }
 0x698   :  { %4061 = vmatpush1.msra.mxu0 %v9196_v24  ;;  %4132 = vmatpush1.msra.mxu1 %v12376_v30  ;;  %5920 = vrcp.f32 %v3984_v21  ;;  %v9889_v21 = vld [vmem:[%s11006_s1 + $0x158] sm:$0xff] }
 0x699   :  { %4062 = vmatprep.subr.mxu0 %v12377_v39  ;;  %4133 = vmatprep.subr.mxu1 %v12378_v10  ;;  %v9805_v39 = vld [vmem:[%s11006_s1 + $0x1d0] sm:$0xff]  ;;  %v9812_v10 = vld [vmem:[%s11006_s1 + $0x1a8] sm:$0xff] }
 0x69a   :  { %4063 = vmatpush1.msra.mxu0 %v12379_v5  ;;  %4134 = vmatpush1.msra.mxu1 %v12380_v53  ;;  %v9817_v5 = vld [vmem:[%s11006_s1 + $0x1b8] sm:$0xff]  ;;  %v9824_v53 = vld [vmem:[%s11006_s1 + $0x1a0] sm:$0xff] }
 0x69b   :  { %4064 = vmatprep.subr.mxu0 %v12381_v16  ;;  %4135 = vmatprep.subr.mxu1 %v12382_v2  ;;  %v9836_v16 = vld [vmem:[%s11006_s1 + $0x188] sm:$0xff]  ;;  %v9841_v2 = vld [vmem:[%s11006_s1 + $0x198] sm:$0xff] }
 0x69c   :  { %v5915_v40 = vpop.eup %5914  ;;  %4065 = vmatpush1.msra.mxu0 %v12383_v41  ;;  %4136 = vmatpush1.msra.mxu1 %v12384_v11  ;;  %v9853_v41 = vld [vmem:[%s11006_s1 + $0x190] sm:$0xff]  ;;  %v9860_v11 = vld [vmem:[%s11006_s1 + $0x168] sm:$0xff] }
 0x69d   :  { %v5917_v24 = vpop.eup %5916  ;;  %4066 = vmatprep.subr.mxu0 %v12385_v57  ;;  %4137 = vmatprep.subr.mxu1 %v12386_v27  ;;  %v9872_v57 = vld [vmem:[%s11006_s1 + $0x160] sm:$0xff]  ;;  %v9877_v27 = vld [vmem:[%s11006_s1 + $0x170] sm:$0xff] }
 0x69e   :  { %v5919_v28 = vpop.eup %5918  ;;  %4067 = vmatpush1.msra.mxu0 %v9268_v4  ;;  %4138 = vmatpush1.msra.mxu1 %v12387_v29  ;;  %v3988_v32 = vmul.f32 %v5917_v24, %v5915_v40  ;;  %v12390_v4 = vld [vmem:[#allocation109_spill] sm:$0xff]  ;;  %v9865_v24 = vld [vmem:[%s11006_s1 + $0x178] sm:$0xff] }
 0x69f   :  { %v3987_v20 = vmul.f32 %v5919_v28, %v9336_v55  ;;  %4068 = vmatprep.subr.mxu0 %v9280_v18  ;;  %4139 = vmatprep.subr.mxu1 %v9285_v13  ;;  %v12392_v55 = vld [vmem:[#allocation111_spill] sm:$0xff]  ;;  %v12393_v18 = vld [vmem:[#allocation112_spill] sm:$0xff]  ;;  %v12394_v13 = vld [vmem:[#allocation113_spill] sm:$0xff] }
 0x6a0   :  { %4069 = vmatpush1.msra.mxu0 %v9292_v26  ;;  %4140 = vmatpush1.msra.mxu1 %v12388_v34  ;;  %v12395_v26 = vld [vmem:[#allocation114_spill] sm:$0xff]  ;;  %v9848_v40 = vld [vmem:[%s11006_s1 + $0x180] sm:$0xff]  ;;  %v9913_v34 = vld [vmem:[%s11006_s1 + $0x138] sm:$0xff] }
 0x6a1   :  { %v9720_v63 = vadd.f32 %v3988_v32, %v3987_v20  ;;  %4070 = vmatprep.subr.mxu0 %v9304_v7  ;;  %4141 = vmatprep.subr.mxu1 %v12389_v31  ;;  %v12397_v7 = vld [vmem:[#allocation116_spill] sm:$0xff]  ;;  %v9884_v28 = vld [vmem:[%s11006_s1 + $0x148] sm:$0xff]  ;;  %v9896_v29 = vld [vmem:[%s11006_s1 + $0x140] sm:$0xff] }
 0x6a2   :  { %4071 = vmatpush1.msra.mxu0 %v12390_v4  ;;  %4142 = vmatpush1.msra.mxu1 %v12391_v36  ;;  %v9901_v32 = vld [vmem:[%s11006_s1 + $0x150] sm:$0xff]  ;;  %v9908_v20 = vld [vmem:[%s11006_s1 + $0x128] sm:$0xff]  ;;  %v9920_v31 = vld [vmem:[%s11006_s1 + $0x120] sm:$0xff] }
 0x6a3   :  { %4072 = vmatprep.subr.mxu0 %v12392_v55  ;;  %4143 = vmatprep.subr.mxu1 %v12393_v18  ;;  %5922 = vtanh.f32 %v9720_v63  ;;  %v9925_v4 = vld [vmem:[%s11006_s1 + $0x130] sm:$0xff]  ;;  %v9932_v36 = vld [vmem:[%s11006_s1 + $0x108] sm:$0xff]  ;;  %v9937_v55 = vld [vmem:[%s11006_s1 + $0x118] sm:$0xff] }
 0x6a4   :  { %4073 = vmatpush1.msra.mxu0 %v12394_v13  ;;  %4144 = vmatpush1.msra.mxu1 %v12395_v26  ;;  %v9944_v18 = vld [vmem:[%s11006_s1 + $0x100] sm:$0xff]  ;;  %v9949_v13 = vld [vmem:[%s11006_s1 + $0x110] sm:$0xff]  ;;  %v9956_v26 = vld [vmem:[%s11006_s1 + $0xe8] sm:$0xff] }
 0x6a5   :  { %4074 = vmatprep.subr.mxu0 %v12396_v1  ;;  %4145 = vmatprep.subr.mxu1 %v12397_v7  ;;  %v5921_v61 = vpop.eup %5920  ;;  %v9961_v1 = vld [vmem:[%s11006_s1 + $0xf8] sm:$0xff]  ;;  %v9968_v7 = vld [vmem:[%s11006_s1 + $0xe0] sm:$0xff] }
 0x6a6   :  { %4075 = vmatpush1.msra.mxu0 %v12398_v9  ;;  %4146 = vmatpush1.msra.mxu1 %v12399_v0  ;;  %v9973_v9 = vld [vmem:[%s11006_s1 + $0xf0] sm:$0xff]  ;;  %v9980_v0 = vld [vmem:[%s11006_s1 + $0xc8] sm:$0xff] }
 0x6a7   :  { %4076 = vmatprep.subr.mxu0 %v12400_v62  ;;  %4147 = vmatprep.subr.mxu1 %v12401_v52  ;;  %12417 = vst [vmem:[#allocation136_spill] sm:$0xff] %v9973_v9  ;;  %12418 = vst [vmem:[#allocation137_spill] sm:$0xff] %v9980_v0  ;;  %v9985_v62 = vld [vmem:[%s11006_s1 + $0xd8] sm:$0xff]  ;;  %v9992_v52 = vld [vmem:[%s11006_s1 + $0xc0] sm:$0xff] }
 0x6a8   :  { %4077 = vmatpush1.msra.mxu0 %v12402_v54  ;;  %4148 = vmatpush1.msra.mxu1 %v12403_v58  ;;  %12419 = vst [vmem:[#allocation138_spill] sm:$0xff] %v9985_v62  ;;  %12420 = vst [vmem:[#allocation139_spill] sm:$0xff] %v9992_v52  ;;  %v9997_v54 = vld [vmem:[%s11006_s1 + $0xd0] sm:$0xff]  ;;  %v10004_v58 = vld [vmem:[%s11006_s1 + $0xa8] sm:$0xff] }
 0x6a9   :  { %4078 = vmatprep.subr.mxu0 %v12404_v48  ;;  %4149 = vmatprep.subr.mxu1 %v12405_v23  ;;  %12421 = vst [vmem:[#allocation140_spill] sm:$0xff] %v9997_v54  ;;  %12422 = vst [vmem:[#allocation141_spill] sm:$0xff] %v10004_v58  ;;  %v10009_v48 = vld [vmem:[%s11006_s1 + $0xb8] sm:$0xff]  ;;  %v10016_v23 = vld [vmem:[%s11006_s1 + $0xa0] sm:$0xff] }
 0x6aa   :  { %4079 = vmatpush1.msra.mxu0 %v12406_v35  ;;  %4150 = vmatpush1.msra.mxu1 %v12407_v12  ;;  %12423 = vst [vmem:[#allocation142_spill] sm:$0xff] %v10009_v48  ;;  %12424 = vst [vmem:[#allocation143_spill] sm:$0xff] %v10016_v23  ;;  %v10021_v35 = vld [vmem:[%s11006_s1 + $0xb0] sm:$0xff]  ;;  %v10028_v12 = vld [vmem:[%s11006_s1 + $0x88] sm:$0xff] }
 0x6ab   :  { %4080 = vmatprep.subr.mxu0 %v12408_v37  ;;  %4151 = vmatprep.subr.mxu1 %v12409_v59  ;;  %12425 = vst [vmem:[#allocation144_spill] sm:$0xff] %v10021_v35  ;;  %12426 = vst [vmem:[#allocation145_spill] sm:$0xff] %v10028_v12  ;;  %v10033_v37 = vld [vmem:[%s11006_s1 + $0x98] sm:$0xff]  ;;  %v10040_v59 = vld [vmem:[%s11006_s1 + $0x80] sm:$0xff] }
 0x6ac   :  { %4081 = vmatpush1.msra.mxu0 %v12410_v60  ;;  %4152 = vmatpush1.msra.mxu1 %v12411_v25  ;;  %12427 = vst [vmem:[#allocation146_spill] sm:$0xff] %v10033_v37  ;;  %12428 = vst [vmem:[#allocation147_spill] sm:$0xff] %v10040_v59  ;;  %v10045_v60 = vld [vmem:[%s11006_s1 + $0x90] sm:$0xff]  ;;  %v10052_v25 = vld [vmem:[%s11006_s1 + $0x68] sm:$0xff] }
 0x6ad   :  { %4082 = vmatprep.subr.mxu0 %v12412_v6  ;;  %4153 = vmatprep.subr.mxu1 %v12413_v8  ;;  %12429 = vst [vmem:[#allocation148_spill] sm:$0xff] %v10045_v60  ;;  %12430 = vst [vmem:[#allocation149_spill] sm:$0xff] %v10052_v25  ;;  %v10057_v6 = vld [vmem:[%s11006_s1 + $0x78] sm:$0xff]  ;;  %v10064_v8 = vld [vmem:[%s11006_s1 + $0x60] sm:$0xff] }
 0x6ae   :  { %4083 = vmatpush1.msra.mxu0 %v12414_v46  ;;  %4154 = vmatpush1.msra.mxu1 %v12415_v22  ;;  %12431 = vst [vmem:[#allocation12_spill] sm:$0xff] %v10057_v6  ;;  %12432 = vst [vmem:[#allocation6_spill] sm:$0xff] %v10064_v8  ;;  %v10069_v46 = vld [vmem:[%s11006_s1 + $0x70] sm:$0xff]  ;;  %v10076_v22 = vld [vmem:[%s11006_s1 + $0x48] sm:$0xff] }
 0x6af   :  { %4084 = vmatprep.subr.mxu0 %v9476_v49  ;;  %4155 = vmatprep.subr.mxu1 %v12416_v33  ;;  %v9764_v49 = vld [vmem:[%s11006_s1 + $0x1e8] sm:$0xff]  ;;  %12433 = vst [vmem:[#allocation14_spill] sm:$0xff] %v10069_v46  ;;  %12434 = vst [vmem:[#allocation7_spill] sm:$0xff] %v10076_v22  ;;  %v10088_v33 = vld [vmem:[%s11006_s1 + $0x40] sm:$0xff] }
 0x6b0   :  { %v5923_v38 = vpop.eup %5922  ;;  %4085 = vmatpush1.msra.mxu0 %v9488_v3  ;;  %4156 = vmatpush1.msra.mxu1 %v9493_v17  ;;  %v9769_v3 = vld [vmem:[%s11006_s1 + $0x1f8] sm:$0xff]  ;;  %v9776_v17 = vld [vmem:[%s11006_s1 + $0x1e0] sm:$0xff]  ;;  %12436 = vst [vmem:[#allocation8_spill] sm:$0xff] %v10088_v33 }
 0x6b1   :  { %4086 = vmatprep.subr.mxu0 %v9500_v43  ;;  %4157 = vmatprep.subr.mxu1 %v9505_v45  ;;  %v9757_v30 = vmul.f32 %v5923_v38, %v5921_v61  ;;  %v9781_v43 = vld [vmem:[%s11006_s1 + $0x1f0] sm:$0xff]  ;;  %v9793_v45 = vld [vmem:[%s11006_s1 + $0x1d8] sm:$0xff] }
 0x6b2   :  { %4087 = vmatpush1.msra.mxu0 %v9512_v47  ;;  %4120 = vmatprep.mubr.f32.mxu0 %v11737_v19  ;;  %v9800_v47 = vld [vmem:[%s11006_s1 + $0x1c0] sm:$0xff]  ;;  %v10081_v61 = vld [vmem:[%s11006_s1 + $0x58] sm:$0xff]  ;;  %v10093_v38 = vld [vmem:[%s11006_s1 + $0x50] sm:$0xff] }
 0x6b3   :  { %4158 = vmatpush1.msra.mxu1 %v9519_v15  ;;  %4191 = vmatprep.mubr.f32.mxu1 %v11737_v19  ;;  %v9788_v15 = vld [vmem:[%s11006_s1 + $0x1c8] sm:$0xff]  ;;  %12435 = vst [vmem:[#allocation16_spill] sm:$0xff] %v10081_v61  ;;  %12437 = vst [vmem:[#allocation17_spill] sm:$0xff] %v10093_v38 }
 0x6b4   :  { %4121 = vmatmul.mubr.f32.vlgmr.msra.gmra.mxu0 %v9757_v30  ;;  %4192 = vmatmul.mubr.f32.vlgmr.msra.gmra.mxu1 %v9757_v30 }
 0x6b5   :  { %4314 = vmatprep.subr.mxu0 %v9764_v49  ;;  %4385 = vmatprep.subr.mxu1 %v9769_v3 }
 0x6b6   :  { %4315 = vmatpush1.msra.mxu0 %v9776_v17  ;;  %4386 = vmatpush1.msra.mxu1 %v9781_v43 }
 0x6b7   :  { %4316 = vmatprep.subr.mxu0 %v9788_v15  ;;  %4387 = vmatprep.subr.mxu1 %v9793_v45 }
 0x6b8   :  { %4317 = vmatpush1.msra.mxu0 %v9800_v47  ;;  %4388 = vmatpush1.msra.mxu1 %v9805_v39 }
 0x6b9   :  { %4318 = vmatprep.subr.mxu0 %v9812_v10  ;;  %4389 = vmatprep.subr.mxu1 %v9817_v5 }
 0x6ba   :  { %4319 = vmatpush1.msra.mxu0 %v9824_v53  ;;  %4390 = vmatpush1.msra.mxu1 %v9829_v14 }
 0x6bb   :  { %4320 = vmatprep.subr.mxu0 %v9836_v16  ;;  %4391 = vmatprep.subr.mxu1 %v9841_v2 }
 0x6bc   :  { %4321 = vmatpush1.msra.mxu0 %v9848_v40  ;;  %4392 = vmatpush1.msra.mxu1 %v9853_v41 }
 0x6bd   :  { %4322 = vmatprep.subr.mxu0 %v9860_v11  ;;  %4393 = vmatprep.subr.mxu1 %v9865_v24 }
 0x6be   :  { %4323 = vmatpush1.msra.mxu0 %v9872_v57  ;;  %4394 = vmatpush1.msra.mxu1 %v9877_v27 }
 0x6bf   :  { %4324 = vmatprep.subr.mxu0 %v9884_v28  ;;  %4395 = vmatprep.subr.mxu1 %v9889_v21 }
 0x6c0   :  { %4325 = vmatpush1.msra.mxu0 %v9896_v29  ;;  %4396 = vmatpush1.msra.mxu1 %v9901_v32 }
 0x6c1   :  { %4326 = vmatprep.subr.mxu0 %v9908_v20  ;;  %4397 = vmatprep.subr.mxu1 %v9913_v34 }
 0x6c2   :  { %4327 = vmatpush1.msra.mxu0 %v9920_v31  ;;  %4398 = vmatpush1.msra.mxu1 %v9925_v4 }
 0x6c3   :  { %4328 = vmatprep.subr.mxu0 %v9932_v36  ;;  %4399 = vmatprep.subr.mxu1 %v9937_v55 }
 0x6c4   :  { %4329 = vmatpush1.msra.mxu0 %v9944_v18  ;;  %4400 = vmatpush1.msra.mxu1 %v9949_v13 }
 0x6c5   :  { %4330 = vmatprep.subr.mxu0 %v9956_v26  ;;  %4401 = vmatprep.subr.mxu1 %v9961_v1 }
 0x6c6   :  { %4331 = vmatpush1.msra.mxu0 %v9968_v7  ;;  %4402 = vmatpush1.msra.mxu1 %v9973_v9 }
 0x6c7   :  { %4332 = vmatprep.subr.mxu0 %v9980_v0  ;;  %4403 = vmatprep.subr.mxu1 %v9985_v62 }
 0x6c8   :  { %4333 = vmatpush1.msra.mxu0 %v9992_v52  ;;  %4404 = vmatpush1.msra.mxu1 %v9997_v54 }
 0x6c9   :  { %4334 = vmatprep.subr.mxu0 %v10004_v58  ;;  %4405 = vmatprep.subr.mxu1 %v10009_v48 }
 0x6ca   :  { %4335 = vmatpush1.msra.mxu0 %v10016_v23  ;;  %4406 = vmatpush1.msra.mxu1 %v10021_v35 }
 0x6cb   :  { %4336 = vmatprep.subr.mxu0 %v10028_v12  ;;  %4407 = vmatprep.subr.mxu1 %v10033_v37 }
 0x6cc   :  { %4337 = vmatpush1.msra.mxu0 %v10040_v59  ;;  %4408 = vmatpush1.msra.mxu1 %v10045_v60 }
 0x6cd   :  { %4338 = vmatprep.subr.mxu0 %v10052_v25  ;;  %4409 = vmatprep.subr.mxu1 %v10057_v6  ;;  %v10100_v25 = vld [vmem:[%s11006_s1 + $0x28] sm:$0xff]  ;;  %v10105_v6 = vld [vmem:[%s11006_s1 + $0x38] sm:$0xff] }
 0x6ce   :  { %4339 = vmatpush1.msra.mxu0 %v10064_v8  ;;  %4410 = vmatpush1.msra.mxu1 %v10069_v46  ;;  %12438 = vst [vmem:[#allocation9_spill] sm:$0xff] %v10100_v25  ;;  %12439 = vst [vmem:[#allocation18_spill] sm:$0xff] %v10105_v6  ;;  %v10112_v8 = vld [vmem:[%s11006_s1 + $0x20] sm:$0xff]  ;;  %v10117_v46 = vld [vmem:[%s11006_s1 + $0x30] sm:$0xff] }
 0x6cf   :  { %4340 = vmatprep.subr.mxu0 %v10076_v22  ;;  %4411 = vmatprep.subr.mxu1 %v10081_v61  ;;  %12440 = vst [vmem:[#allocation11_spill] sm:$0xff] %v10112_v8  ;;  %12441 = vst [vmem:[#allocation20_spill] sm:$0xff] %v10117_v46  ;;  %v10124_v22 = vld [vmem:[%s11006_s1 + $0x8] sm:$0xff]  ;;  %v10129_v61 = vld [vmem:[%s11006_s1 + $0x18] sm:$0xff] }
 0x6d0   :  { %4341 = vmatpush1.msra.mxu0 %v10088_v33  ;;  %4412 = vmatpush1.msra.mxu1 %v10093_v38  ;;  %12442 = vst [vmem:[#allocation13_spill] sm:$0xff] %v10124_v22  ;;  %12443 = vst [vmem:[#allocation22_spill] sm:$0xff] %v10129_v61  ;;  %v10136_v33 = vld [vmem:[%s11006_s1] sm:$0xff]  ;;  %v10143_v38 = vld [vmem:[%s11006_s1 + $0x10] sm:$0xff] }
 0x6d1   :  { %4342 = vmatprep.subr.mxu0 %v10100_v25  ;;  %4413 = vmatprep.subr.mxu1 %v10105_v6  ;;  %12444 = vst [vmem:[#allocation15_spill] sm:$0xff] %v10136_v33  ;;  %12445 = vst [vmem:[#allocation24_spill] sm:$0xff] %v10143_v38  ;;  %v10210_v6 = vld [vmem:[#allocation2 + $0x170] sm:$0xff] }
 0x6d2   :  { %4343 = vmatpush1.msra.mxu0 %v10112_v8  ;;  %4414 = vmatpush1.msra.mxu1 %v10117_v46  ;;  %v10155_v46 = vld [vmem:[#allocation2 + $0x1e8] sm:$0xff]  ;;  %v10173_v8 = vld [vmem:[#allocation2 + $0x1c0] sm:$0xff]  ;;  %12465 = vst [vmem:[#allocation41_spill] sm:$0xff] %v10210_v6 }
 0x6d3   :  { %4344 = vmatprep.subr.mxu0 %v10124_v22  ;;  %4415 = vmatprep.subr.mxu1 %v10129_v61  ;;  %12446 = vst [vmem:[#allocation19_spill] sm:$0xff] %v10155_v46  ;;  %v10157_v22 = vld [vmem:[#allocation2 + $0x1f8] sm:$0xff]  ;;  %12452 = vst [vmem:[#allocation25_spill] sm:$0xff] %v10173_v8 }
 0x6d4   :  { %4345 = vmatpush1.msra.mxu0 %v10136_v33  ;;  %4378 = vmatprep.mubr.f32.mxu0 %v11737_v19  ;;  %12447 = vst [vmem:[#allocation26_spill] sm:$0xff] %v10157_v22  ;;  %v10161_v33 = vld [vmem:[#allocation2 + $0x1e0] sm:$0xff]  ;;  %v10169_v61 = vld [vmem:[#allocation2 + $0x1d8] sm:$0xff] }
 0x6d5   :  { %4416 = vmatpush1.msra.mxu1 %v10143_v38  ;;  %4449 = vmatprep.mubr.f32.mxu1 %v11737_v19  ;;  %12448 = vst [vmem:[#allocation21_spill] sm:$0xff] %v10161_v33  ;;  %v10163_v38 = vld [vmem:[#allocation2 + $0x1f0] sm:$0xff]  ;;  %12451 = vst [vmem:[#allocation29_spill] sm:$0xff] %v10169_v61 }
 0x6d6   :  { %4379 = vmatmul.mubr.f32.vlgmr.msra.gmra.mxu0 %v9757_v30  ;;  %4450 = vmatmul.mubr.f32.vlgmr.msra.gmra.mxu1 %v9757_v30  ;;  %12449 = vst [vmem:[#allocation27_spill] sm:$0xff] %v10163_v38  ;;  %v10167_v30 = vld [vmem:[#allocation2 + $0x1c8] sm:$0xff] }
 0x6d7   :  { %4584 = vmatprep.mubr.f32.mxu0 %v11737_v19  ;;  %4655 = vmatprep.mubr.f32.mxu1 %v11737_v19  ;;  %12450 = vst [vmem:[#allocation23_spill] sm:$0xff] %v10167_v30 }
 0x6d8   :  { %4520 = vmatprep.subr.mxu0 %v10155_v46  ;;  %4591 = vmatprep.subr.mxu1 %v10157_v22  ;;  %v10175_v46 = vld [vmem:[#allocation2 + $0x1d0] sm:$0xff]  ;;  %v10179_v22 = vld [vmem:[#allocation2 + $0x1a8] sm:$0xff] }
 0x6d9   :  { %4521 = vmatpush1.msra.mxu0 %v10161_v33  ;;  %4592 = vmatpush1.msra.mxu1 %v10163_v38  ;;  %12453 = vst [vmem:[#allocation31_spill] sm:$0xff] %v10175_v46  ;;  %12454 = vst [vmem:[#allocation28_spill] sm:$0xff] %v10179_v22  ;;  %v10181_v33 = vld [vmem:[#allocation2 + $0x1b8] sm:$0xff]  ;;  %v10185_v38 = vld [vmem:[#allocation2 + $0x1a0] sm:$0xff] }
 0x6da   :  { %4522 = vmatprep.subr.mxu0 %v10167_v30  ;;  %4593 = vmatprep.subr.mxu1 %v10169_v61  ;;  %12455 = vst [vmem:[#allocation33_spill] sm:$0xff] %v10181_v33  ;;  %12456 = vst [vmem:[#allocation30_spill] sm:$0xff] %v10185_v38  ;;  %v10187_v30 = vld [vmem:[#allocation2 + $0x1b0] sm:$0xff]  ;;  %v10191_v61 = vld [vmem:[#allocation2 + $0x188] sm:$0xff] }
 0x6db   :  { %4523 = vmatpush1.msra.mxu0 %v10173_v8  ;;  %4594 = vmatpush1.msra.mxu1 %v10175_v46  ;;  %12457 = vst [vmem:[#allocation35_spill] sm:$0xff] %v10187_v30  ;;  %12458 = vst [vmem:[#allocation32_spill] sm:$0xff] %v10191_v61  ;;  %v10193_v8 = vld [vmem:[#allocation2 + $0x198] sm:$0xff]  ;;  %v10197_v46 = vld [vmem:[#allocation2 + $0x180] sm:$0xff] }
 0x6dc   :  { %4524 = vmatprep.subr.mxu0 %v10179_v22  ;;  %4595 = vmatprep.subr.mxu1 %v10181_v33  ;;  %12459 = vst [vmem:[#allocation36_spill] sm:$0xff] %v10193_v8  ;;  %12460 = vst [vmem:[#allocation34_spill] sm:$0xff] %v10197_v46  ;;  %v10200_v33 = vld [vmem:[#allocation2 + $0x190] sm:$0xff]  ;;  %v10203_v22 = vld [vmem:[#allocation2 + $0x168] sm:$0xff] }
 0x6dd   :  { %4525 = vmatpush1.msra.mxu0 %v10185_v38  ;;  %4596 = vmatpush1.msra.mxu1 %v10187_v30  ;;  %12461 = vst [vmem:[#allocation37_spill] sm:$0xff] %v10200_v33  ;;  %12462 = vst [vmem:[#allocation38_spill] sm:$0xff] %v10203_v22  ;;  %v10206_v30 = vld [vmem:[#allocation2 + $0x178] sm:$0xff]  ;;  %v10208_v38 = vld [vmem:[#allocation2 + $0x160] sm:$0xff] }
 0x6de   :  { %4526 = vmatprep.subr.mxu0 %v10191_v61  ;;  %4597 = vmatprep.subr.mxu1 %v10193_v8  ;;  %12463 = vst [vmem:[#allocation39_spill] sm:$0xff] %v10206_v30  ;;  %12464 = vst [vmem:[#allocation40_spill] sm:$0xff] %v10208_v38  ;;  %v10214_v8 = vld [vmem:[#allocation2 + $0x148] sm:$0xff] }
 0x6df   :  { %4527 = vmatpush1.msra.mxu0 %v10197_v46  ;;  %4598 = vmatpush1.msra.mxu1 %v10200_v33  ;;  %12466 = vst [vmem:[#allocation42_spill] sm:$0xff] %v10214_v8  ;;  %v10216_v46 = vld [vmem:[#allocation2 + $0x158] sm:$0xff]  ;;  %v10220_v33 = vld [vmem:[#allocation2 + $0x140] sm:$0xff]  ;;  %v10226_v61 = vld [vmem:[#allocation2 + $0x128] sm:$0xff] }
 0x6e0   :  { %4528 = vmatprep.subr.mxu0 %v10203_v22  ;;  %4599 = vmatprep.subr.mxu1 %v10206_v30  ;;  %12467 = vst [vmem:[#allocation43_spill] sm:$0xff] %v10216_v46  ;;  %12468 = vst [vmem:[#allocation44_spill] sm:$0xff] %v10220_v33  ;;  %v10222_v22 = vld [vmem:[#allocation2 + $0x150] sm:$0xff]  ;;  %v10228_v30 = vld [vmem:[#allocation2 + $0x138] sm:$0xff] }
 0x6e1   :  { %4529 = vmatpush1.msra.mxu0 %v10208_v38  ;;  %4600 = vmatpush1.msra.mxu1 %v10210_v6  ;;  %12469 = vst [vmem:[#allocation45_spill] sm:$0xff] %v10222_v22  ;;  %12470 = vst [vmem:[#allocation46_spill] sm:$0xff] %v10226_v61  ;;  %v10232_v38 = vld [vmem:[#allocation2 + $0x120] sm:$0xff]  ;;  %v10234_v6 = vld [vmem:[#allocation2 + $0x130] sm:$0xff] }
 0x6e2   :  { %4530 = vmatprep.subr.mxu0 %v10214_v8  ;;  %4601 = vmatprep.subr.mxu1 %v10216_v46  ;;  %12471 = vst [vmem:[#allocation47_spill] sm:$0xff] %v10228_v30  ;;  %12472 = vst [vmem:[#allocation48_spill] sm:$0xff] %v10232_v38  ;;  %v10238_v8 = vld [vmem:[#allocation2 + $0x108] sm:$0xff]  ;;  %v10240_v46 = vld [vmem:[#allocation2 + $0x118] sm:$0xff] }
 0x6e3   :  { %4531 = vmatpush1.msra.mxu0 %v10220_v33  ;;  %4602 = vmatpush1.msra.mxu1 %v10222_v22  ;;  %12473 = vst [vmem:[#allocation49_spill] sm:$0xff] %v10234_v6  ;;  %12474 = vst [vmem:[#allocation50_spill] sm:$0xff] %v10238_v8  ;;  %v10244_v33 = vld [vmem:[#allocation2 + $0x100] sm:$0xff]  ;;  %v10246_v22 = vld [vmem:[#allocation2 + $0x110] sm:$0xff] }
 0x6e4   :  { %4532 = vmatprep.subr.mxu0 %v10226_v61  ;;  %4603 = vmatprep.subr.mxu1 %v10228_v30  ;;  %12475 = vst [vmem:[#allocation51_spill] sm:$0xff] %v10240_v46  ;;  %12476 = vst [vmem:[#allocation52_spill] sm:$0xff] %v10244_v33  ;;  %v10250_v61 = vld [vmem:[#allocation2 + $0xe8] sm:$0xff]  ;;  %v10252_v30 = vld [vmem:[#allocation2 + $0xf8] sm:$0xff] }
 0x6e5   :  { %4533 = vmatpush1.msra.mxu0 %v10232_v38  ;;  %4604 = vmatpush1.msra.mxu1 %v10234_v6  ;;  %12477 = vst [vmem:[#allocation53_spill] sm:$0xff] %v10246_v22  ;;  %12478 = vst [vmem:[#allocation54_spill] sm:$0xff] %v10250_v61  ;;  %v10256_v38 = vld [vmem:[#allocation2 + $0xe0] sm:$0xff]  ;;  %v10258_v6 = vld [vmem:[#allocation2 + $0xf0] sm:$0xff] }
 0x6e6   :  { %4534 = vmatprep.subr.mxu0 %v10238_v8  ;;  %4605 = vmatprep.subr.mxu1 %v10240_v46  ;;  %12479 = vst [vmem:[#allocation55_spill] sm:$0xff] %v10252_v30  ;;  %12480 = vst [vmem:[#allocation56_spill] sm:$0xff] %v10256_v38  ;;  %v10262_v8 = vld [vmem:[#allocation2 + $0xc8] sm:$0xff]  ;;  %v10264_v46 = vld [vmem:[#allocation2 + $0xd8] sm:$0xff] }
 0x6e7   :  { %4535 = vmatpush1.msra.mxu0 %v10244_v33  ;;  %4606 = vmatpush1.msra.mxu1 %v10246_v22  ;;  %12481 = vst [vmem:[#allocation57_spill] sm:$0xff] %v10258_v6  ;;  %12482 = vst [vmem:[#allocation58_spill] sm:$0xff] %v10262_v8  ;;  %v10268_v33 = vld [vmem:[#allocation2 + $0xc0] sm:$0xff]  ;;  %v10270_v22 = vld [vmem:[#allocation2 + $0xd0] sm:$0xff] }
 0x6e8   :  { %4536 = vmatprep.subr.mxu0 %v10250_v61  ;;  %4607 = vmatprep.subr.mxu1 %v10252_v30  ;;  %12483 = vst [vmem:[#allocation59_spill] sm:$0xff] %v10264_v46  ;;  %12484 = vst [vmem:[#allocation60_spill] sm:$0xff] %v10268_v33  ;;  %v10274_v61 = vld [vmem:[#allocation2 + $0xa8] sm:$0xff]  ;;  %v10276_v30 = vld [vmem:[#allocation2 + $0xb8] sm:$0xff] }
 0x6e9   :  { %4537 = vmatpush1.msra.mxu0 %v10256_v38  ;;  %4608 = vmatpush1.msra.mxu1 %v10258_v6  ;;  %12485 = vst [vmem:[#allocation61_spill] sm:$0xff] %v10270_v22  ;;  %12486 = vst [vmem:[#allocation62_spill] sm:$0xff] %v10274_v61  ;;  %v10280_v38 = vld [vmem:[#allocation2 + $0xa0] sm:$0xff]  ;;  %v10282_v6 = vld [vmem:[#allocation2 + $0xb0] sm:$0xff] }
 0x6ea   :  { %4538 = vmatprep.subr.mxu0 %v10262_v8  ;;  %4609 = vmatprep.subr.mxu1 %v10264_v46  ;;  %12487 = vst [vmem:[#allocation63_spill] sm:$0xff] %v10276_v30  ;;  %12488 = vst [vmem:[#allocation64_spill] sm:$0xff] %v10280_v38  ;;  %v10286_v8 = vld [vmem:[#allocation2 + $0x88] sm:$0xff]  ;;  %v10288_v46 = vld [vmem:[#allocation2 + $0x98] sm:$0xff] }
 0x6eb   :  { %4539 = vmatpush1.msra.mxu0 %v10268_v33  ;;  %4610 = vmatpush1.msra.mxu1 %v10270_v22  ;;  %12489 = vst [vmem:[#allocation65_spill] sm:$0xff] %v10282_v6  ;;  %12490 = vst [vmem:[#allocation66_spill] sm:$0xff] %v10286_v8  ;;  %v10292_v33 = vld [vmem:[#allocation2 + $0x80] sm:$0xff]  ;;  %v10294_v22 = vld [vmem:[#allocation2 + $0x90] sm:$0xff] }
 0x6ec   :  { %4540 = vmatprep.subr.mxu0 %v10274_v61  ;;  %4611 = vmatprep.subr.mxu1 %v10276_v30  ;;  %12491 = vst [vmem:[#allocation67_spill] sm:$0xff] %v10288_v46  ;;  %12492 = vst [vmem:[#allocation68_spill] sm:$0xff] %v10292_v33  ;;  %v10298_v61 = vld [vmem:[#allocation2 + $0x68] sm:$0xff]  ;;  %v10300_v30 = vld [vmem:[#allocation2 + $0x78] sm:$0xff] }
 0x6ed   :  { %4541 = vmatpush1.msra.mxu0 %v10280_v38  ;;  %4612 = vmatpush1.msra.mxu1 %v10282_v6  ;;  %12493 = vst [vmem:[#allocation69_spill] sm:$0xff] %v10294_v22  ;;  %12494 = vst [vmem:[#allocation70_spill] sm:$0xff] %v10298_v61  ;;  %v10304_v38 = vld [vmem:[#allocation2 + $0x60] sm:$0xff]  ;;  %v10306_v6 = vld [vmem:[#allocation2 + $0x70] sm:$0xff] }
 0x6ee   :  { %4542 = vmatprep.subr.mxu0 %v10286_v8  ;;  %4613 = vmatprep.subr.mxu1 %v10288_v46  ;;  %12495 = vst [vmem:[#allocation71_spill] sm:$0xff] %v10300_v30  ;;  %12496 = vst [vmem:[#allocation72_spill] sm:$0xff] %v10304_v38  ;;  %v10310_v8 = vld [vmem:[#allocation2 + $0x48] sm:$0xff]  ;;  %v10312_v46 = vld [vmem:[#allocation2 + $0x58] sm:$0xff] }
 0x6ef   :  { %4543 = vmatpush1.msra.mxu0 %v10292_v33  ;;  %4614 = vmatpush1.msra.mxu1 %v10294_v22  ;;  %12497 = vst [vmem:[#allocation73_spill] sm:$0xff] %v10306_v6  ;;  %12498 = vst [vmem:[#allocation74_spill] sm:$0xff] %v10310_v8  ;;  %v10316_v33 = vld [vmem:[#allocation2 + $0x40] sm:$0xff]  ;;  %v10318_v22 = vld [vmem:[#allocation2 + $0x50] sm:$0xff] }
 0x6f0   :  { %4544 = vmatprep.subr.mxu0 %v10298_v61  ;;  %4615 = vmatprep.subr.mxu1 %v10300_v30  ;;  %12499 = vst [vmem:[#allocation75_spill] sm:$0xff] %v10312_v46  ;;  %12500 = vst [vmem:[#allocation76_spill] sm:$0xff] %v10316_v33  ;;  %v10322_v61 = vld [vmem:[#allocation2 + $0x28] sm:$0xff]  ;;  %v10324_v30 = vld [vmem:[#allocation2 + $0x38] sm:$0xff] }
 0x6f1   :  { %4545 = vmatpush1.msra.mxu0 %v10304_v38  ;;  %4616 = vmatpush1.msra.mxu1 %v10306_v6  ;;  %12501 = vst [vmem:[#allocation77_spill] sm:$0xff] %v10318_v22  ;;  %12502 = vst [vmem:[#allocation78_spill] sm:$0xff] %v10322_v61  ;;  %v10328_v38 = vld [vmem:[#allocation2 + $0x20] sm:$0xff]  ;;  %v10330_v6 = vld [vmem:[#allocation2 + $0x30] sm:$0xff] }
 0x6f2   :  { %4546 = vmatprep.subr.mxu0 %v10310_v8  ;;  %4617 = vmatprep.subr.mxu1 %v10312_v46  ;;  %12503 = vst [vmem:[#allocation79_spill] sm:$0xff] %v10324_v30  ;;  %12504 = vst [vmem:[#allocation80_spill] sm:$0xff] %v10328_v38  ;;  %v10334_v8 = vld [vmem:[#allocation2 + $0x8] sm:$0xff]  ;;  %v10336_v46 = vld [vmem:[#allocation2 + $0x18] sm:$0xff] }
 0x6f3   :  { %4547 = vmatpush1.msra.mxu0 %v10316_v33  ;;  %4618 = vmatpush1.msra.mxu1 %v10318_v22  ;;  %12505 = vst [vmem:[#allocation81_spill] sm:$0xff] %v10330_v6  ;;  %12506 = vst [vmem:[#allocation82_spill] sm:$0xff] %v10334_v8  ;;  %v10340_v33 = vld [vmem:[#allocation2] sm:$0xff]  ;;  %v10342_v22 = vld [vmem:[#allocation2 + $0x10] sm:$0xff] }
 0x6f4   :  { %4548 = vmatprep.subr.mxu0 %v10322_v61  ;;  %4619 = vmatprep.subr.mxu1 %v10324_v30  ;;  %12507 = vst [vmem:[#allocation83_spill] sm:$0xff] %v10336_v46  ;;  %12508 = vst [vmem:[#allocation84_spill] sm:$0xff] %v10340_v33  ;;  %v10354_v30 = vld [vmem:[%s11007_s2 + $0x1f8] sm:$0xff] }
 0x6f5   :  { %4549 = vmatpush1.msra.mxu0 %v10328_v38  ;;  %4620 = vmatpush1.msra.mxu1 %v10330_v6  ;;  %12509 = vst [vmem:[#allocation85_spill] sm:$0xff] %v10342_v22  ;;  %v10349_v38 = vld [vmem:[%s11007_s2 + $0x1e8] sm:$0xff]  ;;  %12511 = vst [vmem:[#allocation87_spill] sm:$0xff] %v10354_v30 }
 0x6f6   :  { %4550 = vmatprep.subr.mxu0 %v10334_v8  ;;  %4621 = vmatprep.subr.mxu1 %v10336_v46  ;;  %12510 = vst [vmem:[#allocation86_spill] sm:$0xff] %v10349_v38 }
 0x6f7   :  { %4551 = vmatpush1.msra.mxu0 %v10340_v33  ;;  %4622 = vmatpush1.msra.mxu1 %v10342_v22  ;;  %v4198_v33 = vld [vmem:[%s11009_s4] sm:$0xf] }
 0x6f8   :  { %4759 = vmatprep.subr.mxu0 %v10349_v38  ;;  %4830 = vmatprep.subr.mxu1 %v10354_v30  ;;  %v4203_v61 = vrot.slane %v4198_v33, %v12374_v50  ;;  %v4207_v37 = vrot.slane %v4198_v33, %v12375_v56  ;;  %v4215_v52 = vrot.slane %v4198_v33, %v7197_v44 }
 0x6f9   :  { %v4211_v0 = vrot.slane %v4198_v33, %v7200_v51 }
 0x753   :  { %v3883_v8 = vpop.f32.mrf.mxu0  ;;  %v3954_v46 = vpop.f32.mrf.mxu1 }
 0x755   :  { %v3885_v6 = vpop.f32.mrf.mxu0  ;;  %v3956_v60 = vpop.f32.mrf.mxu1 }
 0x774   :  { %v4122_v25 = vpop.f32.mrf.mxu0  ;;  %v4193_v35 = vpop.f32.mrf.mxu1 }
 0x775   :  { %v4123_v59 = vadd.f32 %v4122_v25, %v3883_v8  ;;  %v4194_v50 = vadd.f32 %v4193_v35, %v3954_v46 }
 0x776   :  { %v4124_v12 = vpop.f32.mrf.mxu0  ;;  %v4195_v58 = vpop.f32.mrf.mxu1 }
 0x777   :  { %v4220_v22 = vadd.f32 %v4203_v61, %v4123_v59  ;;  %v4125_v38 = vadd.f32 %v4124_v12, %v3885_v6  ;;  %v4196_v54 = vadd.f32 %v4195_v58, %v3956_v60  ;;  %v4222_v56 = vadd.f32 %v4211_v0, %v4194_v50  ;;  %v5722_v58 = vld [vmem:[%s11005_s0 + $0xc0] sm:$0xff] }
 0x779   :  { %v5718_v23 = vmul.f32 -1.442695, %v4220_v22  ;;  %v4221_v30 = vadd.f32 %v4207_v37, %v4125_v38  ;;  %v4223_v62 = vadd.f32 %v4215_v52, %v4196_v54  ;;  %v5723_v52 = vld [vmem:[%s11005_s0 + $0xc8] sm:$0xff]  ;;  %v5725_v38 = vld [vmem:[%s11005_s0 + $0xd8] sm:$0xff] }
 0x77b   :  { %5924 = vpow2.f32 %v5718_v23  ;;  %v5719_v48 = vmul.f32 -1.442695, %v4221_v30  ;;  %v5720_v25 = vmul.f32 -1.442695, %v4223_v62 }
 0x77d   :  { %5926 = vpow2.f32 %v5719_v48 }
 0x77e   :  { %5928 = vpow2.f32 %v5720_v25  ;;  %v5724_v25 = vld [vmem:[%s11005_s0 + $0xd0] sm:$0xff] }
 0x788   :  { %v5925_v8 = vpop.eup %5924 }
 0x789   :  { %v4227_v9 = vadd.f32 1.0, %v5925_v8 }
 0x78a   :  { %v5927_v59 = vpop.eup %5926 }
 0x78b   :  { %5930 = vrcp.f32 %v4227_v9  ;;  %v4233_v12 = vadd.f32 1.0, %v5927_v59  ;;  %v5929_v54 = vpop.eup %5928 }
 0x78c   :  { %5932 = vtanh.f32 %v4222_v56  ;;  %v4240_v60 = vadd.f32 1.0, %v5929_v54 }
 0x78d   :  { %5934 = vrcp.f32 %v4233_v12 }
 0x796   :  { %v4380_v48 = vpop.f32.mrf.mxu0  ;;  %v4451_v46 = vpop.f32.mrf.mxu1 }
 0x797   :  { %v4667_v62 = vadd.f32 %v5722_v58, %v4380_v48  ;;  %v4669_v59 = vadd.f32 %v5724_v25, %v4451_v46  ;;  %v10437_v46 = vld [vmem:[%s11007_s2 + $0x1b0] sm:$0xff]  ;;  %v10468_v25 = vld [vmem:[%s11007_s2 + $0x168] sm:$0xff] }
 0x798   :  { %v5931_v23 = vpop.eup %5930  ;;  %v4382_v50 = vpop.f32.mrf.mxu0  ;;  %12512 = vst [vmem:[#allocation88_spill] sm:$0xff] %v10437_v46  ;;  %12517 = vst [vmem:[#allocation93_spill] sm:$0xff] %v10468_v25 }
 0x799   :  { %v5933_v0 = vpop.eup %5932  ;;  %v5726_v35 = vmul.f32 -1.442695, %v4667_v62  ;;  %v4668_v37 = vadd.f32 %v5723_v52, %v4382_v50  ;;  %v4453_v33 = vpop.f32.mrf.mxu1  ;;  %v10390_v50 = vld [vmem:[%s11007_s2 + $0x1f0] sm:$0xff] }
 0x79a   :  { %v5935_v9 = vpop.eup %5934  ;;  %v4244_v56 = vmul.f32 %v5933_v0, %v5931_v23  ;;  %v4670_v30 = vadd.f32 %v5725_v38, %v4453_v33  ;;  %v10385_v23 = vld [vmem:[%s11007_s2 + $0x1e0] sm:$0xff]  ;;  %v10395_v0 = vld [vmem:[%s11007_s2 + $0x1c8] sm:$0xff]  ;;  %v10449_v33 = vld [vmem:[%s11007_s2 + $0x198] sm:$0xff] }
 0x79b   :  { %v4243_v6 = vmul.f32 %v5935_v9, %v9681_v42  ;;  %5936 = vpow2.f32 %v5726_v35  ;;  %v5727_v22 = vmul.f32 -1.442695, %v4668_v37  ;;  %v10400_v35 = vld [vmem:[%s11007_s2 + $0x1d8] sm:$0xff]  ;;  %v10408_v37 = vld [vmem:[%s11007_s2 + $0x1c0] sm:$0xff]  ;;  %v10413_v9 = vld [vmem:[%s11007_s2 + $0x1d0] sm:$0xff]  ;;  %12514 = vst [vmem:[#allocation90_spill] sm:$0xff] %v10449_v33 }
 0x79c   :  { %v5728_v42 = vmul.f32 -1.442695, %v4670_v30  ;;  %v10456_v38 = vld [vmem:[%s11007_s2 + $0x180] sm:$0xff]  ;;  %v10461_v30 = vld [vmem:[%s11007_s2 + $0x190] sm:$0xff] }
 0x79d   :  { %5938 = vpow2.f32 %v5727_v22  ;;  %v10373_v61 = vadd.f32 %v4244_v56, %v4243_v6  ;;  %v10425_v56 = vld [vmem:[%s11007_s2 + $0x1b8] sm:$0xff]  ;;  %v10432_v6 = vld [vmem:[%s11007_s2 + $0x1a0] sm:$0xff]  ;;  %v10444_v22 = vld [vmem:[%s11007_s2 + $0x188] sm:$0xff]  ;;  %12515 = vst [vmem:[#allocation91_spill] sm:$0xff] %v10456_v38 }
 0x79e   :  { %5940 = vrcp.f32 %v4240_v60  ;;  %v10420_v60 = vld [vmem:[%s11007_s2 + $0x1a8] sm:$0xff]  ;;  %12513 = vst [vmem:[#allocation89_spill] sm:$0xff] %v10444_v22  ;;  %12516 = vst [vmem:[#allocation92_spill] sm:$0xff] %v10461_v30 }
 0x79f   :  { %5942 = vtanh.f32 %v10373_v61 }
 0x7a0   :  { %5944 = vpow2.f32 %v5728_v42  ;;  %v10473_v42 = vld [vmem:[%s11007_s2 + $0x178] sm:$0xff] }
 0x7a1   :  { %12518 = vst [vmem:[#allocation94_spill] sm:$0xff] %v10473_v42 }
 0x7a8   :  { %v5937_v8 = vpop.eup %5936 }
 0x7a9   :  { %v4674_v12 = vadd.f32 1.0, %v5937_v8  ;;  %v10480_v8 = vld [vmem:[%s11007_s2 + $0x160] sm:$0xff] }
 0x7aa   :  { %v5939_v58 = vpop.eup %5938  ;;  %12519 = vst [vmem:[#allocation95_spill] sm:$0xff] %v10480_v8 }
 0x7ab   :  { %v5941_v48 = vpop.eup %5940  ;;  %5946 = vrcp.f32 %v4674_v12  ;;  %v4680_v52 = vadd.f32 1.0, %v5939_v58  ;;  %v10492_v12 = vld [vmem:[%s11007_s2 + $0x148] sm:$0xff]  ;;  %v10497_v58 = vld [vmem:[%s11007_s2 + $0x158] sm:$0xff] }
 0x7ac   :  { %v5943_v54 = vpop.eup %5942  ;;  %5948 = vtanh.f32 %v4669_v59  ;;  %v10485_v59 = vld [vmem:[%s11007_s2 + $0x170] sm:$0xff]  ;;  %12521 = vst [vmem:[#allocation97_spill] sm:$0xff] %v10492_v12  ;;  %12522 = vst [vmem:[#allocation98_spill] sm:$0xff] %v10497_v58 }
 0x7ad   :  { %5950 = vrcp.f32 %v4680_v52  ;;  %v4247_v62 = vmul.f32 %v5943_v54, %v5941_v48  ;;  %12520 = vst [vmem:[#allocation96_spill] sm:$0xff] %v10485_v59  ;;  %v5945_v48 = vpop.eup %5944  ;;  %v10504_v52 = vld [vmem:[%s11007_s2 + $0x140] sm:$0xff]  ;;  %v10509_v54 = vld [vmem:[%s11007_s2 + $0x150] sm:$0xff] }
 0x7ae   :  { %12523 = vst [vmem:[#allocation99_spill] sm:$0xff] %v10509_v54 }
 0x7af   :  { %5721 = vst [vmem:[%s11010_s5 + $0x28] sm:$0xff] %v4247_v62  ;;  %4585 = vmatmul.mubr.f32.vlgmr.msra.gmra.mxu0 %v4247_v62  ;;  %4656 = vmatmul.mubr.f32.vlgmr.msra.gmra.mxu1 %v4247_v62 }
 0x7b0   :  { %4760 = vmatpush1.msra.mxu0 %v10385_v23  ;;  %4831 = vmatpush1.msra.mxu1 %v10390_v50 }
 0x7b1   :  { %4761 = vmatprep.subr.mxu0 %v10395_v0  ;;  %4832 = vmatprep.subr.mxu1 %v10400_v35 }
 0x7b2   :  { %4762 = vmatpush1.msra.mxu0 %v10408_v37  ;;  %4833 = vmatpush1.msra.mxu1 %v10413_v9 }
 0x7b3   :  { %4763 = vmatprep.subr.mxu0 %v10420_v60  ;;  %4834 = vmatprep.subr.mxu1 %v10425_v56 }
 0x7b4   :  { %4764 = vmatpush1.msra.mxu0 %v10432_v6  ;;  %4835 = vmatpush1.msra.mxu1 %v10437_v46 }
 0x7b5   :  { %4765 = vmatprep.subr.mxu0 %v10444_v22  ;;  %4836 = vmatprep.subr.mxu1 %v10449_v33  ;;  %v4687_v33 = vadd.f32 1.0, %v5945_v48  ;;  %v10553_v48 = vld [vmem:[%s11007_s2 + $0x100] sm:$0xff] }
 0x7b6   :  { %4766 = vmatpush1.msra.mxu0 %v10456_v38  ;;  %4837 = vmatpush1.msra.mxu1 %v10461_v30  ;;  %12526 = vst [vmem:[#allocation102_spill] sm:$0xff] %v10553_v48 }
 0x7b7   :  { %4767 = vmatprep.subr.mxu0 %v10468_v25  ;;  %4838 = vmatprep.subr.mxu1 %v10473_v42  ;;  %v10516_v25 = vld [vmem:[%s11007_s2 + $0x128] sm:$0xff]  ;;  %v10521_v42 = vld [vmem:[%s11007_s2 + $0x138] sm:$0xff]  ;;  %5952 = vrcp.f32 %v4687_v33  ;;  %v10603_v33 = vld [vmem:[%s11007_s2 + $0xc0] sm:$0xff] }
 0x7b8   :  { %v5947_v62 = vpop.eup %5946  ;;  %4768 = vmatpush1.msra.mxu0 %v10480_v8  ;;  %4839 = vmatpush1.msra.mxu1 %v10485_v59  ;;  %v10528_v8 = vld [vmem:[%s11007_s2 + $0x120] sm:$0xff]  ;;  %v10533_v59 = vld [vmem:[%s11007_s2 + $0x130] sm:$0xff]  ;;  %12534 = vst [vmem:[#allocation110_spill] sm:$0xff] %v10603_v33 }
 0x7b9   :  { %v5949_v30 = vpop.eup %5948  ;;  %4769 = vmatprep.subr.mxu0 %v10492_v12  ;;  %4840 = vmatprep.subr.mxu1 %v10497_v58  ;;  %12524 = vst [vmem:[#allocation100_spill] sm:$0xff] %v10533_v59  ;;  %v10540_v58 = vld [vmem:[%s11007_s2 + $0x108] sm:$0xff]  ;;  %v10545_v12 = vld [vmem:[%s11007_s2 + $0x118] sm:$0xff] }
 0x7ba   :  { %v5951_v38 = vpop.eup %5950  ;;  %4770 = vmatpush1.msra.mxu0 %v10504_v52  ;;  %4841 = vmatpush1.msra.mxu1 %v10509_v54  ;;  %12525 = vst [vmem:[#allocation101_spill] sm:$0xff] %v10545_v12  ;;  %v4691_v22 = vmul.f32 %v5949_v30, %v5947_v62  ;;  %v10558_v54 = vld [vmem:[%s11007_s2 + $0x110] sm:$0xff]  ;;  %v10579_v62 = vld [vmem:[%s11007_s2 + $0xe0] sm:$0xff] }
 0x7bb   :  { %v4690_v46 = vmul.f32 %v5951_v38, %v9720_v63  ;;  %4771 = vmatprep.subr.mxu0 %v10516_v25  ;;  %4842 = vmatprep.subr.mxu1 %v10521_v42  ;;  %12527 = vst [vmem:[#allocation103_spill] sm:$0xff] %v10558_v54  ;;  %v10565_v63 = vld [vmem:[%s11007_s2 + $0xe8] sm:$0xff]  ;;  %v10570_v38 = vld [vmem:[%s11007_s2 + $0xf8] sm:$0xff]  ;;  %12530 = vst [vmem:[#allocation106_spill] sm:$0xff] %v10579_v62 }
 0x7bc   :  { %4772 = vmatpush1.msra.mxu0 %v10528_v8  ;;  %4843 = vmatpush1.msra.mxu1 %v10533_v59  ;;  %12528 = vst [vmem:[#allocation104_spill] sm:$0xff] %v10565_v63  ;;  %12529 = vst [vmem:[#allocation105_spill] sm:$0xff] %v10570_v38  ;;  %v10584_v59 = vld [vmem:[%s11007_s2 + $0xf0] sm:$0xff] }
 0x7bd   :  { %v10572_v30 = vadd.f32 %v4691_v22, %v4690_v46  ;;  %4773 = vmatprep.subr.mxu0 %v10540_v58  ;;  %4844 = vmatprep.subr.mxu1 %v10545_v12  ;;  %12531 = vst [vmem:[#allocation107_spill] sm:$0xff] %v10584_v59  ;;  %v10591_v46 = vld [vmem:[%s11007_s2 + $0xc8] sm:$0xff]  ;;  %v10596_v22 = vld [vmem:[%s11007_s2 + $0xd8] sm:$0xff]  ;;  %v10755_v12 = vld [vmem:[%s11007_s2 + $0x10] sm:$0xff] }
 0x7be   :  { %4774 = vmatpush1.msra.mxu0 %v10553_v48  ;;  %4845 = vmatpush1.msra.mxu1 %v10558_v54  ;;  %12532 = vst [vmem:[#allocation108_spill] sm:$0xff] %v10591_v46  ;;  %12533 = vst [vmem:[#allocation109_spill] sm:$0xff] %v10596_v22  ;;  %v10608_v54 = vld [vmem:[%s11007_s2 + $0xd0] sm:$0xff] }
 0x7bf   :  { %4775 = vmatprep.subr.mxu0 %v10565_v63  ;;  %4846 = vmatprep.subr.mxu1 %v10570_v38  ;;  %12535 = vst [vmem:[#allocation111_spill] sm:$0xff] %v10608_v54  ;;  %5954 = vtanh.f32 %v10572_v30  ;;  %v10616_v38 = vld [vmem:[%s11007_s2 + $0xa8] sm:$0xff]  ;;  %v10621_v63 = vld [vmem:[%s11007_s2 + $0xb8] sm:$0xff] }
 0x7c0   :  { %4776 = vmatpush1.msra.mxu0 %v10579_v62  ;;  %4847 = vmatpush1.msra.mxu1 %v10584_v59  ;;  %12536 = vst [vmem:[#allocation112_spill] sm:$0xff] %v10616_v38  ;;  %12537 = vst [vmem:[#allocation113_spill] sm:$0xff] %v10621_v63  ;;  %v10628_v62 = vld [vmem:[%s11007_s2 + $0xa0] sm:$0xff]  ;;  %v10633_v59 = vld [vmem:[%s11007_s2 + $0xb0] sm:$0xff] }
 0x7c1   :  { %4777 = vmatprep.subr.mxu0 %v10591_v46  ;;  %4848 = vmatprep.subr.mxu1 %v10596_v22  ;;  %12538 = vst [vmem:[#allocation114_spill] sm:$0xff] %v10628_v62  ;;  %12539 = vst [vmem:[#allocation115_spill] sm:$0xff] %v10633_v59  ;;  %v10640_v46 = vld [vmem:[%s11007_s2 + $0x88] sm:$0xff]  ;;  %v10645_v22 = vld [vmem:[%s11007_s2 + $0x98] sm:$0xff] }
 0x7c2   :  { %4778 = vmatpush1.msra.mxu0 %v10603_v33  ;;  %4849 = vmatpush1.msra.mxu1 %v10608_v54  ;;  %12540 = vst [vmem:[#allocation116_spill] sm:$0xff] %v10640_v46  ;;  %12541 = vst [vmem:[#allocation117_spill] sm:$0xff] %v10645_v22  ;;  %v10652_v33 = vld [vmem:[%s11007_s2 + $0x80] sm:$0xff]  ;;  %v10657_v54 = vld [vmem:[%s11007_s2 + $0x90] sm:$0xff] }
 0x7c3   :  { %4779 = vmatprep.subr.mxu0 %v10616_v38  ;;  %4850 = vmatprep.subr.mxu1 %v10621_v63  ;;  %12542 = vst [vmem:[#allocation118_spill] sm:$0xff] %v10652_v33  ;;  %12543 = vst [vmem:[#allocation119_spill] sm:$0xff] %v10657_v54  ;;  %v10664_v38 = vld [vmem:[%s11007_s2 + $0x68] sm:$0xff]  ;;  %v10669_v63 = vld [vmem:[%s11007_s2 + $0x78] sm:$0xff] }
 0x7c4   :  { %4780 = vmatpush1.msra.mxu0 %v10628_v62  ;;  %4851 = vmatpush1.msra.mxu1 %v10633_v59  ;;  %12544 = vst [vmem:[#allocation120_spill] sm:$0xff] %v10664_v38  ;;  %12545 = vst [vmem:[#allocation121_spill] sm:$0xff] %v10669_v63  ;;  %v10676_v62 = vld [vmem:[%s11007_s2 + $0x60] sm:$0xff]  ;;  %v10681_v59 = vld [vmem:[%s11007_s2 + $0x70] sm:$0xff]  ;;  %v5953_v48 = vpop.eup %5952 }
 0x7c5   :  { %4781 = vmatprep.subr.mxu0 %v10640_v46  ;;  %4852 = vmatprep.subr.mxu1 %v10645_v22  ;;  %12546 = vst [vmem:[#allocation122_spill] sm:$0xff] %v10676_v62  ;;  %12547 = vst [vmem:[#allocation123_spill] sm:$0xff] %v10681_v59  ;;  %v10688_v46 = vld [vmem:[%s11007_s2 + $0x48] sm:$0xff]  ;;  %v10693_v22 = vld [vmem:[%s11007_s2 + $0x58] sm:$0xff] }
 0x7c6   :  { %4782 = vmatpush1.msra.mxu0 %v10652_v33  ;;  %4853 = vmatpush1.msra.mxu1 %v10657_v54  ;;  %12548 = vst [vmem:[#allocation124_spill] sm:$0xff] %v10688_v46  ;;  %12549 = vst [vmem:[#allocation125_spill] sm:$0xff] %v10693_v22  ;;  %v10700_v33 = vld [vmem:[%s11007_s2 + $0x40] sm:$0xff]  ;;  %v10705_v54 = vld [vmem:[%s11007_s2 + $0x50] sm:$0xff] }
 0x7c7   :  { %4783 = vmatprep.subr.mxu0 %v10664_v38  ;;  %4854 = vmatprep.subr.mxu1 %v10669_v63  ;;  %12550 = vst [vmem:[#allocation126_spill] sm:$0xff] %v10700_v33  ;;  %12551 = vst [vmem:[#allocation127_spill] sm:$0xff] %v10705_v54  ;;  %v10712_v38 = vld [vmem:[%s11007_s2 + $0x28] sm:$0xff]  ;;  %v10717_v63 = vld [vmem:[%s11007_s2 + $0x38] sm:$0xff] }
 0x7c8   :  { %4784 = vmatpush1.msra.mxu0 %v10676_v62  ;;  %4855 = vmatpush1.msra.mxu1 %v10681_v59  ;;  %12552 = vst [vmem:[#allocation128_spill] sm:$0xff] %v10717_v63  ;;  %v10724_v62 = vld [vmem:[%s11007_s2 + $0x20] sm:$0xff]  ;;  %v10729_v59 = vld [vmem:[%s11007_s2 + $0x30] sm:$0xff] }
 0x7c9   :  { %4785 = vmatprep.subr.mxu0 %v10688_v46  ;;  %4856 = vmatprep.subr.mxu1 %v10693_v22  ;;  %v10736_v46 = vld [vmem:[%s11007_s2 + $0x8] sm:$0xff]  ;;  %v10741_v22 = vld [vmem:[%s11007_s2 + $0x18] sm:$0xff] }
 0x7ca   :  { %4786 = vmatpush1.msra.mxu0 %v10700_v33  ;;  %4857 = vmatpush1.msra.mxu1 %v10705_v54  ;;  %v10748_v33 = vld [vmem:[%s11007_s2] sm:$0xff] }
 0x7cb   :  { %4787 = vmatprep.subr.mxu0 %v10712_v38  ;;  %4858 = vmatprep.subr.mxu1 %v10717_v63 }
 0x7cc   :  { %v5955_v54 = vpop.eup %5954  ;;  %4788 = vmatpush1.msra.mxu0 %v10724_v62  ;;  %4859 = vmatpush1.msra.mxu1 %v10729_v59 }
 0x7cd   :  { %4789 = vmatprep.subr.mxu0 %v10736_v46  ;;  %4860 = vmatprep.subr.mxu1 %v10741_v22  ;;  %v10759_v63 = vmul.f32 %v5955_v54, %v5953_v48  ;;  %v12588_v54 = vld [vmem:[#allocation25_spill] sm:$0xff]  ;;  %v12589_v48 = vld [vmem:[#allocation31_spill] sm:$0xff] }
 0x7ce   :  { %4790 = vmatpush1.msra.mxu0 %v10748_v33  ;;  %4823 = vmatprep.mubr.f32.mxu0 %v11737_v19 }
 0x7cf   :  { %4861 = vmatpush1.msra.mxu1 %v10755_v12  ;;  %4894 = vmatprep.mubr.f32.mxu1 %v11737_v19 }
 0x7d0   :  { %4824 = vmatmul.mubr.f32.vlgmr.msra.gmra.mxu0 %v10759_v63  ;;  %4895 = vmatmul.mubr.f32.vlgmr.msra.gmra.mxu1 %v10759_v63 }
 0x7d1   :  { %5017 = vmatprep.subr.mxu0 %v9764_v49  ;;  %5088 = vmatprep.subr.mxu1 %v9769_v3  ;;  %v12553_v49 = vld [vmem:[#allocation136_spill] sm:$0xff]  ;;  %v12554_v3 = vld [vmem:[#allocation137_spill] sm:$0xff] }
 0x7d2   :  { %5018 = vmatpush1.msra.mxu0 %v9776_v17  ;;  %5089 = vmatpush1.msra.mxu1 %v9781_v43  ;;  %v12555_v17 = vld [vmem:[#allocation138_spill] sm:$0xff]  ;;  %v12556_v43 = vld [vmem:[#allocation139_spill] sm:$0xff] }
 0x7d3   :  { %5019 = vmatprep.subr.mxu0 %v9788_v15  ;;  %5090 = vmatprep.subr.mxu1 %v9793_v45  ;;  %v12557_v15 = vld [vmem:[#allocation140_spill] sm:$0xff]  ;;  %v12558_v45 = vld [vmem:[#allocation141_spill] sm:$0xff] }
 0x7d4   :  { %5020 = vmatpush1.msra.mxu0 %v9800_v47  ;;  %5091 = vmatpush1.msra.mxu1 %v9805_v39  ;;  %v12559_v47 = vld [vmem:[#allocation142_spill] sm:$0xff]  ;;  %v12560_v39 = vld [vmem:[#allocation143_spill] sm:$0xff] }
 0x7d5   :  { %5021 = vmatprep.subr.mxu0 %v9812_v10  ;;  %5092 = vmatprep.subr.mxu1 %v9817_v5  ;;  %v12561_v10 = vld [vmem:[#allocation144_spill] sm:$0xff]  ;;  %v12562_v5 = vld [vmem:[#allocation145_spill] sm:$0xff] }
 0x7d6   :  { %5022 = vmatpush1.msra.mxu0 %v9824_v53  ;;  %5093 = vmatpush1.msra.mxu1 %v9829_v14  ;;  %v12563_v53 = vld [vmem:[#allocation146_spill] sm:$0xff]  ;;  %v12564_v14 = vld [vmem:[#allocation147_spill] sm:$0xff] }
 0x7d7   :  { %5023 = vmatprep.subr.mxu0 %v9836_v16  ;;  %5094 = vmatprep.subr.mxu1 %v9841_v2  ;;  %v12565_v16 = vld [vmem:[#allocation148_spill] sm:$0xff]  ;;  %v12566_v2 = vld [vmem:[#allocation149_spill] sm:$0xff] }
 0x7d8   :  { %5024 = vmatpush1.msra.mxu0 %v9848_v40  ;;  %5095 = vmatpush1.msra.mxu1 %v9853_v41  ;;  %v12567_v40 = vld [vmem:[#allocation12_spill] sm:$0xff]  ;;  %v12568_v41 = vld [vmem:[#allocation6_spill] sm:$0xff] }
 0x7d9   :  { %5025 = vmatprep.subr.mxu0 %v9860_v11  ;;  %5096 = vmatprep.subr.mxu1 %v9865_v24  ;;  %v12569_v11 = vld [vmem:[#allocation14_spill] sm:$0xff]  ;;  %v12570_v24 = vld [vmem:[#allocation7_spill] sm:$0xff] }
 0x7da   :  { %5026 = vmatpush1.msra.mxu0 %v9872_v57  ;;  %5097 = vmatpush1.msra.mxu1 %v9877_v27  ;;  %v12571_v57 = vld [vmem:[#allocation16_spill] sm:$0xff] }
 0x7db   :  { %5027 = vmatprep.subr.mxu0 %v9884_v28  ;;  %5098 = vmatprep.subr.mxu1 %v9889_v21  ;;  %v12572_v27 = vld [vmem:[#allocation8_spill] sm:$0xff]  ;;  %v12573_v28 = vld [vmem:[#allocation17_spill] sm:$0xff] }
 0x7dc   :  { %5028 = vmatpush1.msra.mxu0 %v9896_v29  ;;  %5099 = vmatpush1.msra.mxu1 %v9901_v32  ;;  %v12574_v21 = vld [vmem:[#allocation9_spill] sm:$0xff]  ;;  %v12575_v29 = vld [vmem:[#allocation18_spill] sm:$0xff]  ;;  %v12576_v32 = vld [vmem:[#allocation11_spill] sm:$0xff] }
 0x7dd   :  { %5029 = vmatprep.subr.mxu0 %v9908_v20  ;;  %5100 = vmatprep.subr.mxu1 %v9913_v34  ;;  %v12577_v20 = vld [vmem:[#allocation20_spill] sm:$0xff]  ;;  %v12578_v34 = vld [vmem:[#allocation13_spill] sm:$0xff] }
 0x7de   :  { %5030 = vmatpush1.msra.mxu0 %v9920_v31  ;;  %5101 = vmatpush1.msra.mxu1 %v9925_v4  ;;  %v12579_v31 = vld [vmem:[#allocation22_spill] sm:$0xff]  ;;  %v12580_v4 = vld [vmem:[#allocation15_spill] sm:$0xff] }
 0x7df   :  { %5031 = vmatprep.subr.mxu0 %v9932_v36  ;;  %5102 = vmatprep.subr.mxu1 %v9937_v55  ;;  %v12581_v36 = vld [vmem:[#allocation24_spill] sm:$0xff]  ;;  %v12582_v55 = vld [vmem:[#allocation19_spill] sm:$0xff] }
 0x7e0   :  { %5032 = vmatpush1.msra.mxu0 %v9944_v18  ;;  %5103 = vmatpush1.msra.mxu1 %v9949_v13  ;;  %v12583_v18 = vld [vmem:[#allocation26_spill] sm:$0xff]  ;;  %v12584_v13 = vld [vmem:[#allocation21_spill] sm:$0xff] }
 0x7e1   :  { %5033 = vmatprep.subr.mxu0 %v9956_v26  ;;  %5104 = vmatprep.subr.mxu1 %v9961_v1  ;;  %v12585_v26 = vld [vmem:[#allocation27_spill] sm:$0xff] }
 0x7e2   :  { %5034 = vmatpush1.msra.mxu0 %v9968_v7  ;;  %5105 = vmatpush1.msra.mxu1 %v12553_v49  ;;  %v12586_v1 = vld [vmem:[#allocation23_spill] sm:$0xff]  ;;  %v12587_v7 = vld [vmem:[#allocation29_spill] sm:$0xff]  ;;  %v12590_v49 = vld [vmem:[#allocation28_spill] sm:$0xff] }
 0x7e3   :  { %5035 = vmatprep.subr.mxu0 %v12554_v3  ;;  %5106 = vmatprep.subr.mxu1 %v12555_v17  ;;  %v12591_v3 = vld [vmem:[#allocation33_spill] sm:$0xff]  ;;  %v12593_v17 = vld [vmem:[#allocation35_spill] sm:$0xff] }
 0x7e4   :  { %5036 = vmatpush1.msra.mxu0 %v12556_v43  ;;  %5107 = vmatpush1.msra.mxu1 %v12557_v15  ;;  %v12594_v43 = vld [vmem:[#allocation32_spill] sm:$0xff] }
 0x7e5   :  { %5037 = vmatprep.subr.mxu0 %v12558_v45  ;;  %5108 = vmatprep.subr.mxu1 %v12559_v47  ;;  %v12595_v15 = vld [vmem:[#allocation36_spill] sm:$0xff]  ;;  %v12596_v45 = vld [vmem:[#allocation34_spill] sm:$0xff]  ;;  %v12597_v47 = vld [vmem:[#allocation37_spill] sm:$0xff] }
 0x7e6   :  { %5038 = vmatpush1.msra.mxu0 %v12560_v39  ;;  %5109 = vmatpush1.msra.mxu1 %v12561_v10  ;;  %v12598_v39 = vld [vmem:[#allocation38_spill] sm:$0xff]  ;;  %v12599_v10 = vld [vmem:[#allocation39_spill] sm:$0xff] }
 0x7e7   :  { %5039 = vmatprep.subr.mxu0 %v12562_v5  ;;  %5110 = vmatprep.subr.mxu1 %v12563_v53  ;;  %v12600_v5 = vld [vmem:[#allocation40_spill] sm:$0xff]  ;;  %v12601_v53 = vld [vmem:[#allocation41_spill] sm:$0xff] }
 0x7e8   :  { %5040 = vmatpush1.msra.mxu0 %v12564_v14  ;;  %5111 = vmatpush1.msra.mxu1 %v12565_v16  ;;  %v12602_v14 = vld [vmem:[#allocation42_spill] sm:$0xff]  ;;  %v12603_v16 = vld [vmem:[#allocation43_spill] sm:$0xff] }
 0x7e9   :  { %5041 = vmatprep.subr.mxu0 %v12566_v2  ;;  %5112 = vmatprep.subr.mxu1 %v12567_v40  ;;  %v12604_v2 = vld [vmem:[#allocation44_spill] sm:$0xff]  ;;  %v12605_v40 = vld [vmem:[#allocation45_spill] sm:$0xff] }
 0x7ea   :  { %5042 = vmatpush1.msra.mxu0 %v12568_v41  ;;  %5113 = vmatpush1.msra.mxu1 %v12569_v11  ;;  %v12606_v41 = vld [vmem:[#allocation46_spill] sm:$0xff]  ;;  %v12607_v11 = vld [vmem:[#allocation47_spill] sm:$0xff] }
 0x7eb   :  { %5043 = vmatprep.subr.mxu0 %v12570_v24  ;;  %5114 = vmatprep.subr.mxu1 %v12571_v57  ;;  %v12608_v24 = vld [vmem:[#allocation48_spill] sm:$0xff]  ;;  %v12609_v57 = vld [vmem:[#allocation49_spill] sm:$0xff] }
 0x7ec   :  { %5044 = vmatpush1.msra.mxu0 %v12572_v27  ;;  %5115 = vmatpush1.msra.mxu1 %v12573_v28  ;;  %v12610_v27 = vld [vmem:[#allocation50_spill] sm:$0xff]  ;;  %v12611_v28 = vld [vmem:[#allocation51_spill] sm:$0xff] }
 0x7ed   :  { %5045 = vmatprep.subr.mxu0 %v12574_v21  ;;  %5116 = vmatprep.subr.mxu1 %v12575_v29  ;;  %v12612_v21 = vld [vmem:[#allocation52_spill] sm:$0xff]  ;;  %v12613_v29 = vld [vmem:[#allocation53_spill] sm:$0xff] }
 0x7ee   :  { %5046 = vmatpush1.msra.mxu0 %v12576_v32  ;;  %5117 = vmatpush1.msra.mxu1 %v12577_v20  ;;  %v12614_v32 = vld [vmem:[#allocation54_spill] sm:$0xff]  ;;  %v12615_v20 = vld [vmem:[#allocation55_spill] sm:$0xff] }
 0x7ef   :  { %5047 = vmatprep.subr.mxu0 %v12578_v34  ;;  %5118 = vmatprep.subr.mxu1 %v12579_v31  ;;  %v12616_v34 = vld [vmem:[#allocation56_spill] sm:$0xff]  ;;  %v12617_v31 = vld [vmem:[#allocation57_spill] sm:$0xff] }
 0x7f0   :  { %5048 = vmatpush1.msra.mxu0 %v12580_v4  ;;  %5081 = vmatprep.mubr.f32.mxu0 %v11737_v19  ;;  %v12618_v4 = vld [vmem:[#allocation58_spill] sm:$0xff] }
 0x7f1   :  { %5119 = vmatpush1.msra.mxu1 %v12581_v36  ;;  %5152 = vmatprep.mubr.f32.mxu1 %v11737_v19  ;;  %v12619_v36 = vld [vmem:[#allocation59_spill] sm:$0xff] }
 0x7f2   :  { %5082 = vmatmul.mubr.f32.vlgmr.msra.gmra.mxu0 %v10759_v63  ;;  %5153 = vmatmul.mubr.f32.vlgmr.msra.gmra.mxu1 %v10759_v63  ;;  %v12592_v63 = vld [vmem:[#allocation30_spill] sm:$0xff] }
 0x7f3   :  { %5223 = vmatprep.subr.mxu0 %v12582_v55  ;;  %5294 = vmatprep.subr.mxu1 %v12583_v18  ;;  %v12620_v55 = vld [vmem:[#allocation60_spill] sm:$0xff]  ;;  %v12621_v18 = vld [vmem:[#allocation61_spill] sm:$0xff] }
 0x7f4   :  { %5224 = vmatpush1.msra.mxu0 %v12584_v13  ;;  %5295 = vmatpush1.msra.mxu1 %v12585_v26  ;;  %v12622_v13 = vld [vmem:[#allocation62_spill] sm:$0xff]  ;;  %v12623_v26 = vld [vmem:[#allocation63_spill] sm:$0xff] }
 0x7f5   :  { %5225 = vmatprep.subr.mxu0 %v12586_v1  ;;  %5296 = vmatprep.subr.mxu1 %v12587_v7  ;;  %v12624_v1 = vld [vmem:[#allocation64_spill] sm:$0xff]  ;;  %v12625_v7 = vld [vmem:[#allocation65_spill] sm:$0xff] }
 0x7f6   :  { %5226 = vmatpush1.msra.mxu0 %v12588_v54  ;;  %5297 = vmatpush1.msra.mxu1 %v12589_v48  ;;  %v12626_v54 = vld [vmem:[#allocation66_spill] sm:$0xff]  ;;  %v12627_v48 = vld [vmem:[#allocation67_spill] sm:$0xff] }
 0x7f7   :  { %5227 = vmatprep.subr.mxu0 %v12590_v49  ;;  %5298 = vmatprep.subr.mxu1 %v12591_v3  ;;  %v12628_v49 = vld [vmem:[#allocation68_spill] sm:$0xff]  ;;  %v12629_v3 = vld [vmem:[#allocation69_spill] sm:$0xff] }
 0x7f8   :  { %5228 = vmatpush1.msra.mxu0 %v12592_v63  ;;  %5299 = vmatpush1.msra.mxu1 %v12593_v17  ;;  %v12630_v63 = vld [vmem:[#allocation70_spill] sm:$0xff]  ;;  %v12631_v17 = vld [vmem:[#allocation71_spill] sm:$0xff] }
 0x7f9   :  { %5229 = vmatprep.subr.mxu0 %v12594_v43  ;;  %5300 = vmatprep.subr.mxu1 %v12595_v15  ;;  %v12632_v43 = vld [vmem:[#allocation72_spill] sm:$0xff]  ;;  %v12633_v15 = vld [vmem:[#allocation73_spill] sm:$0xff] }
 0x7fa   :  { %5230 = vmatpush1.msra.mxu0 %v12596_v45  ;;  %5301 = vmatpush1.msra.mxu1 %v12597_v47  ;;  %v12634_v45 = vld [vmem:[#allocation74_spill] sm:$0xff]  ;;  %v12635_v47 = vld [vmem:[#allocation75_spill] sm:$0xff] }
 0x7fb   :  { %5231 = vmatprep.subr.mxu0 %v12598_v39  ;;  %5302 = vmatprep.subr.mxu1 %v12599_v10  ;;  %v12636_v39 = vld [vmem:[#allocation76_spill] sm:$0xff]  ;;  %v12637_v10 = vld [vmem:[#allocation77_spill] sm:$0xff] }
 0x7fc   :  { %5232 = vmatpush1.msra.mxu0 %v12600_v5  ;;  %5303 = vmatpush1.msra.mxu1 %v12601_v53  ;;  %v12638_v5 = vld [vmem:[#allocation78_spill] sm:$0xff]  ;;  %v12639_v53 = vld [vmem:[#allocation79_spill] sm:$0xff] }
 0x7fd   :  { %5233 = vmatprep.subr.mxu0 %v12602_v14  ;;  %5304 = vmatprep.subr.mxu1 %v12603_v16  ;;  %v12640_v14 = vld [vmem:[#allocation80_spill] sm:$0xff]  ;;  %v12641_v16 = vld [vmem:[#allocation81_spill] sm:$0xff] }
 0x7fe   :  { %5234 = vmatpush1.msra.mxu0 %v12604_v2  ;;  %5305 = vmatpush1.msra.mxu1 %v12605_v40  ;;  %v12642_v2 = vld [vmem:[#allocation82_spill] sm:$0xff]  ;;  %v12643_v40 = vld [vmem:[#allocation83_spill] sm:$0xff] }
 0x7ff   :  { %5235 = vmatprep.subr.mxu0 %v12606_v41  ;;  %5306 = vmatprep.subr.mxu1 %v12607_v11  ;;  %v12644_v41 = vld [vmem:[#allocation84_spill] sm:$0xff]  ;;  %v12645_v11 = vld [vmem:[#allocation85_spill] sm:$0xff] }
 0x800   :  { %5236 = vmatpush1.msra.mxu0 %v12608_v24  ;;  %5307 = vmatpush1.msra.mxu1 %v12609_v57  ;;  %v12646_v24 = vld [vmem:[#allocation86_spill] sm:$0xff]  ;;  %v12647_v57 = vld [vmem:[#allocation87_spill] sm:$0xff] }
 0x801   :  { %5237 = vmatprep.subr.mxu0 %v12610_v27  ;;  %5308 = vmatprep.subr.mxu1 %v12611_v28  ;;  %v4901_v28 = vld [vmem:[%s11009_s4] sm:$0xf] }
 0x802   :  { %5238 = vmatpush1.msra.mxu0 %v12612_v21  ;;  %5309 = vmatpush1.msra.mxu1 %v12613_v29 }
 0x803   :  { %5239 = vmatprep.subr.mxu0 %v12614_v32  ;;  %5310 = vmatprep.subr.mxu1 %v12615_v20  ;;  %v12648_v32 = vld [vmem:[#allocation10_spill] sm:$0xff] }
 0x804   :  { %5240 = vmatpush1.msra.mxu0 %v12616_v34  ;;  %5311 = vmatpush1.msra.mxu1 %v12617_v31  ;;  %v4906_v20 = vrot.slane %v4901_v28, %v12648_v32 }
 0x805   :  { %5241 = vmatprep.subr.mxu0 %v12618_v4  ;;  %5312 = vmatprep.subr.mxu1 %v12619_v36  ;;  %v12649_v36 = vld [vmem:[#allocation5_spill] sm:$0xff] }
 0x806   :  { %5242 = vmatpush1.msra.mxu0 %v12620_v55  ;;  %5313 = vmatpush1.msra.mxu1 %v12621_v18  ;;  %v4910_v55 = vrot.slane %v4901_v28, %v12649_v36 }
 0x807   :  { %5243 = vmatprep.subr.mxu0 %v12622_v13  ;;  %5314 = vmatprep.subr.mxu1 %v12623_v26 }
 0x808   :  { %5244 = vmatpush1.msra.mxu0 %v12624_v1  ;;  %5315 = vmatpush1.msra.mxu1 %v12625_v7 }
 0x809   :  { %5245 = vmatprep.subr.mxu0 %v12626_v54  ;;  %5316 = vmatprep.subr.mxu1 %v12627_v48 }
 0x80a   :  { %5246 = vmatpush1.msra.mxu0 %v12628_v49  ;;  %5317 = vmatpush1.msra.mxu1 %v12629_v3 }
 0x80b   :  { %5247 = vmatprep.subr.mxu0 %v12630_v63  ;;  %5318 = vmatprep.subr.mxu1 %v12631_v17  ;;  %v4918_v63 = vrot.slane %v4901_v28, %v7197_v44 }
 0x80c   :  { %5248 = vmatpush1.msra.mxu0 %v12632_v43  ;;  %5319 = vmatpush1.msra.mxu1 %v12633_v15  ;;  %v4914_v15 = vrot.slane %v4901_v28, %v7200_v51 }
 0x80d   :  { %5249 = vmatprep.subr.mxu0 %v12634_v45  ;;  %5320 = vmatprep.subr.mxu1 %v12635_v47 }
 0x80e   :  { %5250 = vmatpush1.msra.mxu0 %v12636_v39  ;;  %5321 = vmatpush1.msra.mxu1 %v12637_v10 }
 0x80f   :  { %5251 = vmatprep.subr.mxu0 %v12638_v5  ;;  %5322 = vmatprep.subr.mxu1 %v12639_v53 }
 0x810   :  { %5252 = vmatpush1.msra.mxu0 %v12640_v14  ;;  %5323 = vmatpush1.msra.mxu1 %v12641_v16  ;;  %v5733_v14 = vld [vmem:[%s11005_s0 + $0xe0] sm:$0xff] }
 0x811   :  { %5253 = vmatprep.subr.mxu0 %v12642_v2  ;;  %5324 = vmatprep.subr.mxu1 %v12643_v40  ;;  %v5734_v2 = vld [vmem:[%s11005_s0 + $0xe8] sm:$0xff] }
 0x812   :  { %5254 = vmatpush1.msra.mxu0 %v12644_v41  ;;  %5325 = vmatpush1.msra.mxu1 %v12645_v11 }
 0x813   :  { %5287 = vmatprep.mubr.f32.mxu0 %v11737_v19  ;;  %5358 = vmatprep.mubr.f32.mxu1 %v11737_v19 }
 0x814   :  { %5462 = vmatprep.subr.mxu0 %v12646_v24  ;;  %5533 = vmatprep.subr.mxu1 %v12647_v57 }
 0x86f   :  { %v4586_v27 = vpop.f32.mrf.mxu0  ;;  %v4657_v21 = vpop.f32.mrf.mxu1 }
 0x871   :  { %v4588_v29 = vpop.f32.mrf.mxu0  ;;  %v4659_v31 = vpop.f32.mrf.mxu1 }
 0x890   :  { %v4825_v34 = vpop.f32.mrf.mxu0  ;;  %v4896_v26 = vpop.f32.mrf.mxu1 }
 0x891   :  { %v4826_v4 = vadd.f32 %v4825_v34, %v4586_v27  ;;  %v4897_v43 = vadd.f32 %v4896_v26, %v4657_v21 }
 0x892   :  { %v4827_v18 = vpop.f32.mrf.mxu0  ;;  %v4898_v49 = vpop.f32.mrf.mxu1 }
 0x893   :  { %v4923_v13 = vadd.f32 %v4906_v20, %v4826_v4  ;;  %v4828_v1 = vadd.f32 %v4827_v18, %v4588_v29  ;;  %v4899_v3 = vadd.f32 %v4898_v49, %v4659_v31  ;;  %v4925_v39 = vadd.f32 %v4914_v15, %v4897_v43  ;;  %v12650_v15 = vld [vmem:[#allocation88_spill] sm:$0xff] }
 0x895   :  { %v5729_v7 = vmul.f32 -1.442695, %v4923_v13  ;;  %v4924_v54 = vadd.f32 %v4910_v55, %v4828_v1  ;;  %v4926_v17 = vadd.f32 %v4918_v63, %v4899_v3  ;;  %v5736_v13 = vld [vmem:[%s11005_s0 + $0xf8] sm:$0xff]  ;;  %v5735_v1 = vld [vmem:[%s11005_s0 + $0xf0] sm:$0xff] }
 0x897   :  { %5956 = vpow2.f32 %v5729_v7  ;;  %v5730_v48 = vmul.f32 -1.442695, %v4924_v54  ;;  %v5731_v45 = vmul.f32 -1.442695, %v4926_v17 }
 0x899   :  { %5958 = vpow2.f32 %v5730_v48 }
 0x89a   :  { %5960 = vpow2.f32 %v5731_v45  ;;  %v12651_v45 = vld [vmem:[#allocation89_spill] sm:$0xff] }
 0x8a4   :  { %v5957_v47 = vpop.eup %5956 }
 0x8a5   :  { %v4930_v10 = vadd.f32 1.0, %v5957_v47  ;;  %v12657_v47 = vld [vmem:[#allocation95_spill] sm:$0xff] }
 0x8a6   :  { %v5959_v5 = vpop.eup %5958 }
 0x8a7   :  { %5962 = vrcp.f32 %v4930_v10  ;;  %v4936_v53 = vadd.f32 1.0, %v5959_v5  ;;  %v5961_v40 = vpop.eup %5960  ;;  %v12660_v10 = vld [vmem:[#allocation98_spill] sm:$0xff] }
 0x8a8   :  { %5964 = vtanh.f32 %v4925_v39  ;;  %v4943_v29 = vadd.f32 1.0, %v5961_v40  ;;  %v12659_v39 = vld [vmem:[#allocation97_spill] sm:$0xff]  ;;  %v12662_v40 = vld [vmem:[#allocation100_spill] sm:$0xff] }
 0x8a9   :  { %5966 = vrcp.f32 %v4936_v53 }
 0x8b2   :  { %v5083_v16 = vpop.f32.mrf.mxu0  ;;  %v5154_v31 = vpop.f32.mrf.mxu1 }
 0x8b3   :  { %v5370_v41 = vadd.f32 %v5733_v14, %v5083_v16  ;;  %v5372_v54 = vadd.f32 %v5735_v1, %v5154_v31  ;;  %v12661_v14 = vld [vmem:[#allocation99_spill] sm:$0xff]  ;;  %v12678_v31 = vld [vmem:[#allocation116_spill] sm:$0xff]  ;;  %v12683_v1 = vld [vmem:[#allocation121_spill] sm:$0xff] }
 0x8b4   :  { %v5963_v11 = vpop.eup %5962  ;;  %v5085_v24 = vpop.f32.mrf.mxu0 }
 0x8b5   :  { %v5965_v57 = vpop.eup %5964  ;;  %v5737_v27 = vmul.f32 -1.442695, %v5370_v41  ;;  %v5371_v28 = vadd.f32 %v5734_v2, %v5085_v24  ;;  %v5156_v18 = vpop.f32.mrf.mxu1  ;;  %v12665_v24 = vld [vmem:[#allocation103_spill] sm:$0xff] }
 0x8b6   :  { %v5967_v21 = vpop.eup %5966  ;;  %v4947_v20 = vmul.f32 %v5965_v57, %v5963_v11  ;;  %v5373_v26 = vadd.f32 %v5736_v13, %v5156_v18  ;;  %v12663_v11 = vld [vmem:[#allocation101_spill] sm:$0xff]  ;;  %v12666_v57 = vld [vmem:[#allocation104_spill] sm:$0xff]  ;;  %v12680_v18 = vld [vmem:[#allocation118_spill] sm:$0xff] }
 0x8b7   :  { %v4946_v34 = vmul.f32 %v5967_v21, %v10373_v61  ;;  %5968 = vpow2.f32 %v5737_v27  ;;  %v5738_v4 = vmul.f32 -1.442695, %v5371_v28  ;;  %v12671_v27 = vld [vmem:[#allocation109_spill] sm:$0xff]  ;;  %v12673_v28 = vld [vmem:[#allocation111_spill] sm:$0xff]  ;;  %v12674_v21 = vld [vmem:[#allocation112_spill] sm:$0xff] }
 0x8b8   :  { %v5739_v61 = vmul.f32 -1.442695, %v5373_v26  ;;  %v12681_v13 = vld [vmem:[#allocation119_spill] sm:$0xff]  ;;  %v12682_v26 = vld [vmem:[#allocation120_spill] sm:$0xff] }
 0x8b9   :  { %5970 = vpow2.f32 %v5738_v4  ;;  %v10917_v55 = vadd.f32 %v4947_v20, %v4946_v34  ;;  %v12676_v20 = vld [vmem:[#allocation114_spill] sm:$0xff]  ;;  %v12677_v34 = vld [vmem:[#allocation115_spill] sm:$0xff]  ;;  %v12679_v4 = vld [vmem:[#allocation117_spill] sm:$0xff] }
 0x8ba   :  { %5972 = vrcp.f32 %v4943_v29  ;;  %v12675_v29 = vld [vmem:[#allocation113_spill] sm:$0xff] }
 0x8bb   :  { %5974 = vtanh.f32 %v10917_v55 }
 0x8bc   :  { %5976 = vpow2.f32 %v5739_v61  ;;  %v12684_v61 = vld [vmem:[#allocation122_spill] sm:$0xff] }
 0x8c4   :  { %v5969_v7 = vpop.eup %5968 }
 0x8c5   :  { %v5377_v48 = vadd.f32 1.0, %v5969_v7  ;;  %v12685_v7 = vld [vmem:[#allocation123_spill] sm:$0xff] }
 0x8c6   :  { %v5971_v49 = vpop.eup %5970 }
 0x8c7   :  { %v5973_v3 = vpop.eup %5972  ;;  %5978 = vrcp.f32 %v5377_v48  ;;  %v5383_v63 = vadd.f32 1.0, %v5971_v49  ;;  %v12687_v48 = vld [vmem:[#allocation125_spill] sm:$0xff]  ;;  %v12688_v49 = vld [vmem:[#allocation126_spill] sm:$0xff] }
 0x8c8   :  { %v5975_v17 = vpop.eup %5974  ;;  %5980 = vtanh.f32 %v5372_v54  ;;  %v12686_v54 = vld [vmem:[#allocation124_spill] sm:$0xff] }
 0x8c9   :  { %5982 = vrcp.f32 %v5383_v63  ;;  %v4950_v43 = vmul.f32 %v5975_v17, %v5973_v3  ;;  %v12689_v3 = vld [vmem:[#allocation127_spill] sm:$0xff]  ;;  %v12690_v17 = vld [vmem:[#allocation128_spill] sm:$0xff] }
 0x8cb   :  { %5732 = vst [vmem:[%s11010_s5 + $0x30] sm:$0xff] %v4950_v43  ;;  %5288 = vmatmul.mubr.f32.vlgmr.msra.gmra.mxu0 %v4950_v43  ;;  %5359 = vmatmul.mubr.f32.vlgmr.msra.gmra.mxu1 %v4950_v43 }
 0x8cc   :  { %5463 = vmatpush1.msra.mxu0 %v10385_v23  ;;  %5534 = vmatpush1.msra.mxu1 %v10390_v50  ;;  %v12652_v23 = vld [vmem:[#allocation90_spill] sm:$0xff]  ;;  %v12653_v50 = vld [vmem:[#allocation91_spill] sm:$0xff] }
 0x8cd   :  { %5464 = vmatprep.subr.mxu0 %v10395_v0  ;;  %5535 = vmatprep.subr.mxu1 %v10400_v35  ;;  %v12654_v0 = vld [vmem:[#allocation92_spill] sm:$0xff]  ;;  %v5977_v35 = vpop.eup %5976 }
 0x8ce   :  { %5465 = vmatpush1.msra.mxu0 %v10408_v37  ;;  %5536 = vmatpush1.msra.mxu1 %v10413_v9  ;;  %v12655_v37 = vld [vmem:[#allocation93_spill] sm:$0xff]  ;;  %v12656_v9 = vld [vmem:[#allocation94_spill] sm:$0xff]  ;;  %v5390_v53 = vadd.f32 1.0, %v5977_v35 }
 0x8cf   :  { %5466 = vmatprep.subr.mxu0 %v10420_v60  ;;  %5537 = vmatprep.subr.mxu1 %v10425_v56  ;;  %v12658_v56 = vld [vmem:[#allocation96_spill] sm:$0xff] }
 0x8d0   :  { %5467 = vmatpush1.msra.mxu0 %v10432_v6  ;;  %5538 = vmatpush1.msra.mxu1 %v12650_v15  ;;  %5984 = vrcp.f32 %v5390_v53 }
 0x8d1   :  { %5468 = vmatprep.subr.mxu0 %v12651_v45  ;;  %5539 = vmatprep.subr.mxu1 %v12652_v23 }
 0x8d2   :  { %5469 = vmatpush1.msra.mxu0 %v12653_v50  ;;  %5540 = vmatpush1.msra.mxu1 %v12654_v0 }
 0x8d3   :  { %5470 = vmatprep.subr.mxu0 %v12655_v37  ;;  %5541 = vmatprep.subr.mxu1 %v12656_v9 }
 0x8d4   :  { %v5979_v60 = vpop.eup %5978  ;;  %5471 = vmatpush1.msra.mxu0 %v12657_v47  ;;  %5542 = vmatpush1.msra.mxu1 %v12658_v56 }
 0x8d5   :  { %v5981_v6 = vpop.eup %5980  ;;  %5472 = vmatprep.subr.mxu0 %v12659_v39  ;;  %5543 = vmatprep.subr.mxu1 %v12660_v10 }
 0x8d6   :  { %v5983_v5 = vpop.eup %5982  ;;  %5473 = vmatpush1.msra.mxu0 %v10504_v52  ;;  %5544 = vmatpush1.msra.mxu1 %v12661_v14  ;;  %v5394_v16 = vmul.f32 %v5981_v6, %v5979_v60  ;;  %v12664_v52 = vld [vmem:[#allocation102_spill] sm:$0xff] }
 0x8d7   :  { %v5393_v2 = vmul.f32 %v5983_v5, %v10572_v30  ;;  %5474 = vmatprep.subr.mxu0 %v10516_v25  ;;  %5545 = vmatprep.subr.mxu1 %v10521_v42  ;;  %v12667_v30 = vld [vmem:[#allocation105_spill] sm:$0xff]  ;;  %v12668_v25 = vld [vmem:[#allocation106_spill] sm:$0xff]  ;;  %v12669_v42 = vld [vmem:[#allocation107_spill] sm:$0xff] }
 0x8d8   :  { %5475 = vmatpush1.msra.mxu0 %v10528_v8  ;;  %5546 = vmatpush1.msra.mxu1 %v12662_v40  ;;  %v12670_v8 = vld [vmem:[#allocation108_spill] sm:$0xff] }
 0x8d9   :  { %v5395_v41 = vadd.f32 %v5394_v16, %v5393_v2  ;;  %5476 = vmatprep.subr.mxu0 %v10540_v58  ;;  %5547 = vmatprep.subr.mxu1 %v12663_v11  ;;  %v12672_v58 = vld [vmem:[#allocation110_spill] sm:$0xff] }
 0x8da   :  { %5477 = vmatpush1.msra.mxu0 %v12664_v52  ;;  %5548 = vmatpush1.msra.mxu1 %v12665_v24 }
 0x8db   :  { %5478 = vmatprep.subr.mxu0 %v12666_v57  ;;  %5549 = vmatprep.subr.mxu1 %v12667_v30  ;;  %5986 = vtanh.f32 %v5395_v41 }
 0x8dc   :  { %5479 = vmatpush1.msra.mxu0 %v12668_v25  ;;  %5550 = vmatpush1.msra.mxu1 %v12669_v42 }
 0x8dd   :  { %5480 = vmatprep.subr.mxu0 %v12670_v8  ;;  %5551 = vmatprep.subr.mxu1 %v12671_v27  ;;  %v5985_v63 = vpop.eup %5984 }
 0x8de   :  { %5481 = vmatpush1.msra.mxu0 %v12672_v58  ;;  %5552 = vmatpush1.msra.mxu1 %v12673_v28 }
 0x8df   :  { %5482 = vmatprep.subr.mxu0 %v12674_v21  ;;  %5553 = vmatprep.subr.mxu1 %v12675_v29 }
 0x8e0   :  { %5483 = vmatpush1.msra.mxu0 %v12676_v20  ;;  %5554 = vmatpush1.msra.mxu1 %v12677_v34 }
 0x8e1   :  { %5484 = vmatprep.subr.mxu0 %v12678_v31  ;;  %5555 = vmatprep.subr.mxu1 %v12679_v4 }
 0x8e2   :  { %5485 = vmatpush1.msra.mxu0 %v12680_v18  ;;  %5556 = vmatpush1.msra.mxu1 %v12681_v13 }
 0x8e3   :  { %5486 = vmatprep.subr.mxu0 %v12682_v26  ;;  %5557 = vmatprep.subr.mxu1 %v12683_v1 }
 0x8e4   :  { %5487 = vmatpush1.msra.mxu0 %v12684_v61  ;;  %5558 = vmatpush1.msra.mxu1 %v12685_v7 }
 0x8e5   :  { %5488 = vmatprep.subr.mxu0 %v12686_v54  ;;  %5559 = vmatprep.subr.mxu1 %v12687_v48 }
 0x8e6   :  { %5489 = vmatpush1.msra.mxu0 %v12688_v49  ;;  %5560 = vmatpush1.msra.mxu1 %v12689_v3 }
 0x8e7   :  { %5490 = vmatprep.subr.mxu0 %v10712_v38  ;;  %5561 = vmatprep.subr.mxu1 %v12690_v17 }
 0x8e8   :  { %v5987_v43 = vpop.eup %5986  ;;  %5491 = vmatpush1.msra.mxu0 %v10724_v62  ;;  %5562 = vmatpush1.msra.mxu1 %v10729_v59  ;;  %v5604_v59 = vld [vmem:[%s11009_s4] sm:$0xf] }
 0x8e9   :  { %5492 = vmatprep.subr.mxu0 %v10736_v46  ;;  %5563 = vmatprep.subr.mxu1 %v10741_v22  ;;  %v5397_v15 = vmul.f32 %v5987_v43, %v5985_v63  ;;  %v5609_v22 = vrot.slane %v5604_v59, %v12648_v32  ;;  %v5613_v50 = vrot.slane %v5604_v59, %v12649_v36 }
 0x8ea   :  { %5493 = vmatpush1.msra.mxu0 %v10748_v33  ;;  %5526 = vmatprep.mubr.f32.mxu0 %v11737_v19  ;;  %v5621_v6 = vrot.slane %v5604_v59, %v7197_v44  ;;  %v5617_v10 = vrot.slane %v5604_v59, %v7200_v51 }
 0x8eb   :  { %5564 = vmatpush1.msra.mxu1 %v10755_v12  ;;  %5597 = vmatprep.mubr.f32.mxu1 %v11737_v19 }
 0x8ec   :  { %5527 = vmatmul.mubr.f32.vlgmr.msra.gmra.mxu0 %v5397_v15  ;;  %5598 = vmatmul.mubr.f32.vlgmr.msra.gmra.mxu1 %v5397_v15 }
 0x98b   :  { %v5289_v38 = vpop.f32.mrf.mxu0  ;;  %v5360_v62 = vpop.f32.mrf.mxu1 }
 0x98d   :  { %v5291_v46 = vpop.f32.mrf.mxu0  ;;  %v5362_v23 = vpop.f32.mrf.mxu1 }
 0x9ac   :  { %v5528_v45 = vpop.f32.mrf.mxu0  ;;  %v5599_v35 = vpop.f32.mrf.mxu1 }
 0x9ad   :  { %v5529_v33 = vadd.f32 %v5528_v45, %v5289_v38  ;;  %v5600_v32 = vadd.f32 %v5599_v35, %v5360_v62 }
 0x9ae   :  { %v5530_v0 = vpop.f32.mrf.mxu0  ;;  %v5601_v47 = vpop.f32.mrf.mxu1 }
 0x9af   :  { %v5626_v12 = vadd.f32 %v5609_v22, %v5529_v33  ;;  %v5531_v19 = vadd.f32 %v5530_v0, %v5291_v46  ;;  %v5602_v56 = vadd.f32 %v5601_v47, %v5362_v23  ;;  %v5628_v36 = vadd.f32 %v5617_v10, %v5600_v32 }
 0x9b1   :  { %v5740_v37 = vmul.f32 -1.442695, %v5626_v12  ;;  %v5627_v9 = vadd.f32 %v5613_v50, %v5531_v19  ;;  %v5629_v39 = vadd.f32 %v5621_v6, %v5602_v56 }
 0x9b3   :  { %5988 = vpow2.f32 %v5740_v37  ;;  %v5741_v60 = vmul.f32 -1.442695, %v5627_v9  ;;  %v5742_v5 = vmul.f32 -1.442695, %v5629_v39 }
 0x9b5   :  { %5990 = vpow2.f32 %v5741_v60 }
 0x9b6   :  { %5992 = vpow2.f32 %v5742_v5 }
 0x9c0   :  { %v5989_v53 = vpop.eup %5988 }
 0x9c1   :  { %v5633_v14 = vadd.f32 1.0, %v5989_v53 }
 0x9c2   :  { %v5991_v16 = vpop.eup %5990 }
 0x9c3   :  { %5994 = vrcp.f32 %v5633_v14  ;;  %v5639_v2 = vadd.f32 1.0, %v5991_v16  ;;  %v5993_v40 = vpop.eup %5992 }
 0x9c4   :  { %5996 = vtanh.f32 %v5628_v36  ;;  %v5646_v24 = vadd.f32 1.0, %v5993_v40 }
 0x9c5   :  { %5998 = vrcp.f32 %v5639_v2 }
 0x9c6   :  { %6000 = vrcp.f32 %v5646_v24 }
 0x9d0   :  { %v5995_v41 = vpop.eup %5994 }
 0x9d1   :  { %v5997_v11 = vpop.eup %5996 }
 0x9d2   :  { %v5999_v52 = vpop.eup %5998  ;;  %v5650_v44 = vmul.f32 %v5997_v11, %v5995_v41 }
 0x9d3   :  { %v5649_v57 = vmul.f32 %v5999_v52, %v10917_v55  ;;  %v6001_v51 = vpop.eup %6000 }
 0x9d5   :  { %v5651_v30 = vadd.f32 %v5650_v44, %v5649_v57 }
 0x9d7   :  { %6002 = vtanh.f32 %v5651_v30 }
 0x9e4   :  { %v6003_v25 = vpop.eup %6002 }
 0x9e5   :  { %v5653_v42 = vmul.f32 %v6003_v25, %v6001_v51 }
 0x9e7   :  { %5743 = vst [vmem:[%s11010_s5 + $0x38] sm:$0xff] %v5653_v42 }
 0x9e8   :  { %5660 = vsyncpa [#allocation3], 1 }

</bundles_post_ra>
